<compile_context>
chip_gen: v7x
topology: tpu7x:2x2x1
jax: 0.10.0
libtpu: 0.0.40
codegen_flags: <defaults>
</compile_context>

<pallas_src>
import math
import functools

import jax
import jax.numpy as jnp
from jax.experimental import pallas as pl
from jax.experimental.pallas import tpu as pltpu


_INV_SQRT2 = 0.7071067811865476


def _erf(x):
    # Abramowitz & Stegun 7.1.26 (max abs err ~1.5e-7).
    a1, a2, a3, a4, a5 = (0.254829592, -0.284496736, 1.421413741,
                          -1.453152027, 1.061405429)
    p = 0.3275911
    sgn = jnp.where(x < 0.0, -1.0, 1.0)
    ax = jnp.abs(x)
    t = pl.reciprocal(1.0 + p * ax, approx=True)
    poly = ((((a5 * t + a4) * t + a3) * t + a2) * t + a1) * t
    return sgn * (1.0 - poly * jnp.exp(-ax * ax))


def _gelu(x):
    return 0.5 * x * (1.0 + _erf(x * _INV_SQRT2))


def _sigmoid(x):
    return pl.reciprocal(1.0 + jnp.exp(-x), approx=True)


def _layernorm(x, gamma, beta, eps=1e-5):
    mu = jnp.mean(x, axis=-1, keepdims=True)
    d = x - mu
    var = jnp.mean(d * d, axis=-1, keepdims=True)
    return d * jax.lax.rsqrt(var + eps) * gamma + beta


def _dot(a, b):
    return jnp.dot(a, b, preferred_element_type=jnp.float32)


def _dot_nt(a, b):
    # a @ b.T (contract last dims) without an explicit transpose.
    return jax.lax.dot_general(a, b, (((1,), (1,)), ((), ())),
                               preferred_element_type=jnp.float32)


def _softmax_lastdim(s):
    m = jnp.max(s, axis=-1, keepdims=True)
    e = jnp.exp(s - m)
    return e * pl.reciprocal(jnp.sum(e, axis=-1, keepdims=True), approx=True)


# ----------------------------------------------------------------------------
# Single fused kernel: grid = (max_steps,), carried state in scratch.
# ----------------------------------------------------------------------------
def _reasoner_kernel(
        x_ref,
        wqkv_ref, bqkv_ref, wo_ref, bo_ref,
        ln1g_ref, ln1b_ref, w1_ref, b1_ref, w2_ref, b2_ref,
        ln2g_ref, ln2b_ref,
        bilw_ref, bilb_ref, scw1_ref, scb1_ref, scw2t_ref, scb2_ref,
        gwi_ref, gwh_ref, gbi_ref, gbh_ref,
        wc1_ref, bc1_ref, wc2t_ref, bc2_ref,
        tvw1_ref, tvb1_ref, tvw2_ref, tvb2_ref,
        outw_ref, outb_ref,
        stepx_ref, contra_ref, probs_ref, truth_ref, final_ref, nsteps_ref,
        xstate_ref, hstate_ref, active_ref,
        *, num_layers, num_heads, head_dim, batch, seq_len, hidden):
    B, S, H = batch, seq_len, hidden
    BS = B * S
    step = pl.program_id(0)
    scale = 1.0 / math.sqrt(head_dim)

    # --- step 0: load input into the carried state, reset GRU / active flag --
    @pl.when(step == 0)
    def _init():
        xstate_ref[...] = x_ref[...].reshape(BS, H)
        hstate_ref[...] = jnp.zeros_like(hstate_ref)
        active_ref[0] = jnp.int32(1)

    # --- one reasoning step, skipped entirely once the break fired ----------
    @pl.when(active_ref[0] == 1)
    def _reasoning_step():
        xf = xstate_ref[...]                                  # [BS, H]

        # SymbolicReasoningLayer stack (MHA + FFN, residual + LayerNorm).
        for l in range(num_layers):
            qkv = _dot(xf, wqkv_ref[l]) + bqkv_ref[l]          # [BS, 3H]
            wo_l = wo_ref[l]                                   # [H, H]
            attn_rows = []
            for b in range(B):
                r0 = b * S
                acc = None
                for h in range(num_heads):
                    lo = h * head_dim
                    qh = qkv[r0:r0 + S, lo:lo + head_dim]
                    kh = qkv[r0:r0 + S, H + lo:H + lo + head_dim]
                    vh = qkv[r0:r0 + S, 2 * H + lo:2 * H + lo + head_dim]
                    p = _softmax_lastdim(_dot_nt(qh, kh) * scale)   # [S, S]
                    # Fold the out-projection per head (no lane concat).
                    contrib = _dot(_dot(p, vh), wo_l[lo:lo + head_dim, :])
                    acc = contrib if acc is None else acc + contrib
                attn_rows.append(acc)                          # [S, H]
            attn = jnp.concatenate(attn_rows, axis=0) + bo_ref[l]
            xf = _layernorm(xf + attn, ln1g_ref[l], ln1b_ref[l])
            hmid = _gelu(_dot(xf, w1_ref[l]) + b1_ref[l])
            ffn = _dot(hmid, w2_ref[l]) + b2_ref[l]
            xf = _layernorm(xf + ffn, ln2g_ref[l], ln2b_ref[l])

        xstate_ref[...] = xf
        stepx_ref[0] = xf.reshape(B, S, H)

        # ContradictionDetector: bilinear pairwise interactions + scorer.
        # t[(b,i), h*H + c] = sum_a x[b,i,a] * W_bil[h,a,c]
        t = _dot(xf, bilw_ref[...])                            # [BS, H*H]
        t3 = t.reshape(BS, H, H)                               # [(b,i), Hout, Hc]
        inter_rows = []
        for b in range(B):
            r0 = b * S
            xb = xf[r0:r0 + S, :]                              # [S, H]
            tb = t3[r0:r0 + S]                                 # [S_i, Hout, Hc]
            xb_bc = jnp.broadcast_to(xb[None, :, :], (S, S, H))  # [S_i, S_j, Hc]
            ib = jax.lax.dot_general(
                xb_bc, tb, (((2,), (2,)), ((0,), (0,))),
                preferred_element_type=jnp.float32)            # [S_i, S_j, Hout]
            inter_rows.append(ib.reshape(S * S, H))
        inter = jnp.concatenate(inter_rows, axis=0) + bilb_ref[...]   # [B*S*S, H]
        h1 = _gelu(_dot(inter, scw1_ref[...]) + scb1_ref[...])        # [B*S*S, H]
        # Last scorer Linear applied transposed -> lane-dense [1, B*S*S] row.
        logits_row = _dot_nt(scw2t_ref[...], h1) + scb2_ref[...]
        contra_ref[0] = _sigmoid(logits_row)

        # RecursiveReasoningController: mean-pool + GRUCell + continue head.
        pooled = jnp.concatenate(
            [jnp.mean(xf[b * S:(b + 1) * S, :], axis=0, keepdims=True)
             for b in range(B)], axis=0)                        # [B, H]
        hp = hstate_ref[...]                                    # [B, H]
        gi = _dot(pooled, gwi_ref[...]) + gbi_ref[...]           # [B, 3H] (r|z|n)
        gh = _dot(hp, gwh_ref[...]) + gbh_ref[...]               # [B, 3H]
        r = _sigmoid(gi[:, :H] + gh[:, :H])
        z = _sigmoid(gi[:, H:2 * H] + gh[:, H:2 * H])
        n = jnp.tanh(gi[:, 2 * H:] + r * gh[:, 2 * H:])
        hnew = (1.0 - z) * n + z * hp
        hstate_ref[...] = hnew
        c1 = _gelu(_dot(hnew, wc1_ref[...]) + bc1_ref[...])      # [B, H]
        prob_row = _sigmoid(_dot_nt(wc2t_ref[...], c1) + bc2_ref[...])  # [1, B]
        probs_ref[0] = prob_row

        # Early-stop bookkeeping (torch: break if mean(prob) < 0.5 and step>0;
        # the breaking step's outputs / states are kept).
        total = probs_ref[0, 0, 0]
        for b in range(1, B):
            total = total + probs_ref[0, 0, b]
        cont = jnp.logical_or(total * (1.0 / B) >= 0.5, step == 0)
        active_ref[0] = cont.astype(jnp.int32)
        nsteps_ref[...] = jnp.zeros((1, 1), jnp.int32) + (step + 1)

    # --- epilogue (last grid step): truth validator + output Linear ---------
    @pl.when(step == pl.num_programs(0) - 1)
    def _epilogue():
        xf = xstate_ref[...]                                    # frozen final hidden
        th = _gelu(_dot(xf, tvw1_ref[...]) + tvb1_ref[...])
        tl = _dot(th, tvw2_ref[...]) + tvb2_ref[...]            # [BS, 2]
        truth_ref[...] = _softmax_lastdim(tl).reshape(B, S, 2)
        final_ref[...] = (_dot(xf, outw_ref[...]) + outb_ref[...]).reshape(B, S, H)


def _make_forward(params, num_heads, num_layers, max_steps, B, S, H):
    I = params["w1"].shape[-1]
    L = num_layers
    hd = H // num_heads
    BSS = B * S * S

    kern = functools.partial(_reasoner_kernel, num_layers=L, num_heads=num_heads,
                             head_dim=hd, batch=B, seq_len=S, hidden=H)

    def cspec(shape):
        nd = len(shape)
        return pl.BlockSpec(shape, lambda *_: (0,) * nd)   # resident across steps

    in_specs = [
        cspec((B, S, H)),                                   # x (loaded once)
        cspec((L, H, 3 * H)), cspec((L, 1, 3 * H)),         # wqkv, bqkv
        cspec((L, H, H)), cspec((L, 1, H)),                 # wo, bo
        cspec((L, 1, H)), cspec((L, 1, H)),                 # ln1 gamma/beta
        cspec((L, H, I)), cspec((L, 1, I)),                 # ffn w1, b1
        cspec((L, I, H)), cspec((L, 1, H)),                 # ffn w2, b2
        cspec((L, 1, H)), cspec((L, 1, H)),                 # ln2 gamma/beta
        cspec((H, H * H)), cspec((1, H)),                   # bilinear flat W, bias
        cspec((H, H)), cspec((1, H)), cspec((1, H)), cspec((1, 1)),   # scorer
        cspec((H, 3 * H)), cspec((H, 3 * H)),               # GRU Wi, Wh
        cspec((1, 3 * H)), cspec((1, 3 * H)),               # GRU bi, bh
        cspec((H, H)), cspec((1, H)), cspec((1, H)), cspec((1, 1)),   # continue head
        cspec((H, H)), cspec((1, H)), cspec((H, 2)), cspec((1, 2)),   # truth validator
        cspec((H, H)), cspec((1, H)),                       # output layer
    ]
    out_specs = (
        pl.BlockSpec((1, B, S, H), lambda s: (s, 0, 0, 0)),   # per-step hidden
        pl.BlockSpec((1, 1, BSS), lambda s: (s, 0, 0)),       # per-step contra (lane-dense)
        pl.BlockSpec((1, 1, B), lambda s: (s, 0, 0)),         # per-step continue prob
        pl.BlockSpec((B, S, 2), lambda s: (0, 0, 0)),         # truth (last step)
        pl.BlockSpec((B, S, H), lambda s: (0, 0, 0)),         # final (last step)
        pl.BlockSpec((1, 1), lambda s: (0, 0)),               # executed-step count
    )
    out_shape = (
        jax.ShapeDtypeStruct((max_steps, B, S, H), jnp.float32),
        jax.ShapeDtypeStruct((max_steps, 1, BSS), jnp.float32),
        jax.ShapeDtypeStruct((max_steps, 1, B), jnp.float32),
        jax.ShapeDtypeStruct((B, S, 2), jnp.float32),
        jax.ShapeDtypeStruct((B, S, H), jnp.float32),
        jax.ShapeDtypeStruct((1, 1), jnp.int32),
    )
    scratch = [
        pltpu.VMEM((B * S, H), jnp.float32),   # carried hidden state
        pltpu.VMEM((B, H), jnp.float32),       # GRU reasoning state
        pltpu.SMEM((1,), jnp.int32),           # active flag
    ]
    call = pl.pallas_call(
        kern,
        out_shape=out_shape,
        grid_spec=pltpu.PrefetchScalarGridSpec(
            num_scalar_prefetch=0, grid=(max_steps,),
            in_specs=in_specs, out_specs=out_specs,
            scratch_shapes=scratch),
        # Sequential step axis (carried scratch) -> "arbitrary"; keep one TC.
        compiler_params=pltpu.CompilerParams(dimension_semantics=("arbitrary",)),
    )

    p = params

    def fwd(x):
        step_xs, contra_rows, prob_rows, truth, final, nsteps = call(
            x,
            p["wqkv"], p["bqkv"], p["wo"], p["bo"],
            p["ln1_g"], p["ln1_b"], p["w1"], p["b1"], p["w2"], p["b2"],
            p["ln2_g"], p["ln2_b"],
            p["bil_w_flat"], p["bil_b"],
            p["sc_w1"], p["sc_b1"], p["sc_w2_t"], p["sc_b2"],
            p["gru_wi"], p["gru_wh"], p["gru_bi"], p["gru_bh"],
            p["wc1"], p["bc1"], p["wc2_t"], p["bc2"],
            p["tv_w1"], p["tv_b1"], p["tv_w2"], p["tv_b2"],
            p["out_w"], p["out_b"])
        contras = contra_rows.reshape(max_steps, B, S, S)
        probs = jnp.transpose(prob_rows, (0, 2, 1))        # (steps, B, 1)
        return step_xs, contras, probs, truth, final, nsteps

    return jax.jit(fwd)


# ----------------------------------------------------------------------------
# Parameters (deterministic, synthetic)
# ----------------------------------------------------------------------------
def _init_params(key, H, I, num_layers):
    keys = iter(jax.random.split(key, 256))

    def nrm(shape, scale):
        return jax.random.normal(next(keys), shape, jnp.float32) * scale

    def lin(din, dout):     # (W^T [in,out], bias [1,out])
        return nrm((din, dout), 1.0 / math.sqrt(din)), nrm((1, dout), 0.02)

    wqkv, bqkv, wo, bo = [], [], [], []
    ln1g, ln1b, w1s, b1s, w2s, b2s, ln2g, ln2b = [], [], [], [], [], [], [], []
    for _ in range(num_layers):
        wq, bq = lin(H, H); wk, bk = lin(H, H); wv, bv = lin(H, H)
        wqkv.append(jnp.concatenate([wq, wk, wv], axis=1))
        bqkv.append(jnp.concatenate([bq, bk, bv], axis=1))
        w, b = lin(H, H); wo.append(w); bo.append(b)
        ln1g.append(jnp.ones((1, H), jnp.float32))
        ln1b.append(jnp.zeros((1, H), jnp.float32))
        w, b = lin(H, I); w1s.append(w); b1s.append(b)
        w, b = lin(I, H); w2s.append(w); b2s.append(b)
        ln2g.append(jnp.ones((1, H), jnp.float32))
        ln2b.append(jnp.zeros((1, H), jnp.float32))
    p = {
        "wqkv": jnp.stack(wqkv), "bqkv": jnp.stack(bqkv),
        "wo": jnp.stack(wo), "bo": jnp.stack(bo),
        "ln1_g": jnp.stack(ln1g), "ln1_b": jnp.stack(ln1b),
        "w1": jnp.stack(w1s), "b1": jnp.stack(b1s),
        "w2": jnp.stack(w2s), "b2": jnp.stack(b2s),
        "ln2_g": jnp.stack(ln2g), "ln2_b": jnp.stack(ln2b),
    }
    # ContradictionDetector: nn.Bilinear(H, H, H) + scorer (H->H, GELU, H->1)
    bil_w = nrm((H, H, H), 1.0 / H)                     # torch [out_h, in1, in2]
    p["bil_w_flat"] = jnp.transpose(bil_w, (1, 0, 2)).reshape(H, H * H)
    p["bil_b"] = nrm((1, H), 0.02)
    p["sc_w1"], p["sc_b1"] = lin(H, H)
    sc_w2, p["sc_b2"] = lin(H, 1)
    p["sc_w2_t"] = sc_w2.T                              # [1, H] for transposed apply
    # RecursiveReasoningController: GRUCell (gates r|z|n) + continue predictor
    wir, bir = lin(H, H); wiz, biz = lin(H, H); win, bin_ = lin(H, H)
    whr, bhr = lin(H, H); whz, bhz = lin(H, H); whn, bhn = lin(H, H)
    p["gru_wi"] = jnp.concatenate([wir, wiz, win], axis=1)
    p["gru_bi"] = jnp.concatenate([bir, biz, bin_], axis=1)
    p["gru_wh"] = jnp.concatenate([whr, whz, whn], axis=1)
    p["gru_bh"] = jnp.concatenate([bhr, bhz, bhn], axis=1)
    p["wc1"], p["bc1"] = lin(H, H)
    wc2, p["bc2"] = lin(H, 1)
    p["wc2_t"] = wc2.T                                  # [1, H]
    # Truth validator + output layer
    p["tv_w1"], p["tv_b1"] = lin(H, H)
    p["tv_w2"], p["tv_b2"] = lin(H, 2)
    p["out_w"], p["out_b"] = lin(H, H)
    return p


class LogicalReasonerPallas:
    """Pallas-TPU LogicalReasoner forward (dropout = eval-mode identity).

    Note: SymbolicReasoningLayer's operator_embeddings / operator_scorer never
    feed the returned outputs of LogicalReasoner.forward, so they are omitted.
    """

    def __init__(self, key, hidden_size=32, intermediate_size=64,
                 num_layers=2, num_attention_heads=4, max_reasoning_steps=3):
        assert hidden_size % num_attention_heads == 0
        self.hidden_size = hidden_size
        self.num_heads = num_attention_heads
        self.num_layers = num_layers
        self.max_steps = max_reasoning_steps
        self.params = _init_params(key, hidden_size, intermediate_size, num_layers)
        self._fwd_cache = {}

    def _get_forward(self, max_steps, B, S):
        sig = (max_steps, B, S)
        fn = self._fwd_cache.get(sig)
        if fn is None:
            fn = _make_forward(self.params, self.num_heads, self.num_layers,
                               max_steps, B, S, self.hidden_size)
            self._fwd_cache[sig] = fn
        return fn

    def __call__(self, hidden_states, attention_mask=None, reasoning_steps=None):
        if attention_mask is not None:
            # TODO(synk): attention_mask / key-padding / pairwise-mask path not implemented.
            raise NotImplementedError("attention_mask is not supported")
        B, S, H = hidden_states.shape
        assert H == self.hidden_size
        max_steps = reasoning_steps if reasoning_steps is not None else self.max_steps
        fwd = self._get_forward(max_steps, B, S)
        step_xs, contras, probs, truth, final, nsteps = fwd(hidden_states)
        n = int(nsteps[0, 0])   # single device->host sync for the whole forward
        outputs = {
            "step_hidden_states": [step_xs[i] for i in range(n)],
            "contradiction_scores": [contras[i] for i in range(n)],
            "continue_probs": [probs[i] for i in range(n)],
            "truth_evaluation": truth,
            "final_hidden_states": final,
        }
        return outputs


if __name__ == "__main__":
    root = jax.random.PRNGKey(0)
    k_param, k_x = jax.random.split(root)
    B, S, H, I = 2, 8, 32, 64
    model = LogicalReasonerPallas(k_param, hidden_size=H, intermediate_size=I,
                                  num_layers=2, num_attention_heads=4,
                                  max_reasoning_steps=3)
    x = jax.random.normal(k_x, (B, S, H), jnp.float32)
    out = model(x)
    jax.block_until_ready(out["final_hidden_states"])
    jax.block_until_ready(out["truth_evaluation"])
    jax.block_until_ready(out["contradiction_scores"][-1])
    assert out["final_hidden_states"].shape == (B, S, H)
    assert out["truth_evaluation"].shape == (B, S, 2)
    assert out["contradiction_scores"][-1].shape == (B, S, S)
    assert out["continue_probs"][-1].shape == (B, 1)
    assert out["step_hidden_states"][-1].shape == (B, S, H)
    assert 1 <= len(out["step_hidden_states"]) <= 3
    print("KERNEL_OK")
</pallas_src>

<mosaic_0001>
module attributes {stable_mosaic.version = 11 : i64} {
  func.func @_reasoner_kernel(%arg0: i32, %arg1: memref<2x8x32xf32, #tpu.memory_space<vmem>>, %arg2: memref<2x32x96xf32, #tpu.memory_space<vmem>>, %arg3: memref<2x1x96xf32, #tpu.memory_space<vmem>>, %arg4: memref<2x32x32xf32, #tpu.memory_space<vmem>>, %arg5: memref<2x1x32xf32, #tpu.memory_space<vmem>>, %arg6: memref<2x1x32xf32, #tpu.memory_space<vmem>>, %arg7: memref<2x1x32xf32, #tpu.memory_space<vmem>>, %arg8: memref<2x32x64xf32, #tpu.memory_space<vmem>>, %arg9: memref<2x1x64xf32, #tpu.memory_space<vmem>>, %arg10: memref<2x64x32xf32, #tpu.memory_space<vmem>>, %arg11: memref<2x1x32xf32, #tpu.memory_space<vmem>>, %arg12: memref<2x1x32xf32, #tpu.memory_space<vmem>>, %arg13: memref<2x1x32xf32, #tpu.memory_space<vmem>>, %arg14: memref<32x1024xf32, #tpu.memory_space<vmem>>, %arg15: memref<1x32xf32, #tpu.memory_space<vmem>>, %arg16: memref<32x32xf32, #tpu.memory_space<vmem>>, %arg17: memref<1x32xf32, #tpu.memory_space<vmem>>, %arg18: memref<1x32xf32, #tpu.memory_space<vmem>>, %arg19: memref<1x1xf32, #tpu.memory_space<vmem>>, %arg20: memref<32x96xf32, #tpu.memory_space<vmem>>, %arg21: memref<32x96xf32, #tpu.memory_space<vmem>>, %arg22: memref<1x96xf32, #tpu.memory_space<vmem>>, %arg23: memref<1x96xf32, #tpu.memory_space<vmem>>, %arg24: memref<32x32xf32, #tpu.memory_space<vmem>>, %arg25: memref<1x32xf32, #tpu.memory_space<vmem>>, %arg26: memref<1x32xf32, #tpu.memory_space<vmem>>, %arg27: memref<1x1xf32, #tpu.memory_space<vmem>>, %arg28: memref<32x32xf32, #tpu.memory_space<vmem>>, %arg29: memref<1x32xf32, #tpu.memory_space<vmem>>, %arg30: memref<32x2xf32, #tpu.memory_space<vmem>>, %arg31: memref<1x2xf32, #tpu.memory_space<vmem>>, %arg32: memref<32x32xf32, #tpu.memory_space<vmem>>, %arg33: memref<1x32xf32, #tpu.memory_space<vmem>>, %arg34: memref<1x2x8x32xf32, #tpu.memory_space<vmem>>, %arg35: memref<1x1x128xf32, #tpu.memory_space<vmem>>, %arg36: memref<1x1x2xf32, #tpu.memory_space<vmem>>, %arg37: memref<2x8x2xf32, #tpu.memory_space<vmem>>, %arg38: memref<2x8x32xf32, #tpu.memory_space<vmem>>, %arg39: memref<1x1xi32, #tpu.memory_space<vmem>>, %arg40: memref<16x32xf32, #tpu.memory_space<vmem>>, %arg41: memref<2x32xf32, #tpu.memory_space<vmem>>, %arg42: memref<1xi32, #tpu.memory_space<smem>>) attributes {dimension_semantics = [#tpu.dimension_semantics<arbitrary>], iteration_bounds = array<i64: 3>, scalar_prefetch = 0 : i64, scratch_operands = 3 : i64, tpu.core_type = #tpu.core_type<tc>, window_params = [{pipeline_mode = #tpu.pipeline_mode<synchronous>, transform_indices = @transform_0, window_bounds = array<i64: 2, 8, 32>}, {pipeline_mode = #tpu.pipeline_mode<synchronous>, transform_indices = @transform_1, window_bounds = array<i64: 2, 32, 96>}, {pipeline_mode = #tpu.pipeline_mode<synchronous>, transform_indices = @transform_2, window_bounds = array<i64: 2, 1, 96>}, {pipeline_mode = #tpu.pipeline_mode<synchronous>, transform_indices = @transform_3, window_bounds = array<i64: 2, 32, 32>}, {pipeline_mode = #tpu.pipeline_mode<synchronous>, transform_indices = @transform_4, window_bounds = array<i64: 2, 1, 32>}, {pipeline_mode = #tpu.pipeline_mode<synchronous>, transform_indices = @transform_5, window_bounds = array<i64: 2, 1, 32>}, {pipeline_mode = #tpu.pipeline_mode<synchronous>, transform_indices = @transform_6, window_bounds = array<i64: 2, 1, 32>}, {pipeline_mode = #tpu.pipeline_mode<synchronous>, transform_indices = @transform_7, window_bounds = array<i64: 2, 32, 64>}, {pipeline_mode = #tpu.pipeline_mode<synchronous>, transform_indices = @transform_8, window_bounds = array<i64: 2, 1, 64>}, {pipeline_mode = #tpu.pipeline_mode<synchronous>, transform_indices = @transform_9, window_bounds = array<i64: 2, 64, 32>}, {pipeline_mode = #tpu.pipeline_mode<synchronous>, transform_indices = @transform_10, window_bounds = array<i64: 2, 1, 32>}, {pipeline_mode = #tpu.pipeline_mode<synchronous>, transform_indices = @transform_11, window_bounds = array<i64: 2, 1, 32>}, {pipeline_mode = #tpu.pipeline_mode<synchronous>, transform_indices = @transform_12, window_bounds = array<i64: 2, 1, 32>}, {pipeline_mode = #tpu.pipeline_mode<synchronous>, transform_indices = @transform_13, window_bounds = array<i64: 32, 1024>}, {pipeline_mode = #tpu.pipeline_mode<synchronous>, transform_indices = @transform_14, window_bounds = array<i64: 1, 32>}, {pipeline_mode = #tpu.pipeline_mode<synchronous>, transform_indices = @transform_15, window_bounds = array<i64: 32, 32>}, {pipeline_mode = #tpu.pipeline_mode<synchronous>, transform_indices = @transform_16, window_bounds = array<i64: 1, 32>}, {pipeline_mode = #tpu.pipeline_mode<synchronous>, transform_indices = @transform_17, window_bounds = array<i64: 1, 32>}, {pipeline_mode = #tpu.pipeline_mode<synchronous>, transform_indices = @transform_18, window_bounds = array<i64: 1, 1>}, {pipeline_mode = #tpu.pipeline_mode<synchronous>, transform_indices = @transform_19, window_bounds = array<i64: 32, 96>}, {pipeline_mode = #tpu.pipeline_mode<synchronous>, transform_indices = @transform_20, window_bounds = array<i64: 32, 96>}, {pipeline_mode = #tpu.pipeline_mode<synchronous>, transform_indices = @transform_21, window_bounds = array<i64: 1, 96>}, {pipeline_mode = #tpu.pipeline_mode<synchronous>, transform_indices = @transform_22, window_bounds = array<i64: 1, 96>}, {pipeline_mode = #tpu.pipeline_mode<synchronous>, transform_indices = @transform_23, window_bounds = array<i64: 32, 32>}, {pipeline_mode = #tpu.pipeline_mode<synchronous>, transform_indices = @transform_24, window_bounds = array<i64: 1, 32>}, {pipeline_mode = #tpu.pipeline_mode<synchronous>, transform_indices = @transform_25, window_bounds = array<i64: 1, 32>}, {pipeline_mode = #tpu.pipeline_mode<synchronous>, transform_indices = @transform_26, window_bounds = array<i64: 1, 1>}, {pipeline_mode = #tpu.pipeline_mode<synchronous>, transform_indices = @transform_27, window_bounds = array<i64: 32, 32>}, {pipeline_mode = #tpu.pipeline_mode<synchronous>, transform_indices = @transform_28, window_bounds = array<i64: 1, 32>}, {pipeline_mode = #tpu.pipeline_mode<synchronous>, transform_indices = @transform_29, window_bounds = array<i64: 32, 2>}, {pipeline_mode = #tpu.pipeline_mode<synchronous>, transform_indices = @transform_30, window_bounds = array<i64: 1, 2>}, {pipeline_mode = #tpu.pipeline_mode<synchronous>, transform_indices = @transform_31, window_bounds = array<i64: 32, 32>}, {pipeline_mode = #tpu.pipeline_mode<synchronous>, transform_indices = @transform_32, window_bounds = array<i64: 1, 32>}, {transform_indices = @transform_33, window_bounds = array<i64: 1, 2, 8, 32>}, {transform_indices = @transform_34, window_bounds = array<i64: 1, 1, 128>}, {transform_indices = @transform_35, window_bounds = array<i64: 1, 1, 2>}, {pipeline_mode = #tpu.pipeline_mode<synchronous>, transform_indices = @transform_36, window_bounds = array<i64: 2, 8, 2>}, {pipeline_mode = #tpu.pipeline_mode<synchronous>, transform_indices = @transform_37, window_bounds = array<i64: 2, 8, 32>}, {pipeline_mode = #tpu.pipeline_mode<synchronous>, transform_indices = @transform_38, window_bounds = array<i64: 1, 1>}]} {
    %c0_i32 = arith.constant 0 : i32
    %0 = arith.cmpi eq, %arg0, %c0_i32 : i32
    %1 = arith.extui %0 : i1 to i32
    %c0_i32_0 = arith.constant 0 : i32
    %2 = arith.cmpi ne, %1, %c0_i32_0 : i32
    scf.if %2 {
      %c0_3 = arith.constant 0 : index
      %c0_4 = arith.constant 0 : index
      %c0_5 = arith.constant 0 : index
      %10 = vector.load %arg1[%c0_3, %c0_4, %c0_5] : memref<2x8x32xf32, #tpu.memory_space<vmem>>, vector<2x8x32xf32>
      %11 = vector.shape_cast %10 : vector<2x8x32xf32> to vector<16x32xf32>
      %c0_6 = arith.constant 0 : index
      %c0_7 = arith.constant 0 : index
      %12 = vector.load %arg40[%c0_6, %c0_7] : memref<16x32xf32, #tpu.memory_space<vmem>>, vector<16x32xf32>
      tpu.vector_store %arg40[%c0_6, %c0_7], %11 {strides = array<i32>} : memref<16x32xf32, #tpu.memory_space<vmem>>, vector<16x32xf32>,
      %cst = arith.constant 0.000000e+00 : f32
      %13 = vector.broadcast %cst : f32 to vector<2x32xf32>
      %c0_8 = arith.constant 0 : index
      %c0_9 = arith.constant 0 : index
      %14 = vector.load %arg41[%c0_8, %c0_9] : memref<2x32xf32, #tpu.memory_space<vmem>>, vector<2x32xf32>
      tpu.vector_store %arg41[%c0_8, %c0_9], %13 {strides = array<i32>} : memref<2x32xf32, #tpu.memory_space<vmem>>, vector<2x32xf32>,
      %c1_i32_10 = arith.constant 1 : i32
      %c0_11 = arith.constant 0 : index
      %15 = memref.load %arg42[%c0_11] : memref<1xi32, #tpu.memory_space<smem>>
      memref.store %c1_i32_10, %arg42[%c0_11] : memref<1xi32, #tpu.memory_space<smem>>
    } else {
    }
    %c0 = arith.constant 0 : index
    %3 = memref.load %arg42[%c0] : memref<1xi32, #tpu.memory_space<smem>>
    %c1_i32 = arith.constant 1 : i32
    %4 = arith.cmpi eq, %3, %c1_i32 : i32
    %5 = arith.extui %4 : i1 to i32
    %c0_i32_1 = arith.constant 0 : i32
    %6 = arith.cmpi ne, %5, %c0_i32_1 : i32
    scf.if %6 {
      %c0_3 = arith.constant 0 : index
      %c0_4 = arith.constant 0 : index
      %10 = vector.load %arg40[%c0_3, %c0_4] : memref<16x32xf32, #tpu.memory_space<vmem>>, vector<16x32xf32>
      %c0_5 = arith.constant 0 : index
      %c0_6 = arith.constant 0 : index
      %c0_7 = arith.constant 0 : index
      %11 = vector.load %arg2[%c0_5, %c0_6, %c0_7] : memref<2x32x96xf32, #tpu.memory_space<vmem>>, vector<1x32x96xf32>
      %12 = vector.shape_cast %11 : vector<1x32x96xf32> to vector<32x96xf32>
      %cst = arith.constant dense<0.000000e+00> : vector<16x96xf32>
      %13 = tpu.matmul %10, %12, %cst {dimension_numbers = #tpu.dot_dimension_numbers<[1], [0], [0], [1], [0, 0, 1, 1], [], []>} : vector<16x32xf32>, vector<32x96xf32>, vector<16x96xf32> -> vector<16x96xf32>
      %c0_8 = arith.constant 0 : index
      %c0_9 = arith.constant 0 : index
      %c0_10 = arith.constant 0 : index
      %14 = vector.load %arg3[%c0_8, %c0_9, %c0_10] : memref<2x1x96xf32, #tpu.memory_space<vmem>>, vector<1x1x96xf32>
      %15 = vector.shape_cast %14 : vector<1x1x96xf32> to vector<1x96xf32>
      %16 = vector.broadcast %15 : vector<1x96xf32> to vector<16x96xf32>
      %17 = arith.addf %13, %16 : vector<16x96xf32>
      %c0_11 = arith.constant 0 : index
      %c0_12 = arith.constant 0 : index
      %c0_13 = arith.constant 0 : index
      %18 = vector.load %arg4[%c0_11, %c0_12, %c0_13] : memref<2x32x32xf32, #tpu.memory_space<vmem>>, vector<1x32x32xf32>
      %19 = vector.shape_cast %18 : vector<1x32x32xf32> to vector<32x32xf32>
      %20 = vector.extract_strided_slice %17 {offsets = [0, 0], sizes = [8, 8], strides = [1, 1]} : vector<16x96xf32> to vector<8x8xf32>
      %21 = vector.extract_strided_slice %17 {offsets = [0, 32], sizes = [8, 8], strides = [1, 1]} : vector<16x96xf32> to vector<8x8xf32>
      %22 = vector.extract_strided_slice %17 {offsets = [0, 64], sizes = [8, 8], strides = [1, 1]} : vector<16x96xf32> to vector<8x8xf32>
      %cst_14 = arith.constant dense<0.000000e+00> : vector<8x8xf32>
      %23 = tpu.matmul %20, %21, %cst_14 {dimension_numbers = #tpu.dot_dimension_numbers<[1], [1], [0], [0], [0, 0, 1, 0], [], []>} : vector<8x8xf32>, vector<8x8xf32>, vector<8x8xf32> -> vector<8x8xf32>
      %cst_15 = arith.constant 0.353553385 : f32
      %24 = vector.broadcast %cst_15 : f32 to vector<8x8xf32>
      %25 = arith.mulf %23, %24 : vector<8x8xf32>
      %cst_16 = arith.constant dense<0xFF800000> : vector<8xf32>
      %26 = vector.multi_reduction <maximumf>, %25, %cst_16 [1] : vector<8x8xf32> to vector<8xf32>
      %27 = vector.shape_cast %26 : vector<8xf32> to vector<8x1xf32>
      %28 = vector.broadcast %27 : vector<8x1xf32> to vector<8x8xf32>
      %29 = arith.subf %25, %28 : vector<8x8xf32>
      %30 = math.exp %29 : vector<8x8xf32>
      %cst_17 = arith.constant dense<0.000000e+00> : vector<8xf32>
      %31 = vector.multi_reduction <add>, %30, %cst_17 [1] : vector<8x8xf32> to vector<8xf32>
      %32 = vector.shape_cast %31 : vector<8xf32> to vector<8x1xf32>
      %33 = tpu.reciprocal %32 {approx = true} : vector<8x1xf32> -> vector<8x1xf32>
      %34 = vector.broadcast %33 : vector<8x1xf32> to vector<8x8xf32>
      %35 = arith.mulf %30, %34 : vector<8x8xf32>
      %cst_18 = arith.constant dense<0.000000e+00> : vector<8x8xf32>
      %36 = tpu.matmul %35, %22, %cst_18 {dimension_numbers = #tpu.dot_dimension_numbers<[1], [0], [0], [1], [0, 0, 1, 1], [], []>} : vector<8x8xf32>, vector<8x8xf32>, vector<8x8xf32> -> vector<8x8xf32>
      %37 = vector.extract_strided_slice %19 {offsets = [0, 0], sizes = [8, 32], strides = [1, 1]} : vector<32x32xf32> to vector<8x32xf32>
      %cst_19 = arith.constant dense<0.000000e+00> : vector<8x32xf32>
      %38 = tpu.matmul %36, %37, %cst_19 {dimension_numbers = #tpu.dot_dimension_numbers<[1], [0], [0], [1], [0, 0, 1, 1], [], []>} : vector<8x8xf32>, vector<8x32xf32>, vector<8x32xf32> -> vector<8x32xf32>
      %39 = vector.extract_strided_slice %17 {offsets = [0, 8], sizes = [8, 8], strides = [1, 1]} : vector<16x96xf32> to vector<8x8xf32>
      %40 = vector.extract_strided_slice %17 {offsets = [0, 40], sizes = [8, 8], strides = [1, 1]} : vector<16x96xf32> to vector<8x8xf32>
      %41 = vector.extract_strided_slice %17 {offsets = [0, 72], sizes = [8, 8], strides = [1, 1]} : vector<16x96xf32> to vector<8x8xf32>
      %cst_20 = arith.constant dense<0.000000e+00> : vector<8x8xf32>
      %42 = tpu.matmul %39, %40, %cst_20 {dimension_numbers = #tpu.dot_dimension_numbers<[1], [1], [0], [0], [0, 0, 1, 0], [], []>} : vector<8x8xf32>, vector<8x8xf32>, vector<8x8xf32> -> vector<8x8xf32>
      %cst_21 = arith.constant 0.353553385 : f32
      %43 = vector.broadcast %cst_21 : f32 to vector<8x8xf32>
      %44 = arith.mulf %42, %43 : vector<8x8xf32>
      %cst_22 = arith.constant dense<0xFF800000> : vector<8xf32>
      %45 = vector.multi_reduction <maximumf>, %44, %cst_22 [1] : vector<8x8xf32> to vector<8xf32>
      %46 = vector.shape_cast %45 : vector<8xf32> to vector<8x1xf32>
      %47 = vector.broadcast %46 : vector<8x1xf32> to vector<8x8xf32>
      %48 = arith.subf %44, %47 : vector<8x8xf32>
      %49 = math.exp %48 : vector<8x8xf32>
      %cst_23 = arith.constant dense<0.000000e+00> : vector<8xf32>
      %50 = vector.multi_reduction <add>, %49, %cst_23 [1] : vector<8x8xf32> to vector<8xf32>
      %51 = vector.shape_cast %50 : vector<8xf32> to vector<8x1xf32>
      %52 = tpu.reciprocal %51 {approx = true} : vector<8x1xf32> -> vector<8x1xf32>
      %53 = vector.broadcast %52 : vector<8x1xf32> to vector<8x8xf32>
      %54 = arith.mulf %49, %53 : vector<8x8xf32>
      %cst_24 = arith.constant dense<0.000000e+00> : vector<8x8xf32>
      %55 = tpu.matmul %54, %41, %cst_24 {dimension_numbers = #tpu.dot_dimension_numbers<[1], [0], [0], [1], [0, 0, 1, 1], [], []>} : vector<8x8xf32>, vector<8x8xf32>, vector<8x8xf32> -> vector<8x8xf32>
      %56 = vector.extract_strided_slice %19 {offsets = [8, 0], sizes = [8, 32], strides = [1, 1]} : vector<32x32xf32> to vector<8x32xf32>
      %cst_25 = arith.constant dense<0.000000e+00> : vector<8x32xf32>
      %57 = tpu.matmul %55, %56, %cst_25 {dimension_numbers = #tpu.dot_dimension_numbers<[1], [0], [0], [1], [0, 0, 1, 1], [], []>} : vector<8x8xf32>, vector<8x32xf32>, vector<8x32xf32> -> vector<8x32xf32>
      %58 = arith.addf %38, %57 : vector<8x32xf32>
      %59 = vector.extract_strided_slice %17 {offsets = [0, 16], sizes = [8, 8], strides = [1, 1]} : vector<16x96xf32> to vector<8x8xf32>
      %60 = vector.extract_strided_slice %17 {offsets = [0, 48], sizes = [8, 8], strides = [1, 1]} : vector<16x96xf32> to vector<8x8xf32>
      %61 = vector.extract_strided_slice %17 {offsets = [0, 80], sizes = [8, 8], strides = [1, 1]} : vector<16x96xf32> to vector<8x8xf32>
      %cst_26 = arith.constant dense<0.000000e+00> : vector<8x8xf32>
      %62 = tpu.matmul %59, %60, %cst_26 {dimension_numbers = #tpu.dot_dimension_numbers<[1], [1], [0], [0], [0, 0, 1, 0], [], []>} : vector<8x8xf32>, vector<8x8xf32>, vector<8x8xf32> -> vector<8x8xf32>
      %cst_27 = arith.constant 0.353553385 : f32
      %63 = vector.broadcast %cst_27 : f32 to vector<8x8xf32>
      %64 = arith.mulf %62, %63 : vector<8x8xf32>
      %cst_28 = arith.constant dense<0xFF800000> : vector<8xf32>
      %65 = vector.multi_reduction <maximumf>, %64, %cst_28 [1] : vector<8x8xf32> to vector<8xf32>
      %66 = vector.shape_cast %65 : vector<8xf32> to vector<8x1xf32>
      %67 = vector.broadcast %66 : vector<8x1xf32> to vector<8x8xf32>
      %68 = arith.subf %64, %67 : vector<8x8xf32>
      %69 = math.exp %68 : vector<8x8xf32>
      %cst_29 = arith.constant dense<0.000000e+00> : vector<8xf32>
      %70 = vector.multi_reduction <add>, %69, %cst_29 [1] : vector<8x8xf32> to vector<8xf32>
      %71 = vector.shape_cast %70 : vector<8xf32> to vector<8x1xf32>
      %72 = tpu.reciprocal %71 {approx = true} : vector<8x1xf32> -> vector<8x1xf32>
      %73 = vector.broadcast %72 : vector<8x1xf32> to vector<8x8xf32>
      %74 = arith.mulf %69, %73 : vector<8x8xf32>
      %cst_30 = arith.constant dense<0.000000e+00> : vector<8x8xf32>
      %75 = tpu.matmul %74, %61, %cst_30 {dimension_numbers = #tpu.dot_dimension_numbers<[1], [0], [0], [1], [0, 0, 1, 1], [], []>} : vector<8x8xf32>, vector<8x8xf32>, vector<8x8xf32> -> vector<8x8xf32>
      %76 = vector.extract_strided_slice %19 {offsets = [16, 0], sizes = [8, 32], strides = [1, 1]} : vector<32x32xf32> to vector<8x32xf32>
      %cst_31 = arith.constant dense<0.000000e+00> : vector<8x32xf32>
      %77 = tpu.matmul %75, %76, %cst_31 {dimension_numbers = #tpu.dot_dimension_numbers<[1], [0], [0], [1], [0, 0, 1, 1], [], []>} : vector<8x8xf32>, vector<8x32xf32>, vector<8x32xf32> -> vector<8x32xf32>
      %78 = arith.addf %58, %77 : vector<8x32xf32>
      %79 = vector.extract_strided_slice %17 {offsets = [0, 24], sizes = [8, 8], strides = [1, 1]} : vector<16x96xf32> to vector<8x8xf32>
      %80 = vector.extract_strided_slice %17 {offsets = [0, 56], sizes = [8, 8], strides = [1, 1]} : vector<16x96xf32> to vector<8x8xf32>
      %81 = vector.extract_strided_slice %17 {offsets = [0, 88], sizes = [8, 8], strides = [1, 1]} : vector<16x96xf32> to vector<8x8xf32>
      %cst_32 = arith.constant dense<0.000000e+00> : vector<8x8xf32>
      %82 = tpu.matmul %79, %80, %cst_32 {dimension_numbers = #tpu.dot_dimension_numbers<[1], [1], [0], [0], [0, 0, 1, 0], [], []>} : vector<8x8xf32>, vector<8x8xf32>, vector<8x8xf32> -> vector<8x8xf32>
      %cst_33 = arith.constant 0.353553385 : f32
      %83 = vector.broadcast %cst_33 : f32 to vector<8x8xf32>
      %84 = arith.mulf %82, %83 : vector<8x8xf32>
      %cst_34 = arith.constant dense<0xFF800000> : vector<8xf32>
      %85 = vector.multi_reduction <maximumf>, %84, %cst_34 [1] : vector<8x8xf32> to vector<8xf32>
      %86 = vector.shape_cast %85 : vector<8xf32> to vector<8x1xf32>
      %87 = vector.broadcast %86 : vector<8x1xf32> to vector<8x8xf32>
      %88 = arith.subf %84, %87 : vector<8x8xf32>
      %89 = math.exp %88 : vector<8x8xf32>
      %cst_35 = arith.constant dense<0.000000e+00> : vector<8xf32>
      %90 = vector.multi_reduction <add>, %89, %cst_35 [1] : vector<8x8xf32> to vector<8xf32>
      %91 = vector.shape_cast %90 : vector<8xf32> to vector<8x1xf32>
      %92 = tpu.reciprocal %91 {approx = true} : vector<8x1xf32> -> vector<8x1xf32>
      %93 = vector.broadcast %92 : vector<8x1xf32> to vector<8x8xf32>
      %94 = arith.mulf %89, %93 : vector<8x8xf32>
      %cst_36 = arith.constant dense<0.000000e+00> : vector<8x8xf32>
      %95 = tpu.matmul %94, %81, %cst_36 {dimension_numbers = #tpu.dot_dimension_numbers<[1], [0], [0], [1], [0, 0, 1, 1], [], []>} : vector<8x8xf32>, vector<8x8xf32>, vector<8x8xf32> -> vector<8x8xf32>
      %96 = vector.extract_strided_slice %19 {offsets = [24, 0], sizes = [8, 32], strides = [1, 1]} : vector<32x32xf32> to vector<8x32xf32>
      %cst_37 = arith.constant dense<0.000000e+00> : vector<8x32xf32>
      %97 = tpu.matmul %95, %96, %cst_37 {dimension_numbers = #tpu.dot_dimension_numbers<[1], [0], [0], [1], [0, 0, 1, 1], [], []>} : vector<8x8xf32>, vector<8x32xf32>, vector<8x32xf32> -> vector<8x32xf32>
      %98 = arith.addf %78, %97 : vector<8x32xf32>
      %99 = vector.extract_strided_slice %17 {offsets = [8, 0], sizes = [8, 8], strides = [1, 1]} : vector<16x96xf32> to vector<8x8xf32>
      %100 = vector.extract_strided_slice %17 {offsets = [8, 32], sizes = [8, 8], strides = [1, 1]} : vector<16x96xf32> to vector<8x8xf32>
      %101 = vector.extract_strided_slice %17 {offsets = [8, 64], sizes = [8, 8], strides = [1, 1]} : vector<16x96xf32> to vector<8x8xf32>
      %cst_38 = arith.constant dense<0.000000e+00> : vector<8x8xf32>
      %102 = tpu.matmul %99, %100, %cst_38 {dimension_numbers = #tpu.dot_dimension_numbers<[1], [1], [0], [0], [0, 0, 1, 0], [], []>} : vector<8x8xf32>, vector<8x8xf32>, vector<8x8xf32> -> vector<8x8xf32>
      %cst_39 = arith.constant 0.353553385 : f32
      %103 = vector.broadcast %cst_39 : f32 to vector<8x8xf32>
      %104 = arith.mulf %102, %103 : vector<8x8xf32>
      %cst_40 = arith.constant dense<0xFF800000> : vector<8xf32>
      %105 = vector.multi_reduction <maximumf>, %104, %cst_40 [1] : vector<8x8xf32> to vector<8xf32>
      %106 = vector.shape_cast %105 : vector<8xf32> to vector<8x1xf32>
      %107 = vector.broadcast %106 : vector<8x1xf32> to vector<8x8xf32>
      %108 = arith.subf %104, %107 : vector<8x8xf32>
      %109 = math.exp %108 : vector<8x8xf32>
      %cst_41 = arith.constant dense<0.000000e+00> : vector<8xf32>
      %110 = vector.multi_reduction <add>, %109, %cst_41 [1] : vector<8x8xf32> to vector<8xf32>
      %111 = vector.shape_cast %110 : vector<8xf32> to vector<8x1xf32>
      %112 = tpu.reciprocal %111 {approx = true} : vector<8x1xf32> -> vector<8x1xf32>
      %113 = vector.broadcast %112 : vector<8x1xf32> to vector<8x8xf32>
      %114 = arith.mulf %109, %113 : vector<8x8xf32>
      %cst_42 = arith.constant dense<0.000000e+00> : vector<8x8xf32>
      %115 = tpu.matmul %114, %101, %cst_42 {dimension_numbers = #tpu.dot_dimension_numbers<[1], [0], [0], [1], [0, 0, 1, 1], [], []>} : vector<8x8xf32>, vector<8x8xf32>, vector<8x8xf32> -> vector<8x8xf32>
      %116 = vector.extract_strided_slice %19 {offsets = [0, 0], sizes = [8, 32], strides = [1, 1]} : vector<32x32xf32> to vector<8x32xf32>
      %cst_43 = arith.constant dense<0.000000e+00> : vector<8x32xf32>
      %117 = tpu.matmul %115, %116, %cst_43 {dimension_numbers = #tpu.dot_dimension_numbers<[1], [0], [0], [1], [0, 0, 1, 1], [], []>} : vector<8x8xf32>, vector<8x32xf32>, vector<8x32xf32> -> vector<8x32xf32>
      %118 = vector.extract_strided_slice %17 {offsets = [8, 8], sizes = [8, 8], strides = [1, 1]} : vector<16x96xf32> to vector<8x8xf32>
      %119 = vector.extract_strided_slice %17 {offsets = [8, 40], sizes = [8, 8], strides = [1, 1]} : vector<16x96xf32> to vector<8x8xf32>
      %120 = vector.extract_strided_slice %17 {offsets = [8, 72], sizes = [8, 8], strides = [1, 1]} : vector<16x96xf32> to vector<8x8xf32>
      %cst_44 = arith.constant dense<0.000000e+00> : vector<8x8xf32>
      %121 = tpu.matmul %118, %119, %cst_44 {dimension_numbers = #tpu.dot_dimension_numbers<[1], [1], [0], [0], [0, 0, 1, 0], [], []>} : vector<8x8xf32>, vector<8x8xf32>, vector<8x8xf32> -> vector<8x8xf32>
      %cst_45 = arith.constant 0.353553385 : f32
      %122 = vector.broadcast %cst_45 : f32 to vector<8x8xf32>
      %123 = arith.mulf %121, %122 : vector<8x8xf32>
      %cst_46 = arith.constant dense<0xFF800000> : vector<8xf32>
      %124 = vector.multi_reduction <maximumf>, %123, %cst_46 [1] : vector<8x8xf32> to vector<8xf32>
      %125 = vector.shape_cast %124 : vector<8xf32> to vector<8x1xf32>
      %126 = vector.broadcast %125 : vector<8x1xf32> to vector<8x8xf32>
      %127 = arith.subf %123, %126 : vector<8x8xf32>
      %128 = math.exp %127 : vector<8x8xf32>
      %cst_47 = arith.constant dense<0.000000e+00> : vector<8xf32>
      %129 = vector.multi_reduction <add>, %128, %cst_47 [1] : vector<8x8xf32> to vector<8xf32>
      %130 = vector.shape_cast %129 : vector<8xf32> to vector<8x1xf32>
      %131 = tpu.reciprocal %130 {approx = true} : vector<8x1xf32> -> vector<8x1xf32>
      %132 = vector.broadcast %131 : vector<8x1xf32> to vector<8x8xf32>
      %133 = arith.mulf %128, %132 : vector<8x8xf32>
      %cst_48 = arith.constant dense<0.000000e+00> : vector<8x8xf32>
      %134 = tpu.matmul %133, %120, %cst_48 {dimension_numbers = #tpu.dot_dimension_numbers<[1], [0], [0], [1], [0, 0, 1, 1], [], []>} : vector<8x8xf32>, vector<8x8xf32>, vector<8x8xf32> -> vector<8x8xf32>
      %135 = vector.extract_strided_slice %19 {offsets = [8, 0], sizes = [8, 32], strides = [1, 1]} : vector<32x32xf32> to vector<8x32xf32>
      %cst_49 = arith.constant dense<0.000000e+00> : vector<8x32xf32>
      %136 = tpu.matmul %134, %135, %cst_49 {dimension_numbers = #tpu.dot_dimension_numbers<[1], [0], [0], [1], [0, 0, 1, 1], [], []>} : vector<8x8xf32>, vector<8x32xf32>, vector<8x32xf32> -> vector<8x32xf32>
      %137 = arith.addf %117, %136 : vector<8x32xf32>
      %138 = vector.extract_strided_slice %17 {offsets = [8, 16], sizes = [8, 8], strides = [1, 1]} : vector<16x96xf32> to vector<8x8xf32>
      %139 = vector.extract_strided_slice %17 {offsets = [8, 48], sizes = [8, 8], strides = [1, 1]} : vector<16x96xf32> to vector<8x8xf32>
      %140 = vector.extract_strided_slice %17 {offsets = [8, 80], sizes = [8, 8], strides = [1, 1]} : vector<16x96xf32> to vector<8x8xf32>
      %cst_50 = arith.constant dense<0.000000e+00> : vector<8x8xf32>
      %141 = tpu.matmul %138, %139, %cst_50 {dimension_numbers = #tpu.dot_dimension_numbers<[1], [1], [0], [0], [0, 0, 1, 0], [], []>} : vector<8x8xf32>, vector<8x8xf32>, vector<8x8xf32> -> vector<8x8xf32>
      %cst_51 = arith.constant 0.353553385 : f32
      %142 = vector.broadcast %cst_51 : f32 to vector<8x8xf32>
      %143 = arith.mulf %141, %142 : vector<8x8xf32>
      %cst_52 = arith.constant dense<0xFF800000> : vector<8xf32>
      %144 = vector.multi_reduction <maximumf>, %143, %cst_52 [1] : vector<8x8xf32> to vector<8xf32>
      %145 = vector.shape_cast %144 : vector<8xf32> to vector<8x1xf32>
      %146 = vector.broadcast %145 : vector<8x1xf32> to vector<8x8xf32>
      %147 = arith.subf %143, %146 : vector<8x8xf32>
      %148 = math.exp %147 : vector<8x8xf32>
      %cst_53 = arith.constant dense<0.000000e+00> : vector<8xf32>
      %149 = vector.multi_reduction <add>, %148, %cst_53 [1] : vector<8x8xf32> to vector<8xf32>
      %150 = vector.shape_cast %149 : vector<8xf32> to vector<8x1xf32>
      %151 = tpu.reciprocal %150 {approx = true} : vector<8x1xf32> -> vector<8x1xf32>
      %152 = vector.broadcast %151 : vector<8x1xf32> to vector<8x8xf32>
      %153 = arith.mulf %148, %152 : vector<8x8xf32>
      %cst_54 = arith.constant dense<0.000000e+00> : vector<8x8xf32>
      %154 = tpu.matmul %153, %140, %cst_54 {dimension_numbers = #tpu.dot_dimension_numbers<[1], [0], [0], [1], [0, 0, 1, 1], [], []>} : vector<8x8xf32>, vector<8x8xf32>, vector<8x8xf32> -> vector<8x8xf32>
      %155 = vector.extract_strided_slice %19 {offsets = [16, 0], sizes = [8, 32], strides = [1, 1]} : vector<32x32xf32> to vector<8x32xf32>
      %cst_55 = arith.constant dense<0.000000e+00> : vector<8x32xf32>
      %156 = tpu.matmul %154, %155, %cst_55 {dimension_numbers = #tpu.dot_dimension_numbers<[1], [0], [0], [1], [0, 0, 1, 1], [], []>} : vector<8x8xf32>, vector<8x32xf32>, vector<8x32xf32> -> vector<8x32xf32>
      %157 = arith.addf %137, %156 : vector<8x32xf32>
      %158 = vector.extract_strided_slice %17 {offsets = [8, 24], sizes = [8, 8], strides = [1, 1]} : vector<16x96xf32> to vector<8x8xf32>
      %159 = vector.extract_strided_slice %17 {offsets = [8, 56], sizes = [8, 8], strides = [1, 1]} : vector<16x96xf32> to vector<8x8xf32>
      %160 = vector.extract_strided_slice %17 {offsets = [8, 88], sizes = [8, 8], strides = [1, 1]} : vector<16x96xf32> to vector<8x8xf32>
      %cst_56 = arith.constant dense<0.000000e+00> : vector<8x8xf32>
      %161 = tpu.matmul %158, %159, %cst_56 {dimension_numbers = #tpu.dot_dimension_numbers<[1], [1], [0], [0], [0, 0, 1, 0], [], []>} : vector<8x8xf32>, vector<8x8xf32>, vector<8x8xf32> -> vector<8x8xf32>
      %cst_57 = arith.constant 0.353553385 : f32
      %162 = vector.broadcast %cst_57 : f32 to vector<8x8xf32>
      %163 = arith.mulf %161, %162 : vector<8x8xf32>
      %cst_58 = arith.constant dense<0xFF800000> : vector<8xf32>
      %164 = vector.multi_reduction <maximumf>, %163, %cst_58 [1] : vector<8x8xf32> to vector<8xf32>
      %165 = vector.shape_cast %164 : vector<8xf32> to vector<8x1xf32>
      %166 = vector.broadcast %165 : vector<8x1xf32> to vector<8x8xf32>
      %167 = arith.subf %163, %166 : vector<8x8xf32>
      %168 = math.exp %167 : vector<8x8xf32>
      %cst_59 = arith.constant dense<0.000000e+00> : vector<8xf32>
      %169 = vector.multi_reduction <add>, %168, %cst_59 [1] : vector<8x8xf32> to vector<8xf32>
      %170 = vector.shape_cast %169 : vector<8xf32> to vector<8x1xf32>
      %171 = tpu.reciprocal %170 {approx = true} : vector<8x1xf32> -> vector<8x1xf32>
      %172 = vector.broadcast %171 : vector<8x1xf32> to vector<8x8xf32>
      %173 = arith.mulf %168, %172 : vector<8x8xf32>
      %cst_60 = arith.constant dense<0.000000e+00> : vector<8x8xf32>
      %174 = tpu.matmul %173, %160, %cst_60 {dimension_numbers = #tpu.dot_dimension_numbers<[1], [0], [0], [1], [0, 0, 1, 1], [], []>} : vector<8x8xf32>, vector<8x8xf32>, vector<8x8xf32> -> vector<8x8xf32>
      %175 = vector.extract_strided_slice %19 {offsets = [24, 0], sizes = [8, 32], strides = [1, 1]} : vector<32x32xf32> to vector<8x32xf32>
      %cst_61 = arith.constant dense<0.000000e+00> : vector<8x32xf32>
      %176 = tpu.matmul %174, %175, %cst_61 {dimension_numbers = #tpu.dot_dimension_numbers<[1], [0], [0], [1], [0, 0, 1, 1], [], []>} : vector<8x8xf32>, vector<8x32xf32>, vector<8x32xf32> -> vector<8x32xf32>
      %177 = arith.addf %157, %176 : vector<8x32xf32>
      %178 = tpu.concatenate %98, %177 in 0 : vector<8x32xf32>, vector<8x32xf32> -> vector<16x32xf32>
      %c0_62 = arith.constant 0 : index
      %c0_63 = arith.constant 0 : index
      %c0_64 = arith.constant 0 : index
      %179 = vector.load %arg5[%c0_62, %c0_63, %c0_64] : memref<2x1x32xf32, #tpu.memory_space<vmem>>, vector<1x1x32xf32>
      %180 = vector.shape_cast %179 : vector<1x1x32xf32> to vector<1x32xf32>
      %181 = vector.broadcast %180 : vector<1x32xf32> to vector<16x32xf32>
      %182 = arith.addf %178, %181 : vector<16x32xf32>
      %183 = arith.addf %10, %182 : vector<16x32xf32>
      %c0_65 = arith.constant 0 : index
      %c0_66 = arith.constant 0 : index
      %c0_67 = arith.constant 0 : index
      %184 = vector.load %arg6[%c0_65, %c0_66, %c0_67] : memref<2x1x32xf32, #tpu.memory_space<vmem>>, vector<1x1x32xf32>
      %185 = vector.shape_cast %184 : vector<1x1x32xf32> to vector<1x32xf32>
      %c0_68 = arith.constant 0 : index
      %c0_69 = arith.constant 0 : index
      %c0_70 = arith.constant 0 : index
      %186 = vector.load %arg7[%c0_68, %c0_69, %c0_70] : memref<2x1x32xf32, #tpu.memory_space<vmem>>, vector<1x1x32xf32>
      %187 = vector.shape_cast %186 : vector<1x1x32xf32> to vector<1x32xf32>
      %cst_71 = arith.constant dense<0.000000e+00> : vector<16xf32>
      %188 = vector.multi_reduction <add>, %183, %cst_71 [1] : vector<16x32xf32> to vector<16xf32>
      %189 = vector.shape_cast %188 : vector<16xf32> to vector<16x1xf32>
      %cst_72 = arith.constant 3.200000e+01 : f32
      %190 = vector.broadcast %cst_72 : f32 to vector<16x1xf32>
      %191 = arith.divf %189, %190 : vector<16x1xf32>
      %192 = vector.broadcast %191 : vector<16x1xf32> to vector<16x32xf32>
      %193 = arith.subf %183, %192 : vector<16x32xf32>
      %194 = arith.mulf %193, %193 : vector<16x32xf32>
      %cst_73 = arith.constant dense<0.000000e+00> : vector<16xf32>
      %195 = vector.multi_reduction <add>, %194, %cst_73 [1] : vector<16x32xf32> to vector<16xf32>
      %196 = vector.shape_cast %195 : vector<16xf32> to vector<16x1xf32>
      %cst_74 = arith.constant 3.200000e+01 : f32
      %197 = vector.broadcast %cst_74 : f32 to vector<16x1xf32>
      %198 = arith.divf %196, %197 : vector<16x1xf32>
      %cst_75 = arith.constant 9.99999974E-6 : f32
      %199 = vector.broadcast %cst_75 : f32 to vector<16x1xf32>
      %200 = arith.addf %198, %199 : vector<16x1xf32>
      %201 = math.rsqrt %200 : vector<16x1xf32>
      %202 = vector.broadcast %201 : vector<16x1xf32> to vector<16x32xf32>
      %203 = arith.mulf %193, %202 : vector<16x32xf32>
      %204 = vector.broadcast %185 : vector<1x32xf32> to vector<16x32xf32>
      %205 = arith.mulf %203, %204 : vector<16x32xf32>
      %206 = vector.broadcast %187 : vector<1x32xf32> to vector<16x32xf32>
      %207 = arith.addf %205, %206 : vector<16x32xf32>
      %c0_76 = arith.constant 0 : index
      %c0_77 = arith.constant 0 : index
      %c0_78 = arith.constant 0 : index
      %208 = vector.load %arg8[%c0_76, %c0_77, %c0_78] : memref<2x32x64xf32, #tpu.memory_space<vmem>>, vector<1x32x64xf32>
      %209 = vector.shape_cast %208 : vector<1x32x64xf32> to vector<32x64xf32>
      %cst_79 = arith.constant dense<0.000000e+00> : vector<16x64xf32>
      %210 = tpu.matmul %207, %209, %cst_79 {dimension_numbers = #tpu.dot_dimension_numbers<[1], [0], [0], [1], [0, 0, 1, 1], [], []>} : vector<16x32xf32>, vector<32x64xf32>, vector<16x64xf32> -> vector<16x64xf32>
      %c0_80 = arith.constant 0 : index
      %c0_81 = arith.constant 0 : index
      %c0_82 = arith.constant 0 : index
      %211 = vector.load %arg9[%c0_80, %c0_81, %c0_82] : memref<2x1x64xf32, #tpu.memory_space<vmem>>, vector<1x1x64xf32>
      %212 = vector.shape_cast %211 : vector<1x1x64xf32> to vector<1x64xf32>
      %213 = vector.broadcast %212 : vector<1x64xf32> to vector<16x64xf32>
      %214 = arith.addf %210, %213 : vector<16x64xf32>
      %cst_83 = arith.constant 5.000000e-01 : f32
      %215 = vector.broadcast %cst_83 : f32 to vector<16x64xf32>
      %216 = arith.mulf %215, %214 : vector<16x64xf32>
      %cst_84 = arith.constant 0.707106769 : f32
      %217 = vector.broadcast %cst_84 : f32 to vector<16x64xf32>
      %218 = arith.mulf %214, %217 : vector<16x64xf32>
      %cst_85 = arith.constant 0.000000e+00 : f32
      %219 = vector.broadcast %cst_85 : f32 to vector<16x64xf32>
      %220 = arith.cmpf olt, %218, %219 : vector<16x64xf32>
      %cst_86 = arith.constant -1.000000e+00 : f32
      %cst_87 = arith.constant 1.000000e+00 : f32
      %221 = vector.broadcast %cst_86 : f32 to vector<16x64xf32>
      %222 = vector.broadcast %cst_87 : f32 to vector<16x64xf32>
      %223 = arith.select %220, %221, %222 : vector<16x64xi1>, vector<16x64xf32>
      %224 = math.absf %218 : vector<16x64xf32>
      %cst_88 = arith.constant 0.327591091 : f32
      %225 = vector.broadcast %cst_88 : f32 to vector<16x64xf32>
      %226 = arith.mulf %225, %224 : vector<16x64xf32>
      %cst_89 = arith.constant 1.000000e+00 : f32
      %227 = vector.broadcast %cst_89 : f32 to vector<16x64xf32>
      %228 = arith.addf %227, %226 : vector<16x64xf32>
      %229 = tpu.reciprocal %228 {approx = true} : vector<16x64xf32> -> vector<16x64xf32>
      %cst_90 = arith.constant 1.06140542 : f32
      %230 = vector.broadcast %cst_90 : f32 to vector<16x64xf32>
      %231 = arith.mulf %230, %229 : vector<16x64xf32>
      %cst_91 = arith.constant -1.45315206 : f32
      %232 = vector.broadcast %cst_91 : f32 to vector<16x64xf32>
      %233 = arith.addf %231, %232 : vector<16x64xf32>
      %234 = arith.mulf %233, %229 : vector<16x64xf32>
      %cst_92 = arith.constant 1.42141378 : f32
      %235 = vector.broadcast %cst_92 : f32 to vector<16x64xf32>
      %236 = arith.addf %234, %235 : vector<16x64xf32>
      %237 = arith.mulf %236, %229 : vector<16x64xf32>
      %cst_93 = arith.constant -0.284496725 : f32
      %238 = vector.broadcast %cst_93 : f32 to vector<16x64xf32>
      %239 = arith.addf %237, %238 : vector<16x64xf32>
      %240 = arith.mulf %239, %229 : vector<16x64xf32>
      %cst_94 = arith.constant 0.254829586 : f32
      %241 = vector.broadcast %cst_94 : f32 to vector<16x64xf32>
      %242 = arith.addf %240, %241 : vector<16x64xf32>
      %243 = arith.mulf %242, %229 : vector<16x64xf32>
      %cst_95 = arith.constant 0.000000e+00 : f32
      %244 = vector.broadcast %cst_95 : f32 to vector<16x64xf32>
      %245 = arith.subf %244, %224 : vector<16x64xf32>
      %246 = arith.mulf %245, %224 : vector<16x64xf32>
      %247 = math.exp %246 : vector<16x64xf32>
      %248 = arith.mulf %243, %247 : vector<16x64xf32>
      %cst_96 = arith.constant 1.000000e+00 : f32
      %249 = vector.broadcast %cst_96 : f32 to vector<16x64xf32>
      %250 = arith.subf %249, %248 : vector<16x64xf32>
      %251 = arith.mulf %223, %250 : vector<16x64xf32>
      %cst_97 = arith.constant 1.000000e+00 : f32
      %252 = vector.broadcast %cst_97 : f32 to vector<16x64xf32>
      %253 = arith.addf %252, %251 : vector<16x64xf32>
      %254 = arith.mulf %216, %253 : vector<16x64xf32>
      %c0_98 = arith.constant 0 : index
      %c0_99 = arith.constant 0 : index
      %c0_100 = arith.constant 0 : index
      %255 = vector.load %arg10[%c0_98, %c0_99, %c0_100] : memref<2x64x32xf32, #tpu.memory_space<vmem>>, vector<1x64x32xf32>
      %256 = vector.shape_cast %255 : vector<1x64x32xf32> to vector<64x32xf32>
      %cst_101 = arith.constant dense<0.000000e+00> : vector<16x32xf32>
      %257 = tpu.matmul %254, %256, %cst_101 {dimension_numbers = #tpu.dot_dimension_numbers<[1], [0], [0], [1], [0, 0, 1, 1], [], []>} : vector<16x64xf32>, vector<64x32xf32>, vector<16x32xf32> -> vector<16x32xf32>
      %c0_102 = arith.constant 0 : index
      %c0_103 = arith.constant 0 : index
      %c0_104 = arith.constant 0 : index
      %258 = vector.load %arg11[%c0_102, %c0_103, %c0_104] : memref<2x1x32xf32, #tpu.memory_space<vmem>>, vector<1x1x32xf32>
      %259 = vector.shape_cast %258 : vector<1x1x32xf32> to vector<1x32xf32>
      %260 = vector.broadcast %259 : vector<1x32xf32> to vector<16x32xf32>
      %261 = arith.addf %257, %260 : vector<16x32xf32>
      %262 = arith.addf %207, %261 : vector<16x32xf32>
      %c0_105 = arith.constant 0 : index
      %c0_106 = arith.constant 0 : index
      %c0_107 = arith.constant 0 : index
      %263 = vector.load %arg12[%c0_105, %c0_106, %c0_107] : memref<2x1x32xf32, #tpu.memory_space<vmem>>, vector<1x1x32xf32>
      %264 = vector.shape_cast %263 : vector<1x1x32xf32> to vector<1x32xf32>
      %c0_108 = arith.constant 0 : index
      %c0_109 = arith.constant 0 : index
      %c0_110 = arith.constant 0 : index
      %265 = vector.load %arg13[%c0_108, %c0_109, %c0_110] : memref<2x1x32xf32, #tpu.memory_space<vmem>>, vector<1x1x32xf32>
      %266 = vector.shape_cast %265 : vector<1x1x32xf32> to vector<1x32xf32>
      %cst_111 = arith.constant dense<0.000000e+00> : vector<16xf32>
      %267 = vector.multi_reduction <add>, %262, %cst_111 [1] : vector<16x32xf32> to vector<16xf32>
      %268 = vector.shape_cast %267 : vector<16xf32> to vector<16x1xf32>
      %cst_112 = arith.constant 3.200000e+01 : f32
      %269 = vector.broadcast %cst_112 : f32 to vector<16x1xf32>
      %270 = arith.divf %268, %269 : vector<16x1xf32>
      %271 = vector.broadcast %270 : vector<16x1xf32> to vector<16x32xf32>
      %272 = arith.subf %262, %271 : vector<16x32xf32>
      %273 = arith.mulf %272, %272 : vector<16x32xf32>
      %cst_113 = arith.constant dense<0.000000e+00> : vector<16xf32>
      %274 = vector.multi_reduction <add>, %273, %cst_113 [1] : vector<16x32xf32> to vector<16xf32>
      %275 = vector.shape_cast %274 : vector<16xf32> to vector<16x1xf32>
      %cst_114 = arith.constant 3.200000e+01 : f32
      %276 = vector.broadcast %cst_114 : f32 to vector<16x1xf32>
      %277 = arith.divf %275, %276 : vector<16x1xf32>
      %cst_115 = arith.constant 9.99999974E-6 : f32
      %278 = vector.broadcast %cst_115 : f32 to vector<16x1xf32>
      %279 = arith.addf %277, %278 : vector<16x1xf32>
      %280 = math.rsqrt %279 : vector<16x1xf32>
      %281 = vector.broadcast %280 : vector<16x1xf32> to vector<16x32xf32>
      %282 = arith.mulf %272, %281 : vector<16x32xf32>
      %283 = vector.broadcast %264 : vector<1x32xf32> to vector<16x32xf32>
      %284 = arith.mulf %282, %283 : vector<16x32xf32>
      %285 = vector.broadcast %266 : vector<1x32xf32> to vector<16x32xf32>
      %286 = arith.addf %284, %285 : vector<16x32xf32>
      %c1 = arith.constant 1 : index
      %c0_116 = arith.constant 0 : index
      %c0_117 = arith.constant 0 : index
      %287 = vector.load %arg2[%c1, %c0_116, %c0_117] : memref<2x32x96xf32, #tpu.memory_space<vmem>>, vector<1x32x96xf32>
      %288 = vector.shape_cast %287 : vector<1x32x96xf32> to vector<32x96xf32>
      %cst_118 = arith.constant dense<0.000000e+00> : vector<16x96xf32>
      %289 = tpu.matmul %286, %288, %cst_118 {dimension_numbers = #tpu.dot_dimension_numbers<[1], [0], [0], [1], [0, 0, 1, 1], [], []>} : vector<16x32xf32>, vector<32x96xf32>, vector<16x96xf32> -> vector<16x96xf32>
      %c1_119 = arith.constant 1 : index
      %c0_120 = arith.constant 0 : index
      %c0_121 = arith.constant 0 : index
      %290 = vector.load %arg3[%c1_119, %c0_120, %c0_121] : memref<2x1x96xf32, #tpu.memory_space<vmem>>, vector<1x1x96xf32>
      %291 = vector.shape_cast %290 : vector<1x1x96xf32> to vector<1x96xf32>
      %292 = vector.broadcast %291 : vector<1x96xf32> to vector<16x96xf32>
      %293 = arith.addf %289, %292 : vector<16x96xf32>
      %c1_122 = arith.constant 1 : index
      %c0_123 = arith.constant 0 : index
      %c0_124 = arith.constant 0 : index
      %294 = vector.load %arg4[%c1_122, %c0_123, %c0_124] : memref<2x32x32xf32, #tpu.memory_space<vmem>>, vector<1x32x32xf32>
      %295 = vector.shape_cast %294 : vector<1x32x32xf32> to vector<32x32xf32>
      %296 = vector.extract_strided_slice %293 {offsets = [0, 0], sizes = [8, 8], strides = [1, 1]} : vector<16x96xf32> to vector<8x8xf32>
      %297 = vector.extract_strided_slice %293 {offsets = [0, 32], sizes = [8, 8], strides = [1, 1]} : vector<16x96xf32> to vector<8x8xf32>
      %298 = vector.extract_strided_slice %293 {offsets = [0, 64], sizes = [8, 8], strides = [1, 1]} : vector<16x96xf32> to vector<8x8xf32>
      %cst_125 = arith.constant dense<0.000000e+00> : vector<8x8xf32>
      %299 = tpu.matmul %296, %297, %cst_125 {dimension_numbers = #tpu.dot_dimension_numbers<[1], [1], [0], [0], [0, 0, 1, 0], [], []>} : vector<8x8xf32>, vector<8x8xf32>, vector<8x8xf32> -> vector<8x8xf32>
      %cst_126 = arith.constant 0.353553385 : f32
      %300 = vector.broadcast %cst_126 : f32 to vector<8x8xf32>
      %301 = arith.mulf %299, %300 : vector<8x8xf32>
      %cst_127 = arith.constant dense<0xFF800000> : vector<8xf32>
      %302 = vector.multi_reduction <maximumf>, %301, %cst_127 [1] : vector<8x8xf32> to vector<8xf32>
      %303 = vector.shape_cast %302 : vector<8xf32> to vector<8x1xf32>
      %304 = vector.broadcast %303 : vector<8x1xf32> to vector<8x8xf32>
      %305 = arith.subf %301, %304 : vector<8x8xf32>
      %306 = math.exp %305 : vector<8x8xf32>
      %cst_128 = arith.constant dense<0.000000e+00> : vector<8xf32>
      %307 = vector.multi_reduction <add>, %306, %cst_128 [1] : vector<8x8xf32> to vector<8xf32>
      %308 = vector.shape_cast %307 : vector<8xf32> to vector<8x1xf32>
      %309 = tpu.reciprocal %308 {approx = true} : vector<8x1xf32> -> vector<8x1xf32>
      %310 = vector.broadcast %309 : vector<8x1xf32> to vector<8x8xf32>
      %311 = arith.mulf %306, %310 : vector<8x8xf32>
      %cst_129 = arith.constant dense<0.000000e+00> : vector<8x8xf32>
      %312 = tpu.matmul %311, %298, %cst_129 {dimension_numbers = #tpu.dot_dimension_numbers<[1], [0], [0], [1], [0, 0, 1, 1], [], []>} : vector<8x8xf32>, vector<8x8xf32>, vector<8x8xf32> -> vector<8x8xf32>
      %313 = vector.extract_strided_slice %295 {offsets = [0, 0], sizes = [8, 32], strides = [1, 1]} : vector<32x32xf32> to vector<8x32xf32>
      %cst_130 = arith.constant dense<0.000000e+00> : vector<8x32xf32>
      %314 = tpu.matmul %312, %313, %cst_130 {dimension_numbers = #tpu.dot_dimension_numbers<[1], [0], [0], [1], [0, 0, 1, 1], [], []>} : vector<8x8xf32>, vector<8x32xf32>, vector<8x32xf32> -> vector<8x32xf32>
      %315 = vector.extract_strided_slice %293 {offsets = [0, 8], sizes = [8, 8], strides = [1, 1]} : vector<16x96xf32> to vector<8x8xf32>
      %316 = vector.extract_strided_slice %293 {offsets = [0, 40], sizes = [8, 8], strides = [1, 1]} : vector<16x96xf32> to vector<8x8xf32>
      %317 = vector.extract_strided_slice %293 {offsets = [0, 72], sizes = [8, 8], strides = [1, 1]} : vector<16x96xf32> to vector<8x8xf32>
      %cst_131 = arith.constant dense<0.000000e+00> : vector<8x8xf32>
      %318 = tpu.matmul %315, %316, %cst_131 {dimension_numbers = #tpu.dot_dimension_numbers<[1], [1], [0], [0], [0, 0, 1, 0], [], []>} : vector<8x8xf32>, vector<8x8xf32>, vector<8x8xf32> -> vector<8x8xf32>
      %cst_132 = arith.constant 0.353553385 : f32
      %319 = vector.broadcast %cst_132 : f32 to vector<8x8xf32>
      %320 = arith.mulf %318, %319 : vector<8x8xf32>
      %cst_133 = arith.constant dense<0xFF800000> : vector<8xf32>
      %321 = vector.multi_reduction <maximumf>, %320, %cst_133 [1] : vector<8x8xf32> to vector<8xf32>
      %322 = vector.shape_cast %321 : vector<8xf32> to vector<8x1xf32>
      %323 = vector.broadcast %322 : vector<8x1xf32> to vector<8x8xf32>
      %324 = arith.subf %320, %323 : vector<8x8xf32>
      %325 = math.exp %324 : vector<8x8xf32>
      %cst_134 = arith.constant dense<0.000000e+00> : vector<8xf32>
      %326 = vector.multi_reduction <add>, %325, %cst_134 [1] : vector<8x8xf32> to vector<8xf32>
      %327 = vector.shape_cast %326 : vector<8xf32> to vector<8x1xf32>
      %328 = tpu.reciprocal %327 {approx = true} : vector<8x1xf32> -> vector<8x1xf32>
      %329 = vector.broadcast %328 : vector<8x1xf32> to vector<8x8xf32>
      %330 = arith.mulf %325, %329 : vector<8x8xf32>
      %cst_135 = arith.constant dense<0.000000e+00> : vector<8x8xf32>
      %331 = tpu.matmul %330, %317, %cst_135 {dimension_numbers = #tpu.dot_dimension_numbers<[1], [0], [0], [1], [0, 0, 1, 1], [], []>} : vector<8x8xf32>, vector<8x8xf32>, vector<8x8xf32> -> vector<8x8xf32>
      %332 = vector.extract_strided_slice %295 {offsets = [8, 0], sizes = [8, 32], strides = [1, 1]} : vector<32x32xf32> to vector<8x32xf32>
      %cst_136 = arith.constant dense<0.000000e+00> : vector<8x32xf32>
      %333 = tpu.matmul %331, %332, %cst_136 {dimension_numbers = #tpu.dot_dimension_numbers<[1], [0], [0], [1], [0, 0, 1, 1], [], []>} : vector<8x8xf32>, vector<8x32xf32>, vector<8x32xf32> -> vector<8x32xf32>
      %334 = arith.addf %314, %333 : vector<8x32xf32>
      %335 = vector.extract_strided_slice %293 {offsets = [0, 16], sizes = [8, 8], strides = [1, 1]} : vector<16x96xf32> to vector<8x8xf32>
      %336 = vector.extract_strided_slice %293 {offsets = [0, 48], sizes = [8, 8], strides = [1, 1]} : vector<16x96xf32> to vector<8x8xf32>
      %337 = vector.extract_strided_slice %293 {offsets = [0, 80], sizes = [8, 8], strides = [1, 1]} : vector<16x96xf32> to vector<8x8xf32>
      %cst_137 = arith.constant dense<0.000000e+00> : vector<8x8xf32>
      %338 = tpu.matmul %335, %336, %cst_137 {dimension_numbers = #tpu.dot_dimension_numbers<[1], [1], [0], [0], [0, 0, 1, 0], [], []>} : vector<8x8xf32>, vector<8x8xf32>, vector<8x8xf32> -> vector<8x8xf32>
      %cst_138 = arith.constant 0.353553385 : f32
      %339 = vector.broadcast %cst_138 : f32 to vector<8x8xf32>
      %340 = arith.mulf %338, %339 : vector<8x8xf32>
      %cst_139 = arith.constant dense<0xFF800000> : vector<8xf32>
      %341 = vector.multi_reduction <maximumf>, %340, %cst_139 [1] : vector<8x8xf32> to vector<8xf32>
      %342 = vector.shape_cast %341 : vector<8xf32> to vector<8x1xf32>
      %343 = vector.broadcast %342 : vector<8x1xf32> to vector<8x8xf32>
      %344 = arith.subf %340, %343 : vector<8x8xf32>
      %345 = math.exp %344 : vector<8x8xf32>
      %cst_140 = arith.constant dense<0.000000e+00> : vector<8xf32>
      %346 = vector.multi_reduction <add>, %345, %cst_140 [1] : vector<8x8xf32> to vector<8xf32>
      %347 = vector.shape_cast %346 : vector<8xf32> to vector<8x1xf32>
      %348 = tpu.reciprocal %347 {approx = true} : vector<8x1xf32> -> vector<8x1xf32>
      %349 = vector.broadcast %348 : vector<8x1xf32> to vector<8x8xf32>
      %350 = arith.mulf %345, %349 : vector<8x8xf32>
      %cst_141 = arith.constant dense<0.000000e+00> : vector<8x8xf32>
      %351 = tpu.matmul %350, %337, %cst_141 {dimension_numbers = #tpu.dot_dimension_numbers<[1], [0], [0], [1], [0, 0, 1, 1], [], []>} : vector<8x8xf32>, vector<8x8xf32>, vector<8x8xf32> -> vector<8x8xf32>
      %352 = vector.extract_strided_slice %295 {offsets = [16, 0], sizes = [8, 32], strides = [1, 1]} : vector<32x32xf32> to vector<8x32xf32>
      %cst_142 = arith.constant dense<0.000000e+00> : vector<8x32xf32>
      %353 = tpu.matmul %351, %352, %cst_142 {dimension_numbers = #tpu.dot_dimension_numbers<[1], [0], [0], [1], [0, 0, 1, 1], [], []>} : vector<8x8xf32>, vector<8x32xf32>, vector<8x32xf32> -> vector<8x32xf32>
      %354 = arith.addf %334, %353 : vector<8x32xf32>
      %355 = vector.extract_strided_slice %293 {offsets = [0, 24], sizes = [8, 8], strides = [1, 1]} : vector<16x96xf32> to vector<8x8xf32>
      %356 = vector.extract_strided_slice %293 {offsets = [0, 56], sizes = [8, 8], strides = [1, 1]} : vector<16x96xf32> to vector<8x8xf32>
      %357 = vector.extract_strided_slice %293 {offsets = [0, 88], sizes = [8, 8], strides = [1, 1]} : vector<16x96xf32> to vector<8x8xf32>
      %cst_143 = arith.constant dense<0.000000e+00> : vector<8x8xf32>
      %358 = tpu.matmul %355, %356, %cst_143 {dimension_numbers = #tpu.dot_dimension_numbers<[1], [1], [0], [0], [0, 0, 1, 0], [], []>} : vector<8x8xf32>, vector<8x8xf32>, vector<8x8xf32> -> vector<8x8xf32>
      %cst_144 = arith.constant 0.353553385 : f32
      %359 = vector.broadcast %cst_144 : f32 to vector<8x8xf32>
      %360 = arith.mulf %358, %359 : vector<8x8xf32>
      %cst_145 = arith.constant dense<0xFF800000> : vector<8xf32>
      %361 = vector.multi_reduction <maximumf>, %360, %cst_145 [1] : vector<8x8xf32> to vector<8xf32>
      %362 = vector.shape_cast %361 : vector<8xf32> to vector<8x1xf32>
      %363 = vector.broadcast %362 : vector<8x1xf32> to vector<8x8xf32>
      %364 = arith.subf %360, %363 : vector<8x8xf32>
      %365 = math.exp %364 : vector<8x8xf32>
      %cst_146 = arith.constant dense<0.000000e+00> : vector<8xf32>
      %366 = vector.multi_reduction <add>, %365, %cst_146 [1] : vector<8x8xf32> to vector<8xf32>
      %367 = vector.shape_cast %366 : vector<8xf32> to vector<8x1xf32>
      %368 = tpu.reciprocal %367 {approx = true} : vector<8x1xf32> -> vector<8x1xf32>
      %369 = vector.broadcast %368 : vector<8x1xf32> to vector<8x8xf32>
      %370 = arith.mulf %365, %369 : vector<8x8xf32>
      %cst_147 = arith.constant dense<0.000000e+00> : vector<8x8xf32>
      %371 = tpu.matmul %370, %357, %cst_147 {dimension_numbers = #tpu.dot_dimension_numbers<[1], [0], [0], [1], [0, 0, 1, 1], [], []>} : vector<8x8xf32>, vector<8x8xf32>, vector<8x8xf32> -> vector<8x8xf32>
      %372 = vector.extract_strided_slice %295 {offsets = [24, 0], sizes = [8, 32], strides = [1, 1]} : vector<32x32xf32> to vector<8x32xf32>
      %cst_148 = arith.constant dense<0.000000e+00> : vector<8x32xf32>
      %373 = tpu.matmul %371, %372, %cst_148 {dimension_numbers = #tpu.dot_dimension_numbers<[1], [0], [0], [1], [0, 0, 1, 1], [], []>} : vector<8x8xf32>, vector<8x32xf32>, vector<8x32xf32> -> vector<8x32xf32>
      %374 = arith.addf %354, %373 : vector<8x32xf32>
      %375 = vector.extract_strided_slice %293 {offsets = [8, 0], sizes = [8, 8], strides = [1, 1]} : vector<16x96xf32> to vector<8x8xf32>
      %376 = vector.extract_strided_slice %293 {offsets = [8, 32], sizes = [8, 8], strides = [1, 1]} : vector<16x96xf32> to vector<8x8xf32>
      %377 = vector.extract_strided_slice %293 {offsets = [8, 64], sizes = [8, 8], strides = [1, 1]} : vector<16x96xf32> to vector<8x8xf32>
      %cst_149 = arith.constant dense<0.000000e+00> : vector<8x8xf32>
      %378 = tpu.matmul %375, %376, %cst_149 {dimension_numbers = #tpu.dot_dimension_numbers<[1], [1], [0], [0], [0, 0, 1, 0], [], []>} : vector<8x8xf32>, vector<8x8xf32>, vector<8x8xf32> -> vector<8x8xf32>
      %cst_150 = arith.constant 0.353553385 : f32
      %379 = vector.broadcast %cst_150 : f32 to vector<8x8xf32>
      %380 = arith.mulf %378, %379 : vector<8x8xf32>
      %cst_151 = arith.constant dense<0xFF800000> : vector<8xf32>
      %381 = vector.multi_reduction <maximumf>, %380, %cst_151 [1] : vector<8x8xf32> to vector<8xf32>
      %382 = vector.shape_cast %381 : vector<8xf32> to vector<8x1xf32>
      %383 = vector.broadcast %382 : vector<8x1xf32> to vector<8x8xf32>
      %384 = arith.subf %380, %383 : vector<8x8xf32>
      %385 = math.exp %384 : vector<8x8xf32>
      %cst_152 = arith.constant dense<0.000000e+00> : vector<8xf32>
      %386 = vector.multi_reduction <add>, %385, %cst_152 [1] : vector<8x8xf32> to vector<8xf32>
      %387 = vector.shape_cast %386 : vector<8xf32> to vector<8x1xf32>
      %388 = tpu.reciprocal %387 {approx = true} : vector<8x1xf32> -> vector<8x1xf32>
      %389 = vector.broadcast %388 : vector<8x1xf32> to vector<8x8xf32>
      %390 = arith.mulf %385, %389 : vector<8x8xf32>
      %cst_153 = arith.constant dense<0.000000e+00> : vector<8x8xf32>
      %391 = tpu.matmul %390, %377, %cst_153 {dimension_numbers = #tpu.dot_dimension_numbers<[1], [0], [0], [1], [0, 0, 1, 1], [], []>} : vector<8x8xf32>, vector<8x8xf32>, vector<8x8xf32> -> vector<8x8xf32>
      %392 = vector.extract_strided_slice %295 {offsets = [0, 0], sizes = [8, 32], strides = [1, 1]} : vector<32x32xf32> to vector<8x32xf32>
      %cst_154 = arith.constant dense<0.000000e+00> : vector<8x32xf32>
      %393 = tpu.matmul %391, %392, %cst_154 {dimension_numbers = #tpu.dot_dimension_numbers<[1], [0], [0], [1], [0, 0, 1, 1], [], []>} : vector<8x8xf32>, vector<8x32xf32>, vector<8x32xf32> -> vector<8x32xf32>
      %394 = vector.extract_strided_slice %293 {offsets = [8, 8], sizes = [8, 8], strides = [1, 1]} : vector<16x96xf32> to vector<8x8xf32>
      %395 = vector.extract_strided_slice %293 {offsets = [8, 40], sizes = [8, 8], strides = [1, 1]} : vector<16x96xf32> to vector<8x8xf32>
      %396 = vector.extract_strided_slice %293 {offsets = [8, 72], sizes = [8, 8], strides = [1, 1]} : vector<16x96xf32> to vector<8x8xf32>
      %cst_155 = arith.constant dense<0.000000e+00> : vector<8x8xf32>
      %397 = tpu.matmul %394, %395, %cst_155 {dimension_numbers = #tpu.dot_dimension_numbers<[1], [1], [0], [0], [0, 0, 1, 0], [], []>} : vector<8x8xf32>, vector<8x8xf32>, vector<8x8xf32> -> vector<8x8xf32>
      %cst_156 = arith.constant 0.353553385 : f32
      %398 = vector.broadcast %cst_156 : f32 to vector<8x8xf32>
      %399 = arith.mulf %397, %398 : vector<8x8xf32>
      %cst_157 = arith.constant dense<0xFF800000> : vector<8xf32>
      %400 = vector.multi_reduction <maximumf>, %399, %cst_157 [1] : vector<8x8xf32> to vector<8xf32>
      %401 = vector.shape_cast %400 : vector<8xf32> to vector<8x1xf32>
      %402 = vector.broadcast %401 : vector<8x1xf32> to vector<8x8xf32>
      %403 = arith.subf %399, %402 : vector<8x8xf32>
      %404 = math.exp %403 : vector<8x8xf32>
      %cst_158 = arith.constant dense<0.000000e+00> : vector<8xf32>
      %405 = vector.multi_reduction <add>, %404, %cst_158 [1] : vector<8x8xf32> to vector<8xf32>
      %406 = vector.shape_cast %405 : vector<8xf32> to vector<8x1xf32>
      %407 = tpu.reciprocal %406 {approx = true} : vector<8x1xf32> -> vector<8x1xf32>
      %408 = vector.broadcast %407 : vector<8x1xf32> to vector<8x8xf32>
      %409 = arith.mulf %404, %408 : vector<8x8xf32>
      %cst_159 = arith.constant dense<0.000000e+00> : vector<8x8xf32>
      %410 = tpu.matmul %409, %396, %cst_159 {dimension_numbers = #tpu.dot_dimension_numbers<[1], [0], [0], [1], [0, 0, 1, 1], [], []>} : vector<8x8xf32>, vector<8x8xf32>, vector<8x8xf32> -> vector<8x8xf32>
      %411 = vector.extract_strided_slice %295 {offsets = [8, 0], sizes = [8, 32], strides = [1, 1]} : vector<32x32xf32> to vector<8x32xf32>
      %cst_160 = arith.constant dense<0.000000e+00> : vector<8x32xf32>
      %412 = tpu.matmul %410, %411, %cst_160 {dimension_numbers = #tpu.dot_dimension_numbers<[1], [0], [0], [1], [0, 0, 1, 1], [], []>} : vector<8x8xf32>, vector<8x32xf32>, vector<8x32xf32> -> vector<8x32xf32>
      %413 = arith.addf %393, %412 : vector<8x32xf32>
      %414 = vector.extract_strided_slice %293 {offsets = [8, 16], sizes = [8, 8], strides = [1, 1]} : vector<16x96xf32> to vector<8x8xf32>
      %415 = vector.extract_strided_slice %293 {offsets = [8, 48], sizes = [8, 8], strides = [1, 1]} : vector<16x96xf32> to vector<8x8xf32>
      %416 = vector.extract_strided_slice %293 {offsets = [8, 80], sizes = [8, 8], strides = [1, 1]} : vector<16x96xf32> to vector<8x8xf32>
      %cst_161 = arith.constant dense<0.000000e+00> : vector<8x8xf32>
      %417 = tpu.matmul %414, %415, %cst_161 {dimension_numbers = #tpu.dot_dimension_numbers<[1], [1], [0], [0], [0, 0, 1, 0], [], []>} : vector<8x8xf32>, vector<8x8xf32>, vector<8x8xf32> -> vector<8x8xf32>
      %cst_162 = arith.constant 0.353553385 : f32
      %418 = vector.broadcast %cst_162 : f32 to vector<8x8xf32>
      %419 = arith.mulf %417, %418 : vector<8x8xf32>
      %cst_163 = arith.constant dense<0xFF800000> : vector<8xf32>
      %420 = vector.multi_reduction <maximumf>, %419, %cst_163 [1] : vector<8x8xf32> to vector<8xf32>
      %421 = vector.shape_cast %420 : vector<8xf32> to vector<8x1xf32>
      %422 = vector.broadcast %421 : vector<8x1xf32> to vector<8x8xf32>
      %423 = arith.subf %419, %422 : vector<8x8xf32>
      %424 = math.exp %423 : vector<8x8xf32>
      %cst_164 = arith.constant dense<0.000000e+00> : vector<8xf32>
      %425 = vector.multi_reduction <add>, %424, %cst_164 [1] : vector<8x8xf32> to vector<8xf32>
      %426 = vector.shape_cast %425 : vector<8xf32> to vector<8x1xf32>
      %427 = tpu.reciprocal %426 {approx = true} : vector<8x1xf32> -> vector<8x1xf32>
      %428 = vector.broadcast %427 : vector<8x1xf32> to vector<8x8xf32>
      %429 = arith.mulf %424, %428 : vector<8x8xf32>
      %cst_165 = arith.constant dense<0.000000e+00> : vector<8x8xf32>
      %430 = tpu.matmul %429, %416, %cst_165 {dimension_numbers = #tpu.dot_dimension_numbers<[1], [0], [0], [1], [0, 0, 1, 1], [], []>} : vector<8x8xf32>, vector<8x8xf32>, vector<8x8xf32> -> vector<8x8xf32>
      %431 = vector.extract_strided_slice %295 {offsets = [16, 0], sizes = [8, 32], strides = [1, 1]} : vector<32x32xf32> to vector<8x32xf32>
      %cst_166 = arith.constant dense<0.000000e+00> : vector<8x32xf32>
      %432 = tpu.matmul %430, %431, %cst_166 {dimension_numbers = #tpu.dot_dimension_numbers<[1], [0], [0], [1], [0, 0, 1, 1], [], []>} : vector<8x8xf32>, vector<8x32xf32>, vector<8x32xf32> -> vector<8x32xf32>
      %433 = arith.addf %413, %432 : vector<8x32xf32>
      %434 = vector.extract_strided_slice %293 {offsets = [8, 24], sizes = [8, 8], strides = [1, 1]} : vector<16x96xf32> to vector<8x8xf32>
      %435 = vector.extract_strided_slice %293 {offsets = [8, 56], sizes = [8, 8], strides = [1, 1]} : vector<16x96xf32> to vector<8x8xf32>
      %436 = vector.extract_strided_slice %293 {offsets = [8, 88], sizes = [8, 8], strides = [1, 1]} : vector<16x96xf32> to vector<8x8xf32>
      %cst_167 = arith.constant dense<0.000000e+00> : vector<8x8xf32>
      %437 = tpu.matmul %434, %435, %cst_167 {dimension_numbers = #tpu.dot_dimension_numbers<[1], [1], [0], [0], [0, 0, 1, 0], [], []>} : vector<8x8xf32>, vector<8x8xf32>, vector<8x8xf32> -> vector<8x8xf32>
      %cst_168 = arith.constant 0.353553385 : f32
      %438 = vector.broadcast %cst_168 : f32 to vector<8x8xf32>
      %439 = arith.mulf %437, %438 : vector<8x8xf32>
      %cst_169 = arith.constant dense<0xFF800000> : vector<8xf32>
      %440 = vector.multi_reduction <maximumf>, %439, %cst_169 [1] : vector<8x8xf32> to vector<8xf32>
      %441 = vector.shape_cast %440 : vector<8xf32> to vector<8x1xf32>
      %442 = vector.broadcast %441 : vector<8x1xf32> to vector<8x8xf32>
      %443 = arith.subf %439, %442 : vector<8x8xf32>
      %444 = math.exp %443 : vector<8x8xf32>
      %cst_170 = arith.constant dense<0.000000e+00> : vector<8xf32>
      %445 = vector.multi_reduction <add>, %444, %cst_170 [1] : vector<8x8xf32> to vector<8xf32>
      %446 = vector.shape_cast %445 : vector<8xf32> to vector<8x1xf32>
      %447 = tpu.reciprocal %446 {approx = true} : vector<8x1xf32> -> vector<8x1xf32>
      %448 = vector.broadcast %447 : vector<8x1xf32> to vector<8x8xf32>
      %449 = arith.mulf %444, %448 : vector<8x8xf32>
      %cst_171 = arith.constant dense<0.000000e+00> : vector<8x8xf32>
      %450 = tpu.matmul %449, %436, %cst_171 {dimension_numbers = #tpu.dot_dimension_numbers<[1], [0], [0], [1], [0, 0, 1, 1], [], []>} : vector<8x8xf32>, vector<8x8xf32>, vector<8x8xf32> -> vector<8x8xf32>
      %451 = vector.extract_strided_slice %295 {offsets = [24, 0], sizes = [8, 32], strides = [1, 1]} : vector<32x32xf32> to vector<8x32xf32>
      %cst_172 = arith.constant dense<0.000000e+00> : vector<8x32xf32>
      %452 = tpu.matmul %450, %451, %cst_172 {dimension_numbers = #tpu.dot_dimension_numbers<[1], [0], [0], [1], [0, 0, 1, 1], [], []>} : vector<8x8xf32>, vector<8x32xf32>, vector<8x32xf32> -> vector<8x32xf32>
      %453 = arith.addf %433, %452 : vector<8x32xf32>
      %454 = tpu.concatenate %374, %453 in 0 : vector<8x32xf32>, vector<8x32xf32> -> vector<16x32xf32>
      %c1_173 = arith.constant 1 : index
      %c0_174 = arith.constant 0 : index
      %c0_175 = arith.constant 0 : index
      %455 = vector.load %arg5[%c1_173, %c0_174, %c0_175] : memref<2x1x32xf32, #tpu.memory_space<vmem>>, vector<1x1x32xf32>
      %456 = vector.shape_cast %455 : vector<1x1x32xf32> to vector<1x32xf32>
      %457 = vector.broadcast %456 : vector<1x32xf32> to vector<16x32xf32>
      %458 = arith.addf %454, %457 : vector<16x32xf32>
      %459 = arith.addf %286, %458 : vector<16x32xf32>
      %c1_176 = arith.constant 1 : index
      %c0_177 = arith.constant 0 : index
      %c0_178 = arith.constant 0 : index
      %460 = vector.load %arg6[%c1_176, %c0_177, %c0_178] : memref<2x1x32xf32, #tpu.memory_space<vmem>>, vector<1x1x32xf32>
      %461 = vector.shape_cast %460 : vector<1x1x32xf32> to vector<1x32xf32>
      %c1_179 = arith.constant 1 : index
      %c0_180 = arith.constant 0 : index
      %c0_181 = arith.constant 0 : index
      %462 = vector.load %arg7[%c1_179, %c0_180, %c0_181] : memref<2x1x32xf32, #tpu.memory_space<vmem>>, vector<1x1x32xf32>
      %463 = vector.shape_cast %462 : vector<1x1x32xf32> to vector<1x32xf32>
      %cst_182 = arith.constant dense<0.000000e+00> : vector<16xf32>
      %464 = vector.multi_reduction <add>, %459, %cst_182 [1] : vector<16x32xf32> to vector<16xf32>
      %465 = vector.shape_cast %464 : vector<16xf32> to vector<16x1xf32>
      %cst_183 = arith.constant 3.200000e+01 : f32
      %466 = vector.broadcast %cst_183 : f32 to vector<16x1xf32>
      %467 = arith.divf %465, %466 : vector<16x1xf32>
      %468 = vector.broadcast %467 : vector<16x1xf32> to vector<16x32xf32>
      %469 = arith.subf %459, %468 : vector<16x32xf32>
      %470 = arith.mulf %469, %469 : vector<16x32xf32>
      %cst_184 = arith.constant dense<0.000000e+00> : vector<16xf32>
      %471 = vector.multi_reduction <add>, %470, %cst_184 [1] : vector<16x32xf32> to vector<16xf32>
      %472 = vector.shape_cast %471 : vector<16xf32> to vector<16x1xf32>
      %cst_185 = arith.constant 3.200000e+01 : f32
      %473 = vector.broadcast %cst_185 : f32 to vector<16x1xf32>
      %474 = arith.divf %472, %473 : vector<16x1xf32>
      %cst_186 = arith.constant 9.99999974E-6 : f32
      %475 = vector.broadcast %cst_186 : f32 to vector<16x1xf32>
      %476 = arith.addf %474, %475 : vector<16x1xf32>
      %477 = math.rsqrt %476 : vector<16x1xf32>
      %478 = vector.broadcast %477 : vector<16x1xf32> to vector<16x32xf32>
      %479 = arith.mulf %469, %478 : vector<16x32xf32>
      %480 = vector.broadcast %461 : vector<1x32xf32> to vector<16x32xf32>
      %481 = arith.mulf %479, %480 : vector<16x32xf32>
      %482 = vector.broadcast %463 : vector<1x32xf32> to vector<16x32xf32>
      %483 = arith.addf %481, %482 : vector<16x32xf32>
      %c1_187 = arith.constant 1 : index
      %c0_188 = arith.constant 0 : index
      %c0_189 = arith.constant 0 : index
      %484 = vector.load %arg8[%c1_187, %c0_188, %c0_189] : memref<2x32x64xf32, #tpu.memory_space<vmem>>, vector<1x32x64xf32>
      %485 = vector.shape_cast %484 : vector<1x32x64xf32> to vector<32x64xf32>
      %cst_190 = arith.constant dense<0.000000e+00> : vector<16x64xf32>
      %486 = tpu.matmul %483, %485, %cst_190 {dimension_numbers = #tpu.dot_dimension_numbers<[1], [0], [0], [1], [0, 0, 1, 1], [], []>} : vector<16x32xf32>, vector<32x64xf32>, vector<16x64xf32> -> vector<16x64xf32>
      %c1_191 = arith.constant 1 : index
      %c0_192 = arith.constant 0 : index
      %c0_193 = arith.constant 0 : index
      %487 = vector.load %arg9[%c1_191, %c0_192, %c0_193] : memref<2x1x64xf32, #tpu.memory_space<vmem>>, vector<1x1x64xf32>
      %488 = vector.shape_cast %487 : vector<1x1x64xf32> to vector<1x64xf32>
      %489 = vector.broadcast %488 : vector<1x64xf32> to vector<16x64xf32>
      %490 = arith.addf %486, %489 : vector<16x64xf32>
      %cst_194 = arith.constant 5.000000e-01 : f32
      %491 = vector.broadcast %cst_194 : f32 to vector<16x64xf32>
      %492 = arith.mulf %491, %490 : vector<16x64xf32>
      %cst_195 = arith.constant 0.707106769 : f32
      %493 = vector.broadcast %cst_195 : f32 to vector<16x64xf32>
      %494 = arith.mulf %490, %493 : vector<16x64xf32>
      %cst_196 = arith.constant 0.000000e+00 : f32
      %495 = vector.broadcast %cst_196 : f32 to vector<16x64xf32>
      %496 = arith.cmpf olt, %494, %495 : vector<16x64xf32>
      %cst_197 = arith.constant -1.000000e+00 : f32
      %cst_198 = arith.constant 1.000000e+00 : f32
      %497 = vector.broadcast %cst_197 : f32 to vector<16x64xf32>
      %498 = vector.broadcast %cst_198 : f32 to vector<16x64xf32>
      %499 = arith.select %496, %497, %498 : vector<16x64xi1>, vector<16x64xf32>
      %500 = math.absf %494 : vector<16x64xf32>
      %cst_199 = arith.constant 0.327591091 : f32
      %501 = vector.broadcast %cst_199 : f32 to vector<16x64xf32>
      %502 = arith.mulf %501, %500 : vector<16x64xf32>
      %cst_200 = arith.constant 1.000000e+00 : f32
      %503 = vector.broadcast %cst_200 : f32 to vector<16x64xf32>
      %504 = arith.addf %503, %502 : vector<16x64xf32>
      %505 = tpu.reciprocal %504 {approx = true} : vector<16x64xf32> -> vector<16x64xf32>
      %cst_201 = arith.constant 1.06140542 : f32
      %506 = vector.broadcast %cst_201 : f32 to vector<16x64xf32>
      %507 = arith.mulf %506, %505 : vector<16x64xf32>
      %cst_202 = arith.constant -1.45315206 : f32
      %508 = vector.broadcast %cst_202 : f32 to vector<16x64xf32>
      %509 = arith.addf %507, %508 : vector<16x64xf32>
      %510 = arith.mulf %509, %505 : vector<16x64xf32>
      %cst_203 = arith.constant 1.42141378 : f32
      %511 = vector.broadcast %cst_203 : f32 to vector<16x64xf32>
      %512 = arith.addf %510, %511 : vector<16x64xf32>
      %513 = arith.mulf %512, %505 : vector<16x64xf32>
      %cst_204 = arith.constant -0.284496725 : f32
      %514 = vector.broadcast %cst_204 : f32 to vector<16x64xf32>
      %515 = arith.addf %513, %514 : vector<16x64xf32>
      %516 = arith.mulf %515, %505 : vector<16x64xf32>
      %cst_205 = arith.constant 0.254829586 : f32
      %517 = vector.broadcast %cst_205 : f32 to vector<16x64xf32>
      %518 = arith.addf %516, %517 : vector<16x64xf32>
      %519 = arith.mulf %518, %505 : vector<16x64xf32>
      %cst_206 = arith.constant 0.000000e+00 : f32
      %520 = vector.broadcast %cst_206 : f32 to vector<16x64xf32>
      %521 = arith.subf %520, %500 : vector<16x64xf32>
      %522 = arith.mulf %521, %500 : vector<16x64xf32>
      %523 = math.exp %522 : vector<16x64xf32>
      %524 = arith.mulf %519, %523 : vector<16x64xf32>
      %cst_207 = arith.constant 1.000000e+00 : f32
      %525 = vector.broadcast %cst_207 : f32 to vector<16x64xf32>
      %526 = arith.subf %525, %524 : vector<16x64xf32>
      %527 = arith.mulf %499, %526 : vector<16x64xf32>
      %cst_208 = arith.constant 1.000000e+00 : f32
      %528 = vector.broadcast %cst_208 : f32 to vector<16x64xf32>
      %529 = arith.addf %528, %527 : vector<16x64xf32>
      %530 = arith.mulf %492, %529 : vector<16x64xf32>
      %c1_209 = arith.constant 1 : index
      %c0_210 = arith.constant 0 : index
      %c0_211 = arith.constant 0 : index
      %531 = vector.load %arg10[%c1_209, %c0_210, %c0_211] : memref<2x64x32xf32, #tpu.memory_space<vmem>>, vector<1x64x32xf32>
      %532 = vector.shape_cast %531 : vector<1x64x32xf32> to vector<64x32xf32>
      %cst_212 = arith.constant dense<0.000000e+00> : vector<16x32xf32>
      %533 = tpu.matmul %530, %532, %cst_212 {dimension_numbers = #tpu.dot_dimension_numbers<[1], [0], [0], [1], [0, 0, 1, 1], [], []>} : vector<16x64xf32>, vector<64x32xf32>, vector<16x32xf32> -> vector<16x32xf32>
      %c1_213 = arith.constant 1 : index
      %c0_214 = arith.constant 0 : index
      %c0_215 = arith.constant 0 : index
      %534 = vector.load %arg11[%c1_213, %c0_214, %c0_215] : memref<2x1x32xf32, #tpu.memory_space<vmem>>, vector<1x1x32xf32>
      %535 = vector.shape_cast %534 : vector<1x1x32xf32> to vector<1x32xf32>
      %536 = vector.broadcast %535 : vector<1x32xf32> to vector<16x32xf32>
      %537 = arith.addf %533, %536 : vector<16x32xf32>
      %538 = arith.addf %483, %537 : vector<16x32xf32>
      %c1_216 = arith.constant 1 : index
      %c0_217 = arith.constant 0 : index
      %c0_218 = arith.constant 0 : index
      %539 = vector.load %arg12[%c1_216, %c0_217, %c0_218] : memref<2x1x32xf32, #tpu.memory_space<vmem>>, vector<1x1x32xf32>
      %540 = vector.shape_cast %539 : vector<1x1x32xf32> to vector<1x32xf32>
      %c1_219 = arith.constant 1 : index
      %c0_220 = arith.constant 0 : index
      %c0_221 = arith.constant 0 : index
      %541 = vector.load %arg13[%c1_219, %c0_220, %c0_221] : memref<2x1x32xf32, #tpu.memory_space<vmem>>, vector<1x1x32xf32>
      %542 = vector.shape_cast %541 : vector<1x1x32xf32> to vector<1x32xf32>
      %cst_222 = arith.constant dense<0.000000e+00> : vector<16xf32>
      %543 = vector.multi_reduction <add>, %538, %cst_222 [1] : vector<16x32xf32> to vector<16xf32>
      %544 = vector.shape_cast %543 : vector<16xf32> to vector<16x1xf32>
      %cst_223 = arith.constant 3.200000e+01 : f32
      %545 = vector.broadcast %cst_223 : f32 to vector<16x1xf32>
      %546 = arith.divf %544, %545 : vector<16x1xf32>
      %547 = vector.broadcast %546 : vector<16x1xf32> to vector<16x32xf32>
      %548 = arith.subf %538, %547 : vector<16x32xf32>
      %549 = arith.mulf %548, %548 : vector<16x32xf32>
      %cst_224 = arith.constant dense<0.000000e+00> : vector<16xf32>
      %550 = vector.multi_reduction <add>, %549, %cst_224 [1] : vector<16x32xf32> to vector<16xf32>
      %551 = vector.shape_cast %550 : vector<16xf32> to vector<16x1xf32>
      %cst_225 = arith.constant 3.200000e+01 : f32
      %552 = vector.broadcast %cst_225 : f32 to vector<16x1xf32>
      %553 = arith.divf %551, %552 : vector<16x1xf32>
      %cst_226 = arith.constant 9.99999974E-6 : f32
      %554 = vector.broadcast %cst_226 : f32 to vector<16x1xf32>
      %555 = arith.addf %553, %554 : vector<16x1xf32>
      %556 = math.rsqrt %555 : vector<16x1xf32>
      %557 = vector.broadcast %556 : vector<16x1xf32> to vector<16x32xf32>
      %558 = arith.mulf %548, %557 : vector<16x32xf32>
      %559 = vector.broadcast %540 : vector<1x32xf32> to vector<16x32xf32>
      %560 = arith.mulf %558, %559 : vector<16x32xf32>
      %561 = vector.broadcast %542 : vector<1x32xf32> to vector<16x32xf32>
      %562 = arith.addf %560, %561 : vector<16x32xf32>
      %c0_227 = arith.constant 0 : index
      %c0_228 = arith.constant 0 : index
      %563 = vector.load %arg40[%c0_227, %c0_228] : memref<16x32xf32, #tpu.memory_space<vmem>>, vector<16x32xf32>
      tpu.vector_store %arg40[%c0_227, %c0_228], %562 {strides = array<i32>} : memref<16x32xf32, #tpu.memory_space<vmem>>, vector<16x32xf32>,
      %564 = vector.shape_cast %562 : vector<16x32xf32> to vector<2x8x32xf32>
      %c0_229 = arith.constant 0 : index
      %c0_230 = arith.constant 0 : index
      %c0_231 = arith.constant 0 : index
      %c0_232 = arith.constant 0 : index
      %565 = vector.load %arg34[%c0_229, %c0_230, %c0_231, %c0_232] : memref<1x2x8x32xf32, #tpu.memory_space<vmem>>, vector<1x2x8x32xf32>
      %566 = vector.shape_cast %565 : vector<1x2x8x32xf32> to vector<2x8x32xf32>
      %567 = vector.shape_cast %564 : vector<2x8x32xf32> to vector<1x2x8x32xf32>
      tpu.vector_store %arg34[%c0_229, %c0_230, %c0_231, %c0_232], %567 {strides = array<i32>} : memref<1x2x8x32xf32, #tpu.memory_space<vmem>>, vector<1x2x8x32xf32>,
      %c0_233 = arith.constant 0 : index
      %c0_234 = arith.constant 0 : index
      %568 = vector.load %arg14[%c0_233, %c0_234] : memref<32x1024xf32, #tpu.memory_space<vmem>>, vector<32x1024xf32>
      %cst_235 = arith.constant dense<0.000000e+00> : vector<16x1024xf32>
      %569 = tpu.matmul %562, %568, %cst_235 {dimension_numbers = #tpu.dot_dimension_numbers<[1], [0], [0], [1], [0, 0, 1, 1], [], []>} : vector<16x32xf32>, vector<32x1024xf32>, vector<16x1024xf32> -> vector<16x1024xf32>
      %570 = vector.shape_cast %569 : vector<16x1024xf32> to vector<16x32x32xf32>
      %571 = vector.extract_strided_slice %562 {offsets = [0, 0], sizes = [8, 32], strides = [1, 1]} : vector<16x32xf32> to vector<8x32xf32>
      %572 = vector.extract_strided_slice %570 {offsets = [0, 0, 0], sizes = [8, 32, 32], strides = [1, 1, 1]} : vector<16x32x32xf32> to vector<8x32x32xf32>
      %573 = vector.shape_cast %571 : vector<8x32xf32> to vector<1x8x32xf32>
      %574 = vector.shape_cast %573 : vector<1x8x32xf32> to vector<1x8x32xf32>
      %575 = vector.broadcast %574 : vector<1x8x32xf32> to vector<8x8x32xf32>
      %cst_236 = arith.constant dense<0.000000e+00> : vector<8x8x32xf32>
      %576 = tpu.matmul %575, %572, %cst_236 {dimension_numbers = #tpu.dot_dimension_numbers<[2], [2], [1], [1], [0, 0, 0, 1, 1, 1], [0], [0]>} : vector<8x8x32xf32>, vector<8x32x32xf32>, vector<8x8x32xf32> -> vector<8x8x32xf32>
      %577 = vector.shape_cast %576 : vector<8x8x32xf32> to vector<64x32xf32>
      %578 = vector.extract_strided_slice %562 {offsets = [8, 0], sizes = [8, 32], strides = [1, 1]} : vector<16x32xf32> to vector<8x32xf32>
      %579 = vector.extract_strided_slice %570 {offsets = [8, 0, 0], sizes = [8, 32, 32], strides = [1, 1, 1]} : vector<16x32x32xf32> to vector<8x32x32xf32>
      %580 = vector.shape_cast %578 : vector<8x32xf32> to vector<1x8x32xf32>
      %581 = vector.shape_cast %580 : vector<1x8x32xf32> to vector<1x8x32xf32>
      %582 = vector.broadcast %581 : vector<1x8x32xf32> to vector<8x8x32xf32>
      %cst_237 = arith.constant dense<0.000000e+00> : vector<8x8x32xf32>
      %583 = tpu.matmul %582, %579, %cst_237 {dimension_numbers = #tpu.dot_dimension_numbers<[2], [2], [1], [1], [0, 0, 0, 1, 1, 1], [0], [0]>} : vector<8x8x32xf32>, vector<8x32x32xf32>, vector<8x8x32xf32> -> vector<8x8x32xf32>
      %584 = vector.shape_cast %583 : vector<8x8x32xf32> to vector<64x32xf32>
      %585 = tpu.concatenate %577, %584 in 0 : vector<64x32xf32>, vector<64x32xf32> -> vector<128x32xf32>
      %c0_238 = arith.constant 0 : index
      %c0_239 = arith.constant 0 : index
      %586 = vector.load %arg15[%c0_238, %c0_239] : memref<1x32xf32, #tpu.memory_space<vmem>>, vector<1x32xf32>
      %587 = vector.broadcast %586 : vector<1x32xf32> to vector<128x32xf32>
      %588 = arith.addf %585, %587 : vector<128x32xf32>
      %c0_240 = arith.constant 0 : index
      %c0_241 = arith.constant 0 : index
      %589 = vector.load %arg16[%c0_240, %c0_241] : memref<32x32xf32, #tpu.memory_space<vmem>>, vector<32x32xf32>
      %cst_242 = arith.constant dense<0.000000e+00> : vector<128x32xf32>
      %590 = tpu.matmul %588, %589, %cst_242 {dimension_numbers = #tpu.dot_dimension_numbers<[1], [0], [0], [1], [0, 0, 1, 1], [], []>} : vector<128x32xf32>, vector<32x32xf32>, vector<128x32xf32> -> vector<128x32xf32>
      %c0_243 = arith.constant 0 : index
      %c0_244 = arith.constant 0 : index
      %591 = vector.load %arg17[%c0_243, %c0_244] : memref<1x32xf32, #tpu.memory_space<vmem>>, vector<1x32xf32>
      %592 = vector.broadcast %591 : vector<1x32xf32> to vector<128x32xf32>
      %593 = arith.addf %590, %592 : vector<128x32xf32>
      %cst_245 = arith.constant 5.000000e-01 : f32
      %594 = vector.broadcast %cst_245 : f32 to vector<128x32xf32>
      %595 = arith.mulf %594, %593 : vector<128x32xf32>
      %cst_246 = arith.constant 0.707106769 : f32
      %596 = vector.broadcast %cst_246 : f32 to vector<128x32xf32>
      %597 = arith.mulf %593, %596 : vector<128x32xf32>
      %cst_247 = arith.constant 0.000000e+00 : f32
      %598 = vector.broadcast %cst_247 : f32 to vector<128x32xf32>
      %599 = arith.cmpf olt, %597, %598 : vector<128x32xf32>
      %cst_248 = arith.constant -1.000000e+00 : f32
      %cst_249 = arith.constant 1.000000e+00 : f32
      %600 = vector.broadcast %cst_248 : f32 to vector<128x32xf32>
      %601 = vector.broadcast %cst_249 : f32 to vector<128x32xf32>
      %602 = arith.select %599, %600, %601 : vector<128x32xi1>, vector<128x32xf32>
      %603 = math.absf %597 : vector<128x32xf32>
      %cst_250 = arith.constant 0.327591091 : f32
      %604 = vector.broadcast %cst_250 : f32 to vector<128x32xf32>
      %605 = arith.mulf %604, %603 : vector<128x32xf32>
      %cst_251 = arith.constant 1.000000e+00 : f32
      %606 = vector.broadcast %cst_251 : f32 to vector<128x32xf32>
      %607 = arith.addf %606, %605 : vector<128x32xf32>
      %608 = tpu.reciprocal %607 {approx = true} : vector<128x32xf32> -> vector<128x32xf32>
      %cst_252 = arith.constant 1.06140542 : f32
      %609 = vector.broadcast %cst_252 : f32 to vector<128x32xf32>
      %610 = arith.mulf %609, %608 : vector<128x32xf32>
      %cst_253 = arith.constant -1.45315206 : f32
      %611 = vector.broadcast %cst_253 : f32 to vector<128x32xf32>
      %612 = arith.addf %610, %611 : vector<128x32xf32>
      %613 = arith.mulf %612, %608 : vector<128x32xf32>
      %cst_254 = arith.constant 1.42141378 : f32
      %614 = vector.broadcast %cst_254 : f32 to vector<128x32xf32>
      %615 = arith.addf %613, %614 : vector<128x32xf32>
      %616 = arith.mulf %615, %608 : vector<128x32xf32>
      %cst_255 = arith.constant -0.284496725 : f32
      %617 = vector.broadcast %cst_255 : f32 to vector<128x32xf32>
      %618 = arith.addf %616, %617 : vector<128x32xf32>
      %619 = arith.mulf %618, %608 : vector<128x32xf32>
      %cst_256 = arith.constant 0.254829586 : f32
      %620 = vector.broadcast %cst_256 : f32 to vector<128x32xf32>
      %621 = arith.addf %619, %620 : vector<128x32xf32>
      %622 = arith.mulf %621, %608 : vector<128x32xf32>
      %cst_257 = arith.constant 0.000000e+00 : f32
      %623 = vector.broadcast %cst_257 : f32 to vector<128x32xf32>
      %624 = arith.subf %623, %603 : vector<128x32xf32>
      %625 = arith.mulf %624, %603 : vector<128x32xf32>
      %626 = math.exp %625 : vector<128x32xf32>
      %627 = arith.mulf %622, %626 : vector<128x32xf32>
      %cst_258 = arith.constant 1.000000e+00 : f32
      %628 = vector.broadcast %cst_258 : f32 to vector<128x32xf32>
      %629 = arith.subf %628, %627 : vector<128x32xf32>
      %630 = arith.mulf %602, %629 : vector<128x32xf32>
      %cst_259 = arith.constant 1.000000e+00 : f32
      %631 = vector.broadcast %cst_259 : f32 to vector<128x32xf32>
      %632 = arith.addf %631, %630 : vector<128x32xf32>
      %633 = arith.mulf %595, %632 : vector<128x32xf32>
      %c0_260 = arith.constant 0 : index
      %c0_261 = arith.constant 0 : index
      %634 = vector.load %arg18[%c0_260, %c0_261] : memref<1x32xf32, #tpu.memory_space<vmem>>, vector<1x32xf32>
      %cst_262 = arith.constant dense<0.000000e+00> : vector<1x128xf32>
      %635 = tpu.matmul %634, %633, %cst_262 {dimension_numbers = #tpu.dot_dimension_numbers<[1], [1], [0], [0], [0, 0, 1, 0], [], []>} : vector<1x32xf32>, vector<128x32xf32>, vector<1x128xf32> -> vector<1x128xf32>
      %c0_263 = arith.constant 0 : index
      %c0_264 = arith.constant 0 : index
      %636 = vector.load %arg19[%c0_263, %c0_264] : memref<1x1xf32, #tpu.memory_space<vmem>>, vector<1x1xf32>
      %637 = vector.broadcast %636 : vector<1x1xf32> to vector<1x128xf32>
      %638 = arith.addf %635, %637 : vector<1x128xf32>
      %cst_265 = arith.constant 0.000000e+00 : f32
      %639 = vector.broadcast %cst_265 : f32 to vector<1x128xf32>
      %640 = arith.subf %639, %638 : vector<1x128xf32>
      %641 = math.exp %640 : vector<1x128xf32>
      %cst_266 = arith.constant 1.000000e+00 : f32
      %642 = vector.broadcast %cst_266 : f32 to vector<1x128xf32>
      %643 = arith.addf %642, %641 : vector<1x128xf32>
      %644 = tpu.reciprocal %643 {approx = true} : vector<1x128xf32> -> vector<1x128xf32>
      %c0_267 = arith.constant 0 : index
      %c0_268 = arith.constant 0 : index
      %c0_269 = arith.constant 0 : index
      %645 = vector.load %arg35[%c0_267, %c0_268, %c0_269] : memref<1x1x128xf32, #tpu.memory_space<vmem>>, vector<1x1x128xf32>
      %646 = vector.shape_cast %645 : vector<1x1x128xf32> to vector<1x128xf32>
      %647 = vector.shape_cast %644 : vector<1x128xf32> to vector<1x1x128xf32>
      tpu.vector_store %arg35[%c0_267, %c0_268, %c0_269], %647 {strides = array<i32>} : memref<1x1x128xf32, #tpu.memory_space<vmem>>, vector<1x1x128xf32>,
      %648 = vector.extract_strided_slice %562 {offsets = [0, 0], sizes = [8, 32], strides = [1, 1]} : vector<16x32xf32> to vector<8x32xf32>
      %cst_270 = arith.constant dense<0.000000e+00> : vector<32xf32>
      %649 = vector.multi_reduction <add>, %648, %cst_270 [0] : vector<8x32xf32> to vector<32xf32>
      %650 = vector.shape_cast %649 : vector<32xf32> to vector<1x32xf32>
      %cst_271 = arith.constant 8.000000e+00 : f32
      %651 = vector.broadcast %cst_271 : f32 to vector<1x32xf32>
      %652 = arith.divf %650, %651 : vector<1x32xf32>
      %653 = vector.extract_strided_slice %562 {offsets = [8, 0], sizes = [8, 32], strides = [1, 1]} : vector<16x32xf32> to vector<8x32xf32>
      %cst_272 = arith.constant dense<0.000000e+00> : vector<32xf32>
      %654 = vector.multi_reduction <add>, %653, %cst_272 [0] : vector<8x32xf32> to vector<32xf32>
      %655 = vector.shape_cast %654 : vector<32xf32> to vector<1x32xf32>
      %cst_273 = arith.constant 8.000000e+00 : f32
      %656 = vector.broadcast %cst_273 : f32 to vector<1x32xf32>
      %657 = arith.divf %655, %656 : vector<1x32xf32>
      %658 = tpu.concatenate %652, %657 in 0 : vector<1x32xf32>, vector<1x32xf32> -> vector<2x32xf32>
      %c0_274 = arith.constant 0 : index
      %c0_275 = arith.constant 0 : index
      %659 = vector.load %arg41[%c0_274, %c0_275] : memref<2x32xf32, #tpu.memory_space<vmem>>, vector<2x32xf32>
      %c0_276 = arith.constant 0 : index
      %c0_277 = arith.constant 0 : index
      %660 = vector.load %arg20[%c0_276, %c0_277] : memref<32x96xf32, #tpu.memory_space<vmem>>, vector<32x96xf32>
      %cst_278 = arith.constant dense<0.000000e+00> : vector<2x96xf32>
      %661 = tpu.matmul %658, %660, %cst_278 {dimension_numbers = #tpu.dot_dimension_numbers<[1], [0], [0], [1], [0, 0, 1, 1], [], []>} : vector<2x32xf32>, vector<32x96xf32>, vector<2x96xf32> -> vector<2x96xf32>
      %c0_279 = arith.constant 0 : index
      %c0_280 = arith.constant 0 : index
      %662 = vector.load %arg22[%c0_279, %c0_280] : memref<1x96xf32, #tpu.memory_space<vmem>>, vector<1x96xf32>
      %663 = vector.broadcast %662 : vector<1x96xf32> to vector<2x96xf32>
      %664 = arith.addf %661, %663 : vector<2x96xf32>
      %c0_281 = arith.constant 0 : index
      %c0_282 = arith.constant 0 : index
      %665 = vector.load %arg21[%c0_281, %c0_282] : memref<32x96xf32, #tpu.memory_space<vmem>>, vector<32x96xf32>
      %cst_283 = arith.constant dense<0.000000e+00> : vector<2x96xf32>
      %666 = tpu.matmul %659, %665, %cst_283 {dimension_numbers = #tpu.dot_dimension_numbers<[1], [0], [0], [1], [0, 0, 1, 1], [], []>} : vector<2x32xf32>, vector<32x96xf32>, vector<2x96xf32> -> vector<2x96xf32>
      %c0_284 = arith.constant 0 : index
      %c0_285 = arith.constant 0 : index
      %667 = vector.load %arg23[%c0_284, %c0_285] : memref<1x96xf32, #tpu.memory_space<vmem>>, vector<1x96xf32>
      %668 = vector.broadcast %667 : vector<1x96xf32> to vector<2x96xf32>
      %669 = arith.addf %666, %668 : vector<2x96xf32>
      %670 = vector.extract_strided_slice %664 {offsets = [0, 0], sizes = [2, 32], strides = [1, 1]} : vector<2x96xf32> to vector<2x32xf32>
      %671 = vector.extract_strided_slice %669 {offsets = [0, 0], sizes = [2, 32], strides = [1, 1]} : vector<2x96xf32> to vector<2x32xf32>
      %672 = arith.addf %670, %671 : vector<2x32xf32>
      %cst_286 = arith.constant 0.000000e+00 : f32
      %673 = vector.broadcast %cst_286 : f32 to vector<2x32xf32>
      %674 = arith.subf %673, %672 : vector<2x32xf32>
      %675 = math.exp %674 : vector<2x32xf32>
      %cst_287 = arith.constant 1.000000e+00 : f32
      %676 = vector.broadcast %cst_287 : f32 to vector<2x32xf32>
      %677 = arith.addf %676, %675 : vector<2x32xf32>
      %678 = tpu.reciprocal %677 {approx = true} : vector<2x32xf32> -> vector<2x32xf32>
      %679 = vector.extract_strided_slice %664 {offsets = [0, 32], sizes = [2, 32], strides = [1, 1]} : vector<2x96xf32> to vector<2x32xf32>
      %680 = vector.extract_strided_slice %669 {offsets = [0, 32], sizes = [2, 32], strides = [1, 1]} : vector<2x96xf32> to vector<2x32xf32>
      %681 = arith.addf %679, %680 : vector<2x32xf32>
      %cst_288 = arith.constant 0.000000e+00 : f32
      %682 = vector.broadcast %cst_288 : f32 to vector<2x32xf32>
      %683 = arith.subf %682, %681 : vector<2x32xf32>
      %684 = math.exp %683 : vector<2x32xf32>
      %cst_289 = arith.constant 1.000000e+00 : f32
      %685 = vector.broadcast %cst_289 : f32 to vector<2x32xf32>
      %686 = arith.addf %685, %684 : vector<2x32xf32>
      %687 = tpu.reciprocal %686 {approx = true} : vector<2x32xf32> -> vector<2x32xf32>
      %688 = vector.extract_strided_slice %664 {offsets = [0, 64], sizes = [2, 32], strides = [1, 1]} : vector<2x96xf32> to vector<2x32xf32>
      %689 = vector.extract_strided_slice %669 {offsets = [0, 64], sizes = [2, 32], strides = [1, 1]} : vector<2x96xf32> to vector<2x32xf32>
      %690 = arith.mulf %678, %689 : vector<2x32xf32>
      %691 = arith.addf %688, %690 : vector<2x32xf32>
      %692 = math.tanh %691 : vector<2x32xf32>
      %cst_290 = arith.constant 1.000000e+00 : f32
      %693 = vector.broadcast %cst_290 : f32 to vector<2x32xf32>
      %694 = arith.subf %693, %687 : vector<2x32xf32>
      %695 = arith.mulf %694, %692 : vector<2x32xf32>
      %696 = arith.mulf %687, %659 : vector<2x32xf32>
      %697 = arith.addf %695, %696 : vector<2x32xf32>
      %c0_291 = arith.constant 0 : index
      %c0_292 = arith.constant 0 : index
      %698 = vector.load %arg41[%c0_291, %c0_292] : memref<2x32xf32, #tpu.memory_space<vmem>>, vector<2x32xf32>
      tpu.vector_store %arg41[%c0_291, %c0_292], %697 {strides = array<i32>} : memref<2x32xf32, #tpu.memory_space<vmem>>, vector<2x32xf32>,
      %c0_293 = arith.constant 0 : index
      %c0_294 = arith.constant 0 : index
      %699 = vector.load %arg24[%c0_293, %c0_294] : memref<32x32xf32, #tpu.memory_space<vmem>>, vector<32x32xf32>
      %cst_295 = arith.constant dense<0.000000e+00> : vector<2x32xf32>
      %700 = tpu.matmul %697, %699, %cst_295 {dimension_numbers = #tpu.dot_dimension_numbers<[1], [0], [0], [1], [0, 0, 1, 1], [], []>} : vector<2x32xf32>, vector<32x32xf32>, vector<2x32xf32> -> vector<2x32xf32>
      %c0_296 = arith.constant 0 : index
      %c0_297 = arith.constant 0 : index
      %701 = vector.load %arg25[%c0_296, %c0_297] : memref<1x32xf32, #tpu.memory_space<vmem>>, vector<1x32xf32>
      %702 = vector.broadcast %701 : vector<1x32xf32> to vector<2x32xf32>
      %703 = arith.addf %700, %702 : vector<2x32xf32>
      %cst_298 = arith.constant 5.000000e-01 : f32
      %704 = vector.broadcast %cst_298 : f32 to vector<2x32xf32>
      %705 = arith.mulf %704, %703 : vector<2x32xf32>
      %cst_299 = arith.constant 0.707106769 : f32
      %706 = vector.broadcast %cst_299 : f32 to vector<2x32xf32>
      %707 = arith.mulf %703, %706 : vector<2x32xf32>
      %cst_300 = arith.constant 0.000000e+00 : f32
      %708 = vector.broadcast %cst_300 : f32 to vector<2x32xf32>
      %709 = arith.cmpf olt, %707, %708 : vector<2x32xf32>
      %cst_301 = arith.constant -1.000000e+00 : f32
      %cst_302 = arith.constant 1.000000e+00 : f32
      %710 = vector.broadcast %cst_301 : f32 to vector<2x32xf32>
      %711 = vector.broadcast %cst_302 : f32 to vector<2x32xf32>
      %712 = arith.select %709, %710, %711 : vector<2x32xi1>, vector<2x32xf32>
      %713 = math.absf %707 : vector<2x32xf32>
      %cst_303 = arith.constant 0.327591091 : f32
      %714 = vector.broadcast %cst_303 : f32 to vector<2x32xf32>
      %715 = arith.mulf %714, %713 : vector<2x32xf32>
      %cst_304 = arith.constant 1.000000e+00 : f32
      %716 = vector.broadcast %cst_304 : f32 to vector<2x32xf32>
      %717 = arith.addf %716, %715 : vector<2x32xf32>
      %718 = tpu.reciprocal %717 {approx = true} : vector<2x32xf32> -> vector<2x32xf32>
      %cst_305 = arith.constant 1.06140542 : f32
      %719 = vector.broadcast %cst_305 : f32 to vector<2x32xf32>
      %720 = arith.mulf %719, %718 : vector<2x32xf32>
      %cst_306 = arith.constant -1.45315206 : f32
      %721 = vector.broadcast %cst_306 : f32 to vector<2x32xf32>
      %722 = arith.addf %720, %721 : vector<2x32xf32>
      %723 = arith.mulf %722, %718 : vector<2x32xf32>
      %cst_307 = arith.constant 1.42141378 : f32
      %724 = vector.broadcast %cst_307 : f32 to vector<2x32xf32>
      %725 = arith.addf %723, %724 : vector<2x32xf32>
      %726 = arith.mulf %725, %718 : vector<2x32xf32>
      %cst_308 = arith.constant -0.284496725 : f32
      %727 = vector.broadcast %cst_308 : f32 to vector<2x32xf32>
      %728 = arith.addf %726, %727 : vector<2x32xf32>
      %729 = arith.mulf %728, %718 : vector<2x32xf32>
      %cst_309 = arith.constant 0.254829586 : f32
      %730 = vector.broadcast %cst_309 : f32 to vector<2x32xf32>
      %731 = arith.addf %729, %730 : vector<2x32xf32>
      %732 = arith.mulf %731, %718 : vector<2x32xf32>
      %cst_310 = arith.constant 0.000000e+00 : f32
      %733 = vector.broadcast %cst_310 : f32 to vector<2x32xf32>
      %734 = arith.subf %733, %713 : vector<2x32xf32>
      %735 = arith.mulf %734, %713 : vector<2x32xf32>
      %736 = math.exp %735 : vector<2x32xf32>
      %737 = arith.mulf %732, %736 : vector<2x32xf32>
      %cst_311 = arith.constant 1.000000e+00 : f32
      %738 = vector.broadcast %cst_311 : f32 to vector<2x32xf32>
      %739 = arith.subf %738, %737 : vector<2x32xf32>
      %740 = arith.mulf %712, %739 : vector<2x32xf32>
      %cst_312 = arith.constant 1.000000e+00 : f32
      %741 = vector.broadcast %cst_312 : f32 to vector<2x32xf32>
      %742 = arith.addf %741, %740 : vector<2x32xf32>
      %743 = arith.mulf %705, %742 : vector<2x32xf32>
      %c0_313 = arith.constant 0 : index
      %c0_314 = arith.constant 0 : index
      %744 = vector.load %arg26[%c0_313, %c0_314] : memref<1x32xf32, #tpu.memory_space<vmem>>, vector<1x32xf32>
      %cst_315 = arith.constant dense<0.000000e+00> : vector<1x2xf32>
      %745 = tpu.matmul %744, %743, %cst_315 {dimension_numbers = #tpu.dot_dimension_numbers<[1], [1], [0], [0], [0, 0, 1, 0], [], []>} : vector<1x32xf32>, vector<2x32xf32>, vector<1x2xf32> -> vector<1x2xf32>
      %c0_316 = arith.constant 0 : index
      %c0_317 = arith.constant 0 : index
      %746 = vector.load %arg27[%c0_316, %c0_317] : memref<1x1xf32, #tpu.memory_space<vmem>>, vector<1x1xf32>
      %747 = vector.broadcast %746 : vector<1x1xf32> to vector<1x2xf32>
      %748 = arith.addf %745, %747 : vector<1x2xf32>
      %cst_318 = arith.constant 0.000000e+00 : f32
      %749 = vector.broadcast %cst_318 : f32 to vector<1x2xf32>
      %750 = arith.subf %749, %748 : vector<1x2xf32>
      %751 = math.exp %750 : vector<1x2xf32>
      %cst_319 = arith.constant 1.000000e+00 : f32
      %752 = vector.broadcast %cst_319 : f32 to vector<1x2xf32>
      %753 = arith.addf %752, %751 : vector<1x2xf32>
      %754 = tpu.reciprocal %753 {approx = true} : vector<1x2xf32> -> vector<1x2xf32>
      %c0_320 = arith.constant 0 : index
      %c0_321 = arith.constant 0 : index
      %c0_322 = arith.constant 0 : index
      %755 = vector.load %arg36[%c0_320, %c0_321, %c0_322] : memref<1x1x2xf32, #tpu.memory_space<vmem>>, vector<1x1x2xf32>
      %756 = vector.shape_cast %755 : vector<1x1x2xf32> to vector<1x2xf32>
      %757 = vector.shape_cast %754 : vector<1x2xf32> to vector<1x1x2xf32>
      tpu.vector_store %arg36[%c0_320, %c0_321, %c0_322], %757 {strides = array<i32>} : memref<1x1x2xf32, #tpu.memory_space<vmem>>, vector<1x1x2xf32>,
      %c0_323 = arith.constant 0 : index
      %c0_324 = arith.constant 0 : index
      %c0_325 = arith.constant 0 : index
      %758 = vector.load %arg36[%c0_323, %c0_324, %c0_325] : memref<1x1x2xf32, #tpu.memory_space<vmem>>, vector<1x1x1xf32>
      %759 = vector.extract %758[0, 0, 0] : f32 from vector<1x1x1xf32>
      %c0_326 = arith.constant 0 : index
      %c0_327 = arith.constant 0 : index
      %c1_328 = arith.constant 1 : index
      %760 = vector.load %arg36[%c0_326, %c0_327, %c1_328] : memref<1x1x2xf32, #tpu.memory_space<vmem>>, vector<1x1x1xf32>
      %761 = vector.extract %760[0, 0, 0] : f32 from vector<1x1x1xf32>
      %762 = arith.addf %759, %761 : f32
      %cst_329 = arith.constant 5.000000e-01 : f32
      %763 = arith.mulf %762, %cst_329 : f32
      %cst_330 = arith.constant 5.000000e-01 : f32
      %764 = arith.cmpf oge, %763, %cst_330 : f32
      %c0_i32_331 = arith.constant 0 : i32
      %765 = arith.cmpi eq, %arg0, %c0_i32_331 : i32
      %766 = arith.ori %764, %765 : i1
      %767 = arith.extui %766 : i1 to i32
      %c0_332 = arith.constant 0 : index
      %768 = memref.load %arg42[%c0_332] : memref<1xi32, #tpu.memory_space<smem>>
      memref.store %767, %arg42[%c0_332] : memref<1xi32, #tpu.memory_space<smem>>
      %c0_i32_333 = arith.constant 0 : i32
      %769 = vector.broadcast %c0_i32_333 : i32 to vector<1x1xi32>
      %c1_i32_334 = arith.constant 1 : i32
      %770 = arith.addi %arg0, %c1_i32_334 : i32
      %771 = vector.broadcast %770 : i32 to vector<1x1xi32>
      %772 = arith.addi %769, %771 : vector<1x1xi32>
      %c0_335 = arith.constant 0 : index
      %c0_336 = arith.constant 0 : index
      %773 = vector.load %arg39[%c0_335, %c0_336] : memref<1x1xi32, #tpu.memory_space<vmem>>, vector<1x1xi32>
      tpu.vector_store %arg39[%c0_335, %c0_336], %772 {strides = array<i32>} : memref<1x1xi32, #tpu.memory_space<vmem>>, vector<1x1xi32>,
    } else {
    }
    %c2_i32 = arith.constant 2 : i32
    %7 = arith.cmpi eq, %arg0, %c2_i32 : i32
    %8 = arith.extui %7 : i1 to i32
    %c0_i32_2 = arith.constant 0 : i32
    %9 = arith.cmpi ne, %8, %c0_i32_2 : i32
    scf.if %9 {
      %c0_3 = arith.constant 0 : index
      %c0_4 = arith.constant 0 : index
      %10 = vector.load %arg40[%c0_3, %c0_4] : memref<16x32xf32, #tpu.memory_space<vmem>>, vector<16x32xf32>
      %c0_5 = arith.constant 0 : index
      %c0_6 = arith.constant 0 : index
      %11 = vector.load %arg28[%c0_5, %c0_6] : memref<32x32xf32, #tpu.memory_space<vmem>>, vector<32x32xf32>
      %cst = arith.constant dense<0.000000e+00> : vector<16x32xf32>
      %12 = tpu.matmul %10, %11, %cst {dimension_numbers = #tpu.dot_dimension_numbers<[1], [0], [0], [1], [0, 0, 1, 1], [], []>} : vector<16x32xf32>, vector<32x32xf32>, vector<16x32xf32> -> vector<16x32xf32>
      %c0_7 = arith.constant 0 : index
      %c0_8 = arith.constant 0 : index
      %13 = vector.load %arg29[%c0_7, %c0_8] : memref<1x32xf32, #tpu.memory_space<vmem>>, vector<1x32xf32>
      %14 = vector.broadcast %13 : vector<1x32xf32> to vector<16x32xf32>
      %15 = arith.addf %12, %14 : vector<16x32xf32>
      %cst_9 = arith.constant 5.000000e-01 : f32
      %16 = vector.broadcast %cst_9 : f32 to vector<16x32xf32>
      %17 = arith.mulf %16, %15 : vector<16x32xf32>
      %cst_10 = arith.constant 0.707106769 : f32
      %18 = vector.broadcast %cst_10 : f32 to vector<16x32xf32>
      %19 = arith.mulf %15, %18 : vector<16x32xf32>
      %cst_11 = arith.constant 0.000000e+00 : f32
      %20 = vector.broadcast %cst_11 : f32 to vector<16x32xf32>
      %21 = arith.cmpf olt, %19, %20 : vector<16x32xf32>
      %cst_12 = arith.constant -1.000000e+00 : f32
      %cst_13 = arith.constant 1.000000e+00 : f32
      %22 = vector.broadcast %cst_12 : f32 to vector<16x32xf32>
      %23 = vector.broadcast %cst_13 : f32 to vector<16x32xf32>
      %24 = arith.select %21, %22, %23 : vector<16x32xi1>, vector<16x32xf32>
      %25 = math.absf %19 : vector<16x32xf32>
      %cst_14 = arith.constant 0.327591091 : f32
      %26 = vector.broadcast %cst_14 : f32 to vector<16x32xf32>
      %27 = arith.mulf %26, %25 : vector<16x32xf32>
      %cst_15 = arith.constant 1.000000e+00 : f32
      %28 = vector.broadcast %cst_15 : f32 to vector<16x32xf32>
      %29 = arith.addf %28, %27 : vector<16x32xf32>
      %30 = tpu.reciprocal %29 {approx = true} : vector<16x32xf32> -> vector<16x32xf32>
      %cst_16 = arith.constant 1.06140542 : f32
      %31 = vector.broadcast %cst_16 : f32 to vector<16x32xf32>
      %32 = arith.mulf %31, %30 : vector<16x32xf32>
      %cst_17 = arith.constant -1.45315206 : f32
      %33 = vector.broadcast %cst_17 : f32 to vector<16x32xf32>
      %34 = arith.addf %32, %33 : vector<16x32xf32>
      %35 = arith.mulf %34, %30 : vector<16x32xf32>
      %cst_18 = arith.constant 1.42141378 : f32
      %36 = vector.broadcast %cst_18 : f32 to vector<16x32xf32>
      %37 = arith.addf %35, %36 : vector<16x32xf32>
      %38 = arith.mulf %37, %30 : vector<16x32xf32>
      %cst_19 = arith.constant -0.284496725 : f32
      %39 = vector.broadcast %cst_19 : f32 to vector<16x32xf32>
      %40 = arith.addf %38, %39 : vector<16x32xf32>
      %41 = arith.mulf %40, %30 : vector<16x32xf32>
      %cst_20 = arith.constant 0.254829586 : f32
      %42 = vector.broadcast %cst_20 : f32 to vector<16x32xf32>
      %43 = arith.addf %41, %42 : vector<16x32xf32>
      %44 = arith.mulf %43, %30 : vector<16x32xf32>
      %cst_21 = arith.constant 0.000000e+00 : f32
      %45 = vector.broadcast %cst_21 : f32 to vector<16x32xf32>
      %46 = arith.subf %45, %25 : vector<16x32xf32>
      %47 = arith.mulf %46, %25 : vector<16x32xf32>
      %48 = math.exp %47 : vector<16x32xf32>
      %49 = arith.mulf %44, %48 : vector<16x32xf32>
      %cst_22 = arith.constant 1.000000e+00 : f32
      %50 = vector.broadcast %cst_22 : f32 to vector<16x32xf32>
      %51 = arith.subf %50, %49 : vector<16x32xf32>
      %52 = arith.mulf %24, %51 : vector<16x32xf32>
      %cst_23 = arith.constant 1.000000e+00 : f32
      %53 = vector.broadcast %cst_23 : f32 to vector<16x32xf32>
      %54 = arith.addf %53, %52 : vector<16x32xf32>
      %55 = arith.mulf %17, %54 : vector<16x32xf32>
      %c0_24 = arith.constant 0 : index
      %c0_25 = arith.constant 0 : index
      %56 = vector.load %arg30[%c0_24, %c0_25] : memref<32x2xf32, #tpu.memory_space<vmem>>, vector<32x2xf32>
      %cst_26 = arith.constant dense<0.000000e+00> : vector<16x2xf32>
      %57 = tpu.matmul %55, %56, %cst_26 {dimension_numbers = #tpu.dot_dimension_numbers<[1], [0], [0], [1], [0, 0, 1, 1], [], []>} : vector<16x32xf32>, vector<32x2xf32>, vector<16x2xf32> -> vector<16x2xf32>
      %c0_27 = arith.constant 0 : index
      %c0_28 = arith.constant 0 : index
      %58 = vector.load %arg31[%c0_27, %c0_28] : memref<1x2xf32, #tpu.memory_space<vmem>>, vector<1x2xf32>
      %59 = vector.broadcast %58 : vector<1x2xf32> to vector<16x2xf32>
      %60 = arith.addf %57, %59 : vector<16x2xf32>
      %cst_29 = arith.constant dense<0xFF800000> : vector<16xf32>
      %61 = vector.multi_reduction <maximumf>, %60, %cst_29 [1] : vector<16x2xf32> to vector<16xf32>
      %62 = vector.shape_cast %61 : vector<16xf32> to vector<16x1xf32>
      %63 = vector.broadcast %62 : vector<16x1xf32> to vector<16x2xf32>
      %64 = arith.subf %60, %63 : vector<16x2xf32>
      %65 = math.exp %64 : vector<16x2xf32>
      %cst_30 = arith.constant dense<0.000000e+00> : vector<16xf32>
      %66 = vector.multi_reduction <add>, %65, %cst_30 [1] : vector<16x2xf32> to vector<16xf32>
      %67 = vector.shape_cast %66 : vector<16xf32> to vector<16x1xf32>
      %68 = tpu.reciprocal %67 {approx = true} : vector<16x1xf32> -> vector<16x1xf32>
      %69 = vector.broadcast %68 : vector<16x1xf32> to vector<16x2xf32>
      %70 = arith.mulf %65, %69 : vector<16x2xf32>
      %71 = vector.shape_cast %70 : vector<16x2xf32> to vector<2x8x2xf32>
      %c0_31 = arith.constant 0 : index
      %c0_32 = arith.constant 0 : index
      %c0_33 = arith.constant 0 : index
      %72 = vector.load %arg37[%c0_31, %c0_32, %c0_33] : memref<2x8x2xf32, #tpu.memory_space<vmem>>, vector<2x8x2xf32>
      tpu.vector_store %arg37[%c0_31, %c0_32, %c0_33], %71 {strides = array<i32>} : memref<2x8x2xf32, #tpu.memory_space<vmem>>, vector<2x8x2xf32>,
      %c0_34 = arith.constant 0 : index
      %c0_35 = arith.constant 0 : index
      %73 = vector.load %arg32[%c0_34, %c0_35] : memref<32x32xf32, #tpu.memory_space<vmem>>, vector<32x32xf32>
      %cst_36 = arith.constant dense<0.000000e+00> : vector<16x32xf32>
      %74 = tpu.matmul %10, %73, %cst_36 {dimension_numbers = #tpu.dot_dimension_numbers<[1], [0], [0], [1], [0, 0, 1, 1], [], []>} : vector<16x32xf32>, vector<32x32xf32>, vector<16x32xf32> -> vector<16x32xf32>
      %c0_37 = arith.constant 0 : index
      %c0_38 = arith.constant 0 : index
      %75 = vector.load %arg33[%c0_37, %c0_38] : memref<1x32xf32, #tpu.memory_space<vmem>>, vector<1x32xf32>
      %76 = vector.broadcast %75 : vector<1x32xf32> to vector<16x32xf32>
      %77 = arith.addf %74, %76 : vector<16x32xf32>
      %78 = vector.shape_cast %77 : vector<16x32xf32> to vector<2x8x32xf32>
      %c0_39 = arith.constant 0 : index
      %c0_40 = arith.constant 0 : index
      %c0_41 = arith.constant 0 : index
      %79 = vector.load %arg38[%c0_39, %c0_40, %c0_41] : memref<2x8x32xf32, #tpu.memory_space<vmem>>, vector<2x8x32xf32>
      tpu.vector_store %arg38[%c0_39, %c0_40, %c0_41], %78 {strides = array<i32>} : memref<2x8x32xf32, #tpu.memory_space<vmem>>, vector<2x8x32xf32>,
    } else {
    }
    return
  }
  func.func @transform_0(%arg0: i32) -> (i32, i32, i32) {
    %c0_i32 = arith.constant 0 : i32
    %c0_i32_0 = arith.constant 0 : i32
    %c0_i32_1 = arith.constant 0 : i32
    %c0_i32_2 = arith.constant 0 : i32
    return %c0_i32, %c0_i32_0, %c0_i32_1 : i32, i32, i32
  }
  func.func @transform_1(%arg0: i32) -> (i32, i32, i32) {
    %c0_i32 = arith.constant 0 : i32
    %c0_i32_0 = arith.constant 0 : i32
    %c0_i32_1 = arith.constant 0 : i32
    %c0_i32_2 = arith.constant 0 : i32
    return %c0_i32, %c0_i32_0, %c0_i32_1 : i32, i32, i32
  }
  func.func @transform_2(%arg0: i32) -> (i32, i32, i32) {
    %c0_i32 = arith.constant 0 : i32
    %c0_i32_0 = arith.constant 0 : i32
    %c0_i32_1 = arith.constant 0 : i32
    %c0_i32_2 = arith.constant 0 : i32
    return %c0_i32, %c0_i32_0, %c0_i32_1 : i32, i32, i32
  }
  func.func @transform_3(%arg0: i32) -> (i32, i32, i32) {
    %c0_i32 = arith.constant 0 : i32
    %c0_i32_0 = arith.constant 0 : i32
    %c0_i32_1 = arith.constant 0 : i32
    %c0_i32_2 = arith.constant 0 : i32
    return %c0_i32, %c0_i32_0, %c0_i32_1 : i32, i32, i32
  }
  func.func @transform_4(%arg0: i32) -> (i32, i32, i32) {
    %c0_i32 = arith.constant 0 : i32
    %c0_i32_0 = arith.constant 0 : i32
    %c0_i32_1 = arith.constant 0 : i32
    %c0_i32_2 = arith.constant 0 : i32
    return %c0_i32, %c0_i32_0, %c0_i32_1 : i32, i32, i32
  }
  func.func @transform_5(%arg0: i32) -> (i32, i32, i32) {
    %c0_i32 = arith.constant 0 : i32
    %c0_i32_0 = arith.constant 0 : i32
    %c0_i32_1 = arith.constant 0 : i32
    %c0_i32_2 = arith.constant 0 : i32
    return %c0_i32, %c0_i32_0, %c0_i32_1 : i32, i32, i32
  }
  func.func @transform_6(%arg0: i32) -> (i32, i32, i32) {
    %c0_i32 = arith.constant 0 : i32
    %c0_i32_0 = arith.constant 0 : i32
    %c0_i32_1 = arith.constant 0 : i32
    %c0_i32_2 = arith.constant 0 : i32
    return %c0_i32, %c0_i32_0, %c0_i32_1 : i32, i32, i32
  }
  func.func @transform_7(%arg0: i32) -> (i32, i32, i32) {
    %c0_i32 = arith.constant 0 : i32
    %c0_i32_0 = arith.constant 0 : i32
    %c0_i32_1 = arith.constant 0 : i32
    %c0_i32_2 = arith.constant 0 : i32
    return %c0_i32, %c0_i32_0, %c0_i32_1 : i32, i32, i32
  }
  func.func @transform_8(%arg0: i32) -> (i32, i32, i32) {
    %c0_i32 = arith.constant 0 : i32
    %c0_i32_0 = arith.constant 0 : i32
    %c0_i32_1 = arith.constant 0 : i32
    %c0_i32_2 = arith.constant 0 : i32
    return %c0_i32, %c0_i32_0, %c0_i32_1 : i32, i32, i32
  }
  func.func @transform_9(%arg0: i32) -> (i32, i32, i32) {
    %c0_i32 = arith.constant 0 : i32
    %c0_i32_0 = arith.constant 0 : i32
    %c0_i32_1 = arith.constant 0 : i32
    %c0_i32_2 = arith.constant 0 : i32
    return %c0_i32, %c0_i32_0, %c0_i32_1 : i32, i32, i32
  }
  func.func @transform_10(%arg0: i32) -> (i32, i32, i32) {
    %c0_i32 = arith.constant 0 : i32
    %c0_i32_0 = arith.constant 0 : i32
    %c0_i32_1 = arith.constant 0 : i32
    %c0_i32_2 = arith.constant 0 : i32
    return %c0_i32, %c0_i32_0, %c0_i32_1 : i32, i32, i32
  }
  func.func @transform_11(%arg0: i32) -> (i32, i32, i32) {
    %c0_i32 = arith.constant 0 : i32
    %c0_i32_0 = arith.constant 0 : i32
    %c0_i32_1 = arith.constant 0 : i32
    %c0_i32_2 = arith.constant 0 : i32
    return %c0_i32, %c0_i32_0, %c0_i32_1 : i32, i32, i32
  }
  func.func @transform_12(%arg0: i32) -> (i32, i32, i32) {
    %c0_i32 = arith.constant 0 : i32
    %c0_i32_0 = arith.constant 0 : i32
    %c0_i32_1 = arith.constant 0 : i32
    %c0_i32_2 = arith.constant 0 : i32
    return %c0_i32, %c0_i32_0, %c0_i32_1 : i32, i32, i32
  }
  func.func @transform_13(%arg0: i32) -> (i32, i32) {
    %c0_i32 = arith.constant 0 : i32
    %c0_i32_0 = arith.constant 0 : i32
    %c0_i32_1 = arith.constant 0 : i32
    return %c0_i32, %c0_i32_0 : i32, i32
  }
  func.func @transform_14(%arg0: i32) -> (i32, i32) {
    %c0_i32 = arith.constant 0 : i32
    %c0_i32_0 = arith.constant 0 : i32
    %c0_i32_1 = arith.constant 0 : i32
    return %c0_i32, %c0_i32_0 : i32, i32
  }
  func.func @transform_15(%arg0: i32) -> (i32, i32) {
    %c0_i32 = arith.constant 0 : i32
    %c0_i32_0 = arith.constant 0 : i32
    %c0_i32_1 = arith.constant 0 : i32
    return %c0_i32, %c0_i32_0 : i32, i32
  }
  func.func @transform_16(%arg0: i32) -> (i32, i32) {
    %c0_i32 = arith.constant 0 : i32
    %c0_i32_0 = arith.constant 0 : i32
    %c0_i32_1 = arith.constant 0 : i32
    return %c0_i32, %c0_i32_0 : i32, i32
  }
  func.func @transform_17(%arg0: i32) -> (i32, i32) {
    %c0_i32 = arith.constant 0 : i32
    %c0_i32_0 = arith.constant 0 : i32
    %c0_i32_1 = arith.constant 0 : i32
    return %c0_i32, %c0_i32_0 : i32, i32
  }
  func.func @transform_18(%arg0: i32) -> (i32, i32) {
    %c0_i32 = arith.constant 0 : i32
    %c0_i32_0 = arith.constant 0 : i32
    %c0_i32_1 = arith.constant 0 : i32
    return %c0_i32, %c0_i32_0 : i32, i32
  }
  func.func @transform_19(%arg0: i32) -> (i32, i32) {
    %c0_i32 = arith.constant 0 : i32
    %c0_i32_0 = arith.constant 0 : i32
    %c0_i32_1 = arith.constant 0 : i32
    return %c0_i32, %c0_i32_0 : i32, i32
  }
  func.func @transform_20(%arg0: i32) -> (i32, i32) {
    %c0_i32 = arith.constant 0 : i32
    %c0_i32_0 = arith.constant 0 : i32
    %c0_i32_1 = arith.constant 0 : i32
    return %c0_i32, %c0_i32_0 : i32, i32
  }
  func.func @transform_21(%arg0: i32) -> (i32, i32) {
    %c0_i32 = arith.constant 0 : i32
    %c0_i32_0 = arith.constant 0 : i32
    %c0_i32_1 = arith.constant 0 : i32
    return %c0_i32, %c0_i32_0 : i32, i32
  }
  func.func @transform_22(%arg0: i32) -> (i32, i32) {
    %c0_i32 = arith.constant 0 : i32
    %c0_i32_0 = arith.constant 0 : i32
    %c0_i32_1 = arith.constant 0 : i32
    return %c0_i32, %c0_i32_0 : i32, i32
  }
  func.func @transform_23(%arg0: i32) -> (i32, i32) {
    %c0_i32 = arith.constant 0 : i32
    %c0_i32_0 = arith.constant 0 : i32
    %c0_i32_1 = arith.constant 0 : i32
    return %c0_i32, %c0_i32_0 : i32, i32
  }
  func.func @transform_24(%arg0: i32) -> (i32, i32) {
    %c0_i32 = arith.constant 0 : i32
    %c0_i32_0 = arith.constant 0 : i32
    %c0_i32_1 = arith.constant 0 : i32
    return %c0_i32, %c0_i32_0 : i32, i32
  }
  func.func @transform_25(%arg0: i32) -> (i32, i32) {
    %c0_i32 = arith.constant 0 : i32
    %c0_i32_0 = arith.constant 0 : i32
    %c0_i32_1 = arith.constant 0 : i32
    return %c0_i32, %c0_i32_0 : i32, i32
  }
  func.func @transform_26(%arg0: i32) -> (i32, i32) {
    %c0_i32 = arith.constant 0 : i32
    %c0_i32_0 = arith.constant 0 : i32
    %c0_i32_1 = arith.constant 0 : i32
    return %c0_i32, %c0_i32_0 : i32, i32
  }
  func.func @transform_27(%arg0: i32) -> (i32, i32) {
    %c0_i32 = arith.constant 0 : i32
    %c0_i32_0 = arith.constant 0 : i32
    %c0_i32_1 = arith.constant 0 : i32
    return %c0_i32, %c0_i32_0 : i32, i32
  }
  func.func @transform_28(%arg0: i32) -> (i32, i32) {
    %c0_i32 = arith.constant 0 : i32
    %c0_i32_0 = arith.constant 0 : i32
    %c0_i32_1 = arith.constant 0 : i32
    return %c0_i32, %c0_i32_0 : i32, i32
  }
  func.func @transform_29(%arg0: i32) -> (i32, i32) {
    %c0_i32 = arith.constant 0 : i32
    %c0_i32_0 = arith.constant 0 : i32
    %c0_i32_1 = arith.constant 0 : i32
    return %c0_i32, %c0_i32_0 : i32, i32
  }
  func.func @transform_30(%arg0: i32) -> (i32, i32) {
    %c0_i32 = arith.constant 0 : i32
    %c0_i32_0 = arith.constant 0 : i32
    %c0_i32_1 = arith.constant 0 : i32
    return %c0_i32, %c0_i32_0 : i32, i32
  }
  func.func @transform_31(%arg0: i32) -> (i32, i32) {
    %c0_i32 = arith.constant 0 : i32
    %c0_i32_0 = arith.constant 0 : i32
    %c0_i32_1 = arith.constant 0 : i32
    return %c0_i32, %c0_i32_0 : i32, i32
  }
  func.func @transform_32(%arg0: i32) -> (i32, i32) {
    %c0_i32 = arith.constant 0 : i32
    %c0_i32_0 = arith.constant 0 : i32
    %c0_i32_1 = arith.constant 0 : i32
    return %c0_i32, %c0_i32_0 : i32, i32
  }
  func.func @transform_33(%arg0: i32) -> (i32, i32, i32, i32) {
    %c0_i32 = arith.constant 0 : i32
    %c0_i32_0 = arith.constant 0 : i32
    %c0_i32_1 = arith.constant 0 : i32
    %c0_i32_2 = arith.constant 0 : i32
    return %arg0, %c0_i32, %c0_i32_0, %c0_i32_1 : i32, i32, i32, i32
  }
  func.func @transform_34(%arg0: i32) -> (i32, i32, i32) {
    %c0_i32 = arith.constant 0 : i32
    %c0_i32_0 = arith.constant 0 : i32
    %c0_i32_1 = arith.constant 0 : i32
    return %arg0, %c0_i32, %c0_i32_0 : i32, i32, i32
  }
  func.func @transform_35(%arg0: i32) -> (i32, i32, i32) {
    %c0_i32 = arith.constant 0 : i32
    %c0_i32_0 = arith.constant 0 : i32
    %c0_i32_1 = arith.constant 0 : i32
    return %arg0, %c0_i32, %c0_i32_0 : i32, i32, i32
  }
  func.func @transform_36(%arg0: i32) -> (i32, i32, i32) {
    %c0_i32 = arith.constant 0 : i32
    %c0_i32_0 = arith.constant 0 : i32
    %c0_i32_1 = arith.constant 0 : i32
    %c0_i32_2 = arith.constant 0 : i32
    return %c0_i32, %c0_i32_0, %c0_i32_1 : i32, i32, i32
  }
  func.func @transform_37(%arg0: i32) -> (i32, i32, i32) {
    %c0_i32 = arith.constant 0 : i32
    %c0_i32_0 = arith.constant 0 : i32
    %c0_i32_1 = arith.constant 0 : i32
    %c0_i32_2 = arith.constant 0 : i32
    return %c0_i32, %c0_i32_0, %c0_i32_1 : i32, i32, i32
  }
  func.func @transform_38(%arg0: i32) -> (i32, i32) {
    %c0_i32 = arith.constant 0 : i32
    %c0_i32_0 = arith.constant 0 : i32
    %c0_i32_1 = arith.constant 0 : i32
    return %c0_i32, %c0_i32_0 : i32, i32
  }
}

</mosaic_0001>

<bundles_post_ra>
// kernel: fwd.1
= control target key start
LH: loop header
LB: loop body
LE: loop exit
PB: predicated region body
PF: predicated region fallthrough
CT: control target
= control target key end

     0   :  { %s13885_s6 = smov 1   ;;  %s13886_s10 = smov 2   ;;  %s16382_s0 = inlined_call_operand.smem [shape: u32[39], index: -1, kind: input, shape index: {}] }
   0x1   :  { %s13986_s5 = sld [smem:[%s16382_s0]]   ;;  %s13887_s14 = smov 3  }
   0x2   :  { %s13991_s9 = sld [smem:[%s16382_s0 + %s13885_s6]]   ;;  %s13888_s18 = smov 4  }
   0x3   :  { %s13996_s13 = sld [smem:[%s16382_s0 + %s13886_s10]]   ;;  %s13889_s22 = smov 5  }
   0x4   :  { %s14001_s17 = sld [smem:[%s16382_s0 + %s13887_s14]]   ;;  %s13890_s26 = smov 6  }
   0x5   :  { %s14006_s21 = sld [smem:[%s16382_s0 + %s13888_s18]]   ;;  %s13891_s30 = smov 7  }
   0x6   :  { %s14011_s25 = sld [smem:[%s16382_s0 + %s13889_s22]]   ;;  %s13892_s4 = smov 8  }
   0x7   :  { %16458 = sst [smem:[#allocation57_spill]] %s13986_s5  ;;  %s13893_s10 = smov 9  }
   0x8   :  { %16459 = sst [smem:[#allocation58_spill]] %s13991_s9  ;;  %s13894_s15 = smov 10  }
   0x9   :  { %16460 = sst [smem:[#allocation59_spill]] %s13996_s13  ;;  %s13895_s20 = smov 11  }
   0xa   :  { %16461 = sst [smem:[#allocation60_spill]] %s14001_s17  ;;  %s13897_s1 = smov 13  }
   0xb   :  { %s14016_s29 = sld [smem:[%s16382_s0 + %s13890_s26]]   ;;  %s13896_s26 = smov 12  }
   0xc   :  { %16462 = sst [smem:[#allocation61_spill]] %s14011_s25  ;;  %s13898_s7 = smov 14  }
   0xd   :  { %s14021_s3 = sld [smem:[%s16382_s0 + %s13891_s30]]   ;;  %s13900_s22 = smov 16  }
   0xe   :  { %s14026_s8 = sld [smem:[%s16382_s0 + %s13892_s4]]   ;;  %s13901_s28 = smov 17  }
   0xf   :  { %s14031_s14 = sld [smem:[%s16382_s0 + %s13893_s10]]   ;;  %s13903_s16 = smov 19  }
  0x10   :  { %s14036_s19 = sld [smem:[%s16382_s0 + %s13894_s15]]   ;;  %s13899_s15 = smov 15  }
  0x11   :  { %16463 = sst [smem:[#allocation62_spill]] %s14016_s29  ;;  %s13904_s23 = smov 20  }
  0x12   :  { %s14041_s24 = sld [smem:[%s16382_s0 + %s13895_s20]]   ;;  %s13906_s10 = smov 22  }
  0x13   :  { %16464 = sst [smem:[#allocation63_spill]] %s14021_s3 }
  0x14   :  { %16465 = sst [smem:[#allocation64_spill]] %s14026_s8 }
  0x15   :  { %16466 = sst [smem:[#allocation65_spill]] %s14031_s14 }
  0x16   :  { %16467 = sst [smem:[#allocation66_spill]] %s14036_s19 }
  0x17   :  { %s14046_s30 = sld [smem:[%s16382_s0 + %s13896_s26]]  }
  0x18   :  { %16468 = sst [smem:[#allocation67_spill]] %s14041_s24 }
  0x19   :  { %s14051_s6 = sld [smem:[%s16382_s0 + %s13897_s1]]   ;;  %s13905_s1 = smov 21  }
  0x1a   :  { %s14056_s12 = sld [smem:[%s16382_s0 + %s13898_s7]]   ;;  %s13902_s7 = smov 18  }
  0x1b   :  { %s14061_s20 = sld [smem:[%s16382_s0 + %s13899_s15]]   ;;  %s13911_s15 = smov 28  }
  0x1c   :  { %s14066_s27 = sld [smem:[%s16382_s0 + %s13900_s22]]  }
  0x1d   :  { %16469 = sst [smem:[#allocation68_spill]] %s14046_s30 }
  0x1e   :  { %s14071_s4 = sld [smem:[%s16382_s0 + %s13901_s28]]  }
  0x1f   :  { %16470 = sst [smem:[#allocation69_spill]] %s14051_s6 }
  0x20   :  { %16471 = sst [smem:[#allocation70_spill]] %s14056_s12 }
  0x21   :  { %16472 = sst [smem:[#allocation71_spill]] %s14061_s20 }
  0x22   :  { %16473 = sst [smem:[#allocation72_spill]] %s14066_s27 }
  0x23   :  { %s11048_s30 = sld [smem:[%s16382_s0 + %s13902_s7]]  }
  0x24   :  { %16474 = sst [smem:[#allocation73_spill]] %s14071_s4 }
  0x25   :  { %s14079_s24 = sld [smem:[%s16382_s0 + %s13903_s16]]   ;;  %s13907_s16 = smov 23  }
  0x26   :  { %s14084_s29 = sld [smem:[%s16382_s0 + %s13904_s23]]   ;;  %s13908_s23 = smov 24  }
  0x27   :  { %s14089_s25 = sld [smem:[%s16382_s0 + %s13905_s1]]   ;;  %s13909_s1 = smov 25  }
  0x28   :  { %s14094_s27 = sld [smem:[%s16382_s0 + %s13906_s10]]   ;;  %s13910_s10 = smov 27  }
  0x29   :  { %s14104_s12 = sld [smem:[%s16382_s0 + %s13908_s23]]   ;;  %v83_v0 = vstv %s11048_s30  ;;  %s13912_s30 = smov 29  }
  0x2a   :  { %s14109_s7 = sld [smem:[%s16382_s0 + %s13909_s1]]   ;;  %84 = vst [vmem:[#allocation5] sm:$0x1] %v83_v0  ;;  %s13913_s1 = smov 30  }
  0x2b   :  { %16475 = sst [smem:[#allocation74_spill]] %s14079_s24 }
  0x2c   :  { %s14099_s24 = sld [smem:[%s16382_s0 + %s13907_s16]]  }
  0x2d   :  { %16476 = sst [smem:[#allocation75_spill]] %s14089_s25  ;;  %s13914_s25 = smov 31  }
  0x2e   :  { %s14114_s16 = sld [smem:[%s16382_s0 + %s13910_s10]]  }
  0x2f   :  { %16478 = sst [smem:[#allocation77_spill]] %s14104_s12 }
  0x30   :  { %16479 = sst [smem:[#allocation78_spill]] %s14109_s7  ;;  %s13917_s7 = smov 34  }
  0x31   :  { %s14119_s23 = sld [smem:[%s16382_s0 + %s13911_s15]]  }
  0x32   :  { %16477 = sst [smem:[#allocation76_spill]] %s14099_s24  ;;  %s13915_s24 = smov 32  }
  0x33   :  { %s14124_s28 = sld [smem:[%s16382_s0 + %s13912_s30]]   ;;  %s13916_s30 = smov 33  }
  0x34   :  { %16480 = sst [smem:[#allocation79_spill]] %s14114_s16 }
  0x35   :  { %s14129_s19 = sld [smem:[%s16382_s0 + %s13913_s1]]  }
  0x36   :  { %s14134_s16 = sld [smem:[%s16382_s0 + %s13914_s25]]   ;;  %s13918_s25 = smov 35  }
  0x37   :  { %16481 = sst [smem:[#allocation80_spill]] %s14119_s23 }
  0x38   :  { %s14139_s23 = sld [smem:[%s16382_s0 + %s13915_s24]]   ;;  %s13919_s24 = smov 36  }
  0x39   :  { %16482 = sst [smem:[#allocation81_spill]] %s14124_s28 }
  0x3a   :  { %s14144_s28 = sld [smem:[%s16382_s0 + %s13916_s30]]   ;;  %s13920_s30 = smov 37  }
  0x3b   :  { %16483 = sst [smem:[#allocation82_spill]] %s14129_s19 }
  0x3c   :  { %16484 = sst [smem:[#allocation83_spill]] %s14134_s16 }
  0x3d   :  { %s14149_s19 = sld [smem:[%s16382_s0 + %s13917_s7]]   ;;  %s13921_s7 = smov 38  }
  0x3e   :  { %16485 = sst [smem:[#allocation84_spill]] %s14139_s23 }
  0x3f   :  { %s14154_s16 = sld [smem:[%s16382_s0 + %s13918_s25]]   ;;  %s13922_s25 = smov 26  }
  0x40   :  { %16486 = sst [smem:[#allocation85_spill]] %s14144_s28 }
  0x41   :  { %s14159_s23 = sld [smem:[%s16382_s0 + %s13919_s24]]  }
  0x42   :  { %s14164_s28 = sld [smem:[%s16382_s0 + %s13920_s30]]  }
  0x43   :  { %16487 = sst [smem:[#allocation86_spill]] %s14149_s19 }
  0x44   :  { %s14169_s19 = sld [smem:[%s16382_s0 + %s13921_s7]]  }
  0x45   :  { %16488 = sst [smem:[#allocation87_spill]] %s14154_s16 }
  0x46   :  { %s11056_s16 = sld [smem:[%s16382_s0 + %s13922_s25]]  }
  0x4c   :  { %v85_v1 = vstv %s11056_s16 }
  0x4d   :  { %86 = vst [vmem:[#allocation6] sm:$0x1] %v85_v1 }
  0x4e   :  { %87 = vsyncpa [#allocation8], 0 }
  0x4f   :  { %88 = vsyncpa [#allocation11], 0 }
  0x50   :  { %89 = vsyncpa [#allocation14], 0 }
  0x51   :  { %90 = vsyncpa [#allocation17], 0 }
  0x52   :  { %91 = vsyncpa [#allocation20], 0 }
  0x53   :  { %92 = vsyncpa [#allocation23], 0 }
  0x54   :  { %93 = vsyncpa [#allocation26], 0 }
  0x55   :  { %94 = vsyncpa [#allocation29], 0 }
  0x56   :  { %95 = vsyncpa [#allocation32], 0 }
  0x57   :  { %96 = vsyncpa [#allocation35], 0 }
  0x58   :  { %97 = vsyncpa [#allocation38], 0 }
  0x59   :  { %98 = vsyncpa [#allocation9], 0 }
  0x5a   :  { %100 = vsyncpa [#allocation9 + $0x1], 0 }
  0x5b   :  { %101 = vsyncpa [#allocation42], 0  ;;  %s14174_s24 = smov 0   ;;  %s14176_s15 = smov 0  }
  0x5c   :  { %s14178_s0 = smov 0   ;;  %s14180_s16 = smov 0  }
  0x5d LB: > { %s16489_s20 = sld [smem:[#allocation71_spill]]  ;;  %s16490_s14 = sld [smem:[#allocation65_spill]]  ;;  %s13879_s0 = sphi %s14178_s0, %s16609_s0   ;;  %s13875_s15 = sphi %s14176_s15, %s16611_s15   ;;  %s13871_s24 = sphi %s14174_s24, %s16610_s24   ;;  %s13883_s16 = sphi %s14180_s16, %s16607_s16  }
  0x5e   : > { %s16491_s13 = sld [smem:[#allocation59_spill]]  ;;  %s16492_s12 = sld [smem:[#allocation77_spill]] }
  0x5f   : > { %s16493_s8 = sld [smem:[#allocation64_spill]]  ;;  %s16494_s6 = sld [smem:[#allocation69_spill]] }
  0x60   : > { %s16495_s5 = sld [smem:[#allocation57_spill]]  ;;  %s16497_s3 = sld [smem:[#allocation63_spill]] }
  0x61   : > { %s16496_s4 = sld [smem:[#allocation73_spill]]  ;;  %s16498_s17 = sld [smem:[#allocation60_spill]] }
  0x62   : > { %s16499_s9 = sld [smem:[#allocation58_spill]]  ;;  %16500 = sst [smem:[#allocation88_spill]] %s13871_s24 }
  0x63   : > { %16501 = sst [smem:[#allocation89_spill]] %s13879_s0  ;;  %s14195_s18 = sadd.s32 4294967295, %s13883_s16  }
  0x64   : > { %s11070_s30 = sadd.s32 4294967294, %s13883_s16   ;;  %s14199_s22 = sadd.s32 1, %s13883_s16  }
  0x65   : > { %16502 = sst [smem:[#allocation90_spill]] %s14199_s22  ;;  %s807_s26 = sadd.s32 1, %s13879_s0 }
  0x66   : > { %s804_s7 = ssub.s32 %s13883_s16, %s14199_s22  ;;  %p817_p0 = scmp.ne.s32.totalorder %s13879_s0, %s13875_s15 }
  0x67   : > { %p805_p1 = scmp.eq.s32.totalorder %s804_s7, 0  ;;  %p16402_p2 = scmp.eq.s32.totalorder %s14195_s18, 2 }
  0x68   : > { %p823_p3 = scmp.ne.s32.totalorder %s13875_s15, %s13871_s24  ;;  %p824_p4 = scmp.eq.s32.totalorder %s11070_s30, 2 }
  0x69   : > { %s14210_s1 = scalar_select %p805_p1, %s13879_s0, %s807_s26  }
  0x6a   : > { %p14214_p5 = por %p16402_p2, %p817_p0  ;;  %p14218_p6 = por %p824_p4, %p823_p3 }
  0x6b   : > { %16503 = sst [smem:[#allocation91_spill]] %s14210_s1  ;;  %p11071_p7 = scmp.ge.s32.totalorder %s13883_s16, 1 }
  0x6c   : > { %s16504_s2 = scalar_select %p14214_p5, 1, 0 }
  0x6d   : > { %s16505_s25 = scalar_select %p14218_p6, 1, 0 }
  0x6e   : > { %p946_p8 = scmp.lt.s32.totalorder %s13883_s16, 4  ;;  %p16403_p10 = scmp.eq.s32.totalorder %s14195_s18, 0 }
  0x6f   : > { %16506 = sst [smem:[#allocation92_spill]] %s16505_s25  ;;  %s13923_s11 = smov [#allocation10]  }
  0x70   : > { %p14226_p11 = pnand %p11071_p7, %p946_p8  ;;  %s971_s30 = sshll.u32 %s13923_s11, 4  ;;  %s14232_s30 = int_to_ptr.vmem [resolvable:$true] %s971_s30 }
  0x71   : > { %s13924_s7 = smov [#allocation13]   ;;  %s13925_s0 = smov [#allocation16]  }
  0x72   : > { %s16507_s10 = scalar_select %p14226_p11, 1, 0 }
  0x73   : > { %p12697_p12 = pneg %p14226_p11  ;;  %s997_s1 = sshll.u32 %s13924_s7, 4  ;;  %s14240_s1 = int_to_ptr.vmem [resolvable:$true] %s997_s1 }
  0x74   : > { %s14242_s22 = sshll.u32 %s13925_s0, 4  ;;  %s13133_s25 = scalar_lea.hbm %s16499_s9, 1024  ;;  %s1030_s22 = int_to_ptr.vmem [resolvable:$true] %s14242_s22 }
  0x75   : > { %p14236_p13 = pnand %p16403_p10, %p12697_p12  ;;  %p13134_p0 = scmp.ne.s32.totalorder %s16499_s9, %s13133_s25 }
  0x76   : > { %p13140_p7 = scmp.lt.u32.totalorder %s13133_s25, %s16499_s9 }
  0x77   : > { %p14248_p1 = pneg %p14236_p13 }
  0x79   : > { %p13136_p3 = pnand %p14248_p1, %p13134_p0 }
  0x7b   : > { %p13137_p4 = pneg %p13136_p3 }
  0x7d   : > { %p13142_p8 = pnand %p13140_p7, %p13137_p4 }
  0x7f   : > { %13145 = shalt.err (!%p13142_p8)
}
  0x80   : > { %s13146_s0 = scalar_lea.vmem %s14232_s30, 1024  ;;  %p13154_p10 = scmp.lt.s32.totalorder %s14232_s30, %s14232_s30 }
  0x81   : > { %p13147_p12 = scmp.ne.s32.totalorder %s14232_s30, %s13146_s0  ;;  %p13155_p6 = scmp.lt.s32.totalorder %s13146_s0, %s13146_s0 }
  0x83   : > { %p13149_p2 = pnand %p13147_p12, %p14248_p1  ;;  %p13156_p5 = por %p13155_p6, %p13154_p10 }
  0x85   : > { %p13150_p9 = pneg %p13149_p2 }
  0x87   : > { %p13157_p11 = pnand %p13156_p5, %p13150_p9 }
  0x89   : > { %13160 = shalt.err (!%p13157_p11)
}
  0x8a   : > { %s16409_s7 = smov 128   ;;  %s16411_s25 = smov 8  }
  0x8b   : > { %12703 = dma.hbm_to_vmem [thread:$0]  (!%p14236_p13), %s16499_s9, 1024, %s14232_s30, [#allocation11], %s16409_s7, %s16409_s7, %s16411_s25  }
  0x8c   : > { %s13161_s24 = scalar_lea.hbm %s16498_s17, 1024 }
  0x8d   : > { %p13162_p2 = scmp.ne.s32.totalorder %s16498_s17, %s13161_s24  ;;  %p13168_p9 = scmp.lt.u32.totalorder %s13161_s24, %s16498_s17 }
  0x8f   : > { %p13164_p6 = pnand %p13162_p2, %p14248_p1 }
  0x91   : > { %p13165_p5 = pneg %p13164_p6 }
  0x93   : > { %p13170_p10 = pnand %p13168_p9, %p13165_p5 }
  0x95   : > { %13173 = shalt.err (!%p13170_p10)
}
  0x96   : > { %s13174_s0 = scalar_lea.vmem %s14240_s1, 1024  ;;  %p13182_p4 = scmp.lt.s32.totalorder %s14240_s1, %s14240_s1 }
  0x97   : > { %p13175_p11 = scmp.ne.s32.totalorder %s14240_s1, %s13174_s0  ;;  %p13183_p7 = scmp.lt.s32.totalorder %s13174_s0, %s13174_s0 }
  0x99   : > { %p13177_p0 = pnand %p13175_p11, %p14248_p1  ;;  %p13184_p8 = por %p13183_p7, %p13182_p4 }
  0x9b   : > { %p13178_p3 = pneg %p13177_p0 }
  0x9d   : > { %p13185_p12 = pnand %p13184_p8, %p13178_p3 }
  0x9f   : > { %13188 = shalt.err (!%p13185_p12)
}
  0xa0   : > { %12709 = dma.hbm_to_vmem [thread:$0]  (!%p14236_p13), %s16498_s17, 1024, %s14240_s1, [#allocation14], %s16409_s7, %s16409_s7, %s16411_s25  }
  0xa1   : > { %s13189_s24 = scalar_lea.hbm %s16497_s3, 1024 }
  0xa2   : > { %p13190_p2 = scmp.ne.s32.totalorder %s16497_s3, %s13189_s24  ;;  %p13196_p9 = scmp.lt.u32.totalorder %s13189_s24, %s16497_s3 }
  0xa4   : > { %p13192_p6 = pnand %p13190_p2, %p14248_p1 }
  0xa6   : > { %p13193_p5 = pneg %p13192_p6 }
  0xa8   : > { %p13198_p10 = pnand %p13196_p9, %p13193_p5 }
  0xaa   : > { %13201 = shalt.err (!%p13198_p10)
}
  0xab   : > { %s13202_s30 = scalar_lea.vmem %s1030_s22, 1024  ;;  %p13210_p4 = scmp.lt.s32.totalorder %s1030_s22, %s1030_s22 }
  0xac   : > { %p13203_p11 = scmp.ne.s32.totalorder %s1030_s22, %s13202_s30  ;;  %p13211_p7 = scmp.lt.s32.totalorder %s13202_s30, %s13202_s30 }
  0xae   : > { %p13205_p0 = pnand %p13203_p11, %p14248_p1  ;;  %p13212_p8 = por %p13211_p7, %p13210_p4 }
  0xb0   : > { %p13206_p3 = pneg %p13205_p0 }
  0xb2   : > { %p13213_p12 = pnand %p13212_p8, %p13206_p3 }
  0xb4   : > { %13216 = shalt.err (!%p13213_p12)
}
  0xb5   : > { %12715 = dma.hbm_to_vmem [thread:$0]  (!%p14236_p13), %s16497_s3, 1024, %s1030_s22, [#allocation17], %s16409_s7, %s16409_s7, %s16411_s25  }
  0xb6   : > { %s13928_s1 = smov [#allocation19]   ;;  %s13929_s24 = smov [#allocation22]  }
  0xb7   : > { %s1055_s0 = sshll.u32 %s13928_s1, 4  ;;  %s1087_s9 = sshll.u32 %s13929_s24, 4  ;;  %s1056_s0 = int_to_ptr.vmem [resolvable:$true] %s1055_s0  ;;  %s1088_s9 = int_to_ptr.vmem [resolvable:$true] %s1087_s9 }
  0xb8   : > { %s13217_s30 = scalar_lea.hbm %s16490_s14, 2048 }
  0xb9   : > { %p13218_p2 = scmp.ne.s32.totalorder %s16490_s14, %s13217_s30  ;;  %p13224_p9 = scmp.lt.u32.totalorder %s13217_s30, %s16490_s14 }
  0xbb   : > { %p13220_p6 = pnand %p13218_p2, %p14248_p1 }
  0xbd   : > { %p13221_p5 = pneg %p13220_p6 }
  0xbf   : > { %p13226_p10 = pnand %p13224_p9, %p13221_p5 }
  0xc1   : > { %13229 = shalt.err (!%p13226_p10)
}
  0xc2   : > { %s13230_s17 = scalar_lea.vmem %s1056_s0, 2048  ;;  %p13238_p4 = scmp.lt.s32.totalorder %s1056_s0, %s1056_s0 }
  0xc3   : > { %p13231_p11 = scmp.ne.s32.totalorder %s1056_s0, %s13230_s17  ;;  %p13239_p7 = scmp.lt.s32.totalorder %s13230_s17, %s13230_s17 }
  0xc5   : > { %p13233_p0 = pnand %p13231_p11, %p14248_p1  ;;  %p13240_p8 = por %p13239_p7, %p13238_p4 }
  0xc7   : > { %p13234_p3 = pneg %p13233_p0 }
  0xc9   : > { %p13241_p12 = pnand %p13240_p8, %p13234_p3 }
  0xcb   : > { %13244 = shalt.err (!%p13241_p12)
}
  0xcc   : > { %12721 = dma.hbm_to_vmem [thread:$0]  (!%p14236_p13), %s16490_s14, 2048, %s1056_s0, [#allocation20], %s16409_s7, %s16409_s7, %s16411_s25  }
  0xcd   : > { %s13245_s22 = scalar_lea.hbm %s16494_s6, 4096 }
  0xce   : > { %p13246_p2 = scmp.ne.s32.totalorder %s16494_s6, %s13245_s22  ;;  %p13252_p9 = scmp.lt.u32.totalorder %s13245_s22, %s16494_s6 }
  0xd0   : > { %p13248_p6 = pnand %p13246_p2, %p14248_p1 }
  0xd2   : > { %p13249_p5 = pneg %p13248_p6 }
  0xd4   : > { %p13254_p10 = pnand %p13252_p9, %p13249_p5 }
  0xd6   : > { %13257 = shalt.err (!%p13254_p10)
}
  0xd7   : > { %s13258_s17 = scalar_lea.vmem %s1088_s9, 4096  ;;  %p13266_p4 = scmp.lt.s32.totalorder %s1088_s9, %s1088_s9 }
  0xd8   : > { %p13259_p11 = scmp.ne.s32.totalorder %s1088_s9, %s13258_s17  ;;  %p13267_p7 = scmp.lt.s32.totalorder %s13258_s17, %s13258_s17 }
  0xda   : > { %p13261_p0 = pnand %p13259_p11, %p14248_p1  ;;  %p13268_p8 = por %p13267_p7, %p13266_p4 }
  0xdc   : > { %p13262_p3 = pneg %p13261_p0 }
  0xde   : > { %p13269_p12 = pnand %p13268_p8, %p13262_p3 }
  0xe0   : > { %13272 = shalt.err (!%p13269_p12)
}
  0xe1   : > { %s13930_s1 = smov 1024   ;;  %s13931_s0 = smov 64  }
  0xe2   : > { %12727 = dma.hbm_to_vmem [thread:$0]  (!%p14236_p13), %s16494_s6, 4096, %s1088_s9, [#allocation23], %s13930_s1, %s13930_s1, %s13931_s0  }
  0xe3   : > { %s13932_s24 = smov [#allocation25]   ;;  %s13933_s22 = smov [#allocation28]  }
  0xe4   : > { %s1111_s30 = sshll.u32 %s13932_s24, 4  ;;  %s1136_s7 = sshll.u32 %s13933_s22, 4  ;;  %s1112_s30 = int_to_ptr.vmem [resolvable:$true] %s1111_s30  ;;  %s1137_s7 = int_to_ptr.vmem [resolvable:$true] %s1136_s7 }
  0xe5   : > { %s13273_s25 = scalar_lea.hbm %s16489_s20, 512 }
  0xe6   : > { %p13274_p2 = scmp.ne.s32.totalorder %s16489_s20, %s13273_s25  ;;  %p13280_p9 = scmp.lt.u32.totalorder %s13273_s25, %s16489_s20 }
  0xe8   : > { %p13276_p6 = pnand %p13274_p2, %p14248_p1 }
  0xea   : > { %p13277_p5 = pneg %p13276_p6 }
  0xec   : > { %p13282_p10 = pnand %p13280_p9, %p13277_p5 }
  0xee   : > { %13285 = shalt.err (!%p13282_p10)
}
  0xef   : > { %s13286_s17 = scalar_lea.vmem %s1112_s30, 512  ;;  %p13294_p4 = scmp.lt.s32.totalorder %s1112_s30, %s1112_s30 }
  0xf0   : > { %p13287_p11 = scmp.ne.s32.totalorder %s1112_s30, %s13286_s17  ;;  %p13295_p7 = scmp.lt.s32.totalorder %s13286_s17, %s13286_s17 }
  0xf2   : > { %p13289_p0 = pnand %p13287_p11, %p14248_p1  ;;  %p13296_p8 = por %p13295_p7, %p13294_p4 }
  0xf4   : > { %p13290_p3 = pneg %p13289_p0 }
  0xf6   : > { %p13297_p12 = pnand %p13296_p8, %p13290_p3 }
  0xf8   : > { %13300 = shalt.err (!%p13297_p12)
}
  0xf9   : > { %s16510_s9 = smov 8   ;;  %s16511_s1 = smov 128  }
  0xfa   : > { %12733 = dma.hbm_to_vmem [thread:$0]  (!%p14236_p13), %s16489_s20, 512, %s1112_s30, [#allocation26], %s16511_s1, %s16511_s1, %s16510_s9  }
  0xfb   : > { %s13301_s25 = scalar_lea.hbm %s16496_s4, 16 }
  0xfc   : > { %p13302_p2 = scmp.ne.s32.totalorder %s16496_s4, %s13301_s25  ;;  %p13308_p9 = scmp.lt.u32.totalorder %s13301_s25, %s16496_s4 }
  0xfe   : > { %p13304_p6 = pnand %p13302_p2, %p14248_p1 }
 0x100   : > { %p13305_p5 = pneg %p13304_p6 }
 0x102   : > { %p13310_p10 = pnand %p13308_p9, %p13305_p5 }
 0x104   : > { %13313 = shalt.err (!%p13310_p10)
}
 0x105   : > { %s13314_s0 = scalar_lea.vmem %s1137_s7, 16  ;;  %s13321_s24 = scalar_lea.vmem %s1137_s7, 32 }
 0x106   : > { %p13315_p11 = scmp.ne.s32.totalorder %s1137_s7, %s13314_s0  ;;  %p13322_p4 = scmp.lt.s32.totalorder %s1137_s7, %s1137_s7 }
 0x107   : > { %p13323_p7 = scmp.lt.s32.totalorder %s13321_s24, %s13314_s0 }
 0x108   : > { %p13317_p0 = pnand %p13315_p11, %p14248_p1 }
 0x109   : > { %p13324_p8 = por %p13323_p7, %p13322_p4 }
 0x10a   : > { %p13318_p3 = pneg %p13317_p0 }
 0x10c   : > { %p13325_p12 = pnand %p13324_p8, %p13318_p3 }
 0x10e   : > { %13328 = shalt.err (!%p13325_p12)
}
 0x10f   : > { %12739 = dma.hbm_to_vmem [thread:$0]  (!%p14236_p13), %s16496_s4, 16, %s1137_s7, [#allocation29]  }
 0x110   : > { %s13934_s30 = smov [#allocation31]   ;;  %s13935_s17 = smov [#allocation34]  }
 0x111   : > { %s1162_s22 = sshll.u32 %s13934_s30, 4  ;;  %s1187_s25 = sshll.u32 %s13935_s17, 4  ;;  %s1163_s22 = int_to_ptr.vmem [resolvable:$true] %s1162_s22  ;;  %s1188_s25 = int_to_ptr.vmem [resolvable:$true] %s1187_s25 }
 0x112   : > { %s13329_s3 = scalar_lea.hbm %s14084_s29, 512 }
 0x113   : > { %p13330_p2 = scmp.ne.s32.totalorder %s14084_s29, %s13329_s3  ;;  %p13336_p9 = scmp.lt.u32.totalorder %s13329_s3, %s14084_s29 }
 0x115   : > { %p13332_p6 = pnand %p13330_p2, %p14248_p1 }
 0x117   : > { %p13333_p5 = pneg %p13332_p6 }
 0x119   : > { %p13338_p10 = pnand %p13336_p9, %p13333_p5 }
 0x11b   : > { %13341 = shalt.err (!%p13338_p10)
}
 0x11c   : > { %s13342_s0 = scalar_lea.vmem %s1163_s22, 512  ;;  %p13350_p4 = scmp.lt.s32.totalorder %s1163_s22, %s1163_s22 }
 0x11d   : > { %p13343_p11 = scmp.ne.s32.totalorder %s1163_s22, %s13342_s0  ;;  %p13351_p7 = scmp.lt.s32.totalorder %s13342_s0, %s13342_s0 }
 0x11f   : > { %p13345_p0 = pnand %p13343_p11, %p14248_p1  ;;  %p13352_p8 = por %p13351_p7, %p13350_p4 }
 0x121   : > { %p13346_p3 = pneg %p13345_p0 }
 0x123   : > { %p13353_p12 = pnand %p13352_p8, %p13346_p3 }
 0x125   : > { %13356 = shalt.err (!%p13353_p12)
}
 0x126   : > { %12745 = dma.hbm_to_vmem [thread:$0]  (!%p14236_p13), %s14084_s29, 512, %s1163_s22, [#allocation32], %s16511_s1, %s16511_s1, %s16510_s9  }
 0x127   : > { %s13357_s3 = scalar_lea.hbm %s14094_s27, 16 }
 0x128   : > { %p13358_p2 = scmp.ne.s32.totalorder %s14094_s27, %s13357_s3  ;;  %p13364_p9 = scmp.lt.u32.totalorder %s13357_s3, %s14094_s27 }
 0x12a   : > { %p13360_p6 = pnand %p13358_p2, %p14248_p1 }
 0x12c   : > { %p13361_p5 = pneg %p13360_p6 }
 0x12e   : > { %p13366_p10 = pnand %p13364_p9, %p13361_p5 }
 0x130   : > { %13369 = shalt.err (!%p13366_p10)
}
 0x131   : > { %s13370_s7 = scalar_lea.vmem %s1188_s25, 16  ;;  %s13377_s24 = scalar_lea.vmem %s1188_s25, 32 }
 0x132   : > { %p13371_p11 = scmp.ne.s32.totalorder %s1188_s25, %s13370_s7  ;;  %p13378_p4 = scmp.lt.s32.totalorder %s1188_s25, %s1188_s25 }
 0x133   : > { %p13379_p7 = scmp.lt.s32.totalorder %s13377_s24, %s13370_s7 }
 0x134   : > { %p13373_p0 = pnand %p13371_p11, %p14248_p1 }
 0x135   : > { %p13380_p8 = por %p13379_p7, %p13378_p4 }
 0x136   : > { %p13374_p3 = pneg %p13373_p0 }
 0x138   : > { %p13381_p12 = pnand %p13380_p8, %p13374_p3 }
 0x13a   : > { %13384 = shalt.err (!%p13381_p12)
}
 0x13b   : > { %12751 = dma.hbm_to_vmem [thread:$0]  (!%p14236_p13), %s14094_s27, 16, %s1188_s25, [#allocation35]  }
 0x13c   : > { %s13936_s30 = smov [#allocation37]   ;;  %s13937_s17 = smov [#allocation7]  }
 0x13d   : > { %s1211_s22 = sshll.u32 %s13936_s30, 4  ;;  %s958_s0 = sshll.u32 %s13937_s17, 4  ;;  %s1212_s22 = int_to_ptr.vmem [resolvable:$true] %s1211_s22  ;;  %s959_s0 = int_to_ptr.vmem [resolvable:$true] %s958_s0 }
 0x13e   : > { %s13385_s3 = scalar_lea.hbm %s16492_s12, 16 }
 0x13f   : > { %p13386_p2 = scmp.ne.s32.totalorder %s16492_s12, %s13385_s3  ;;  %p13392_p9 = scmp.lt.u32.totalorder %s13385_s3, %s16492_s12 }
 0x141   : > { %p13388_p6 = pnand %p13386_p2, %p14248_p1 }
 0x143   : > { %p13389_p5 = pneg %p13388_p6 }
 0x145   : > { %p13394_p10 = pnand %p13392_p9, %p13389_p5 }
 0x147   : > { %13397 = shalt.err (!%p13394_p10)
}
 0x148   : > { %s13398_s7 = scalar_lea.vmem %s1212_s22, 16  ;;  %s13405_s25 = scalar_lea.vmem %s1212_s22, 32 }
 0x149   : > { %p13399_p11 = scmp.ne.s32.totalorder %s1212_s22, %s13398_s7  ;;  %p13406_p4 = scmp.lt.s32.totalorder %s1212_s22, %s1212_s22 }
 0x14a   : > { %p13407_p7 = scmp.lt.s32.totalorder %s13405_s25, %s13398_s7 }
 0x14b   : > { %p13401_p0 = pnand %p13399_p11, %p14248_p1 }
 0x14c   : > { %p13408_p8 = por %p13407_p7, %p13406_p4 }
 0x14d   : > { %p13402_p3 = pneg %p13401_p0 }
 0x14f   : > { %p13409_p12 = pnand %p13408_p8, %p13402_p3 }
 0x151   : > { %13412 = shalt.err (!%p13409_p12)
}
 0x152   : > { %12757 = dma.hbm_to_vmem [thread:$0]  (!%p14236_p13), %s16492_s12, 16, %s1212_s22, [#allocation38]  }
 0x153   : > { %s13413_s24 = scalar_lea.hbm %s16495_s5, 256 }
 0x154   : > { %p13414_p2 = scmp.ne.s32.totalorder %s16495_s5, %s13413_s24  ;;  %p13420_p9 = scmp.lt.u32.totalorder %s13413_s24, %s16495_s5 }
 0x156   : > { %p13416_p6 = pnand %p13414_p2, %p14248_p1 }
 0x158   : > { %p13417_p5 = pneg %p13416_p6 }
 0x15a   : > { %p13422_p10 = pnand %p13420_p9, %p13417_p5 }
 0x15c   : > { %13425 = shalt.err (!%p13422_p10)
}
 0x15d   : > { %s13426_s30 = scalar_lea.vmem %s959_s0, 256  ;;  %p13434_p4 = scmp.lt.s32.totalorder %s959_s0, %s959_s0 }
 0x15e   : > { %p13427_p11 = scmp.ne.s32.totalorder %s959_s0, %s13426_s30  ;;  %p13435_p7 = scmp.lt.s32.totalorder %s13426_s30, %s13426_s30 }
 0x160   : > { %p13429_p0 = pnand %p13427_p11, %p14248_p1  ;;  %p13436_p8 = por %p13435_p7, %p13434_p4 }
 0x162   : > { %p13430_p3 = pneg %p13429_p0 }
 0x164   : > { %p13437_p12 = pnand %p13436_p8, %p13430_p3 }
 0x166   : > { %13440 = shalt.err (!%p13437_p12)
}
 0x167   : > { %12700 = dma.hbm_to_vmem [thread:$0]  (!%p14236_p13), %s16495_s5, 256, %s959_s0, [#allocation8], %s16511_s1, %s16511_s1, %s16510_s9  }
 0x168   : > { %s13938_s22 = smov [#allocation12]   ;;  %s13441_s3 = scalar_lea.hbm %s16491_s13, 32 }
 0x169   : > { %s984_s17 = sshll.u32 %s13938_s22, 4  ;;  %p13442_p2 = scmp.ne.s32.totalorder %s16491_s13, %s13441_s3  ;;  %s985_s17 = int_to_ptr.vmem [resolvable:$true] %s984_s17 }
 0x16a   : > { %p13448_p9 = scmp.lt.u32.totalorder %s13441_s3, %s16491_s13 }
 0x16b   : > { %p13444_p6 = pnand %p13442_p2, %p14248_p1 }
 0x16d   : > { %p13445_p5 = pneg %p13444_p6 }
 0x16f   : > { %p13450_p10 = pnand %p13448_p9, %p13445_p5 }
 0x171   : > { %13453 = shalt.err (!%p13450_p10)
}
 0x172   : > { %s13454_s7 = scalar_lea.vmem %s985_s17, 32  ;;  %p13462_p4 = scmp.lt.s32.totalorder %s985_s17, %s985_s17 }
 0x173   : > { %p13455_p11 = scmp.ne.s32.totalorder %s985_s17, %s13454_s7  ;;  %p13463_p7 = scmp.lt.s32.totalorder %s13454_s7, %s13454_s7 }
 0x175   : > { %p13457_p0 = pnand %p13455_p11, %p14248_p1  ;;  %p13464_p8 = por %p13463_p7, %p13462_p4 }
 0x177   : > { %p13458_p3 = pneg %p13457_p0 }
 0x179   : > { %p13465_p12 = pnand %p13464_p8, %p13458_p3 }
 0x17b   : > { %13468 = shalt.err (!%p13465_p12)
}
 0x17c   : > { %s13939_s0 = smov 16   ;;  %s13940_s25 = smov 1  }
 0x17d   : > { %12706 = dma.hbm_to_vmem [thread:$0]  (!%p14236_p13), %s16491_s13, 32, %s985_s17, [#allocation11], %s13939_s0, %s13939_s0, %s13940_s25  }
 0x17e   : > { %s13941_s24 = smov [#allocation15]   ;;  %s13942_s22 = smov [#allocation18]  }
 0x17f   : > { %s1010_s30 = sshll.u32 %s13941_s24, 4  ;;  %s1042_s3 = sshll.u32 %s13942_s22, 4  ;;  %s1011_s30 = int_to_ptr.vmem [resolvable:$true] %s1010_s30  ;;  %s14405_s3 = int_to_ptr.vmem [resolvable:$true] %s1042_s3 }
 0x180   : > { %s13469_s7 = scalar_lea.hbm %s14006_s21, 32 }
 0x181   : > { %p13470_p2 = scmp.ne.s32.totalorder %s14006_s21, %s13469_s7  ;;  %p13476_p9 = scmp.lt.u32.totalorder %s13469_s7, %s14006_s21 }
 0x183   : > { %p13472_p6 = pnand %p13470_p2, %p14248_p1 }
 0x185   : > { %p13473_p5 = pneg %p13472_p6 }
 0x187   : > { %p13478_p10 = pnand %p13476_p9, %p13473_p5 }
 0x189   : > { %13481 = shalt.err (!%p13478_p10)
}
 0x18a   : > { %s13482_s4 = scalar_lea.vmem %s1011_s30, 32  ;;  %p13490_p4 = scmp.lt.s32.totalorder %s1011_s30, %s1011_s30 }
 0x18b   : > { %p13483_p11 = scmp.ne.s32.totalorder %s1011_s30, %s13482_s4  ;;  %p13491_p7 = scmp.lt.s32.totalorder %s13482_s4, %s13482_s4 }
 0x18d   : > { %p13485_p0 = pnand %p13483_p11, %p14248_p1  ;;  %p13492_p8 = por %p13491_p7, %p13490_p4 }
 0x18f   : > { %p13486_p3 = pneg %p13485_p0 }
 0x191   : > { %p13493_p12 = pnand %p13492_p8, %p13486_p3 }
 0x193   : > { %13496 = shalt.err (!%p13493_p12)
}
 0x194   : > { %12712 = dma.hbm_to_vmem [thread:$0]  (!%p14236_p13), %s14006_s21, 32, %s1011_s30, [#allocation14], %s13939_s0, %s13939_s0, %s13940_s25  }
 0x195   : > { %s13497_s17 = scalar_lea.hbm %s16493_s8, 32 }
 0x196   : > { %p13498_p2 = scmp.ne.s32.totalorder %s16493_s8, %s13497_s17  ;;  %p13504_p9 = scmp.lt.u32.totalorder %s13497_s17, %s16493_s8 }
 0x198   : > { %p13500_p6 = pnand %p13498_p2, %p14248_p1 }
 0x19a   : > { %p13501_p5 = pneg %p13500_p6 }
 0x19c   : > { %p13506_p10 = pnand %p13504_p9, %p13501_p5 }
 0x19e   : > { %13509 = shalt.err (!%p13506_p10)
}
 0x19f   : > { %s13510_s4 = scalar_lea.vmem %s14405_s3, 32  ;;  %p13518_p4 = scmp.lt.s32.totalorder %s14405_s3, %s14405_s3 }
 0x1a0   : > { %p13511_p11 = scmp.ne.s32.totalorder %s14405_s3, %s13510_s4  ;;  %p13519_p7 = scmp.lt.s32.totalorder %s13510_s4, %s13510_s4 }
 0x1a2   : > { %p13513_p0 = pnand %p13511_p11, %p14248_p1  ;;  %p13520_p8 = por %p13519_p7, %p13518_p4 }
 0x1a4   : > { %p13514_p3 = pneg %p13513_p0 }
 0x1a6   : > { %p13521_p12 = pnand %p13520_p8, %p13514_p3 }
 0x1a8   : > { %13524 = shalt.err (!%p13521_p12)
}
 0x1a9   : > { %s16512_s24 = sld [smem:[#allocation66_spill]]  ;;  %s13943_s22 = smov [#allocation21]  }
 0x1aa   : > { %12718 = dma.hbm_to_vmem [thread:$0]  (!%p14236_p13), %s16493_s8, 32, %s14405_s3, [#allocation17], %s13939_s0, %s13939_s0, %s13940_s25  }
 0x1ab   : > { %s1068_s7 = sshll.u32 %s13943_s22, 4  ;;  %s13944_s17 = smov [#allocation24]   ;;  %s1069_s7 = int_to_ptr.vmem [resolvable:$true] %s1068_s7 }
 0x1ac   : > { %s1101_s5 = sshll.u32 %s13944_s17, 4  ;;  %s14438_s5 = int_to_ptr.vmem [resolvable:$true] %s1101_s5 }
 0x1af   : > { %s16513_s30 = smov %s16512_s24  ;;  %s13525_s4 = scalar_lea.hbm %s16512_s24, 32 }
 0x1b0   : > { %p13526_p2 = scmp.ne.s32.totalorder %s16513_s30, %s13525_s4  ;;  %p13532_p9 = scmp.lt.u32.totalorder %s13525_s4, %s16513_s30 }
 0x1b2   : > { %p13528_p6 = pnand %p13526_p2, %p14248_p1 }
 0x1b4   : > { %p13529_p5 = pneg %p13528_p6 }
 0x1b6   : > { %p13534_p10 = pnand %p13532_p9, %p13529_p5 }
 0x1b8   : > { %13537 = shalt.err (!%p13534_p10)
}
 0x1b9   : > { %s13538_s6 = scalar_lea.vmem %s1069_s7, 32  ;;  %p13546_p4 = scmp.lt.s32.totalorder %s1069_s7, %s1069_s7 }
 0x1ba   : > { %p13539_p11 = scmp.ne.s32.totalorder %s1069_s7, %s13538_s6  ;;  %p13547_p7 = scmp.lt.s32.totalorder %s13538_s6, %s13538_s6 }
 0x1bc   : > { %p13541_p0 = pnand %p13539_p11, %p14248_p1  ;;  %p13548_p8 = por %p13547_p7, %p13546_p4 }
 0x1be   : > { %p13542_p3 = pneg %p13541_p0 }
 0x1c0   : > { %p13549_p12 = pnand %p13548_p8, %p13542_p3 }
 0x1c2   : > { %13552 = shalt.err (!%p13549_p12)
}
 0x1c3   : > { %s16514_s3 = sld [smem:[#allocation70_spill]] }
 0x1c4   : > { %12724 = dma.hbm_to_vmem [thread:$0]  (!%p14236_p13), %s16513_s30, 32, %s1069_s7, [#allocation20], %s13939_s0, %s13939_s0, %s13940_s25  }
 0x1c9   : > { %s13553_s24 = scalar_lea.hbm %s16514_s3, 16 }
 0x1ca   : > { %p13554_p2 = scmp.ne.s32.totalorder %s16514_s3, %s13553_s24  ;;  %p13560_p9 = scmp.lt.u32.totalorder %s13553_s24, %s16514_s3 }
 0x1cc   : > { %p13556_p6 = pnand %p13554_p2, %p14248_p1 }
 0x1ce   : > { %p13557_p5 = pneg %p13556_p6 }
 0x1d0   : > { %p13562_p10 = pnand %p13560_p9, %p13557_p5 }
 0x1d2   : > { %13565 = shalt.err (!%p13562_p10)
}
 0x1d3   : > { %s13566_s6 = scalar_lea.vmem %s14438_s5, 16  ;;  %s13573_s22 = scalar_lea.vmem %s14438_s5, 32 }
 0x1d4   : > { %p13567_p11 = scmp.ne.s32.totalorder %s14438_s5, %s13566_s6  ;;  %p13574_p4 = scmp.lt.s32.totalorder %s14438_s5, %s14438_s5 }
 0x1d5   : > { %p13575_p7 = scmp.lt.s32.totalorder %s13573_s22, %s13566_s6 }
 0x1d6   : > { %p13569_p0 = pnand %p13567_p11, %p14248_p1 }
 0x1d7   : > { %p13576_p8 = por %p13575_p7, %p13574_p4 }
 0x1d8   : > { %p13570_p3 = pneg %p13569_p0 }
 0x1da   : > { %p13577_p12 = pnand %p13576_p8, %p13570_p3 }
 0x1dc   : > { %13580 = shalt.err (!%p13577_p12)
}
 0x1dd   : > { %s16515_s0 = sld [smem:[#allocation72_spill]]  ;;  %s13945_s7 = smov [#allocation27]  }
 0x1de   : > { %12730 = dma.hbm_to_vmem [thread:$0]  (!%p14236_p13), %s16514_s3, 16, %s14438_s5, [#allocation23]  }
 0x1df   : > { %s1125_s17 = sshll.u32 %s13945_s7, 4  ;;  %s13946_s4 = smov [#allocation30]   ;;  %s1126_s17 = int_to_ptr.vmem [resolvable:$true] %s1125_s17 }
 0x1e0   : > { %s1149_s24 = sshll.u32 %s13946_s4, 4  ;;  %s14469_s24 = int_to_ptr.vmem [resolvable:$true] %s1149_s24 }
 0x1e3   : > { %s16516_s25 = smov %s16515_s0  ;;  %s13581_s6 = scalar_lea.hbm %s16515_s0, 16 }
 0x1e4   : > { %p13582_p2 = scmp.ne.s32.totalorder %s16516_s25, %s13581_s6  ;;  %p13588_p9 = scmp.lt.u32.totalorder %s13581_s6, %s16516_s25 }
 0x1e6   : > { %p13584_p6 = pnand %p13582_p2, %p14248_p1 }
 0x1e8   : > { %p13585_p5 = pneg %p13584_p6 }
 0x1ea   : > { %p13590_p10 = pnand %p13588_p9, %p13585_p5 }
 0x1ec   : > { %13593 = shalt.err (!%p13590_p10)
}
 0x1ed   : > { %s13594_s22 = scalar_lea.vmem %s1126_s17, 16  ;;  %s13601_s5 = scalar_lea.vmem %s1126_s17, 32 }
 0x1ee   : > { %p13595_p11 = scmp.ne.s32.totalorder %s1126_s17, %s13594_s22  ;;  %p13602_p4 = scmp.lt.s32.totalorder %s1126_s17, %s1126_s17 }
 0x1ef   : > { %p13603_p7 = scmp.lt.s32.totalorder %s13601_s5, %s13594_s22 }
 0x1f0   : > { %p13597_p0 = pnand %p13595_p11, %p14248_p1 }
 0x1f1   : > { %p13604_p8 = por %p13603_p7, %p13602_p4 }
 0x1f2   : > { %p13598_p3 = pneg %p13597_p0 }
 0x1f4   : > { %p13605_p12 = pnand %p13604_p8, %p13598_p3 }
 0x1f6   : > { %13608 = shalt.err (!%p13605_p12)
}
 0x1f7   : > { %s16517_s0 = sld [smem:[#allocation74_spill]] }
 0x1f8   : > { %12736 = dma.hbm_to_vmem [thread:$0]  (!%p14236_p13), %s16516_s25, 16, %s1126_s17, [#allocation26]  }
 0x1fd   : > { %s16518_s7 = smov %s16517_s0  ;;  %s13609_s4 = scalar_lea.hbm %s16517_s0, 512 }
 0x1fe   : > { %p13610_p2 = scmp.ne.s32.totalorder %s16518_s7, %s13609_s4  ;;  %p13616_p9 = scmp.lt.u32.totalorder %s13609_s4, %s16518_s7 }
 0x200   : > { %p13612_p6 = pnand %p13610_p2, %p14248_p1 }
 0x202   : > { %p13613_p5 = pneg %p13612_p6 }
 0x204   : > { %p13618_p10 = pnand %p13616_p9, %p13613_p5 }
 0x206   : > { %13621 = shalt.err (!%p13618_p10)
}
 0x207   : > { %s13622_s6 = scalar_lea.vmem %s14469_s24, 512  ;;  %p13630_p4 = scmp.lt.s32.totalorder %s14469_s24, %s14469_s24 }
 0x208   : > { %p13623_p11 = scmp.ne.s32.totalorder %s14469_s24, %s13622_s6  ;;  %p13631_p7 = scmp.lt.s32.totalorder %s13622_s6, %s13622_s6 }
 0x20a   : > { %p13625_p0 = pnand %p13623_p11, %p14248_p1  ;;  %p13632_p8 = por %p13631_p7, %p13630_p4 }
 0x20c   : > { %p13626_p3 = pneg %p13625_p0 }
 0x20e   : > { %p13633_p12 = pnand %p13632_p8, %p13626_p3 }
 0x210   : > { %13636 = shalt.err (!%p13633_p12)
}
 0x211   : > { %s16519_s17 = sld [smem:[#allocation75_spill]]  ;;  %s13947_s22 = smov [#allocation33]  }
 0x212   : > { %12742 = dma.hbm_to_vmem [thread:$0]  (!%p14236_p13), %s16518_s7, 512, %s14469_s24, [#allocation29], %s16511_s1, %s16511_s1, %s16510_s9  }
 0x213   : > { %s1176_s5 = sshll.u32 %s13947_s22, 4  ;;  %s13948_s0 = smov [#allocation36]   ;;  %s1177_s5 = int_to_ptr.vmem [resolvable:$true] %s1176_s5 }
 0x214   : > { %s1197_s4 = sshll.u32 %s13948_s0, 4  ;;  %s14499_s4 = int_to_ptr.vmem [resolvable:$true] %s1197_s4 }
 0x217   : > { %s13637_s6 = scalar_lea.hbm %s16519_s17, 16 }
 0x218   : > { %p13638_p2 = scmp.ne.s32.totalorder %s16519_s17, %s13637_s6  ;;  %p13644_p9 = scmp.lt.u32.totalorder %s13637_s6, %s16519_s17 }
 0x21a   : > { %p13640_p6 = pnand %p13638_p2, %p14248_p1 }
 0x21c   : > { %p13641_p5 = pneg %p13640_p6 }
 0x21e   : > { %p13646_p10 = pnand %p13644_p9, %p13641_p5 }
 0x220   : > { %13649 = shalt.err (!%p13646_p10)
}
 0x221   : > { %s13650_s3 = scalar_lea.vmem %s1177_s5, 16  ;;  %s13657_s24 = scalar_lea.vmem %s1177_s5, 32 }
 0x222   : > { %p13651_p11 = scmp.ne.s32.totalorder %s1177_s5, %s13650_s3  ;;  %p13658_p4 = scmp.lt.s32.totalorder %s1177_s5, %s1177_s5 }
 0x223   : > { %p13659_p7 = scmp.lt.s32.totalorder %s13657_s24, %s13650_s3 }
 0x224   : > { %p13653_p0 = pnand %p13651_p11, %p14248_p1 }
 0x225   : > { %p13660_p8 = por %p13659_p7, %p13658_p4 }
 0x226   : > { %p13654_p3 = pneg %p13653_p0 }
 0x228   : > { %p13661_p12 = pnand %p13660_p8, %p13654_p3 }
 0x22a   : > { %13664 = shalt.err (!%p13661_p12)
}
 0x22b   : > { %s16520_s22 = sld [smem:[#allocation76_spill]] }
 0x22c   : > { %12748 = dma.hbm_to_vmem [thread:$0]  (!%p14236_p13), %s16519_s17, 16, %s1177_s5, [#allocation32]  }
 0x231   : > { %s13665_s0 = scalar_lea.hbm %s16520_s22, 512 }
 0x232   : > { %p13666_p2 = scmp.ne.s32.totalorder %s16520_s22, %s13665_s0  ;;  %p13672_p9 = scmp.lt.u32.totalorder %s13665_s0, %s16520_s22 }
 0x234   : > { %p13668_p6 = pnand %p13666_p2, %p14248_p1 }
 0x236   : > { %p13669_p5 = pneg %p13668_p6 }
 0x238   : > { %p13674_p10 = pnand %p13672_p9, %p13669_p5 }
 0x23a   : > { %13677 = shalt.err (!%p13674_p10)
}
 0x23b   : > { %s13678_s3 = scalar_lea.vmem %s14499_s4, 512  ;;  %p13686_p4 = scmp.lt.s32.totalorder %s14499_s4, %s14499_s4 }
 0x23c   : > { %p13679_p11 = scmp.ne.s32.totalorder %s14499_s4, %s13678_s3  ;;  %p13687_p7 = scmp.lt.s32.totalorder %s13678_s3, %s13678_s3 }
 0x23e   : > { %p13681_p0 = pnand %p13679_p11, %p14248_p1  ;;  %p13688_p8 = por %p13687_p7, %p13686_p4 }
 0x240   : > { %p13682_p3 = pneg %p13681_p0 }
 0x242   : > { %p13689_p12 = pnand %p13688_p8, %p13682_p3 }
 0x244   : > { %13692 = shalt.err (!%p13689_p12)
}
 0x245   : > { %s16521_s5 = sld [smem:[#allocation78_spill]]  ;;  %s13949_s6 = smov [#allocation39]  }
 0x246   : > { %12754 = dma.hbm_to_vmem [thread:$0]  (!%p14236_p13), %s16520_s22, 512, %s14499_s4, [#allocation35], %s16511_s1, %s16511_s1, %s16510_s9  }
 0x247   : > { %s1222_s24 = sshll.u32 %s13949_s6, 4  ;;  %s1223_s24 = int_to_ptr.vmem [resolvable:$true] %s1222_s24 }
 0x24b   : > { %s13693_s0 = scalar_lea.hbm %s16521_s5, 16 }
 0x24c   : > { %p13694_p2 = scmp.ne.s32.totalorder %s16521_s5, %s13693_s0  ;;  %p13700_p9 = scmp.lt.u32.totalorder %s13693_s0, %s16521_s5 }
 0x24e   : > { %p13696_p6 = pnand %p13694_p2, %p14248_p1 }
 0x250   : > { %p13697_p5 = pneg %p13696_p6 }
 0x252   : > { %p13702_p10 = pnand %p13700_p9, %p13697_p5 }
 0x254   : > { %13705 = shalt.err (!%p13702_p10)
}
 0x255   : > { %s13706_s3 = scalar_lea.vmem %s1223_s24, 16  ;;  %s13713_s7 = scalar_lea.vmem %s1223_s24, 32 }
 0x256   : > { %p13707_p11 = scmp.ne.s32.totalorder %s1223_s24, %s13706_s3  ;;  %p13714_p4 = scmp.lt.s32.totalorder %s1223_s24, %s1223_s24 }
 0x257   : > { %p13715_p7 = scmp.lt.s32.totalorder %s13713_s7, %s13706_s3 }
 0x258   : > { %p13709_p0 = pnand %p13707_p11, %p14248_p1 }
 0x259   : > { %p13716_p8 = por %p13715_p7, %p13714_p4 }
 0x25a   : > { %p13710_p3 = pneg %p13709_p0 }
 0x25c   : > { %p13717_p12 = pnand %p13716_p8, %p13710_p3 }
 0x25e   : > { %13720 = shalt.err (!%p13717_p12)
}
 0x25f   : > { %12760 = dma.hbm_to_vmem [thread:$0]  (!%p14236_p13), %s16521_s5, 16, %s1223_s24, [#allocation38]  }
 0x260   : > { %p16522_p2 = scmp.ne.s32.totalorder %s16507_s10, 0 }
 0x261   : > { %p16523_p6 = scmp.eq.s32.totalorder (!%p16522_p2), %s14195_s18, 0 }
 0x262   : > { %1256 = sbr.rel (%p16522_p2) target bundleno = 15212 (0x3b6c), region = 152 }
 0x269   : > { %13818 = dma.done.wait (%p16523_p6), [#allocation8], 256   ;;  %p16524_p5 = pmov %p16523_p6 }
 0x26b   : > { %13820 = vsyncadd (%p16524_p5), [#allocation8], 4294967040  ;;  %p16525_p1 = pmov %p16524_p5 }
 0x26d   : > { %13822 = dma.done.wait (%p16525_p1), [#allocation11], 1056   ;;  %p16526_p9 = pmov %p16525_p1 }
 0x26e   : > { %p16527_p10 = pmov %p16525_p1 }
 0x26f   : > { %13824 = vsyncadd (%p16526_p9), [#allocation11], 4294966240 }
 0x270   : > { %13826 = dma.done.wait (%p16527_p10), [#allocation14], 1056   ;;  %p16528_p13 = pmov %p16525_p1 }
 0x271   : > { %p16529_p11 = pmov %p16525_p1 }
 0x272   : > { %13828 = vsyncadd (%p16528_p13), [#allocation14], 4294966240 }
 0x273   : > { %13830 = dma.done.wait (%p16529_p11), [#allocation17], 1056   ;;  %p16530_p0 = pmov %p16525_p1 }
 0x275   : > { %13832 = vsyncadd (%p16530_p0), [#allocation17], 4294966240  ;;  %p16531_p3 = pmov %p16530_p0 }
 0x276   : > { %p16532_p4 = pmov %p16530_p0 }
 0x277   : > { %13834 = dma.done.wait (%p16531_p3), [#allocation20], 2080  }
 0x278   : > { %13836 = vsyncadd (%p16532_p4), [#allocation20], 4294965216  ;;  %p16533_p7 = pmov %p16530_p0 }
 0x279   : > { %p16534_p8 = pmov %p16530_p0 }
 0x27a   : > { %13838 = dma.done.wait (%p16533_p7), [#allocation23], 4112  }
 0x27b   : > { %13840 = vsyncadd (%p16534_p8), [#allocation23], 4294963184  ;;  %p16535_p12 = pmov %p16530_p0 }
 0x27c   : > { %p16536_p2 = pmov %p16530_p0 }
 0x27d   : > { %13842 = dma.done.wait (%p16535_p12), [#allocation26], 528  }
 0x27e   : > { %13844 = vsyncadd (%p16536_p2), [#allocation26], 4294966768  ;;  %p16537_p6 = pmov %p16530_p0 }
 0x27f   : > { %p16538_p5 = pmov %p16530_p0 }
 0x280   : > { %13846 = dma.done.wait (%p16537_p6), [#allocation29], 528  }
 0x281   : > { %13848 = vsyncadd (%p16538_p5), [#allocation29], 4294966768  ;;  %p16539_p1 = pmov %p16530_p0 }
 0x282   : > { %p16540_p9 = pmov %p16530_p0 }
 0x283   : > { %13850 = dma.done.wait (%p16539_p1), [#allocation32], 528  }
 0x284   : > { %13852 = vsyncadd (%p16540_p9), [#allocation32], 4294966768  ;;  %p16541_p10 = pmov %p16530_p0 }
 0x285   : > { %p16542_p13 = pmov %p16530_p0 }
 0x286   : > { %13854 = dma.done.wait (%p16541_p10), [#allocation35], 528  }
 0x287   : > { %13856 = vsyncadd (%p16542_p13), [#allocation35], 4294966768  ;;  %p16543_p11 = pmov %p16530_p0 }
 0x289   : > { %13858 = dma.done.wait (%p16543_p11), [#allocation38], 32  }
 0x28a   : > { %13860 = vsyncadd (%p16530_p0), [#allocation38], 4294967264  ;;  %s16545_s26 = sld [smem:[#allocation87_spill]]  ;;  %s16419_s11 = sand.u32 1, %s13875_s15  }
 0x28b   : > { %p1431_p3 = scmp.lt.s32.totalorder %s14195_s18, 2  ;;  %s11115_s9 = sshll.u32 %s16419_s11, 4 }
 0x28c   : > { %s14598_s6 = scalar_lea.vmem [#allocation40], %s11115_s9  ;;  %p16546_p4 = scmp.ne.s32.totalorder %s14195_s18, 0 }
 0x28d   : > { %s14590_s1 = scalar_select %p1431_p3, %s14195_s18, 2 }
 0x28e   : > { %1440 = sbr.rel (%p16546_p4) target bundleno = 661 (0x295), region = 240  ;;  %v1441_v2 = vld [vmem:[#allocation7] sm:$0xff] (!%p16546_p4)  ;;  %vm1443_vm0 = vcmask (!%p16546_p4), 261120   ;;  %v1442_v3 = vld [vmem:[#allocation7 + $0x8] sm:$0xff] (!%p16546_p4)  ;;  %vm1446_vm1 = vcmask (!%p16546_p4), 254976   ;;  %v13950_v4 = vmov (!%p16546_p4), 0.0  }
 0x28f   : > { %1444 = vst.msk [vmem:[#allocation2] sm:$0xff] (!%p16546_p4), %vm1443_vm0, %v1441_v2  ;;  %1445 = vst.msk [vmem:[#allocation2 + $0x8] sm:$0xff] (!%p16546_p4), %vm1443_vm0, %v1442_v3  ;;  %s13951_s24 = smov (!%p16546_p4), 1  }
 0x290   : > { %s14596_s4 = scalar_lea.vmem %s16545_s26, %s14590_s1  ;;  %1447 = vst.msk [vmem:[#allocation3] sm:$0x3] (!%p16546_p4), %vm1446_vm1, %v13950_v4  ;;  %1449 = sst [smem:[#allocation4]] (!%p16546_p4), %s13951_s24 }
 0x295 PF: > { %s1450_s0 = sld [smem:[#allocation4]] }
 0x29b   : > { %p11117_p7 = scmp.ne.s32.totalorder %s1450_s0, 1 }
 0x29c   : > { %v1457_v5 = vld [vmem:[#allocation10] sm:$0xff] (!%p11117_p7)  ;;  %v1458_v6 = vld [vmem:[#allocation10 + $0x8] sm:$0xff] (!%p11117_p7)  ;;  %v1459_v7 = vld [vmem:[#allocation10 + $0x10] sm:$0xff] (!%p11117_p7)  ;;  %vm1468_vm2 = vcmask (!%p11117_p7), 261120   ;;  %v16451_v13 = vmov (!%p11117_p7), 0.0   ;;  %vm13953_vm3 = vmmov (!%p11117_p7), 0  }
 0x29d   : > { %1454 = sbr.rel (%p11117_p7) target bundleno = 14321 (0x37f1), region = 244  ;;  %v12293_v8 = vpack.c.bf16 (!%p11117_p7), %v1458_v6, %v1457_v5  ;;  %v1460_v9 = vld [vmem:[#allocation10 + $0x18] sm:$0xff] (!%p11117_p7)  ;;  %v14606_v12 = vld [vmem:[#allocation2 + $0x8] sm:$0xff] (!%p11117_p7)  ;;  %11673 = vmatprep.subr.mxu0 (!%p11117_p7), %v16451_v13  ;;  %11675 = vmatprep.mubr.msk.f32.mxu0 (!%p11117_p7), %vm13953_vm3, %v16451_v13  ;;  %v11118_v14 = vld [vmem:[#allocation12] ss:$0 sm:$0xff] (!%p11117_p7)  ;;  %s16430_s3 = smov (!%p11117_p7), 64  }
 0x29e   : > { %v14602_v10 = vld [vmem:[#allocation2] sm:$0xff] (!%p11117_p7)  ;;  %v12297_v11 = vpack.c.bf16 (!%p11117_p7), %v1460_v9, %v1459_v7  ;;  %s16438_s10 = smov (!%p11117_p7), 96   ;;  %s16428_s26 = smov (!%p11117_p7), 88   ;;  %vm1557_vm4 = vcmask (!%p11117_p7), 64512   ;;  %v14653_v46 = vld [vmem:[#allocation13 + $0x8] sm:$0xff] (!%p11117_p7)  ;;  %v14689_v7 = vld [vmem:[#allocation13 + $0x10] sm:$0xff] (!%p11117_p7) }
 0x29f   : > { %11665 = vmatprep.mubr.msk.f32.mxu1 (!%p11117_p7), %vm1468_vm2, %v14602_v10  ;;  %12294 = vmatprep.subr.bf16.mxu1 (!%p11117_p7), %v12293_v8  ;;  %s16440_s9 = smov (!%p11117_p7), 120   ;;  %s16426_s24 = smov (!%p11117_p7), 56   ;;  %v14658_v51 = vld [vmem:[#allocation13] sm:$0xff] (!%p11117_p7)  ;;  %vm3684_vm7 = vcmask (!%p11117_p7), 523264   ;;  %vm15405_vm10 = vmpackc.low (!%p11117_p7), %vm1468_vm2, %vm1468_vm2  ;;  %vm9883_vm11 = vcmask (!%p11117_p7), 1040384  }
 0x2a0   : > { %12296 = vmatpush3.bf16.msra.mxu1 (!%p11117_p7), %v12293_v8  ;;  %s16422_s0 = smov (!%p11117_p7), 80   ;;  %s16420_s11 = smov (!%p11117_p7), 112  }
 0x2a1   : > { %12298 = vmatprep.subr.bf16.mxu1 (!%p11117_p7), %v12297_v11  ;;  %s16424_s7 = smov (!%p11117_p7), 48   ;;  %s16557_s5 = smov (!%p11117_p7), 96  }
 0x2a2   : > { %s16558_s8 = smov (!%p11117_p7), 88   ;;  %s16559_s12 = smov (!%p11117_p7), 56  }
 0x2a3   : > { %s16560_s13 = smov (!%p11117_p7), 64   ;;  %s16561_s14 = smov (!%p11117_p7), 72  }
 0x2a4   : > { %12300 = vmatpush3.bf16.msra.mxu1 %v12297_v11  ;;  %s16562_s17 = smov 104   ;;  %s16563_s20 = smov 40  }
 0x2a5   : > { %11668 = vmatprep.subr.mxu1 %v16451_v13  ;;  %p16586_p12 = scmp.eq.s32.totalorder %s14195_s18, 0 }
 0x2a7   : > { %11666 = vmatmul.mubr.msk.f32.vlgmr.msra.gmra.mrb[0].mxu1 %vm1468_vm2, %v14606_v12 }
 0x2a8   : > { %11670 = vmatprep.mubr.msk.f32.mxu1 %vm13953_vm3, %v16451_v13 }
 0x37a   : > { %v11667_v15 = vpop.f32.mrb[0].mxu1 }
 0x37b   : > { %v14616_v16 = vadd.f32 %v11667_v15, %v11118_v14  ;;  %v1541_v17 = vpop.f32.mrb[1].mxu1 }
 0x37c   : > { %v14618_v18 = vadd.f32 %v11118_v14, %v1541_v17 }
 0x37e   : > { %1644 = vrot.lane.b32.xlu1 %v14618_v18, %s16430_s3  ;;  %1555 = vrot.lane.b32.xlu0 %v14618_v18, %s16438_s10 }
 0x382   : > { %1722 = vrot.lane.b32.xlu1 %v14618_v18, %s16428_s26 }
 0x3f0   : > { %v1645_v19 = vpop.permute.xlu1 %1644  ;;  %v1556_v20 = vpop.permute.xlu0 %1555 }
 0x3f1   : > { %11669 = vmatpush3.xpose.msk.msra.mxu1 %vm1557_vm4, %v1556_v20  ;;  %11674 = vmatpush3.msra.mxu0 %v1645_v19 }
 0x3f2   : > { %11678 = vmatprep.subr.mxu0 %v16451_v13  ;;  %11683 = vmatprep.subr.mxu1 %v16451_v13 }
 0x3f4   : > { %11671 = vmatmul.mubr.msk.f32.vlgmr.msra.gmra.mrb[2].mxu1 %vm1557_vm4, %v14618_v18  ;;  %v1723_v30 = vpop.permute.xlu1 %1722 }
 0x3f5   : > { %11685 = vmatprep.mubr.msk.f32.mxu1 %vm13953_vm3, %v16451_v13 }
 0x4c7   : > { %v1628_v21 = vpop.f32.mrb[2].mxu1 }
 0x4c8   : > { %v1632_v22 = vmul.f32 0.35355338, %v1628_v21  ;;  %v11672_v23 = vpop.f32.mrb[3].mxu1 }
 0x4ca   : > { %v1633_v24 = vsel %vm1557_vm4, %v1632_v22, -inf }
 0x4cb   : > { %1634 = vmax.xlane.f32.xlu0 %v1633_v24 }
 0x558   : > { %v1635_v25 = vpop.xlane.xlu0 %1634 }
 0x559   : > { %v1636_v26 = vsub.f32 %v1632_v22, %v1635_v25 }
 0x55b   : > { %v1637_v27 = vmul.f32 1.442695, %v1636_v26 }
 0x55d   : > { %12938 = vpow2.f32 %v1637_v27 }
 0x567   : > { %v12939_v28 = vpop.eup %12938 }
 0x568   : > { %v1639_v29 = vsel %vm1557_vm4, %v12939_v28, 0.0 }
 0x569   : > { %1640 = vadd.xlane.f32.xlu1 %v1639_v29 }
 0x57a   : > { %1720 = vrot.lane.b32.xlu1 %v14618_v18, %s16440_s9 }
 0x5f6   : > { %v1641_v31 = vpop.xlane.xlu1 %1640 }
 0x5f7   : > { %12940 = vrcp.f32 %v1641_v31 }
 0x5fa   : > { %v1721_v34 = vpop.permute.xlu1 %1720 }
 0x601   : > { %v12941_v32 = vpop.eup %12940 }
 0x602   : > { %v1643_v33 = vmul.f32 %v12941_v32, %v12939_v28 }
 0x604   : > { %11676 = vmatmul.mubr.msk.f32.vlgmr.msra.gmra.mrb[0].mxu0 %vm1557_vm4, %v1643_v33 }
 0x605   : > { %11679 = vmatpush3.xpose.msk.msra.mxu0 %vm1557_vm4, %v1723_v30  ;;  %11680 = vmatprep.mubr.msk.f32.mxu0 %vm13953_vm3, %v16451_v13 }
 0x606   : > { %11688 = vmatprep.subr.mxu0 %v16451_v13 }
 0x608   : > { %11681 = vmatmul.mubr.msk.f32.vlgmr.msra.gmra.mrb[2].mxu0 %vm1557_vm4, %v1721_v34 }
 0x609   : > { %11690 = vmatprep.mubr.msk.f32.mxu0 %vm13953_vm3, %v16451_v13  ;;  %11689 = vmatpush3.msra.mxu0 %v14653_v46 }
 0x60a   : > { %11698 = vmatprep.subr.mxu0 %v16451_v13 }
 0x6d7   : > { %v1716_v35 = vpop.f32.mrb[0].mxu0 }
 0x6d8   : > { %v11677_v36 = vpop.f32.mrb[1].mxu0 }
 0x6db   : > { %v1794_v37 = vpop.f32.mrb[2].mxu0 }
 0x6dc   : > { %v1798_v38 = vmul.f32 0.35355338, %v1794_v37  ;;  %v11682_v39 = vpop.f32.mrb[3].mxu0 }
 0x6de   : > { %v1799_v40 = vsel %vm1557_vm4, %v1798_v38, -inf }
 0x6df   : > { %1800 = vmax.xlane.f32.xlu1 %v1799_v40 }
 0x76c   : > { %v1801_v41 = vpop.xlane.xlu1 %1800 }
 0x76d   : > { %v1802_v42 = vsub.f32 %v1798_v38, %v1801_v41  ;;  %v14730_v38 = vld [vmem:[#allocation13 + $0x18] sm:$0xff] }
 0x76f   : > { %v1803_v43 = vmul.f32 1.442695, %v1802_v42 }
 0x771   : > { %12942 = vpow2.f32 %v1803_v43 }
 0x77b   : > { %v12943_v44 = vpop.eup %12942 }
 0x77c   : > { %v1805_v45 = vsel %vm1557_vm4, %v12943_v44, 0.0 }
 0x77d   : > { %1806 = vadd.xlane.f32.xlu0 %v1805_v45 }
 0x793   : > { %1810 = vrot.lane.b32.xlu0 %v14618_v18, %s16426_s24 }
 0x797   : > { %2034 = vrot.lane.b32.xlu0 %v14618_v18, %s16422_s0  ;;  %s16434_s0 = smov 104  }
 0x79b   : > { %2032 = vrot.lane.b32.xlu0 %v14618_v18, %s16420_s11  ;;  %s16436_s11 = smov 72  }
 0x80a   : > { %v1807_v47 = vpop.xlane.xlu0 %1806 }
 0x80b   : > { %12944 = vrcp.f32 %v1807_v47 }
 0x80e   : > { %v1811_v48 = vpop.permute.xlu0 %1810 }
 0x80f   : > { %11684 = vmatpush3.msra.mxu1 %v1811_v48 }
 0x810   : > { %11693 = vmatprep.subr.mxu1 %v16451_v13 }
 0x812   : > { %v2035_v52 = vpop.permute.xlu0 %2034 }
 0x815   : > { %v12945_v49 = vpop.eup %12944 }
 0x816   : > { %v1809_v50 = vmul.f32 %v12945_v49, %v12943_v44  ;;  %v2033_v55 = vpop.permute.xlu0 %2032 }
 0x818   : > { %11686 = vmatmul.mubr.msk.f32.vlgmr.msra.gmra.mrb[4].mxu1 %vm1557_vm4, %v1809_v50 }
 0x819   : > { %11694 = vmatpush3.msra.mxu1 %v14658_v51  ;;  %11695 = vmatprep.mubr.msk.f32.mxu1 %vm13953_vm3, %v16451_v13 }
 0x81a   : > { %11703 = vmatprep.subr.mxu1 %v16451_v13 }
 0x81c   : > { %11696 = vmatmul.mubr.msk.f32.vlgmr.msra.gmra.mrb[6].mxu1 %vm1557_vm4, %v1716_v35 }
 0x81d   : > { %11705 = vmatprep.mubr.msk.f32.mxu1 %vm13953_vm3, %v16451_v13 }
 0x8eb   : > { %v1882_v53 = vpop.f32.mrb[4].mxu1 }
 0x8ec   : > { %v11687_v54 = vpop.f32.mrb[5].mxu1  ;;  %11691 = vmatmul.mubr.msk.f32.vlgmr.msra.gmra.mrb[4].mxu0 %vm1557_vm4, %v1882_v53 }
 0x8ed   : > { %11699 = vmatpush3.xpose.msk.msra.mxu0 %vm1557_vm4, %v2035_v52  ;;  %11700 = vmatprep.mubr.msk.f32.mxu0 %vm13953_vm3, %v16451_v13 }
 0x8ee   : > { %11708 = vmatprep.subr.mxu0 %v16451_v13 }
 0x8ef   : > { %v2028_v56 = vpop.f32.mrb[6].mxu1 }
 0x8f0   : > { %v11697_v57 = vpop.f32.mrb[7].mxu1  ;;  %11701 = vmatmul.mubr.msk.f32.vlgmr.msra.gmra.mrb[6].mxu0 %vm1557_vm4, %v2033_v55 }
 0x8f1   : > { %11710 = vmatprep.mubr.msk.f32.mxu0 %vm13953_vm3, %v16451_v13  ;;  %11709 = vmatpush3.msra.mxu0 %v14689_v7 }
 0x8f2   : > { %11718 = vmatprep.subr.mxu0 %v16451_v13 }
 0x9bf   : > { %v1955_v58 = vpop.f32.mrb[4].mxu0 }
 0x9c0   : > { %v14676_v59 = vadd.f32 %v2028_v56, %v1955_v58  ;;  %v11692_v60 = vpop.f32.mrb[5].mxu0 }
 0x9c3   : > { %v2106_v61 = vpop.f32.mrb[6].mxu0 }
 0x9c4   : > { %v2110_v62 = vmul.f32 0.35355338, %v2106_v61  ;;  %v11702_v63 = vpop.f32.mrb[7].mxu0 }
 0x9c6   : > { %v2111_v0 = vsel %vm1557_vm4, %v2110_v62, -inf }
 0x9c7   : > { %2112 = vmax.xlane.f32.xlu1 %v2111_v0 }
 0x9d8   : > { %2122 = vrot.lane.b32.xlu1 %v14618_v18, %s16424_s7  ;;  %s16432_s7 = smov 40  }
 0x9dc   : > { %2274 = vrot.lane.b32.xlu1 %v14618_v18, %s16436_s11 }
 0x9e0   : > { %2272 = vrot.lane.b32.xlu1 %v14618_v18, %s16434_s0 }
 0xa54   : > { %v2113_v1 = vpop.xlane.xlu1 %2112 }
 0xa55   : > { %v2114_v2 = vsub.f32 %v2110_v62, %v2113_v1 }
 0xa57   : > { %v2115_v3 = vmul.f32 1.442695, %v2114_v2 }
 0xa58   : > { %v2123_v4 = vpop.permute.xlu1 %2122 }
 0xa59   : > { %12946 = vpow2.f32 %v2115_v3  ;;  %11704 = vmatpush3.msra.mxu1 %v2123_v4 }
 0xa5a   : > { %11713 = vmatprep.subr.mxu1 %v16451_v13 }
 0xa5c   : > { %v2275_v11 = vpop.permute.xlu1 %2274 }
 0xa60   : > { %v2273_v15 = vpop.permute.xlu1 %2272 }
 0xa63   : > { %v12947_v5 = vpop.eup %12946 }
 0xa64   : > { %v2117_v6 = vsel %vm1557_vm4, %v12947_v5, 0.0 }
 0xa65   : > { %2118 = vadd.xlane.f32.xlu0 %v2117_v6 }
 0xa7b   : > { %2362 = vrot.lane.b32.xlu0 %v14618_v18, %s16432_s7 }
 0xaf2   : > { %v2119_v8 = vpop.xlane.xlu0 %2118 }
 0xaf3   : > { %12948 = vrcp.f32 %v2119_v8 }
 0xaf6   : > { %v2363_v18 = vpop.permute.xlu0 %2362 }
 0xafd   : > { %v12949_v9 = vpop.eup %12948 }
 0xafe   : > { %v2121_v14 = vmul.f32 %v12949_v9, %v12947_v5 }
 0xb00   : > { %11706 = vmatmul.mubr.msk.f32.vlgmr.msra.gmra.mrb[8].mxu1 %vm1557_vm4, %v2121_v14 }
 0xb01   : > { %11714 = vmatpush3.xpose.msk.msra.mxu1 %vm1557_vm4, %v2275_v11  ;;  %11715 = vmatprep.mubr.msk.f32.mxu1 %vm13953_vm3, %v16451_v13 }
 0xb02   : > { %11723 = vmatprep.subr.mxu1 %v16451_v13 }
 0xb04   : > { %11716 = vmatmul.mubr.msk.f32.vlgmr.msra.gmra.mrb[10].mxu1 %vm1557_vm4, %v2273_v15 }
 0xb05   : > { %11725 = vmatprep.mubr.msk.f32.mxu1 %vm13953_vm3, %v16451_v13  ;;  %11724 = vmatpush3.msra.mxu1 %v14730_v38 }
 0xb06   : > { %11733 = vmatprep.subr.mxu1 %v16451_v13 }
 0xbd3   : > { %v2194_v17 = vpop.f32.mrb[8].mxu1 }
 0xbd4   : > { %v11707_v19 = vpop.f32.mrb[9].mxu1  ;;  %11711 = vmatmul.mubr.msk.f32.vlgmr.msra.gmra.mrb[8].mxu0 %vm1557_vm4, %v2194_v17 }
 0xbd5   : > { %11719 = vmatpush3.msra.mxu0 %v2363_v18  ;;  %11720 = vmatprep.mubr.msk.f32.mxu0 %vm13953_vm3, %v16451_v13 }
 0xbd6   : > { %11728 = vmatprep.subr.mxu0 %v16451_v13 }
 0xbd7   : > { %v2346_v20 = vpop.f32.mrb[10].mxu1 }
 0xbd8   : > { %v2350_v21 = vmul.f32 0.35355338, %v2346_v20  ;;  %v11717_v22 = vpop.f32.mrb[11].mxu1 }
 0xbda   : > { %v2351_v23 = vsel %vm1557_vm4, %v2350_v21, -inf }
 0xbdb   : > { %2352 = vmax.xlane.f32.xlu1 %v2351_v23 }
 0xbec   : > { %2677 = vrot.lane.b32.xlu1 %v14616_v16, %s16440_s9  ;;  %s16555_s9 = sld [smem:[#allocation68_spill]] }
 0xc68   : > { %v2353_v24 = vpop.xlane.xlu1 %2352 }
 0xc69   : > { %v2354_v25 = vsub.f32 %v2350_v21, %v2353_v24 }
 0xc6b   : > { %v2355_v26 = vmul.f32 1.442695, %v2354_v25 }
 0xc6c   : > { %v2678_v37 = vpop.permute.xlu1 %2677 }
 0xc6d   : > { %12950 = vpow2.f32 %v2355_v26 }
 0xc77   : > { %v12951_v27 = vpop.eup %12950 }
 0xc78   : > { %v2357_v28 = vsel %vm1557_vm4, %v12951_v27, 0.0 }
 0xc79   : > { %2358 = vadd.xlane.f32.xlu0 %v2357_v28 }
 0xc8f   : > { %2513 = vrot.lane.b32.xlu0 %v14616_v16, %s16438_s10 }
 0xc93   : > { %2679 = vrot.lane.b32.xlu0 %v14616_v16, %s16428_s26  ;;  %s16548_s26 = smov 112  }
 0xca7   : > { %v2267_v29 = vpop.f32.mrb[8].mxu0 }
 0xca8   : > { %v2271_v30 = vadd.f32 %v2267_v29, %v14676_v59  ;;  %v11712_v31 = vpop.f32.mrb[9].mxu0 }
 0xd06   : > { %v2359_v32 = vpop.xlane.xlu0 %2358 }
 0xd07   : > { %12952 = vrcp.f32 %v2359_v32 }
 0xd0a   : > { %v2514_v34 = vpop.permute.xlu0 %2513 }
 0xd0e   : > { %v2680_v36 = vpop.permute.xlu0 %2679 }
 0xd11   : > { %v12953_v33 = vpop.eup %12952 }
 0xd12   : > { %v2361_v35 = vmul.f32 %v12953_v33, %v12951_v27 }
 0xd14   : > { %11721 = vmatmul.mubr.msk.f32.vlgmr.msra.gmra.mrb[10].mxu0 %vm1557_vm4, %v2361_v35 }
 0xd15   : > { %11729 = vmatpush3.xpose.msk.msra.mxu0 %vm1557_vm4, %v2514_v34  ;;  %11730 = vmatprep.mubr.msk.f32.mxu0 %vm13953_vm3, %v16451_v13 }
 0xd16   : > { %11738 = vmatprep.subr.mxu0 %v16451_v13 }
 0xd18   : > { %11731 = vmatmul.mubr.msk.f32.vlgmr.msra.gmra.mrb[12].mxu0 %vm1557_vm4, %v14616_v16 }
 0xd19   : > { %11739 = vmatpush3.xpose.msk.msra.mxu0 %vm1557_vm4, %v2680_v36  ;;  %11740 = vmatprep.mubr.msk.f32.mxu0 %vm13953_vm3, %v16451_v13 }
 0xd1a   : > { %11748 = vmatprep.subr.mxu0 %v16451_v13 }
 0xd1c   : > { %11741 = vmatmul.mubr.msk.f32.vlgmr.msra.gmra.mrb[14].mxu0 %vm1557_vm4, %v2678_v37 }
 0xd1d   : > { %11749 = vmatpush3.msra.mxu0 %v14653_v46  ;;  %11750 = vmatprep.mubr.msk.f32.mxu0 %vm13953_vm3, %v16451_v13 }
 0xd1e   : > { %11758 = vmatprep.subr.mxu0 %v16451_v13 }
 0xde7   : > { %v2434_v39 = vpop.f32.mrb[10].mxu0 }
 0xde8   : > { %v11722_v40 = vpop.f32.mrb[11].mxu0  ;;  %11726 = vmatmul.mubr.msk.f32.vlgmr.msra.gmra.mrb[12].mxu1 %vm1557_vm4, %v2434_v39 }
 0xde9   : > { %11735 = vmatprep.mubr.msk.f32.mxu1 %vm13953_vm3, %v16451_v13 }
 0xdeb   : > { %v2585_v41 = vpop.f32.mrb[12].mxu0 }
 0xdec   : > { %v2589_v42 = vmul.f32 0.35355338, %v2585_v41  ;;  %v11732_v43 = vpop.f32.mrb[13].mxu0 }
 0xdee   : > { %v2590_v44 = vsel %vm1557_vm4, %v2589_v42, -inf }
 0xdef   : > { %2591 = vmax.xlane.f32.xlu0 %v2590_v44  ;;  %v2751_v45 = vpop.f32.mrb[14].mxu0 }
 0xdf0   : > { %v2755_v46 = vmul.f32 0.35355338, %v2751_v45  ;;  %v11742_v47 = vpop.f32.mrb[15].mxu0 }
 0xdf2   : > { %v2756_v48 = vsel %vm1557_vm4, %v2755_v46, -inf }
 0xdf3   : > { %2757 = vmax.xlane.f32.xlu1 %v2756_v48 }
 0xe04   : > { %2767 = vrot.lane.b32.xlu1 %v14616_v16, %s16426_s24  ;;  %s16547_s24 = smov 80  }
 0xe7c   : > { %v2592_v49 = vpop.xlane.xlu0 %2591 }
 0xe7d   : > { %v2593_v50 = vsub.f32 %v2589_v42, %v2592_v49 }
 0xe7f   : > { %v2594_v52 = vmul.f32 1.442695, %v2593_v50 }
 0xe80   : > { %v2758_v53 = vpop.xlane.xlu1 %2757 }
 0xe81   : > { %12954 = vpow2.f32 %v2594_v52  ;;  %v2759_v54 = vsub.f32 %v2755_v46, %v2758_v53  ;;  %v11153_v46 = vld [vmem:[#allocation15] ss:$0 sm:$0xff] }
 0xe83   : > { %v2760_v55 = vmul.f32 1.442695, %v2759_v54 }
 0xe84   : > { %v2768_v4 = vpop.permute.xlu1 %2767 }
 0xe85   : > { %12956 = vpow2.f32 %v2760_v55 }
 0xe8b   : > { %v12955_v56 = vpop.eup %12954 }
 0xe8c   : > { %v2596_v57 = vsel %vm1557_vm4, %v12955_v56, 0.0 }
 0xe8d   : > { %2597 = vadd.xlane.f32.xlu0 %v2596_v57 }
 0xe8f   : > { %v12957_v58 = vpop.eup %12956 }
 0xe90   : > { %v2762_v59 = vsel %vm1557_vm4, %v12957_v58, 0.0 }
 0xe91   : > { %2763 = vadd.xlane.f32.xlu0 %v2762_v59 }
 0xea7   : > { %2601 = vrot.lane.b32.xlu0 %v14616_v16, %s16430_s3  ;;  %s16549_s3 = smov 48  }
 0xeab   : > { %2991 = vrot.lane.b32.xlu0 %v14616_v16, %s16547_s24 }
 0xeaf   : > { %2989 = vrot.lane.b32.xlu0 %v14616_v16, %s16548_s26 }
 0xebb   : > { %v2507_v60 = vpop.f32.mrb[12].mxu1 }
 0xebc   : > { %v14749_v61 = vadd.f32 %v2507_v60, %v2271_v30  ;;  %v11727_v62 = vpop.f32.mrb[13].mxu1 }
 0xebe   : > { %v3476_v47 = vadd.f32 %v11153_v46, %v14749_v61 }
 0xec0   : > { %v3478_v50 = vadd.f32 %v3476_v47, %v14602_v10  ;;  %v11156_v47 = vld [vmem:[#allocation18] ss:$0 sm:$0xff] }
 0xec2   : > { %v3482_v52 = vsel %vm1468_vm2, %v3478_v50, 0.0 }
 0xf1a   : > { %v2598_v63 = vpop.xlane.xlu0 %2597 }
 0xf1b   : > { %12958 = vrcp.f32 %v2598_v63 }
 0xf1e   : > { %v2764_v0 = vpop.xlane.xlu0 %2763 }
 0xf1f   : > { %12960 = vrcp.f32 %v2764_v0 }
 0xf22   : > { %v2602_v1 = vpop.permute.xlu0 %2601 }
 0xf23   : > { %11734 = vmatpush3.msra.mxu1 %v2602_v1 }
 0xf24   : > { %11743 = vmatprep.subr.mxu1 %v16451_v13 }
 0xf25   : > { %v12959_v2 = vpop.eup %12958 }
 0xf26   : > { %v2600_v3 = vmul.f32 %v12959_v2, %v12955_v56  ;;  %v2992_v11 = vpop.permute.xlu0 %2991 }
 0xf28   : > { %11736 = vmatmul.mubr.msk.f32.vlgmr.msra.gmra.mrb[14].mxu1 %vm1557_vm4, %v2600_v3 }
 0xf29   : > { %v12961_v5 = vpop.eup %12960  ;;  %11744 = vmatpush3.msra.mxu1 %v2768_v4  ;;  %11745 = vmatprep.mubr.msk.f32.mxu1 %vm13953_vm3, %v16451_v13 }
 0xf2a   : > { %v2766_v6 = vmul.f32 %v12961_v5, %v12957_v58  ;;  %11753 = vmatprep.subr.mxu1 %v16451_v13 }
 0xf2c   : > { %11746 = vmatmul.mubr.msk.f32.vlgmr.msra.gmra.mrb[16].mxu1 %vm1557_vm4, %v2766_v6 }
 0xf2d   : > { %11754 = vmatpush3.msra.mxu1 %v14658_v51  ;;  %11755 = vmatprep.mubr.msk.f32.mxu1 %vm13953_vm3, %v16451_v13  ;;  %v2990_v51 = vpop.permute.xlu0 %2989 }
 0xf2e   : > { %11763 = vmatprep.subr.mxu1 %v16451_v13 }
 0xffb   : > { %v2673_v8 = vpop.f32.mrb[14].mxu1 }
 0xffc   : > { %v11737_v9 = vpop.f32.mrb[15].mxu1  ;;  %11756 = vmatmul.mubr.msk.f32.vlgmr.msra.gmra.mrb[18].mxu1 %vm1557_vm4, %v2673_v8 }
 0xffd   : > { %11765 = vmatprep.mubr.msk.f32.mxu1 %vm13953_vm3, %v16451_v13 }
 0xfff   : > { %v2839_v14 = vpop.f32.mrb[16].mxu1 }
0x1000   : > { %v11747_v15 = vpop.f32.mrb[17].mxu1  ;;  %11751 = vmatmul.mubr.msk.f32.vlgmr.msra.gmra.mrb[16].mxu0 %vm1557_vm4, %v2839_v14 }
0x1001   : > { %11759 = vmatpush3.xpose.msk.msra.mxu0 %vm1557_vm4, %v2992_v11  ;;  %11760 = vmatprep.mubr.msk.f32.mxu0 %vm13953_vm3, %v16451_v13 }
0x1002   : > { %11768 = vmatprep.subr.mxu0 %v16451_v13 }
0x1004   : > { %11761 = vmatmul.mubr.msk.f32.vlgmr.msra.gmra.mrb[18].mxu0 %vm1557_vm4, %v2990_v51 }
0x1005   : > { %11769 = vmatpush3.msra.mxu0 %v14689_v7  ;;  %11770 = vmatprep.mubr.msk.f32.mxu0 %vm13953_vm3, %v16451_v13 }
0x1006   : > { %11778 = vmatprep.subr.mxu0 %v16451_v13 }
0x10cf   : > { %v2985_v17 = vpop.f32.mrb[18].mxu1 }
0x10d0   : > { %v11757_v18 = vpop.f32.mrb[19].mxu1 }
0x10d3   : > { %v2912_v19 = vpop.f32.mrb[16].mxu0 }
0x10d4   : > { %v2986_v20 = vadd.f32 %v2985_v17, %v2912_v19  ;;  %v11752_v21 = vpop.f32.mrb[17].mxu0 }
0x10d7   : > { %v3063_v22 = vpop.f32.mrb[18].mxu0 }
0x10d8   : > { %v3067_v23 = vmul.f32 0.35355338, %v3063_v22  ;;  %v11762_v24 = vpop.f32.mrb[19].mxu0 }
0x10d9   : > { %v3526_v24 = vld [vmem:[#allocation16 + $0x8] sm:$0xff] }
0x10da   : > { %v3068_v25 = vsel %vm1557_vm4, %v3067_v23, -inf }
0x10db   : > { %3069 = vmax.xlane.f32.xlu1 %v3068_v25 }
0x10ec   : > { %3231 = vrot.lane.b32.xlu1 %v14616_v16, %s16436_s11 }
0x10f0   : > { %3229 = vrot.lane.b32.xlu1 %v14616_v16, %s16434_s0  ;;  %s16551_s0 = sld [smem:[#allocation62_spill]] }
0x10f6   : > { %s16552_s11 = smov %s16551_s0 }
0x1168   : > { %v3070_v7 = vpop.xlane.xlu1 %3069 }
0x1169   : > { %v3071_v26 = vsub.f32 %v3067_v23, %v3070_v7  ;;  %v3525_v23 = vld [vmem:[#allocation16] sm:$0xff]  ;;  %v3527_v7 = vld [vmem:[#allocation16 + $0x10] sm:$0xff] }
0x116a   : > { %v12301_v25 = vpack.c.bf16 %v3526_v24, %v3525_v23 }
0x116b   : > { %v3072_v27 = vmul.f32 1.442695, %v3071_v26  ;;  %v3528_v26 = vld [vmem:[#allocation16 + $0x18] sm:$0xff] }
0x116c   : > { %v3232_v33 = vpop.permute.xlu1 %3231 }
0x116d   : > { %12962 = vpow2.f32 %v3072_v27  ;;  %v12305_v27 = vpack.c.bf16 %v3528_v26, %v3527_v7 }
0x1170   : > { %v3230_v35 = vpop.permute.xlu1 %3229 }
0x1177   : > { %v12963_v28 = vpop.eup %12962 }
0x1178   : > { %v3074_v29 = vsel %vm1557_vm4, %v12963_v28, 0.0 }
0x1179   : > { %3075 = vadd.xlane.f32.xlu0 %v3074_v29 }
0x118f   : > { %3079 = vrot.lane.b32.xlu0 %v14616_v16, %s16549_s3 }
0x1206   : > { %v3076_v30 = vpop.xlane.xlu0 %3075 }
0x1207   : > { %12964 = vrcp.f32 %v3076_v30 }
0x120a   : > { %v3080_v31 = vpop.permute.xlu0 %3079 }
0x120b   : > { %11764 = vmatpush3.msra.mxu1 %v3080_v31 }
0x120c   : > { %11773 = vmatprep.subr.mxu1 %v16451_v13 }
0x1211   : > { %v12965_v32 = vpop.eup %12964 }
0x1212   : > { %v3078_v34 = vmul.f32 %v12965_v32, %v12963_v28 }
0x1214   : > { %11766 = vmatmul.mubr.msk.f32.vlgmr.msra.gmra.mrb[20].mxu1 %vm1557_vm4, %v3078_v34 }
0x1215   : > { %11774 = vmatpush3.xpose.msk.msra.mxu1 %vm1557_vm4, %v3232_v33  ;;  %11775 = vmatprep.mubr.msk.f32.mxu1 %vm13953_vm3, %v16451_v13 }
0x1216   : > { %11783 = vmatprep.subr.mxu1 %v16451_v13 }
0x1218   : > { %11776 = vmatmul.mubr.msk.f32.vlgmr.msra.gmra.mrb[22].mxu1 %vm1557_vm4, %v3230_v35  ;;  %v3669_v35 = vld [vmem:[#allocation19] sm:$0xff] }
0x1219   : > { %11784 = vmatpush3.msra.mxu1 %v14730_v38  ;;  %11785 = vmatprep.mubr.msk.f32.mxu1 %vm13953_vm3, %v16451_v13 }
0x12e7   : > { %v3151_v36 = vpop.f32.mrb[20].mxu1 }
0x12e8   : > { %v11767_v37 = vpop.f32.mrb[21].mxu1  ;;  %11771 = vmatmul.mubr.msk.f32.vlgmr.msra.gmra.mrb[20].mxu0 %vm1557_vm4, %v3151_v36  ;;  %v3670_v36 = vld [vmem:[#allocation19 + $0x8] sm:$0xff] }
0x12e9   : > { %11780 = vmatprep.mubr.msk.f32.mxu0 %vm13953_vm3, %v16451_v13  ;;  %v12309_v37 = vpack.c.bf16 %v3670_v36, %v3669_v35 }
0x12eb   : > { %v3303_v39 = vpop.f32.mrb[22].mxu1  ;;  %12310 = vmatprep.subr.bf16.mxu1 %v12309_v37 }
0x12ec   : > { %v3307_v40 = vmul.f32 0.35355338, %v3303_v39  ;;  %v11777_v41 = vpop.f32.mrb[23].mxu1  ;;  %v3671_v39 = vld [vmem:[#allocation19 + $0x10] sm:$0xff] }
0x12ee   : > { %v3308_v42 = vsel %vm1557_vm4, %v3307_v40, -inf }
0x12ef   : > { %3309 = vmax.xlane.f32.xlu0 %v3308_v42  ;;  %v3673_v42 = vld [vmem:[#allocation19 + $0x20] sm:$0xff] }
0x1305   : > { %3319 = vrot.lane.b32.xlu0 %v14616_v16, %s16432_s7  ;;  %s16550_s7 = sld [smem:[#allocation61_spill]] }
0x130b   : > { %v11154_v18 = vld [vmem:[%s16550_s7] ss:$0 sm:$0xff] }
0x137c   : > { %v3310_v38 = vpop.xlane.xlu0 %3309 }
0x137d   : > { %v3311_v43 = vsub.f32 %v3307_v40, %v3310_v38  ;;  %v3672_v40 = vld [vmem:[#allocation19 + $0x18] sm:$0xff]  ;;  %v3674_v38 = vld [vmem:[#allocation19 + $0x28] sm:$0xff] }
0x137e   : > { %v12313_v41 = vpack.c.bf16 %v3672_v40, %v3671_v39 }
0x137f   : > { %v3312_v44 = vmul.f32 1.442695, %v3311_v43  ;;  %v12317_v43 = vpack.c.bf16 %v3674_v38, %v3673_v42  ;;  %v11159_v38 = vld [vmem:[#allocation21] ss:$0 sm:$0xff] }
0x1380   : > { %v3320_v45 = vpop.permute.xlu0 %3319 }
0x1381   : > { %12966 = vpow2.f32 %v3312_v44  ;;  %11779 = vmatpush3.msra.mxu0 %v3320_v45  ;;  %v3675_v44 = vld [vmem:[#allocation19 + $0x30] sm:$0xff]  ;;  %v3676_v45 = vld [vmem:[#allocation19 + $0x38] sm:$0xff] }
0x1382   : > { %12302 = vmatprep.subr.bf16.mxu0 %v12301_v25 }
0x138b   : > { %v12967_v48 = vpop.eup %12966 }
0x138c   : > { %v3314_v49 = vsel %vm1557_vm4, %v12967_v48, 0.0 }
0x138d   : > { %3315 = vadd.xlane.f32.xlu1 %v3314_v49 }
0x1391   : > { %3483 = vadd.xlane.f32.xlu1 %v3482_v52 }
0x13bb   : > { %v3224_v53 = vpop.f32.mrb[20].mxu0 }
0x13bc   : > { %v3228_v16 = vadd.f32 %v3224_v53, %v2986_v20  ;;  %v11772_v54 = vpop.f32.mrb[21].mxu0  ;;  %v11155_v20 = vld [vmem:[%s16551_s0] ss:$0 sm:$0xff]  ;;  %s16553_s0 = sld [smem:[#allocation67_spill]] }
0x13c2   : > { %s16554_s10 = smov %s16553_s0 }
0x141a   : > { %v3316_v55 = vpop.xlane.xlu1 %3315 }
0x141b   : > { %12968 = vrcp.f32 %v3316_v55 }
0x141e   : > { %v3484_v60 = vpop.xlane.xlu1 %3483 }
0x141f   : > { %v3489_v61 = vmul.f32 0.03125, %v3484_v60 }
0x1421   : > { %v3491_v0 = vsub.f32 %v3478_v50, %v3489_v61 }
0x1423   : > { %v3493_v4 = vmul.f32 %v3491_v0, %v3491_v0 }
0x1425   : > { %v12969_v56 = vpop.eup %12968  ;;  %v3495_v5 = vsel %vm1468_vm2, %v3493_v4, 0.0 }
0x1426   : > { %v3318_v57 = vmul.f32 %v12969_v56, %v12967_v48 }
0x1428   : > { %11781 = vmatmul.mubr.msk.f32.vlgmr.msra.gmra.mrb[22].mxu0 %vm1557_vm4, %v3318_v57 }
0x1429   : > { %12304 = vmatpush3.bf16.msra.mxu0 %v12301_v25 }
0x142a   : > { %12306 = vmatprep.subr.bf16.mxu0 %v12305_v27 }
0x142d   : > { %12308 = vmatpush3.bf16.msra.mxu0 %v12305_v27 }
0x14fb   : > { %v3391_v58 = vpop.f32.mrb[22].mxu0 }
0x14fc   : > { %v11782_v59 = vpop.f32.mrb[23].mxu0  ;;  %11786 = vmatmul.mubr.msk.f32.vlgmr.msra.gmra.mrb[24].mxu1 %vm1557_vm4, %v3391_v58 }
0x14fd   : > { %12312 = vmatpush3.bf16.msra.mxu1 %v12309_v37 }
0x14fe   : > { %12314 = vmatprep.subr.bf16.mxu1 %v12313_v41 }
0x1501   : > { %12316 = vmatpush3.bf16.msra.mxu1 %v12313_v41 }
0x1502   : > { %12318 = vmatprep.subr.bf16.mxu1 %v12317_v43 }
0x1505   : > { %12320 = vmatpush3.bf16.msra.mxu1 %v12317_v43 }
0x15cf   : > { %v3464_v10 = vpop.f32.mrb[24].mxu1 }
0x15d0   : > { %v3468_v62 = vadd.f32 %v3464_v10, %v3228_v16  ;;  %v11787_v63 = vpop.f32.mrb[25].mxu1 }
0x15d2   : > { %v3477_v1 = vadd.f32 %v11153_v46, %v3468_v62  ;;  %v12321_v46 = vpack.c.bf16 %v3676_v45, %v3675_v44 }
0x15d4   : > { %v3479_v2 = vadd.f32 %v3477_v1, %v14606_v12  ;;  %12322 = vmatprep.subr.bf16.mxu1 %v12321_v46 }
0x15d5   : > { %12324 = vmatpush3.bf16.msra.mxu1 %v12321_v46 }
0x15d6   : > { %v3485_v3 = vsel %vm1468_vm2, %v3479_v2, 0.0  ;;  %11834 = vmatprep.subr.mxu1 %v16451_v13 }
0x15d7   : > { %3486 = vadd.xlane.f32.xlu1 %v3485_v3 }
0x15db   : > { %3496 = vadd.xlane.f32.xlu1 %v3495_v5 }
0x1664   : > { %v3487_v6 = vpop.xlane.xlu1 %3486 }
0x1665   : > { %v3490_v8 = vmul.f32 0.03125, %v3487_v6 }
0x1667   : > { %v3492_v9 = vsub.f32 %v3479_v2, %v3490_v8 }
0x1668   : > { %v3497_v11 = vpop.xlane.xlu1 %3496 }
0x1669   : > { %v3501_v14 = vmul.f32 0.03125, %v3497_v11  ;;  %v3494_v15 = vmul.f32 %v3492_v9, %v3492_v9 }
0x166b   : > { %v3503_v51 = vadd.f32 1e-05, %v3501_v14  ;;  %v3498_v17 = vsel %vm1468_vm2, %v3494_v15, 0.0 }
0x166c   : > { %3499 = vadd.xlane.f32.xlu1 %v3498_v17 }
0x166d   : > { %12970 = vrsqrt.f32 %v3503_v51 }
0x1677   : > { %v12971_v12 = vpop.eup %12970 }
0x1678   : > { %v3507_v19 = vmul.f32 %v12971_v12, %v3491_v0 }
0x167a   : > { %v3515_v21 = vmul.f32 %v11154_v18, %v3507_v19 }
0x167c   : > { %v14810_v22 = vadd.f32 %v11155_v20, %v3515_v21 }
0x167e   : > { %11796 = vmatprep.mubr.msk.f32.mxu0 %vm1468_vm2, %v14810_v22 }
0x16f9   : > { %v3500_v28 = vpop.xlane.xlu1 %3499 }
0x16fa   : > { %v3502_v29 = vmul.f32 0.03125, %v3500_v28 }
0x16fc   : > { %v3504_v30 = vadd.f32 1e-05, %v3502_v29  ;;  %v16449_v29 = vmov 1.0  }
0x16fe   : > { %12972 = vrsqrt.f32 %v3504_v30 }
0x1708   : > { %v12973_v31 = vpop.eup %12972 }
0x1709   : > { %v3508_v32 = vmul.f32 %v12973_v31, %v3492_v9 }
0x170b   : > { %v3516_v33 = vmul.f32 %v11154_v18, %v3508_v32 }
0x170d   : > { %v14814_v34 = vadd.f32 %v11155_v20, %v3516_v33 }
0x170f   : > { %11797 = vmatmul.mubr.msk.f32.vlgmr.msra.gmra.mrb[24].mxu0 %vm1468_vm2, %v14814_v34 }
0x17e2   : > { %v11798_v48 = vpop.f32.mrb[24].mxu0 }
0x17e3   : > { %v3614_v49 = vadd.f32 %v11798_v48, %v11156_v47  ;;  %v3608_v50 = vpop.f32.mrb[25].mxu0 }
0x17e4   : > { %v3609_v52 = vadd.f32 %v11156_v47, %v3608_v50 }
0x17e5   : > { %v3620_v53 = vmul.f32 0.70710677, %v3614_v49  ;;  %v3618_v40 = vmul.f32 0.5, %v3614_v49 }
0x17e6   : > { %v3619_v16 = vmul.f32 0.70710677, %v3609_v52  ;;  %v3617_v37 = vmul.f32 0.5, %v3609_v52 }
0x17e7   : > { %v3626_v54 = vand.u32 2147483647, %v3620_v53  ;;  %vm3622_vm5 = vcmp.lt.f32.partialorder %v3620_v53, 0.0 }
0x17e8   : > { %v3625_v55 = vand.u32 2147483647, %v3619_v16  ;;  %vm3621_vm6 = vcmp.lt.f32.partialorder %v3619_v16, 0.0  ;;  %v3624_v30 = vsel %vm3622_vm5, -1.0, %v16449_v29 }
0x17e9   : > { %v3628_v56 = vmul.f32 0.3275911, %v3626_v54  ;;  %v3652_v60 = vsub.f32 0.0, %v3626_v54  ;;  %v3623_v33 = vsel %vm3621_vm6, -1.0, %v16449_v29 }
0x17ea   : > { %v3627_v57 = vmul.f32 0.3275911, %v3625_v55  ;;  %v3651_v61 = vsub.f32 0.0, %v3625_v55 }
0x17eb   : > { %v3630_v58 = vadd.f32 1.0, %v3628_v56  ;;  %v3654_v62 = vmul.f32 %v3652_v60, %v3626_v54  ;;  %v3814_v60 = vld [vmem:[#allocation10 + $0x28] sm:$0xff] }
0x17ec   : > { %v3629_v59 = vadd.f32 1.0, %v3627_v57  ;;  %v3653_v1 = vmul.f32 %v3651_v61, %v3625_v55  ;;  %v3815_v61 = vld [vmem:[#allocation10 + $0x30] sm:$0xff] }
0x17ed   : > { %12974 = vrcp.f32 %v3630_v58  ;;  %v3657_v4 = vmul.f32 1.442695, %v3654_v62  ;;  %v3816_v62 = vld [vmem:[#allocation10 + $0x38] sm:$0xff] }
0x17ee   : > { %12976 = vrcp.f32 %v3629_v59  ;;  %v3655_v8 = vmul.f32 1.442695, %v3653_v1 }
0x17ef   : > { %12978 = vpow2.f32 %v3657_v4 }
0x17f0   : > { %12980 = vpow2.f32 %v3655_v8  ;;  %v11162_v8 = vld [vmem:[%s16553_s0] ss:$0 sm:$0xff]  ;;  %s16556_s0 = smov 120  }
0x17f7   : > { %v12975_v10 = vpop.eup %12974 }
0x17f8   : > { %v12977_v63 = vpop.eup %12976  ;;  %v3634_v0 = vmul.f32 1.0614054, %v12975_v10 }
0x17f9   : > { %v3633_v2 = vmul.f32 1.0614054, %v12977_v63  ;;  %v12979_v24 = vpop.eup %12978 }
0x17fa   : > { %v3636_v3 = vadd.f32 -1.4531521, %v3634_v0  ;;  %v12981_v7 = vpop.eup %12980 }
0x17fb   : > { %v3635_v5 = vadd.f32 -1.4531521, %v3633_v2 }
0x17fc   : > { %v3638_v6 = vmul.f32 %v12975_v10, %v3636_v3 }
0x17fd   : > { %v3637_v9 = vmul.f32 %v12977_v63, %v3635_v5 }
0x17fe   : > { %v3640_v11 = vadd.f32 1.4214138, %v3638_v6 }
0x17ff   : > { %v3639_v14 = vadd.f32 1.4214138, %v3637_v9 }
0x1800   : > { %v3642_v15 = vmul.f32 %v12975_v10, %v3640_v11  ;;  %v11163_v11 = vld [vmem:[%s16555_s9] ss:$0 sm:$0xff] }
0x1801   : > { %v3641_v51 = vmul.f32 %v12977_v63, %v3639_v14 }
0x1802   : > { %v3644_v17 = vadd.f32 -0.28449672, %v3642_v15 }
0x1803   : > { %v3643_v12 = vadd.f32 -0.28449672, %v3641_v51 }
0x1804   : > { %v3646_v18 = vmul.f32 %v12975_v10, %v3644_v17 }
0x1805   : > { %v3645_v19 = vmul.f32 %v12977_v63, %v3643_v12 }
0x1806   : > { %v3648_v20 = vadd.f32 0.2548296, %v3646_v18 }
0x1807   : > { %v3647_v21 = vadd.f32 0.2548296, %v3645_v19  ;;  %v11164_v19 = vld [vmem:[#allocation12 + $0x1] ss:$0 sm:$0xff] }
0x1808   : > { %v3650_v23 = vmul.f32 %v12975_v10, %v3648_v20 }
0x1809   : > { %v3649_v25 = vmul.f32 %v12977_v63, %v3647_v21  ;;  %v12329_v63 = vpack.c.bf16 %v3816_v62, %v3815_v61 }
0x180a   : > { %v3660_v26 = vmul.f32 %v12979_v24, %v3650_v23 }
0x180b   : > { %v3659_v27 = vmul.f32 %v12981_v7, %v3649_v25 }
0x180c   : > { %v3662_v28 = vsub.f32 1.0, %v3660_v26 }
0x180d   : > { %v3661_v31 = vsub.f32 1.0, %v3659_v27 }
0x180e   : > { %v3664_v32 = vmul.f32 %v3662_v28, %v3624_v30 }
0x180f   : > { %v3663_v35 = vmul.f32 %v3661_v31, %v3623_v33 }
0x1810   : > { %v3666_v36 = vadd.f32 1.0, %v3664_v32 }
0x1811   : > { %v3665_v39 = vadd.f32 1.0, %v3663_v35 }
0x1812   : > { %v3668_v42 = vmul.f32 %v3666_v36, %v3618_v40 }
0x1813   : > { %v3667_v41 = vmul.f32 %v3665_v39, %v3617_v37 }
0x1815   : > { %11815 = vmatprep.mubr.msk.f32.mxu1 %vm3684_vm7, %v3667_v41 }
0x1816   : > { %11816 = vmatmul.mubr.msk.f32.vlgmr.msra.gmra.mrb[26].mxu1 %vm3684_vm7, %v3668_v42 }
0x1817   : > { %11836 = vmatprep.mubr.msk.f32.mxu1 %vm13953_vm3, %v16451_v13 }
0x18e9   : > { %v11817_v43 = vpop.f32.mrb[26].mxu1 }
0x18ea   : > { %v3763_v44 = vadd.f32 %v11817_v43, %v11159_v38  ;;  %v3757_v45 = vpop.f32.mrb[27].mxu1 }
0x18eb   : > { %v3758_v46 = vadd.f32 %v11159_v38, %v3757_v45 }
0x18ec   : > { %v3767_v47 = vadd.f32 %v3763_v44, %v14814_v34 }
0x18ed   : > { %v3766_v48 = vadd.f32 %v3758_v46, %v14810_v22  ;;  %v3813_v22 = vld [vmem:[#allocation10 + $0x20] sm:$0xff] }
0x18ee   : > { %v3773_v49 = vsel %vm1468_vm2, %v3767_v47, 0.0  ;;  %v12325_v10 = vpack.c.bf16 %v3814_v60, %v3813_v22 }
0x18ef   : > { %3774 = vadd.xlane.f32.xlu1 %v3773_v49  ;;  %v3770_v50 = vsel %vm1468_vm2, %v3766_v48, 0.0 }
0x18f0   : > { %3771 = vadd.xlane.f32.xlu0 %v3770_v50  ;;  %12326 = vmatprep.subr.bf16.mxu0 %v12325_v10 }
0x18f1   : > { %12328 = vmatpush3.bf16.msra.mxu0 %v12325_v10 }
0x18f2   : > { %12330 = vmatprep.subr.bf16.mxu0 %v12329_v63 }
0x18f5   : > { %12332 = vmatpush3.bf16.msra.mxu0 %v12329_v63 }
0x18f6   : > { %11829 = vmatprep.subr.mxu0 %v16451_v13 }
0x197c   : > { %v3775_v52 = vpop.xlane.xlu1 %3774 }
0x197d   : > { %v3777_v53 = vmul.f32 0.03125, %v3775_v52  ;;  %v3772_v16 = vpop.xlane.xlu0 %3771 }
0x197e   : > { %v3776_v54 = vmul.f32 0.03125, %v3772_v16 }
0x197f   : > { %v3779_v55 = vsub.f32 %v3767_v47, %v3777_v53  ;;  %v14877_v47 = vld [vmem:[#allocation13 + $0x28] sm:$0xff] }
0x1980   : > { %v3778_v56 = vsub.f32 %v3766_v48, %v3776_v54 }
0x1981   : > { %v3781_v59 = vmul.f32 %v3779_v55, %v3779_v55 }
0x1982   : > { %v3780_v57 = vmul.f32 %v3778_v56, %v3778_v56 }
0x1983   : > { %v3785_v34 = vsel %vm1468_vm2, %v3781_v59, 0.0 }
0x1984   : > { %v3782_v58 = vsel %vm1468_vm2, %v3780_v57, 0.0 }
0x1985   : > { %3783 = vadd.xlane.f32.xlu1 %v3782_v58 }
0x1989   : > { %3786 = vadd.xlane.f32.xlu1 %v3785_v34 }
0x1a12   : > { %v3784_v0 = vpop.xlane.xlu1 %3783 }
0x1a13   : > { %v3788_v1 = vmul.f32 0.03125, %v3784_v0 }
0x1a15   : > { %v3790_v2 = vadd.f32 1e-05, %v3788_v1 }
0x1a16   : > { %v3787_v3 = vpop.xlane.xlu1 %3786 }
0x1a17   : > { %12982 = vrsqrt.f32 %v3790_v2  ;;  %v3789_v4 = vmul.f32 0.03125, %v3787_v3 }
0x1a19   : > { %v3791_v5 = vadd.f32 1e-05, %v3789_v4 }
0x1a1b   : > { %12984 = vrsqrt.f32 %v3791_v5 }
0x1a21   : > { %v12983_v6 = vpop.eup %12982 }
0x1a22   : > { %v3794_v9 = vmul.f32 %v12983_v6, %v3778_v56  ;;  %v14889_v56 = vld [vmem:[#allocation13 + $0x20] sm:$0xff] }
0x1a24   : > { %v3802_v14 = vmul.f32 %v11162_v8, %v3794_v9 }
0x1a25   : > { %v12985_v15 = vpop.eup %12984 }
0x1a26   : > { %v3795_v51 = vmul.f32 %v12985_v15, %v3779_v55  ;;  %v14834_v17 = vadd.f32 %v11163_v11, %v3802_v14 }
0x1a28   : > { %v3803_v12 = vmul.f32 %v11162_v8, %v3795_v51  ;;  %11826 = vmatprep.mubr.msk.f32.mxu0 %vm1468_vm2, %v14834_v17 }
0x1a2a   : > { %v14838_v18 = vadd.f32 %v11163_v11, %v3803_v12 }
0x1a2c   : > { %11827 = vmatmul.mubr.msk.f32.vlgmr.msra.gmra.mrb[26].mxu0 %vm1468_vm2, %v14838_v18 }
0x1a2d   : > { %11831 = vmatprep.mubr.msk.f32.mxu0 %vm13953_vm3, %v16451_v13 }
0x1aff   : > { %v11828_v20 = vpop.f32.mrb[26].mxu0 }
0x1b00   : > { %v14844_v21 = vadd.f32 %v11828_v20, %v11164_v19  ;;  %v3897_v23 = vpop.f32.mrb[27].mxu0 }
0x1b01   : > { %v14846_v24 = vadd.f32 %v11164_v19, %v3897_v23  ;;  %v14923_v23 = vld [vmem:[#allocation13 + $0x30] sm:$0xff] }
0x1b03   : > { %4076 = vrot.lane.b32.xlu0 %v14846_v24, %s16556_s0  ;;  %3912 = vrot.lane.b32.xlu1 %v14846_v24, %s16557_s5 }
0x1b07   : > { %4078 = vrot.lane.b32.xlu1 %v14846_v24, %s16558_s8 }
0x1b75   : > { %v3913_v25 = vpop.permute.xlu1 %3912  ;;  %v4077_v26 = vpop.permute.xlu0 %4076 }
0x1b76   : > { %11830 = vmatpush3.xpose.msk.msra.mxu0 %vm1557_vm4, %v3913_v25 }
0x1b77   : > { %11839 = vmatprep.subr.mxu0 %v16451_v13 }
0x1b79   : > { %11832 = vmatmul.mubr.msk.f32.vlgmr.msra.gmra.mrb[28].mxu0 %vm1557_vm4, %v14846_v24  ;;  %v4079_v7 = vpop.permute.xlu1 %4078 }
0x1b7a   : > { %11840 = vmatpush3.xpose.msk.msra.mxu0 %vm1557_vm4, %v4079_v7  ;;  %11841 = vmatprep.mubr.msk.f32.mxu0 %vm13953_vm3, %v16451_v13 }
0x1b7b   : > { %11849 = vmatprep.subr.mxu0 %v16451_v13 }
0x1b7d   : > { %11842 = vmatmul.mubr.msk.f32.vlgmr.msra.gmra.mrb[30].mxu0 %vm1557_vm4, %v4077_v26 }
0x1b7e   : > { %11851 = vmatprep.mubr.msk.f32.mxu0 %vm13953_vm3, %v16451_v13  ;;  %11850 = vmatpush3.msra.mxu0 %v14877_v47 }
0x1b7f   : > { %11859 = vmatprep.subr.mxu0 %v16451_v13 }
0x1c4c   : > { %v3984_v27 = vpop.f32.mrb[28].mxu0 }
0x1c4d   : > { %v3988_v28 = vmul.f32 0.35355338, %v3984_v27  ;;  %v11833_v30 = vpop.f32.mrb[29].mxu0 }
0x1c4f   : > { %v3989_v31 = vsel %vm1557_vm4, %v3988_v28, -inf }
0x1c50   : > { %3990 = vmax.xlane.f32.xlu1 %v3989_v31  ;;  %v4150_v32 = vpop.f32.mrb[30].mxu0 }
0x1c51   : > { %v4154_v33 = vmul.f32 0.35355338, %v4150_v32  ;;  %v11843_v35 = vpop.f32.mrb[31].mxu0 }
0x1c53   : > { %v4155_v36 = vsel %vm1557_vm4, %v4154_v33, -inf }
0x1c54   : > { %4156 = vmax.xlane.f32.xlu0 %v4155_v36 }
0x1c6a   : > { %4166 = vrot.lane.b32.xlu0 %v14846_v24, %s16559_s12 }
0x1cdd   : > { %v3991_v37 = vpop.xlane.xlu1 %3990 }
0x1cde   : > { %v3992_v39 = vsub.f32 %v3988_v28, %v3991_v37 }
0x1ce0   : > { %v3993_v40 = vmul.f32 1.442695, %v3992_v39 }
0x1ce1   : > { %v4157_v41 = vpop.xlane.xlu0 %4156 }
0x1ce2   : > { %12986 = vpow2.f32 %v3993_v40  ;;  %v4158_v42 = vsub.f32 %v4154_v33, %v4157_v41 }
0x1ce4   : > { %v4159_v38 = vmul.f32 1.442695, %v4158_v42 }
0x1ce5   : > { %v4167_v16 = vpop.permute.xlu0 %4166 }
0x1ce6   : > { %12988 = vpow2.f32 %v4159_v38 }
0x1cec   : > { %v12987_v43 = vpop.eup %12986 }
0x1ced   : > { %v3995_v44 = vsel %vm1557_vm4, %v12987_v43, 0.0 }
0x1cee   : > { %3996 = vadd.xlane.f32.xlu1 %v3995_v44 }
0x1cf0   : > { %v12989_v45 = vpop.eup %12988 }
0x1cf1   : > { %v4161_v46 = vsel %vm1557_vm4, %v12989_v45, 0.0 }
0x1cf2   : > { %4162 = vadd.xlane.f32.xlu1 %v4161_v46  ;;  %v14955_v46 = vld [vmem:[#allocation13 + $0x38] sm:$0xff] }
0x1d03   : > { %4000 = vrot.lane.b32.xlu1 %v14846_v24, %s16560_s13 }
0x1d07   : > { %4390 = vrot.lane.b32.xlu1 %v14846_v24, %s16547_s24 }
0x1d0b   : > { %4388 = vrot.lane.b32.xlu1 %v14846_v24, %s16548_s26 }
0x1d7b   : > { %v3997_v48 = vpop.xlane.xlu1 %3996 }
0x1d7c   : > { %12990 = vrcp.f32 %v3997_v48 }
0x1d7f   : > { %v4163_v49 = vpop.xlane.xlu1 %4162 }
0x1d80   : > { %12992 = vrcp.f32 %v4163_v49 }
0x1d83   : > { %v4001_v50 = vpop.permute.xlu1 %4000 }
0x1d84   : > { %11835 = vmatpush3.msra.mxu1 %v4001_v50 }
0x1d85   : > { %11844 = vmatprep.subr.mxu1 %v16451_v13 }
0x1d86   : > { %v12991_v52 = vpop.eup %12990 }
0x1d87   : > { %v3999_v53 = vmul.f32 %v12991_v52, %v12987_v43  ;;  %v4391_v59 = vpop.permute.xlu1 %4390 }
0x1d89   : > { %11837 = vmatmul.mubr.msk.f32.vlgmr.msra.gmra.mrb[28].mxu1 %vm1557_vm4, %v3999_v53 }
0x1d8a   : > { %v12993_v54 = vpop.eup %12992  ;;  %11845 = vmatpush3.msra.mxu1 %v4167_v16  ;;  %11846 = vmatprep.mubr.msk.f32.mxu1 %vm13953_vm3, %v16451_v13 }
0x1d8b   : > { %v4165_v55 = vmul.f32 %v12993_v54, %v12989_v45  ;;  %11854 = vmatprep.subr.mxu1 %v16451_v13  ;;  %v4389_v60 = vpop.permute.xlu1 %4388 }
0x1d8d   : > { %11847 = vmatmul.mubr.msk.f32.vlgmr.msra.gmra.mrb[30].mxu1 %vm1557_vm4, %v4165_v55 }
0x1d8e   : > { %11856 = vmatprep.mubr.msk.f32.mxu1 %vm13953_vm3, %v16451_v13  ;;  %11855 = vmatpush3.msra.mxu1 %v14889_v56 }
0x1d8f   : > { %11864 = vmatprep.subr.mxu1 %v16451_v13 }
0x1e5c   : > { %v4072_v57 = vpop.f32.mrb[28].mxu1 }
0x1e5d   : > { %v11838_v58 = vpop.f32.mrb[29].mxu1  ;;  %11857 = vmatmul.mubr.msk.f32.vlgmr.msra.gmra.mrb[32].mxu1 %vm1557_vm4, %v4072_v57 }
0x1e5e   : > { %11866 = vmatprep.mubr.msk.f32.mxu1 %vm13953_vm3, %v16451_v13 }
0x1e60   : > { %v4238_v34 = vpop.f32.mrb[30].mxu1 }
0x1e61   : > { %v11848_v22 = vpop.f32.mrb[31].mxu1  ;;  %11852 = vmatmul.mubr.msk.f32.vlgmr.msra.gmra.mrb[32].mxu0 %vm1557_vm4, %v4238_v34 }
0x1e62   : > { %11860 = vmatpush3.xpose.msk.msra.mxu0 %vm1557_vm4, %v4391_v59  ;;  %11861 = vmatprep.mubr.msk.f32.mxu0 %vm13953_vm3, %v16451_v13 }
0x1e63   : > { %11869 = vmatprep.subr.mxu0 %v16451_v13 }
0x1e65   : > { %11862 = vmatmul.mubr.msk.f32.vlgmr.msra.gmra.mrb[34].mxu0 %vm1557_vm4, %v4389_v60 }
0x1e66   : > { %11871 = vmatprep.mubr.msk.f32.mxu0 %vm13953_vm3, %v16451_v13  ;;  %11870 = vmatpush3.msra.mxu0 %v14923_v23 }
0x1e67   : > { %11879 = vmatprep.subr.mxu0 %v16451_v13 }
0x1f30   : > { %v4384_v61 = vpop.f32.mrb[32].mxu1 }
0x1f31   : > { %v11858_v10 = vpop.f32.mrb[33].mxu1 }
0x1f34   : > { %v4311_v62 = vpop.f32.mrb[32].mxu0 }
0x1f35   : > { %v4385_v63 = vadd.f32 %v4384_v61, %v4311_v62  ;;  %v11853_v0 = vpop.f32.mrb[33].mxu0 }
0x1f38   : > { %v4462_v1 = vpop.f32.mrb[34].mxu0 }
0x1f39   : > { %v4466_v2 = vmul.f32 0.35355338, %v4462_v1  ;;  %v11863_v3 = vpop.f32.mrb[35].mxu0 }
0x1f3b   : > { %v4467_v4 = vsel %vm1557_vm4, %v4466_v2, -inf }
0x1f3c   : > { %4468 = vmax.xlane.f32.xlu1 %v4467_v4 }
0x1f4d   : > { %4630 = vrot.lane.b32.xlu1 %v14846_v24, %s16561_s14 }
0x1f51   : > { %4628 = vrot.lane.b32.xlu1 %v14846_v24, %s16562_s17 }
0x1f55   : > { %4869 = vrot.lane.b32.xlu1 %v14844_v21, %s16557_s5 }
0x1fc9   : > { %v4469_v5 = vpop.xlane.xlu1 %4468 }
0x1fca   : > { %v4470_v6 = vsub.f32 %v4466_v2, %v4469_v5 }
0x1fcc   : > { %v4471_v8 = vmul.f32 1.442695, %v4470_v6 }
0x1fcd   : > { %v4631_v12 = vpop.permute.xlu1 %4630 }
0x1fce   : > { %12994 = vpow2.f32 %v4471_v8 }
0x1fd1   : > { %v4629_v20 = vpop.permute.xlu1 %4628 }
0x1fd5   : > { %v4870_v41 = vpop.permute.xlu1 %4869 }
0x1fd8   : > { %v12995_v9 = vpop.eup %12994 }
0x1fd9   : > { %v4473_v11 = vsel %vm1557_vm4, %v12995_v9, 0.0 }
0x1fda   : > { %4474 = vadd.xlane.f32.xlu0 %v4473_v11 }
0x1ff0   : > { %4478 = vrot.lane.b32.xlu0 %v14846_v24, %s16549_s3 }
0x2067   : > { %v4475_v14 = vpop.xlane.xlu0 %4474 }
0x2068   : > { %12996 = vrcp.f32 %v4475_v14 }
0x206b   : > { %v4479_v15 = vpop.permute.xlu0 %4478 }
0x206c   : > { %11865 = vmatpush3.msra.mxu1 %v4479_v15 }
0x206d   : > { %11874 = vmatprep.subr.mxu1 %v16451_v13 }
0x2072   : > { %v12997_v51 = vpop.eup %12996 }
0x2073   : > { %v4477_v19 = vmul.f32 %v12997_v51, %v12995_v9 }
0x2075   : > { %11867 = vmatmul.mubr.msk.f32.vlgmr.msra.gmra.mrb[34].mxu1 %vm1557_vm4, %v4477_v19 }
0x2076   : > { %11875 = vmatpush3.xpose.msk.msra.mxu1 %vm1557_vm4, %v4631_v12  ;;  %11876 = vmatprep.mubr.msk.f32.mxu1 %vm13953_vm3, %v16451_v13 }
0x2077   : > { %11884 = vmatprep.subr.mxu1 %v16451_v13 }
0x2079   : > { %11877 = vmatmul.mubr.msk.f32.vlgmr.msra.gmra.mrb[36].mxu1 %vm1557_vm4, %v4629_v20 }
0x207a   : > { %11886 = vmatprep.mubr.msk.f32.mxu1 %vm13953_vm3, %v16451_v13  ;;  %11885 = vmatpush3.msra.mxu1 %v14955_v46 }
0x207b   : > { %11894 = vmatprep.subr.mxu1 %v16451_v13 }
0x2148   : > { %v4550_v25 = vpop.f32.mrb[34].mxu1 }
0x2149   : > { %v11868_v7 = vpop.f32.mrb[35].mxu1  ;;  %11872 = vmatmul.mubr.msk.f32.vlgmr.msra.gmra.mrb[36].mxu0 %vm1557_vm4, %v4550_v25 }
0x214a   : > { %11881 = vmatprep.mubr.msk.f32.mxu0 %vm13953_vm3, %v16451_v13 }
0x214c   : > { %v4702_v26 = vpop.f32.mrb[36].mxu1 }
0x214d   : > { %v4706_v27 = vmul.f32 0.35355338, %v4702_v26  ;;  %v11878_v28 = vpop.f32.mrb[37].mxu1 }
0x214f   : > { %v4707_v30 = vsel %vm1557_vm4, %v4706_v27, -inf }
0x2150   : > { %4708 = vmax.xlane.f32.xlu0 %v4707_v30 }
0x2166   : > { %4718 = vrot.lane.b32.xlu0 %v14846_v24, %s16563_s20 }
0x216a   : > { %5035 = vrot.lane.b32.xlu0 %v14844_v21, %s16558_s8  ;;  %s13966_s8 = smov 32  }
0x21dd   : > { %v4709_v31 = vpop.xlane.xlu0 %4708 }
0x21de   : > { %v4710_v32 = vsub.f32 %v4706_v27, %v4709_v31 }
0x21e0   : > { %v4711_v33 = vmul.f32 1.442695, %v4710_v32 }
0x21e1   : > { %v4719_v35 = vpop.permute.xlu0 %4718 }
0x21e2   : > { %12998 = vpow2.f32 %v4711_v33  ;;  %11880 = vmatpush3.msra.mxu0 %v4719_v35 }
0x21e3   : > { %11889 = vmatprep.subr.mxu0 %v16451_v13 }
0x21e5   : > { %v5036_v44 = vpop.permute.xlu0 %5035 }
0x21ec   : > { %v12999_v36 = vpop.eup %12998 }
0x21ed   : > { %v4713_v37 = vsel %vm1557_vm4, %v12999_v36, 0.0 }
0x21ee   : > { %4714 = vadd.xlane.f32.xlu1 %v4713_v37 }
0x21ff   : > { %5033 = vrot.lane.b32.xlu1 %v14844_v21, %s16556_s0 }
0x221c   : > { %v4623_v39 = vpop.f32.mrb[36].mxu0 }
0x221d   : > { %v4627_v24 = vadd.f32 %v4623_v39, %v4385_v63  ;;  %v11873_v40 = vpop.f32.mrb[37].mxu0 }
0x227b   : > { %v4715_v42 = vpop.xlane.xlu1 %4714 }
0x227c   : > { %13000 = vrcp.f32 %v4715_v42 }
0x227f   : > { %v5034_v45 = vpop.permute.xlu1 %5033 }
0x2286   : > { %v13001_v38 = vpop.eup %13000 }
0x2287   : > { %v4717_v43 = vmul.f32 %v13001_v38, %v12999_v36 }
0x2289   : > { %11882 = vmatmul.mubr.msk.f32.vlgmr.msra.gmra.mrb[38].mxu0 %vm1557_vm4, %v4717_v43 }
0x228a   : > { %11890 = vmatpush3.xpose.msk.msra.mxu0 %vm1557_vm4, %v4870_v41  ;;  %11891 = vmatprep.mubr.msk.f32.mxu0 %vm13953_vm3, %v16451_v13 }
0x228b   : > { %11899 = vmatprep.subr.mxu0 %v16451_v13 }
0x228d   : > { %11892 = vmatmul.mubr.msk.f32.vlgmr.msra.gmra.mrb[40].mxu0 %vm1557_vm4, %v14844_v21 }
0x228e   : > { %11900 = vmatpush3.xpose.msk.msra.mxu0 %vm1557_vm4, %v5036_v44  ;;  %11901 = vmatprep.mubr.msk.f32.mxu0 %vm13953_vm3, %v16451_v13 }
0x228f   : > { %11909 = vmatprep.subr.mxu0 %v16451_v13 }
0x2291   : > { %11902 = vmatmul.mubr.msk.f32.vlgmr.msra.gmra.mrb[42].mxu0 %vm1557_vm4, %v5034_v45  ;;  %v11199_v45 = vld [vmem:[#allocation15 + $0x1] ss:$0 sm:$0xff] }
0x2292   : > { %11910 = vmatpush3.msra.mxu0 %v14877_v47  ;;  %11911 = vmatprep.mubr.msk.f32.mxu0 %vm13953_vm3, %v16451_v13 }
0x2293   : > { %11919 = vmatprep.subr.mxu0 %v16451_v13 }
0x235c   : > { %v4790_v48 = vpop.f32.mrb[38].mxu0 }
0x235d   : > { %v11883_v49 = vpop.f32.mrb[39].mxu0  ;;  %11887 = vmatmul.mubr.msk.f32.vlgmr.msra.gmra.mrb[38].mxu1 %vm1557_vm4, %v4790_v48 }
0x235e   : > { %11896 = vmatprep.mubr.msk.f32.mxu1 %vm13953_vm3, %v16451_v13 }
0x2360   : > { %v4941_v50 = vpop.f32.mrb[40].mxu0 }
0x2361   : > { %v4945_v47 = vmul.f32 0.35355338, %v4941_v50  ;;  %v11893_v52 = vpop.f32.mrb[41].mxu0 }
0x2363   : > { %v4946_v53 = vsel %vm1557_vm4, %v4945_v47, -inf }
0x2364   : > { %4947 = vmax.xlane.f32.xlu0 %v4946_v53  ;;  %v5107_v16 = vpop.f32.mrb[42].mxu0 }
0x2365   : > { %v5111_v54 = vmul.f32 0.35355338, %v5107_v16  ;;  %v11903_v55 = vpop.f32.mrb[43].mxu0 }
0x2367   : > { %v5112_v57 = vsel %vm1557_vm4, %v5111_v54, -inf }
0x2368   : > { %5113 = vmax.xlane.f32.xlu1 %v5112_v57 }
0x2379   : > { %4957 = vrot.lane.b32.xlu1 %v14844_v21, %s16560_s13 }
0x237d   : > { %5347 = vrot.lane.b32.xlu1 %v14844_v21, %s16547_s24 }
0x2381   : > { %5345 = vrot.lane.b32.xlu1 %v14844_v21, %s16548_s26 }
0x23f1   : > { %v4948_v58 = vpop.xlane.xlu0 %4947 }
0x23f2   : > { %v4949_v59 = vsub.f32 %v4945_v47, %v4948_v58 }
0x23f4   : > { %v4950_v34 = vmul.f32 1.442695, %v4949_v59 }
0x23f5   : > { %v5114_v22 = vpop.xlane.xlu1 %5113 }
0x23f6   : > { %13002 = vpow2.f32 %v4950_v34  ;;  %v5115_v60 = vsub.f32 %v5111_v54, %v5114_v22 }
0x23f8   : > { %v5116_v61 = vmul.f32 1.442695, %v5115_v60 }
0x23f9   : > { %v4958_v10 = vpop.permute.xlu1 %4957 }
0x23fa   : > { %13004 = vpow2.f32 %v5116_v61  ;;  %11895 = vmatpush3.msra.mxu1 %v4958_v10 }
0x23fb   : > { %11904 = vmatprep.subr.mxu1 %v16451_v13 }
0x23fd   : > { %v5348_v19 = vpop.permute.xlu1 %5347 }
0x2400   : > { %v13003_v62 = vpop.eup %13002 }
0x2401   : > { %v4952_v63 = vsel %vm1557_vm4, %v13003_v62, 0.0 }
0x2402   : > { %4953 = vadd.xlane.f32.xlu0 %v4952_v63 }
0x2404   : > { %v13005_v0 = vpop.eup %13004 }
0x2405   : > { %v5118_v1 = vsel %vm1557_vm4, %v13005_v0, 0.0 }
0x2406   : > { %5119 = vadd.xlane.f32.xlu0 %v5118_v1 }
0x241c   : > { %5123 = vrot.lane.b32.xlu0 %v14844_v21, %s16559_s12  ;;  %s13971_s12 = smov 127  }
0x2430   : > { %v4863_v2 = vpop.f32.mrb[38].mxu1 }
0x2431   : > { %v14975_v3 = vadd.f32 %v4863_v2, %v4627_v24  ;;  %v11888_v4 = vpop.f32.mrb[39].mxu1 }
0x2433   : > { %v5833_v50 = vadd.f32 %v11199_v45, %v14975_v3 }
0x248f   : > { %v4954_v5 = vpop.xlane.xlu0 %4953 }
0x2490   : > { %13006 = vrcp.f32 %v4954_v5 }
0x2493   : > { %v5120_v6 = vpop.xlane.xlu0 %5119 }
0x2494   : > { %13008 = vrcp.f32 %v5120_v6 }
0x2497   : > { %v5124_v11 = vpop.permute.xlu0 %5123 }
0x249a   : > { %v13007_v8 = vpop.eup %13006 }
0x249b   : > { %v4956_v9 = vmul.f32 %v13007_v8, %v13003_v62 }
0x249d   : > { %11897 = vmatmul.mubr.msk.f32.vlgmr.msra.gmra.mrb[40].mxu1 %vm1557_vm4, %v4956_v9 }
0x249e   : > { %v13009_v14 = vpop.eup %13008  ;;  %11905 = vmatpush3.msra.mxu1 %v5124_v11  ;;  %11906 = vmatprep.mubr.msk.f32.mxu1 %vm13953_vm3, %v16451_v13 }
0x249f   : > { %v5122_v15 = vmul.f32 %v13009_v14, %v13005_v0  ;;  %11914 = vmatprep.subr.mxu1 %v16451_v13 }
0x24a1   : > { %11907 = vmatmul.mubr.msk.f32.vlgmr.msra.gmra.mrb[42].mxu1 %vm1557_vm4, %v5122_v15 }
0x24a2   : > { %11915 = vmatpush3.msra.mxu1 %v14889_v56  ;;  %11916 = vmatprep.mubr.msk.f32.mxu1 %vm13953_vm3, %v16451_v13  ;;  %v5346_v56 = vpop.permute.xlu1 %5345 }
0x24a3   : > { %11924 = vmatprep.subr.mxu1 %v16451_v13 }
0x2570   : > { %v5029_v51 = vpop.f32.mrb[40].mxu1 }
0x2571   : > { %v11898_v12 = vpop.f32.mrb[41].mxu1  ;;  %11917 = vmatmul.mubr.msk.f32.vlgmr.msra.gmra.mrb[44].mxu1 %vm1557_vm4, %v5029_v51 }
0x2572   : > { %11926 = vmatprep.mubr.msk.f32.mxu1 %vm13953_vm3, %v16451_v13 }
0x2574   : > { %v5195_v20 = vpop.f32.mrb[42].mxu1 }
0x2575   : > { %v11908_v25 = vpop.f32.mrb[43].mxu1  ;;  %11912 = vmatmul.mubr.msk.f32.vlgmr.msra.gmra.mrb[44].mxu0 %vm1557_vm4, %v5195_v20 }
0x2576   : > { %11920 = vmatpush3.xpose.msk.msra.mxu0 %vm1557_vm4, %v5348_v19  ;;  %11921 = vmatprep.mubr.msk.f32.mxu0 %vm13953_vm3, %v16451_v13 }
0x2577   : > { %11929 = vmatprep.subr.mxu0 %v16451_v13 }
0x2579   : > { %11922 = vmatmul.mubr.msk.f32.vlgmr.msra.gmra.mrb[46].mxu0 %vm1557_vm4, %v5346_v56 }
0x257a   : > { %11930 = vmatpush3.msra.mxu0 %v14923_v23  ;;  %11931 = vmatprep.mubr.msk.f32.mxu0 %vm13953_vm3, %v16451_v13 }
0x257b   : > { %11939 = vmatprep.subr.mxu0 %v16451_v13 }
0x2644   : > { %v5341_v7 = vpop.f32.mrb[44].mxu1 }
0x2645   : > { %v11918_v26 = vpop.f32.mrb[45].mxu1 }
0x2648   : > { %v5268_v27 = vpop.f32.mrb[44].mxu0 }
0x2649   : > { %v5342_v28 = vadd.f32 %v5341_v7, %v5268_v27  ;;  %v11913_v30 = vpop.f32.mrb[45].mxu0  ;;  %v11202_v27 = vld [vmem:[%s16550_s7 + $0x1] ss:$0 sm:$0xff] }
0x264a   : > { %v11203_v30 = vld [vmem:[%s16552_s11 + $0x1] ss:$0 sm:$0xff] }
0x264c   : > { %v5419_v31 = vpop.f32.mrb[46].mxu0 }
0x264d   : > { %v5423_v32 = vmul.f32 0.35355338, %v5419_v31  ;;  %v11923_v33 = vpop.f32.mrb[47].mxu0 }
0x264e   : > { %v5884_v33 = vld [vmem:[#allocation16 + $0x20] sm:$0xff] }
0x264f   : > { %v5424_v35 = vsel %vm1557_vm4, %v5423_v32, -inf }
0x2650   : > { %5425 = vmax.xlane.f32.xlu0 %v5424_v35  ;;  %v5885_v35 = vld [vmem:[#allocation16 + $0x28] sm:$0xff] }
0x2666   : > { %5435 = vrot.lane.b32.xlu0 %v14844_v21, %s16549_s3 }
0x266a   : > { %5585 = vrot.lane.b32.xlu0 %v14844_v21, %s16562_s17 }
0x26dd   : > { %v5426_v23 = vpop.xlane.xlu0 %5425 }
0x26de   : > { %v5427_v36 = vsub.f32 %v5423_v32, %v5426_v23  ;;  %v12333_v23 = vpack.c.bf16 %v5885_v35, %v5884_v33 }
0x26e0   : > { %v5428_v37 = vmul.f32 1.442695, %v5427_v36  ;;  %v5886_v36 = vld [vmem:[#allocation16 + $0x30] sm:$0xff] }
0x26e1   : > { %v5436_v39 = vpop.permute.xlu0 %5435 }
0x26e2   : > { %13010 = vpow2.f32 %v5428_v37  ;;  %11925 = vmatpush3.msra.mxu1 %v5436_v39  ;;  %v5887_v37 = vld [vmem:[#allocation16 + $0x38] sm:$0xff] }
0x26e3   : > { %11934 = vmatprep.subr.mxu1 %v16451_v13  ;;  %v12337_v39 = vpack.c.bf16 %v5887_v37, %v5886_v36 }
0x26e5   : > { %v5586_v44 = vpop.permute.xlu0 %5585 }
0x26ec   : > { %v13011_v24 = vpop.eup %13010 }
0x26ed   : > { %v5430_v40 = vsel %vm1557_vm4, %v13011_v24, 0.0 }
0x26ee   : > { %5431 = vadd.xlane.f32.xlu1 %v5430_v40 }
0x26ff   : > { %5587 = vrot.lane.b32.xlu1 %v14844_v21, %s16561_s14 }
0x277b   : > { %v5432_v41 = vpop.xlane.xlu1 %5431 }
0x277c   : > { %13012 = vrcp.f32 %v5432_v41 }
0x277f   : > { %v5588_v43 = vpop.permute.xlu1 %5587 }
0x2786   : > { %v13013_v42 = vpop.eup %13012 }
0x2787   : > { %v5434_v38 = vmul.f32 %v13013_v42, %v13011_v24 }
0x2789   : > { %11927 = vmatmul.mubr.msk.f32.vlgmr.msra.gmra.mrb[46].mxu1 %vm1557_vm4, %v5434_v38 }
0x278a   : > { %11935 = vmatpush3.xpose.msk.msra.mxu1 %vm1557_vm4, %v5588_v43  ;;  %11936 = vmatprep.mubr.msk.f32.mxu1 %vm13953_vm3, %v16451_v13 }
0x278b   : > { %11944 = vmatprep.subr.mxu1 %v16451_v13 }
0x278d   : > { %11937 = vmatmul.mubr.msk.f32.vlgmr.msra.gmra.mrb[48].mxu1 %vm1557_vm4, %v5586_v44 }
0x278e   : > { %11945 = vmatpush3.msra.mxu1 %v14955_v46  ;;  %11946 = vmatprep.mubr.msk.f32.mxu1 %vm13953_vm3, %v16451_v13  ;;  %v5835_v46 = vadd.f32 %v5833_v50, %v14834_v17  ;;  %v6032_v50 = vld [vmem:[#allocation19 + $0x50] sm:$0xff] }
0x2790   : > { %v5841_v54 = vsel %vm1468_vm2, %v5835_v46, 0.0 }
0x285c   : > { %v5507_v48 = vpop.f32.mrb[46].mxu1 }
0x285d   : > { %v11928_v49 = vpop.f32.mrb[47].mxu1  ;;  %11932 = vmatmul.mubr.msk.f32.vlgmr.msra.gmra.mrb[48].mxu0 %vm1557_vm4, %v5507_v48  ;;  %v6031_v48 = vld [vmem:[#allocation19 + $0x48] sm:$0xff] }
0x285e   : > { %11941 = vmatprep.mubr.msk.f32.mxu0 %vm13953_vm3, %v16451_v13 }
0x2860   : > { %v5659_v47 = vpop.f32.mrb[48].mxu1 }
0x2861   : > { %v5663_v52 = vmul.f32 0.35355338, %v5659_v47  ;;  %v11938_v53 = vpop.f32.mrb[49].mxu1  ;;  %v6033_v47 = vld [vmem:[#allocation19 + $0x58] sm:$0xff] }
0x2862   : > { %v6034_v53 = vld [vmem:[#allocation19 + $0x60] sm:$0xff] }
0x2863   : > { %v5664_v16 = vsel %vm1557_vm4, %v5663_v52, -inf }
0x2864   : > { %5665 = vmax.xlane.f32.xlu1 %v5664_v16  ;;  %v6035_v16 = vld [vmem:[#allocation19 + $0x68] sm:$0xff] }
0x2868   : > { %5842 = vadd.xlane.f32.xlu1 %v5841_v54  ;;  %v6036_v54 = vld [vmem:[#allocation19 + $0x70] sm:$0xff] }
0x28f1   : > { %v5666_v55 = vpop.xlane.xlu1 %5665 }
0x28f2   : > { %v5667_v57 = vsub.f32 %v5663_v52, %v5666_v55  ;;  %v12345_v52 = vpack.c.bf16 %v6033_v47, %v6032_v50  ;;  %v6037_v55 = vld [vmem:[#allocation19 + $0x78] sm:$0xff] }
0x28f4   : > { %v5668_v58 = vmul.f32 1.442695, %v5667_v57  ;;  %v12353_v57 = vpack.c.bf16 %v6037_v55, %v6036_v54 }
0x28f5   : > { %v5843_v2 = vpop.xlane.xlu1 %5842 }
0x28f6   : > { %13014 = vpow2.f32 %v5668_v58  ;;  %v5847_v3 = vmul.f32 0.03125, %v5843_v2  ;;  %v11204_v58 = vld [vmem:[#allocation18 + $0x1] ss:$0 sm:$0xff] }
0x28f8   : > { %v5849_v6 = vsub.f32 %v5835_v46, %v5847_v3  ;;  %v12349_v46 = vpack.c.bf16 %v6035_v16, %v6034_v53  ;;  %v11207_v16 = vld [vmem:[#allocation21 + $0x1] ss:$0 sm:$0xff] }
0x28fa   : > { %v5851_v14 = vmul.f32 %v5849_v6, %v5849_v6 }
0x28fc   : > { %v5853_v15 = vsel %vm1468_vm2, %v5851_v14, 0.0 }
0x2900   : > { %v13015_v59 = vpop.eup %13014 }
0x2901   : > { %v5670_v34 = vsel %vm1557_vm4, %v13015_v59, 0.0 }
0x2902   : > { %5671 = vadd.xlane.f32.xlu0 %v5670_v34 }
0x2918   : > { %5675 = vrot.lane.b32.xlu0 %v14844_v21, %s16563_s20  ;;  %s10305_s20 = sadd.s32 1, %s14195_s18 }
0x2930   : > { %v5580_v22 = vpop.f32.mrb[48].mxu0 }
0x2931   : > { %v5584_v60 = vadd.f32 %v5580_v22, %v5342_v28  ;;  %v11933_v61 = vpop.f32.mrb[49].mxu0 }
0x298f   : > { %v5672_v10 = vpop.xlane.xlu0 %5671 }
0x2990   : > { %13016 = vrcp.f32 %v5672_v10 }
0x2993   : > { %v5676_v17 = vpop.permute.xlu0 %5675 }
0x2994   : > { %11940 = vmatpush3.msra.mxu0 %v5676_v17 }
0x2995   : > { %12334 = vmatprep.subr.bf16.mxu0 %v12333_v23 }
0x299a   : > { %v13017_v62 = vpop.eup %13016 }
0x299b   : > { %v5674_v63 = vmul.f32 %v13017_v62, %v13015_v59 }
0x299d   : > { %11942 = vmatmul.mubr.msk.f32.vlgmr.msra.gmra.mrb[50].mxu0 %vm1557_vm4, %v5674_v63 }
0x299e   : > { %12336 = vmatpush3.bf16.msra.mxu0 %v12333_v23 }
0x299f   : > { %12338 = vmatprep.subr.bf16.mxu0 %v12337_v39 }
0x29a2   : > { %12340 = vmatpush3.bf16.msra.mxu0 %v12337_v39 }
0x2a70   : > { %v5747_v0 = vpop.f32.mrb[50].mxu0 }
0x2a71   : > { %v11943_v1 = vpop.f32.mrb[51].mxu0  ;;  %11947 = vmatmul.mubr.msk.f32.vlgmr.msra.gmra.mrb[50].mxu1 %vm1557_vm4, %v5747_v0 }
0x2b44   : > { %v5820_v4 = vpop.f32.mrb[50].mxu1 }
0x2b45   : > { %v5824_v5 = vadd.f32 %v5820_v4, %v5584_v60  ;;  %v11948_v21 = vpop.f32.mrb[51].mxu1 }
0x2b47   : > { %v5834_v8 = vadd.f32 %v11199_v45, %v5824_v5  ;;  %v6030_v45 = vld [vmem:[#allocation19 + $0x40] sm:$0xff] }
0x2b48   : > { %v12341_v49 = vpack.c.bf16 %v6031_v48, %v6030_v45 }
0x2b49   : > { %v5836_v9 = vadd.f32 %v5834_v8, %v14838_v18 }
0x2b4a   : > { %12342 = vmatprep.subr.bf16.mxu1 %v12341_v49 }
0x2b4b   : > { %v5844_v11 = vsel %vm1468_vm2, %v5836_v9, 0.0  ;;  %12344 = vmatpush3.bf16.msra.mxu1 %v12341_v49 }
0x2b4c   : > { %5845 = vadd.xlane.f32.xlu1 %v5844_v11  ;;  %12346 = vmatprep.subr.bf16.mxu1 %v12345_v52 }
0x2b4f   : > { %12348 = vmatpush3.bf16.msra.mxu1 %v12345_v52 }
0x2b50   : > { %5854 = vadd.xlane.f32.xlu1 %v5853_v15  ;;  %12350 = vmatprep.subr.bf16.mxu1 %v12349_v46 }
0x2b53   : > { %12352 = vmatpush3.bf16.msra.mxu1 %v12349_v46 }
0x2b54   : > { %12354 = vmatprep.subr.bf16.mxu1 %v12353_v57 }
0x2b57   : > { %12356 = vmatpush3.bf16.msra.mxu1 %v12353_v57 }
0x2bd9   : > { %v5846_v51 = vpop.xlane.xlu1 %5845 }
0x2bda   : > { %v5848_v12 = vmul.f32 0.03125, %v5846_v51 }
0x2bdc   : > { %v5850_v19 = vsub.f32 %v5836_v9, %v5848_v12 }
0x2bdd   : > { %v5855_v20 = vpop.xlane.xlu1 %5854 }
0x2bde   : > { %v5859_v25 = vmul.f32 0.03125, %v5855_v20  ;;  %v5852_v56 = vmul.f32 %v5850_v19, %v5850_v19 }
0x2be0   : > { %v5861_v7 = vadd.f32 1e-05, %v5859_v25  ;;  %v5856_v26 = vsel %vm1468_vm2, %v5852_v56, 0.0 }
0x2be1   : > { %5857 = vadd.xlane.f32.xlu1 %v5856_v26 }
0x2be2   : > { %13018 = vrsqrt.f32 %v5861_v7 }
0x2bec   : > { %v13019_v18 = vpop.eup %13018 }
0x2bed   : > { %v5865_v28 = vmul.f32 %v13019_v18, %v5849_v6 }
0x2bef   : > { %v5873_v31 = vmul.f32 %v11202_v27, %v5865_v28 }
0x2bf1   : > { %v15035_v32 = vadd.f32 %v11203_v30, %v5873_v31 }
0x2bf3   : > { %11957 = vmatprep.mubr.msk.f32.mxu0 %vm1468_vm2, %v15035_v32 }
0x2c6e   : > { %v5858_v24 = vpop.xlane.xlu1 %5857 }
0x2c6f   : > { %v5860_v40 = vmul.f32 0.03125, %v5858_v24 }
0x2c71   : > { %v5862_v41 = vadd.f32 1e-05, %v5860_v40 }
0x2c73   : > { %13020 = vrsqrt.f32 %v5862_v41 }
0x2c7d   : > { %v13021_v42 = vpop.eup %13020 }
0x2c7e   : > { %v5866_v38 = vmul.f32 %v13021_v42, %v5850_v19 }
0x2c80   : > { %v5874_v43 = vmul.f32 %v11202_v27, %v5866_v38 }
0x2c82   : > { %v15039_v44 = vadd.f32 %v11203_v30, %v5874_v43 }
0x2c84   : > { %11958 = vmatmul.mubr.msk.f32.vlgmr.msra.gmra.mrb[52].mxu0 %vm1468_vm2, %v15039_v44 }
0x2c85   : > { %6281 = vmatprep.mubr.f32.mxu0 %v16451_v13 }
0x2d57   : > { %v11959_v59 = vpop.f32.mrb[52].mxu0 }
0x2d58   : > { %v5974_v34 = vadd.f32 %v11959_v59, %v11204_v58  ;;  %v5968_v22 = vpop.f32.mrb[53].mxu0 }
0x2d59   : > { %v5969_v60 = vadd.f32 %v11204_v58, %v5968_v22 }
0x2d5a   : > { %v5980_v61 = vmul.f32 0.70710677, %v5974_v34  ;;  %v5978_v47 = vmul.f32 0.5, %v5974_v34 }
0x2d5b   : > { %v5979_v10 = vmul.f32 0.70710677, %v5969_v60  ;;  %v5977_v49 = vmul.f32 0.5, %v5969_v60 }
0x2d5c   : > { %v5986_v17 = vand.u32 2147483647, %v5980_v61  ;;  %vm5982_vm8 = vcmp.lt.f32.partialorder %v5980_v61, 0.0 }
0x2d5d   : > { %v5985_v62 = vand.u32 2147483647, %v5979_v10  ;;  %vm5981_vm9 = vcmp.lt.f32.partialorder %v5979_v10, 0.0  ;;  %v5984_v41 = vsel %vm5982_vm8, -1.0, %v16449_v29 }
0x2d5e   : > { %v5988_v63 = vmul.f32 0.3275911, %v5986_v17  ;;  %v6012_v3 = vsub.f32 0.0, %v5986_v17  ;;  %v5983_v43 = vsel %vm5981_vm9, -1.0, %v16449_v29 }
0x2d5f   : > { %v5987_v0 = vmul.f32 0.3275911, %v5985_v62  ;;  %v6011_v4 = vsub.f32 0.0, %v5985_v62 }
0x2d60   : > { %v5990_v1 = vadd.f32 1.0, %v5988_v63  ;;  %v6014_v21 = vmul.f32 %v6012_v3, %v5986_v17  ;;  %v6188_v3 = vld [vmem:[#allocation22 + $0x48] sm:$0xff] }
0x2d61   : > { %v5989_v2 = vadd.f32 1.0, %v5987_v0  ;;  %v6013_v9 = vmul.f32 %v6011_v4, %v5985_v62  ;;  %v6184_v4 = vld [vmem:[#allocation22 + $0x28] sm:$0xff] }
0x2d62   : > { %13022 = vrcp.f32 %v5990_v1  ;;  %v6017_v15 = vmul.f32 1.442695, %v6014_v21  ;;  %v6192_v21 = vld [vmem:[#allocation22 + $0x68] sm:$0xff] }
0x2d63   : > { %13024 = vrcp.f32 %v5989_v2  ;;  %v6015_v19 = vmul.f32 1.442695, %v6013_v9  ;;  %v12373_v9 = vpack.c.bf16 %v6192_v21, %v6184_v4 }
0x2d64   : > { %13026 = vpow2.f32 %v6017_v15  ;;  %v6191_v15 = vld [vmem:[#allocation22 + $0x60] sm:$0xff] }
0x2d65   : > { %13028 = vpow2.f32 %v6015_v19  ;;  %12374 = vmatprep.subr.bf16.mxu1 %v12373_v9  ;;  %v6204_v19 = vld [vmem:[#allocation22 + $0xc8] sm:$0xff] }
0x2d6c   : > { %v13023_v5 = vpop.eup %13022 }
0x2d6d   : > { %v13025_v6 = vpop.eup %13024  ;;  %v5994_v8 = vmul.f32 1.0614054, %v13023_v5 }
0x2d6e   : > { %v5993_v11 = vmul.f32 1.0614054, %v13025_v6  ;;  %v13027_v23 = vpop.eup %13026 }
0x2d6f   : > { %v5996_v14 = vadd.f32 -1.4531521, %v5994_v8  ;;  %v13029_v37 = vpop.eup %13028  ;;  %v6187_v8 = vld [vmem:[#allocation22 + $0x40] sm:$0xff] }
0x2d70   : > { %v5995_v51 = vadd.f32 -1.4531521, %v5993_v11 }
0x2d71   : > { %v5998_v12 = vmul.f32 %v13023_v5, %v5996_v14  ;;  %v6183_v14 = vld [vmem:[#allocation22 + $0x20] sm:$0xff] }
0x2d72   : > { %v5997_v20 = vmul.f32 %v13025_v6, %v5995_v51  ;;  %v12375_v51 = vpack.c.bf16 %v6191_v15, %v6183_v14 }
0x2d73   : > { %v6000_v25 = vadd.f32 1.4214138, %v5998_v12  ;;  %v6196_v12 = vld [vmem:[#allocation22 + $0x88] sm:$0xff] }
0x2d74   : > { %v5999_v56 = vadd.f32 1.4214138, %v5997_v20  ;;  %v6200_v20 = vld [vmem:[#allocation22 + $0xa8] sm:$0xff] }
0x2d75   : > { %v6002_v7 = vmul.f32 %v13023_v5, %v6000_v25  ;;  %v12361_v25 = vpack.c.bf16 %v6204_v19, %v6196_v12 }
0x2d76   : > { %v6001_v26 = vmul.f32 %v13025_v6, %v5999_v56  ;;  %v6208_v56 = vld [vmem:[#allocation22 + $0xe8] sm:$0xff] }
0x2d77   : > { %v6004_v18 = vadd.f32 -0.28449672, %v6002_v7  ;;  %v6195_v7 = vld [vmem:[#allocation22 + $0x80] sm:$0xff] }
0x2d78   : > { %v6003_v27 = vadd.f32 -0.28449672, %v6001_v26  ;;  %v6203_v26 = vld [vmem:[#allocation22 + $0xc0] sm:$0xff] }
0x2d79   : > { %v6006_v28 = vmul.f32 %v13023_v5, %v6004_v18  ;;  %v12377_v18 = vpack.c.bf16 %v6208_v56, %v6200_v20 }
0x2d7a   : > { %v6005_v30 = vmul.f32 %v13025_v6, %v6003_v27  ;;  %v12363_v27 = vpack.c.bf16 %v6203_v26, %v6195_v7  ;;  %v16453_v26 = vmov 0.0|0.0  }
0x2d7b   : > { %v6008_v31 = vadd.f32 0.2548296, %v6006_v28  ;;  %v6199_v28 = vld [vmem:[#allocation22 + $0xa0] sm:$0xff] }
0x2d7c   : > { %v6007_v33 = vadd.f32 0.2548296, %v6005_v30  ;;  %v6207_v30 = vld [vmem:[#allocation22 + $0xe0] sm:$0xff] }
0x2d7d   : > { %v6010_v35 = vmul.f32 %v13023_v5, %v6008_v31  ;;  %v12379_v31 = vpack.c.bf16 %v6207_v30, %v6199_v28  ;;  %v6690_v28 = vlaneseq }
0x2d7e   : > { %v6009_v36 = vmul.f32 %v13025_v6, %v6007_v33  ;;  %v6179_v6 = vld [vmem:[#allocation22] sm:$0xff]  ;;  %v6182_v33 = vld [vmem:[#allocation22 + $0x18] sm:$0xff] }
0x2d7f   : > { %v6020_v39 = vmul.f32 %v13027_v23, %v6010_v35  ;;  %v12359_v11 = vpack.c.bf16 %v6187_v8, %v6179_v6  ;;  %v6190_v35 = vld [vmem:[#allocation22 + $0x58] sm:$0xff] }
0x2d80   : > { %v6019_v24 = vmul.f32 %v13029_v37, %v6009_v36  ;;  %v12365_v23 = vpack.c.bf16 %v6190_v35, %v6182_v33  ;;  %v15229_v35 = vshrl.u32 %v6690_v28, 7 }
0x2d81   : > { %v6022_v40 = vsub.f32 1.0, %v6020_v39 }
0x2d82   : > { %v6021_v42 = vsub.f32 1.0, %v6019_v24 }
0x2d83   : > { %v6024_v38 = vmul.f32 %v6022_v40, %v5984_v41 }
0x2d84   : > { %v6023_v45 = vmul.f32 %v6021_v42, %v5983_v43 }
0x2d85   : > { %v6026_v48 = vadd.f32 1.0, %v6024_v38  ;;  %v11212_v38 = vld [vmem:[%s16554_s10 + $0x1] ss:$0 sm:$0xff] }
0x2d86   : > { %v6025_v50 = vadd.f32 1.0, %v6023_v45  ;;  %v6181_v45 = vld [vmem:[#allocation22 + $0x10] sm:$0xff] }
0x2d87   : > { %v6028_v53 = vmul.f32 %v6026_v48, %v5978_v47  ;;  %v6189_v48 = vld [vmem:[#allocation22 + $0x50] sm:$0xff]  ;;  %v6206_v47 = vld [vmem:[#allocation22 + $0xd8] sm:$0xff] }
0x2d88   : > { %v6027_v52 = vmul.f32 %v6025_v50, %v5977_v49  ;;  %v11213_v49 = vld [vmem:[%s16555_s9 + $0x1] ss:$0 sm:$0xff]  ;;  %v6198_v50 = vld [vmem:[#allocation22 + $0x98] sm:$0xff] }
0x2d8a   : > { %11976 = vmatprep.mubr.msk.f32.mxu1 %vm3684_vm7, %v6027_v52 }
0x2d8b   : > { %11977 = vmatmul.mubr.msk.f32.vlgmr.msra.gmra.mrb[52].mxu1 %vm3684_vm7, %v6028_v53 }
0x2d8c   : > { %6435 = vmatprep.mubr.f32.mxu1 %v16451_v13  ;;  %12376 = vmatpush1.bf16.msra.mxu1 %v12375_v51 }
0x2d8d   : > { %12378 = vmatprep.subr.bf16.mxu1 %v12377_v18  ;;  %v13968_v18 = vmov 1983009808  }
0x2d90   : > { %12380 = vmatpush1.bf16.msra.mxu1 %v12379_v31 }
0x2d91   : > { %12389 = vmatprep.subr.bf16.mxu1 %v16453_v26 }
0x2e5e   : > { %v11978_v46 = vpop.f32.mrb[52].mxu1 }
0x2e5f   : > { %v6118_v54 = vpop.f32.mrb[53].mxu1  ;;  %v6124_v55 = vadd.f32 %v11978_v46, %v11207_v16 }
0x2e60   : > { %v6119_v57 = vadd.f32 %v11207_v16, %v6118_v54  ;;  %v12367_v16 = vpack.c.bf16 %v6189_v48, %v6181_v45 }
0x2e61   : > { %v6128_v59 = vadd.f32 %v6124_v55, %v15039_v44  ;;  %v6180_v44 = vld [vmem:[#allocation22 + $0x8] sm:$0xff]  ;;  %v12369_v55 = vpack.c.bf16 %v6206_v47, %v6198_v50  ;;  %v13969_v50 = vmov 1934713408  }
0x2e62   : > { %v6127_v58 = vadd.f32 %v6119_v57, %v15035_v32  ;;  %v12357_v5 = vpack.c.bf16 %v6188_v3, %v6180_v44  ;;  %v6197_v57 = vld [vmem:[#allocation22 + $0x90] sm:$0xff]  ;;  %v6752_v47 = vunpack.c.l.s4 %v13969_v50 }
0x2e63   : > { %v6136_v34 = vsel %vm1468_vm2, %v6128_v59, 0.0  ;;  %v6209_v44 = vld [vmem:[#allocation22 + $0xf0] sm:$0xff] }
0x2e64   : > { %v6133_v22 = vsel %vm1468_vm2, %v6127_v58, 0.0  ;;  %12358 = vmatprep.subr.bf16.mxu0 %v12357_v5 }
0x2e65   : > { %6134 = vadd.xlane.f32.xlu1 %v6133_v22  ;;  %12360 = vmatpush1.bf16.msra.mxu0 %v12359_v11  ;;  %v6194_v22 = vld [vmem:[#allocation22 + $0x78] sm:$0xff] }
0x2e66   : > { %12362 = vmatprep.subr.bf16.mxu0 %v12361_v25 }
0x2e69   : > { %6137 = vadd.xlane.f32.xlu1 %v6136_v34  ;;  %12364 = vmatpush1.bf16.msra.mxu0 %v12363_v27  ;;  %v6688_v27 = vunpack.c.l.s4 %v13968_v18 }
0x2e6a   : > { %12366 = vmatprep.subr.bf16.mxu0 %v12365_v23 }
0x2e6b   : > { %v6689_v33 = vunpack.c.0.s8 %v6688_v27 }
0x2ef2   : > { %v6135_v60 = vpop.xlane.xlu1 %6134 }
0x2ef3   : > { %v6139_v61 = vmul.f32 0.03125, %v6135_v60 }
0x2ef5   : > { %v6141_v10 = vsub.f32 %v6127_v58, %v6139_v61  ;;  %v6205_v58 = vld [vmem:[#allocation22 + $0xd0] sm:$0xff] }
0x2ef6   : > { %v6138_v17 = vpop.xlane.xlu1 %6137  ;;  %v12371_v60 = vpack.c.bf16 %v6205_v58, %v6197_v57  ;;  %v6753_v58 = vunpack.c.0.s8 %v6752_v47 }
0x2ef7   : > { %v6140_v62 = vmul.f32 0.03125, %v6138_v17  ;;  %v6143_v63 = vmul.f32 %v6141_v10, %v6141_v10  ;;  %v6185_v17 = vld [vmem:[#allocation22 + $0x30] sm:$0xff] }
0x2ef9   : > { %v6142_v0 = vsub.f32 %v6128_v59, %v6140_v62  ;;  %v6145_v1 = vsel %vm1468_vm2, %v6143_v63, 0.0  ;;  %v6186_v59 = vld [vmem:[#allocation22 + $0x38] sm:$0xff]  ;;  %v6193_v62 = vld [vmem:[#allocation22 + $0x70] sm:$0xff] }
0x2efa   : > { %6146 = vadd.xlane.f32.xlu0 %v6145_v1  ;;  %v6202_v63 = vld [vmem:[#allocation22 + $0xb8] sm:$0xff]  ;;  %v12383_v1 = vpack.c.bf16 %v6193_v62, %v6185_v17 }
0x2efb   : > { %v6144_v2 = vmul.f32 %v6142_v0, %v6142_v0 }
0x2efd   : > { %v6148_v32 = vsel %vm1468_vm2, %v6144_v2, 0.0 }
0x2efe   : > { %6149 = vadd.xlane.f32.xlu1 %v6148_v32  ;;  %v6201_v32 = vld [vmem:[#allocation22 + $0xb0] sm:$0xff] }
0x2eff   : > { %v12387_v3 = vpack.c.bf16 %v6209_v44, %v6201_v32 }
0x2f87   : > { %v6147_v36 = vpop.xlane.xlu0 %6146 }
0x2f88   : > { %v6151_v37 = vmul.f32 0.03125, %v6147_v36 }
0x2f8a   : > { %v6153_v39 = vadd.f32 1e-05, %v6151_v37 }
0x2f8b   : > { %v6150_v24 = vpop.xlane.xlu1 %6149 }
0x2f8c   : > { %13030 = vrsqrt.f32 %v6153_v39  ;;  %v6152_v40 = vmul.f32 0.03125, %v6150_v24  ;;  %v15235_v39 = vsub.s32 %v6689_v33, %v15229_v35 }
0x2f8e   : > { %v6154_v41 = vadd.f32 1e-05, %v6152_v40 }
0x2f90   : > { %13032 = vrsqrt.f32 %v6154_v41 }
0x2f96   : > { %v13031_v42 = vpop.eup %13030 }
0x2f97   : > { %v6157_v43 = vmul.f32 %v13031_v42, %v6141_v10  ;;  %v12381_v10 = vpack.c.bf16 %v6194_v22, %v6186_v59 }
0x2f99   : > { %v6165_v52 = vmul.f32 %v11212_v38, %v6157_v43 }
0x2f9a   : > { %v13033_v53 = vpop.eup %13032 }
0x2f9b   : > { %v15057_v46 = vadd.f32 %v11213_v49, %v6165_v52  ;;  %v6158_v54 = vmul.f32 %v13033_v53, %v6142_v0  ;;  %v6210_v0 = vld [vmem:[#allocation22 + $0xf8] sm:$0xff] }
0x2f9c   : > { %v12385_v2 = vpack.c.bf16 %v6210_v0, %v6202_v63  ;;  %v15254_v0 = vsub.s32 %v6753_v58, %v15229_v35 }
0x2f9d   : > { %6175 = vst.msk [vmem:[#allocation2] sm:$0xff] %vm1468_vm2, %v15057_v46  ;;  %6177 = vst.msk [vmem:[%s14598_s6] sm:$0xff] %vm1468_vm2, %v15057_v46  ;;  %v6166_v34 = vmul.f32 %v11212_v38, %v6158_v54  ;;  %11214 = vmatmul.mubr.msk.f32.vlgmr.msra.gmra.mrb[54].mxu0 %vm1468_vm2, %v15057_v46  ;;  %11218 = vmatmul.mubr.msk.f32.vlgmr.msra.gmra.mrb[54].mxu1 %vm1468_vm2, %v15057_v46 }
0x2f9e   : > { %12368 = vmatpush1.bf16.msra.mxu0 %v12367_v16  ;;  %6287 = vmatprep.mubr.f32.mxu0 %v16451_v13 }
0x2f9f   : > { %v15069_v61 = vadd.f32 %v11213_v49, %v6166_v34  ;;  %6441 = vmatprep.mubr.f32.mxu1 %v16451_v13  ;;  %12370 = vmatprep.subr.bf16.mxu0 %v12369_v55 }
0x2fa1   : > { %6176 = vst.msk [vmem:[#allocation2 + $0x8] sm:$0xff] %vm1468_vm2, %v15069_v61  ;;  %6178 = vst.msk [vmem:[%s14598_s6 + $0x8] sm:$0xff] %vm1468_vm2, %v15069_v61  ;;  %11215 = vmatmul.mubr.msk.f32.gmra.mrb[56].mxu0 %vm1468_vm2, %v15069_v61  ;;  %11219 = vmatmul.mubr.msk.f32.gmra.mrb[56].mxu1 %vm1468_vm2, %v15069_v61 }
0x2fa2   : > { %12372 = vmatpush1.bf16.msra.mxu0 %v12371_v60  ;;  %6358 = vmatprep.mubr.f32.mxu0 %v16451_v13 }
0x2fa3   : > { %12382 = vmatprep.subr.bf16.mxu0 %v12381_v10  ;;  %11987 = vmatprep.mubr.msk.f32.mxu1 %vm13953_vm3, %v16451_v13 }
0x2fa5   : > { %11216 = vmatmul.mubr.msk.f32.vlgmr.msra.gmra.mrb[58].mxu0 %vm1468_vm2, %v15057_v46 }
0x2fa6   : > { %12384 = vmatpush1.bf16.msra.mxu0 %v12383_v1  ;;  %6364 = vmatprep.mubr.f32.mxu0 %v16451_v13 }
0x2fa7   : > { %12386 = vmatprep.subr.bf16.mxu0 %v12385_v2 }
0x2fa9   : > { %11217 = vmatmul.mubr.msk.f32.gmra.mrb[60].mxu0 %vm1468_vm2, %v15069_v61 }
0x2faa   : > { %12388 = vmatpush1.bf16.msra.mxu0 %v12387_v3  ;;  %6512 = vmatprep.mubr.f32.mxu0 %v16451_v13 }
0x2fab   : > { %12397 = vmatprep.subr.bf16.mxu0 %v16453_v26 }
0x2fad   : > { %11220 = vmatmul.mubr.msk.f32.vlgmr.msra.gmra.mrb[62].mxu0 %vm1468_vm2, %v15057_v46 }
0x2fae   : > { %6518 = vmatprep.mubr.f32.mxu0 %v16451_v13 }
0x2fb1   : > { %11221 = vmatmul.mubr.msk.f32.gmra.mrb[64].mxu0 %vm1468_vm2, %v15069_v61 }
0x2fb2   : > { %11998 = vmatprep.mubr.msk.f32.mxu0 %vm13953_vm3, %v16451_v13 }
0x3070   : > { %v15097_v4 = vpop.f32.mrb[54].mxu0  ;;  %v15099_v5 = vpop.f32.mrb[54].mxu1 }
0x3071   : > { %6607 = vrot.lane.b32.xlu0 %v15099_v5, %s16557_s5  ;;  %v15103_v21 = vpop.f32.mrb[55].mxu0  ;;  %v15105_v6 = vpop.f32.mrb[55].mxu1  ;;  %6527 = vrot.lane.b32.xlu1 %v15097_v4, %s16557_s5 }
0x3074   : > { %v15109_v8 = vpop.f32.mrb[56].mxu0  ;;  %v15111_v9 = vpop.f32.mrb[56].mxu1 }
0x3075   : > { %6619 = vrot.lane.b32.xlu0 %v15099_v5, %s13966_s8  ;;  %6533 = vrot.lane.b32.xlu1 %v15097_v4, %s16560_s13  ;;  %v15117_v11 = vpop.f32.mrb[57].mxu0  ;;  %v15119_v14 = vpop.f32.mrb[57].mxu1 }
0x3078   : > { %v15121_v15 = vpop.f32.mrb[58].mxu0 }
0x3079   : > { %6547 = vrot.lane.b32.xlu0 %v15103_v21, %s16557_s5  ;;  %6539 = vrot.lane.b32.xlu1 %v15097_v4, %s13966_s8  ;;  %v15127_v51 = vpop.f32.mrb[59].mxu0 }
0x307c   : > { %v15129_v12 = vpop.f32.mrb[60].mxu0 }
0x307d   : > { %6633 = vrot.lane.b32.xlu0 %v15105_v6, %s16560_s13  ;;  %6613 = vrot.lane.b32.xlu1 %v15099_v5, %s16560_s13  ;;  %v15135_v19 = vpop.f32.mrb[61].mxu0 }
0x3080   : > { %v15137_v20 = vpop.f32.mrb[62].mxu0 }
0x3081   : > { %6553 = vrot.lane.b32.xlu1 %v15103_v21, %s16560_s13  ;;  %6593 = vrot.lane.b32.xlu0 %v15127_v51, %s16560_s13  ;;  %v15143_v25 = vpop.f32.mrb[63].mxu0 }
0x3084   : > { %v15145_v56 = vpop.f32.mrb[64].mxu0 }
0x3085   : > { %6559 = vrot.lane.b32.xlu1 %v15103_v21, %s13966_s8  ;;  %6647 = vrot.lane.b32.xlu0 %v15137_v20, %s16557_s5  ;;  %v15151_v7 = vpop.f32.mrb[65].mxu0 }
0x3089   : > { %6627 = vrot.lane.b32.xlu1 %v15105_v6, %s16557_s5  ;;  %6659 = vrot.lane.b32.xlu0 %v15137_v20, %s13966_s8 }
0x308d   : > { %6639 = vrot.lane.b32.xlu1 %v15105_v6, %s13966_s8  ;;  %6673 = vrot.lane.b32.xlu0 %v15143_v25, %s16560_s13 }
0x3091   : > { %6567 = vrot.lane.b32.xlu1 %v15121_v15, %s16557_s5  ;;  %6529 = vrot.lane.b32.xlu0 %v15109_v8, %s16557_s5 }
0x3095   : > { %6573 = vrot.lane.b32.xlu1 %v15121_v15, %s16560_s13  ;;  %6541 = vrot.lane.b32.xlu0 %v15109_v8, %s13966_s8 }
0x3099   : > { %6579 = vrot.lane.b32.xlu1 %v15121_v15, %s13966_s8  ;;  %6555 = vrot.lane.b32.xlu0 %v15117_v11, %s16560_s13 }
0x309d   : > { %6587 = vrot.lane.b32.xlu1 %v15127_v51, %s16557_s5  ;;  %6569 = vrot.lane.b32.xlu0 %v15129_v12, %s16557_s5 }
0x30a1   : > { %6599 = vrot.lane.b32.xlu1 %v15127_v51, %s13966_s8  ;;  %6581 = vrot.lane.b32.xlu0 %v15129_v12, %s13966_s8 }
0x30a5   : > { %6653 = vrot.lane.b32.xlu1 %v15137_v20, %s16560_s13  ;;  %6595 = vrot.lane.b32.xlu0 %v15135_v19, %s16560_s13 }
0x30a9   : > { %6609 = vrot.lane.b32.xlu0 %v15111_v9, %s16557_s5  ;;  %6667 = vrot.lane.b32.xlu1 %v15143_v25, %s16557_s5 }
0x30ad   : > { %6621 = vrot.lane.b32.xlu0 %v15111_v9, %s13966_s8  ;;  %6679 = vrot.lane.b32.xlu1 %v15143_v25, %s13966_s8 }
0x30b1   : > { %6635 = vrot.lane.b32.xlu0 %v15119_v14, %s16560_s13  ;;  %6535 = vrot.lane.b32.xlu1 %v15109_v8, %s16560_s13 }
0x30b5   : > { %6549 = vrot.lane.b32.xlu1 %v15117_v11, %s16557_s5  ;;  %6649 = vrot.lane.b32.xlu0 %v15145_v56, %s16557_s5 }
0x30b9   : > { %6561 = vrot.lane.b32.xlu1 %v15117_v11, %s13966_s8  ;;  %6661 = vrot.lane.b32.xlu0 %v15145_v56, %s13966_s8 }
0x30bd   : > { %6575 = vrot.lane.b32.xlu1 %v15129_v12, %s16560_s13  ;;  %6675 = vrot.lane.b32.xlu0 %v15151_v7, %s16560_s13 }
0x30c1   : > { %6589 = vrot.lane.b32.xlu1 %v15135_v19, %s16557_s5 }
0x30c5   : > { %6601 = vrot.lane.b32.xlu1 %v15135_v19, %s13966_s8 }
0x30c9   : > { %6615 = vrot.lane.b32.xlu1 %v15111_v9, %s16560_s13 }
0x30cd   : > { %6629 = vrot.lane.b32.xlu1 %v15119_v14, %s16557_s5 }
0x30d1   : > { %6641 = vrot.lane.b32.xlu1 %v15119_v14, %s13966_s8 }
0x30d5   : > { %6655 = vrot.lane.b32.xlu1 %v15145_v56, %s16560_s13 }
0x30d9   : > { %6669 = vrot.lane.b32.xlu1 %v15151_v7, %s16557_s5 }
0x30dd   : > { %6681 = vrot.lane.b32.xlu1 %v15151_v7, %s13966_s8 }
0x30e3   : > { %v15227_v30 = vpop.permute.xlu0 %6607  ;;  %v6528_v31 = vpop.permute.xlu1 %6527 }
0x30e7   : > { %v15231_v23 = vpop.permute.xlu0 %6619  ;;  %v6534_v36 = vpop.permute.xlu1 %6533 }
0x30e8   : > { %v6686_v37 = vcombine.high %v15097_v4, %v6534_v36  ;;  %v6685_v16 = vcombine.low %v15097_v4, %v6534_v36  ;;  %v6973_v34 = vcombine.low %v15227_v30, %v15231_v23 }
0x30ea   : > { %v6700_v42 = vrot.slane %v6686_v37, %v15235_v39  ;;  %v6693_v60 = vrot.slane %v6685_v16, %v15235_v39  ;;  %v6981_v18 = vrot.slane %v6973_v34, %v15235_v39 }
0x30eb   : > { %v6548_v24 = vpop.permute.xlu0 %6547  ;;  %v6540_v40 = vpop.permute.xlu1 %6539 }
0x30ec   : > { %v6702_v41 = vcombine.high %v6528_v31, %v6540_v40  ;;  %v6701_v52 = vcombine.low %v6528_v31, %v6540_v40 }
0x30ee   : > { %v6716_v38 = vrot.slane %v6702_v41, %v15235_v39  ;;  %v6709_v59 = vrot.slane %v6701_v52, %v15235_v39 }
0x30ef   : > { %v15239_v43 = vpop.permute.xlu0 %6633  ;;  %v6614_v45 = vpop.permute.xlu1 %6613 }
0x30f0   : > { %v6765_v48 = vcombine.low %v6700_v42, %v6716_v38  ;;  %v6766_v49 = vcombine.high %v6700_v42, %v6716_v38  ;;  %v6958_v53 = vcombine.high %v15099_v5, %v6614_v45  ;;  %v6749_v1 = vcombine.low %v6693_v60, %v6709_v59 }
0x30f1   : > { %v6750_v2 = vcombine.high %v6693_v60, %v6709_v59  ;;  %v6957_v27 = vcombine.low %v15099_v5, %v6614_v45 }
0x30f2   : > { %v15267_v40 = vrot.slane %v6749_v1, %v15254_v0  ;;  %v15289_v50 = vrot.slane %v6765_v48, %v15254_v0  ;;  %v15292_v47 = vrot.slane %v6766_v49, %v15254_v0 }
0x30f3   : > { %v15243_v54 = vpop.permute.xlu0 %6593  ;;  %v6554_v55 = vpop.permute.xlu1 %6553  ;;  %v15270_v41 = vrot.slane %v6750_v2, %v15254_v0 }
0x30f4   : > { %v6718_v57 = vcombine.high %v15103_v21, %v6554_v55  ;;  %v6717_v22 = vcombine.low %v15103_v21, %v6554_v55  ;;  %v6974_v21 = vcombine.high %v15227_v30, %v15231_v23  ;;  %v6989_v30 = vcombine.low %v15105_v6, %v15239_v43 }
0x30f5   : > { %v6990_v23 = vcombine.high %v15105_v6, %v15239_v43  ;;  %v6965_v6 = vrot.slane %v6957_v27, %v15235_v39  ;;  %v6972_v43 = vrot.slane %v6958_v53, %v15235_v39 }
0x30f6   : > { %v6725_v32 = vrot.slane %v6717_v22, %v15235_v39  ;;  %v6732_v44 = vrot.slane %v6718_v57, %v15235_v39 }
0x30f7   : > { %v15251_v10 = vpop.permute.xlu0 %6647  ;;  %v6560_v17 = vpop.permute.xlu1 %6559 }
0x30f8   : > { %v6733_v62 = vcombine.low %v6548_v24, %v6560_v17  ;;  %v6734_v63 = vcombine.high %v6548_v24, %v6560_v17  ;;  %v6988_v17 = vrot.slane %v6974_v21, %v15235_v39 }
0x30fa   : > { %v6741_v3 = vrot.slane %v6733_v62, %v15235_v39  ;;  %v6748_v4 = vrot.slane %v6734_v63, %v15235_v39  ;;  %v7021_v62 = vcombine.low %v6965_v6, %v6981_v18  ;;  %v7022_v63 = vcombine.high %v6965_v6, %v6981_v18 }
0x30fb   : > { %v15264_v28 = vpop.permute.xlu0 %6659  ;;  %v6628_v31 = vpop.permute.xlu1 %6627  ;;  %v7037_v27 = vcombine.low %v6972_v43, %v6988_v17 }
0x30fc   : > { %v6781_v33 = vcombine.low %v6725_v32, %v6741_v3  ;;  %v6782_v36 = vcombine.high %v6725_v32, %v6741_v3  ;;  %v6797_v37 = vcombine.low %v6732_v44, %v6748_v4  ;;  %v6798_v24 = vcombine.high %v6732_v44, %v6748_v4 }
0x30fd   : > { %v6997_v32 = vrot.slane %v6989_v30, %v15235_v39  ;;  %v7004_v44 = vrot.slane %v6990_v23, %v15235_v39  ;;  %v15322_v21 = vrot.slane %v7021_v62, %v15254_v0  ;;  %v15325_v18 = vrot.slane %v7022_v63, %v15254_v0 }
0x30fe   : > { %v15277_v5 = vrot.slane %v6781_v33, %v15254_v0  ;;  %v15280_v42 = vrot.slane %v6782_v36, %v15254_v0  ;;  %v15283_v38 = vrot.slane %v6797_v37, %v15254_v0  ;;  %v15286_v45 = vrot.slane %v6798_v24, %v15254_v0 }
0x30ff   : > { %v15296_v52 = vpop.permute.xlu0 %6673  ;;  %v6640_v16 = vpop.permute.xlu1 %6639  ;;  %v7038_v33 = vcombine.high %v6972_v43, %v6988_v17 }
0x3100   : > { %v6813_v55 = vcombine.low %v15267_v40, %v15277_v5  ;;  %v6814_v57 = vcombine.high %v15267_v40, %v15277_v5  ;;  %v7005_v34 = vcombine.low %v6628_v31, %v6640_v16  ;;  %v7006_v60 = vcombine.high %v6628_v31, %v6640_v16 }
0x3101   : > { %v15345_v17 = vrot.slane %v7038_v33, %v15254_v0  ;;  %v16570_v5 = vcombine.low %v15292_v47, %v15286_v45 }
0x3102   : > { %v7013_v3 = vrot.slane %v7005_v34, %v15235_v39  ;;  %v7020_v4 = vrot.slane %v7006_v60, %v15235_v39  ;;  %v15342_v60 = vrot.slane %v7037_v27, %v15254_v0 }
0x3103   : > { %v15315_v1 = vpop.permute.xlu0 %6529  ;;  %v6568_v2 = vpop.permute.xlu1 %6567 }
0x3104   : > { %v7053_v36 = vcombine.low %v6997_v32, %v7013_v3  ;;  %v7054_v37 = vcombine.high %v6997_v32, %v7013_v3  ;;  %v7069_v31 = vcombine.low %v7004_v44, %v7020_v4  ;;  %v7070_v24 = vcombine.high %v7004_v44, %v7020_v4 }
0x3105   : > { %v6853_v3 = vcombine.low %v15127_v51, %v15243_v54  ;;  %v6854_v4 = vcombine.high %v15127_v51, %v15243_v54 }
0x3106   : > { %v15330_v23 = vrot.slane %v7053_v36, %v15254_v0  ;;  %v15333_v16 = vrot.slane %v7054_v37, %v15254_v0  ;;  %v15336_v43 = vrot.slane %v7069_v31, %v15254_v0  ;;  %v15339_v34 = vrot.slane %v7070_v24, %v15254_v0 }
0x3107   : > { %v15327_v6 = vpop.permute.xlu0 %6541  ;;  %v6574_v30 = vpop.permute.xlu1 %6573  ;;  %v6868_v26 = vrot.slane %v6854_v4, %v15235_v39 }
0x3108   : > { %v6821_v24 = vcombine.low %v15121_v15, %v6574_v30  ;;  %v6822_v27 = vcombine.high %v15121_v15, %v6574_v30  ;;  %v7109_v15 = vcombine.low %v15251_v10, %v15264_v28  ;;  %v7110_v30 = vcombine.high %v15251_v10, %v15264_v28 }
0x310a   : > { %v6829_v36 = vrot.slane %v6821_v24, %v15235_v39  ;;  %v6836_v22 = vrot.slane %v6822_v27, %v15235_v39 }
0x310b   : > { %v6580_v37 = vpop.permute.xlu1 %6579  ;;  %v15372_v33 = vpop.permute.xlu0 %6555 }
0x310c   : > { %v6837_v31 = vcombine.low %v6568_v2, %v6580_v37  ;;  %v6838_v29 = vcombine.high %v6568_v2, %v6580_v37  ;;  %v6861_v2 = vrot.slane %v6853_v3, %v15235_v39  ;;  %v7125_v3 = vcombine.low %v15143_v25, %v15296_v52 }
0x310e   : > { %v6845_v44 = vrot.slane %v6837_v31, %v15235_v39  ;;  %v6852_v32 = vrot.slane %v6838_v29, %v15235_v39 }
0x310f   : > { %v6588_v13 = vpop.permute.xlu1 %6587 }
0x3110   : > { %v6885_v51 = vcombine.low %v6829_v36, %v6845_v44  ;;  %v6886_v54 = vcombine.high %v6829_v36, %v6845_v44  ;;  %v6902_v4 = vcombine.high %v6836_v22, %v6852_v32  ;;  %v15389_v44 = vpop.permute.xlu0 %6569 }
0x3112   : > { %v6893_v10 = vrot.slane %v6885_v51, %v15254_v0  ;;  %v6900_v28 = vrot.slane %v6886_v54, %v15254_v0 }
0x3113   : > { %v6600_v63 = vpop.permute.xlu1 %6599 }
0x3114   : > { %v6869_v37 = vcombine.low %v6588_v13, %v6600_v63  ;;  %v6870_v62 = vcombine.high %v6588_v13, %v6600_v63  ;;  %v7126_v13 = vcombine.high %v15143_v25, %v15296_v52  ;;  %v6901_v63 = vcombine.low %v6836_v22, %v6852_v32 }
0x3116   : > { %v6877_v31 = vrot.slane %v6869_v37, %v15235_v39  ;;  %v6884_v29 = vrot.slane %v6870_v62, %v15235_v39  ;;  %v6909_v32 = vrot.slane %v6901_v63, %v15254_v0 }
0x3117   : > { %v6654_v27 = vpop.permute.xlu1 %6653 }
0x3118   : > { %v6917_v36 = vcombine.low %v6861_v2, %v6877_v31  ;;  %v6918_v24 = vcombine.high %v6861_v2, %v6877_v31  ;;  %v6933_v59 = vcombine.low %v6868_v26, %v6884_v29  ;;  %v6934_v53 = vcombine.high %v6868_v26, %v6884_v29 }
0x3119   : > { %v7093_v62 = vcombine.low %v15137_v20, %v6654_v27  ;;  %v7094_v37 = vcombine.high %v15137_v20, %v6654_v27  ;;  %v6916_v26 = vrot.slane %v6902_v4, %v15254_v0  ;;  %v16566_v4 = vcombine.low %v15270_v41, %v15280_v42 }
0x311a   : > { %v6925_v58 = vrot.slane %v6917_v36, %v15254_v0  ;;  %v6932_v25 = vrot.slane %v6918_v24, %v15254_v0  ;;  %v6941_v52 = vrot.slane %v6933_v59, %v15254_v0  ;;  %v6948_v22 = vrot.slane %v6934_v53, %v15254_v0  ;;  %v15409_v59 = vpop.permute.xlu0 %6581 }
0x311b   : > { %v7101_v2 = vrot.slane %v7093_v62, %v15235_v39  ;;  %v7108_v51 = vrot.slane %v7094_v37, %v15235_v39  ;;  %v6668_v54 = vpop.permute.xlu1 %6667  ;;  %v16568_v37 = vcombine.low %v15289_v50, %v15283_v38 }
0x311c   : > { %v6949_v31 = vcombine.low %v6893_v10, %v6925_v58  ;;  %v6950_v29 = vcombine.high %v6893_v10, %v6925_v58  ;;  %v6951_v20 = vcombine.low %v6900_v28, %v6932_v25  ;;  %v6952_v27 = vcombine.high %v6900_v28, %v6932_v25 }
0x311d   : > { %v6953_v36 = vcombine.low %v6909_v32, %v6941_v52  ;;  %v6954_v49 = vcombine.high %v6909_v32, %v6941_v52  ;;  %v6955_v24 = vcombine.low %v6916_v26, %v6948_v22  ;;  %v6956_v48 = vcombine.high %v6916_v26, %v6948_v22 }
0x311e   : > { %v12390_v63 = vpack.c.bf16 %v6949_v31, %v6813_v55  ;;  %v12398_v58 = vpack.c.bf16 %v6950_v29, %v6814_v57  ;;  %v15420_v10 = vpack.c.bf16 %v6951_v20, %v16566_v4  ;;  %v16567_v28 = vcombine.high %v15270_v41, %v15280_v42 }
0x311f   : > { %v15430_v25 = vpack.c.bf16 %v6953_v36, %v16568_v37  ;;  %v16569_v55 = vcombine.high %v15289_v50, %v15283_v38  ;;  %v15440_v57 = vpack.c.bf16 %v6955_v24, %v16570_v5  ;;  %v16571_v41 = vcombine.high %v15292_v47, %v15286_v45  ;;  %v6680_v52 = vpop.permute.xlu1 %6679 }
0x3120   : > { %v15425_v62 = vpack.c.bf16 %v6952_v27, %v16567_v28  ;;  %v7117_v22 = vrot.slane %v7109_v15, %v15235_v39  ;;  %v7124_v32 = vrot.slane %v7110_v30, %v15235_v39  ;;  %12392 = vmatpush3.bf16.xpose.msk.msra.mxu1 %vm15405_vm10, %v12390_v63  ;;  %v7133_v38 = vrot.slane %v7125_v3, %v15235_v39  ;;  %v15471_v27 = vpop.permute.xlu0 %6595 }
0x3121   : > { %v15435_v40 = vpack.c.bf16 %v6954_v49, %v16569_v55  ;;  %v15445_v42 = vpack.c.bf16 %v6956_v48, %v16571_v41  ;;  %v7140_v50 = vrot.slane %v7126_v13, %v15235_v39  ;;  %v7141_v49 = vcombine.low %v6668_v54, %v6680_v52  ;;  %12400 = vmatpush3.bf16.xpose.msk.msra.mxu0 %vm15405_vm10, %v12398_v58 }
0x3122   : > { %v7142_v26 = vcombine.high %v6668_v54, %v6680_v52  ;;  %v7245_v45 = vcombine.low %v15315_v1, %v15327_v6  ;;  %v7157_v47 = vcombine.low %v7101_v2, %v7117_v22  ;;  %v7158_v48 = vcombine.high %v7101_v2, %v7117_v22 }
0x3123   : > { %v7173_v15 = vcombine.low %v7108_v51, %v7124_v32  ;;  %v16572_v31 = vmov 0.0|0.0   ;;  %v16573_v30 = vcombine.high %v15315_v1, %v15327_v6  ;;  %v7261_v13 = vcombine.low %v15117_v11, %v15372_v33  ;;  %v6536_v20 = vpop.permute.xlu1 %6535 }
0x3124   : > { %12393 = vmatprep.subr.bf16.mxu1 %v16572_v31  ;;  %v7149_v54 = vrot.slane %v7141_v49, %v15235_v39  ;;  %v7156_v29 = vrot.slane %v7142_v26, %v15235_v39  ;;  %12401 = vmatprep.subr.bf16.mxu0 %v16572_v31  ;;  %v7262_v2 = vcombine.high %v15117_v11, %v15372_v33 }
0x3125   : > { %v15462_v3 = vrot.slane %v16573_v30, %v15235_v39  ;;  %v7174_v36 = vcombine.high %v7108_v51, %v7124_v32  ;;  %v7229_v1 = vcombine.low %v15109_v8, %v6536_v20  ;;  %v7230_v6 = vcombine.high %v15109_v8, %v6536_v20 }
0x3126   : > { %v7189_v24 = vcombine.low %v7133_v38, %v7149_v54  ;;  %v7190_v63 = vcombine.high %v7133_v38, %v7149_v54  ;;  %v7205_v58 = vcombine.low %v7140_v50, %v7156_v29  ;;  %v7206_v4 = vcombine.high %v7140_v50, %v7156_v29 }
0x3127   : > { %v7165_v28 = vrot.slane %v7157_v47, %v15254_v0  ;;  %v7172_v37 = vrot.slane %v7158_v48, %v15254_v0  ;;  %v7181_v55 = vrot.slane %v7173_v15, %v15254_v0  ;;  %v15479_v5 = vrot.slane %v7230_v6, %v15235_v39  ;;  %v6550_v41 = vpop.permute.xlu1 %6549  ;;  %v15491_v48 = vpop.permute.xlu0 %6609 }
0x3128   : > { %v7197_v11 = vrot.slane %v7189_v24, %v15254_v0  ;;  %v7204_v33 = vrot.slane %v7190_v63, %v15254_v0  ;;  %v7213_v51 = vrot.slane %v7205_v58, %v15254_v0  ;;  %v7220_v8 = vrot.slane %v7206_v4, %v15254_v0 }
0x3129   : > { %v7188_v52 = vrot.slane %v7174_v36, %v15254_v0  ;;  %v7237_v22 = vrot.slane %v7229_v1, %v15235_v39  ;;  %v7309_v32 = vcombine.low %v15479_v5, %v15462_v3  ;;  %v7310_v38 = vcombine.high %v15479_v5, %v15462_v3 }
0x312a   : > { %v7221_v50 = vcombine.low %v7165_v28, %v7197_v11  ;;  %v7222_v49 = vcombine.high %v7165_v28, %v7197_v11  ;;  %v7223_v26 = vcombine.low %v7172_v37, %v7204_v33  ;;  %v7224_v47 = vcombine.high %v7172_v37, %v7204_v33 }
0x312b   : > { %v7225_v15 = vcombine.low %v7181_v55, %v7213_v51  ;;  %v7226_v30 = vcombine.high %v7181_v55, %v7213_v51  ;;  %v7227_v54 = vcombine.low %v7188_v52, %v7220_v8  ;;  %v7228_v29 = vcombine.high %v7188_v52, %v7220_v8  ;;  %v6562_v4 = vpop.permute.xlu1 %6561 }
0x312c   : > { %v16574_v20 = vcombine.low %v15322_v21, %v15330_v23  ;;  %v16575_v1 = vcombine.high %v15322_v21, %v15330_v23  ;;  %v16576_v3 = vcombine.low %v15325_v18, %v15333_v16  ;;  %v16577_v63 = vcombine.high %v15325_v18, %v15333_v16 }
0x312d   : > { %v16578_v28 = vcombine.low %v15342_v60, %v15336_v43  ;;  %v16579_v21 = vcombine.high %v15342_v60, %v15336_v43  ;;  %v16580_v55 = vcombine.low %v15345_v17, %v15339_v34  ;;  %v16581_v18 = vcombine.high %v15345_v17, %v15339_v34 }
0x312e   : > { %v12394_v36 = vpack.c.bf16 %v7221_v50, %v16574_v20  ;;  %v12402_v6 = vpack.c.bf16 %v7222_v49, %v16575_v1  ;;  %v15502_v24 = vpack.c.bf16 %v7223_v26, %v16576_v3  ;;  %v15507_v58 = vpack.c.bf16 %v7224_v47, %v16577_v63 }
0x312f   : > { %v15512_v37 = vpack.c.bf16 %v7225_v15, %v16578_v28  ;;  %v15517_v23 = vpack.c.bf16 %v7226_v30, %v16579_v21  ;;  %v15522_v5 = vpack.c.bf16 %v7227_v54, %v16580_v55  ;;  %v15527_v16 = vpack.c.bf16 %v7228_v29, %v16581_v18  ;;  %v6576_v8 = vpop.permute.xlu1 %6575 }
0x3130   : > { %v7253_v11 = vrot.slane %v7245_v45, %v15235_v39  ;;  %12396 = vmatpush3.bf16.xpose.msk.msra.mxu1 %vm15405_vm10, %v12394_v36  ;;  %v7277_v33 = vcombine.low %v6550_v41, %v6562_v4  ;;  %v7278_v51 = vcombine.high %v6550_v41, %v6562_v4  ;;  %12404 = vmatpush3.bf16.xpose.msk.msra.mxu0 %vm15405_vm10, %v12402_v6  ;;  %v15538_v45 = vpop.permute.xlu0 %6621 }
0x3131   : > { %12405 = vmatprep.subr.bf16.mxu1 %v16572_v31  ;;  %12413 = vmatprep.subr.bf16.mxu0 %v16572_v31  ;;  %v7269_v34 = vrot.slane %v7261_v13, %v15235_v39  ;;  %v7276_v17 = vrot.slane %v7262_v2, %v15235_v39  ;;  %v7381_v50 = vcombine.low %v15389_v44, %v15409_v59 }
0x3132   : > { %v7293_v43 = vcombine.low %v7237_v22, %v7253_v11  ;;  %v7294_v60 = vcombine.high %v7237_v22, %v7253_v11  ;;  %v7285_v52 = vrot.slane %v7277_v33, %v15235_v39  ;;  %v7292_v41 = vrot.slane %v7278_v51, %v15235_v39 }
0x3133   : > { %v7382_v22 = vcombine.high %v15389_v44, %v15409_v59  ;;  %v7365_v49 = vcombine.low %v15129_v12, %v6576_v8  ;;  %v7397_v2 = vcombine.low %v15135_v19, %v15471_v27  ;;  %v7366_v29 = vcombine.high %v15129_v12, %v6576_v8  ;;  %v6590_v20 = vpop.permute.xlu1 %6589 }
0x3134   : > { %v7325_v26 = vcombine.low %v7269_v34, %v7285_v52  ;;  %v7326_v47 = vcombine.high %v7269_v34, %v7285_v52  ;;  %v7341_v15 = vcombine.low %v7276_v17, %v7292_v41  ;;  %v7342_v13 = vcombine.high %v7276_v17, %v7292_v41  ;;  %v15581_v4 = vpop.permute.xlu0 %6635 }
0x3135   : > { %v15550_v30 = vrot.slane %v7293_v43, %v15254_v0  ;;  %v15553_v54 = vrot.slane %v7294_v60, %v15254_v0  ;;  %v7398_v6 = vcombine.high %v15135_v19, %v15471_v27  ;;  %v15573_v12 = vrot.slane %v7309_v32, %v15254_v0 }
0x3136   : > { %v15557_v44 = vrot.slane %v7325_v26, %v15254_v0  ;;  %v15560_v59 = vrot.slane %v7326_v47, %v15254_v0  ;;  %v15563_v36 = vrot.slane %v7341_v15, %v15254_v0  ;;  %v15566_v1 = vrot.slane %v7342_v13, %v15254_v0 }
0x3137   : > { %11988 = vmatmul.mubr.msk.f32.vlgmr.msra.gmra.mrb[58].mxu1 %vm1468_vm2, %v15057_v46  ;;  %v15576_v3 = vrot.slane %v7310_v38, %v15254_v0  ;;  %v7373_v63 = vrot.slane %v7365_v49, %v15235_v39  ;;  %11999 = vmatmul.mubr.msk.f32.vlgmr.msra.gmra.mrb[66].mxu0 %vm1468_vm2, %v15057_v46  ;;  %v6602_v11 = vpop.permute.xlu1 %6601  ;;  %v7389_v33 = vrot.slane %v7381_v50, %v15235_v39  ;;  %v16582_v60 = vmov 0.0  }
0x3138   : > { %v7357_v28 = vcombine.low %v15550_v30, %v15557_v44  ;;  %v7358_v21 = vcombine.high %v15550_v30, %v15557_v44  ;;  %v7359_v19 = vcombine.low %v15553_v54, %v15560_v59  ;;  %v7360_v27 = vcombine.high %v15553_v54, %v15560_v59  ;;  %12408 = vmatpush3.bf16.xpose.msk.msra.mxu1 %vm15405_vm10, %v15420_v10  ;;  %v15622_v47 = vpop.permute.xlu0 %6649 }
0x3139   : > { %v7361_v32 = vcombine.low %v15573_v12, %v15563_v36  ;;  %v7362_v38 = vcombine.high %v15573_v12, %v15563_v36  ;;  %v7363_v55 = vcombine.low %v15576_v3, %v15566_v1  ;;  %v7364_v18 = vcombine.high %v15576_v3, %v15566_v1  ;;  %12416 = vmatpush3.bf16.xpose.msk.msra.mxu0 %vm15405_vm10, %v15425_v62 }
0x313a   : > { %v7380_v10 = vrot.slane %v7366_v29, %v15235_v39  ;;  %12409 = vmatprep.subr.bf16.mxu1 %v16572_v31  ;;  %v7413_v51 = vcombine.low %v6590_v20, %v6602_v11  ;;  %v7414_v43 = vcombine.high %v6590_v20, %v6602_v11  ;;  %12417 = vmatprep.subr.bf16.mxu0 %v16572_v31 }
0x313b   : > { %12009 = vmatprep.mubr.msk.f32.mxu1 %vm13953_vm3, %v16582_v60  ;;  %v7396_v8 = vrot.slane %v7382_v22, %v15235_v39  ;;  %v7405_v34 = vrot.slane %v7397_v2, %v15235_v39  ;;  %v7429_v17 = vcombine.low %v7373_v63, %v7389_v33  ;;  %v7430_v62 = vcombine.high %v7373_v63, %v7389_v33  ;;  %v6616_v26 = vpop.permute.xlu1 %6615 }
0x313c   : > { %12020 = vmatprep.mubr.msk.f32.mxu0 %vm13953_vm3, %v16582_v60  ;;  %v7412_v52 = vrot.slane %v7398_v6, %v15235_v39  ;;  %v7517_v41 = vcombine.low %v15491_v48, %v15538_v45  ;;  %v7421_v50 = vrot.slane %v7413_v51, %v15235_v39  ;;  %v7428_v49 = vrot.slane %v7414_v43, %v15235_v39 }
0x313d   : > { %v7518_v22 = vcombine.high %v15491_v48, %v15538_v45  ;;  %v7445_v15 = vcombine.low %v7380_v10, %v7396_v8  ;;  %v7446_v13 = vcombine.high %v7380_v10, %v7396_v8  ;;  %v7501_v2 = vcombine.low %v15111_v9, %v6616_v26 }
0x313e   : > { %v7461_v29 = vcombine.low %v7405_v34, %v7421_v50  ;;  %v7462_v20 = vcombine.high %v7405_v34, %v7421_v50  ;;  %v7477_v6 = vcombine.low %v7412_v52, %v7428_v49  ;;  %v7478_v63 = vcombine.high %v7412_v52, %v7428_v49 }
0x313f   : > { %v7533_v11 = vcombine.low %v15119_v14, %v15581_v4  ;;  %v7534_v33 = vcombine.high %v15119_v14, %v15581_v4  ;;  %v7437_v51 = vrot.slane %v7429_v17, %v15254_v0  ;;  %v7444_v48 = vrot.slane %v7430_v62, %v15254_v0  ;;  %v6630_v14 = vpop.permute.xlu1 %6629 }
0x3140   : > { %12412 = vmatpush3.bf16.xpose.msk.msra.mxu1 %vm15405_vm10, %v15502_v24  ;;  %v7469_v45 = vrot.slane %v7461_v29, %v15254_v0  ;;  %v7476_v10 = vrot.slane %v7462_v20, %v15254_v0  ;;  %v7485_v43 = vrot.slane %v7477_v6, %v15254_v0  ;;  %v7492_v8 = vrot.slane %v7478_v63, %v15254_v0  ;;  %v15647_v29 = vpop.permute.xlu0 %6661 }
0x3141   : > { %12420 = vmatpush3.bf16.xpose.msk.msra.mxu0 %vm15405_vm10, %v15507_v58  ;;  %v7453_v4 = vrot.slane %v7445_v15, %v15254_v0  ;;  %v7460_v34 = vrot.slane %v7446_v13, %v15254_v0  ;;  %v7502_v17 = vcombine.high %v15111_v9, %v6616_v26  ;;  %v7509_v24 = vrot.slane %v7501_v2, %v15235_v39 }
0x3142   : > { %12421 = vmatprep.subr.bf16.mxu1 %v16572_v31  ;;  %v7493_v62 = vcombine.low %v7437_v51, %v7469_v45  ;;  %v7494_v52 = vcombine.high %v7437_v51, %v7469_v45  ;;  %v7495_v50 = vcombine.low %v7444_v48, %v7476_v10  ;;  %v7496_v49 = vcombine.high %v7444_v48, %v7476_v10 }
0x3143   : > { %12429 = vmatprep.subr.bf16.mxu0 %v16572_v31  ;;  %v7497_v58 = vcombine.low %v7453_v4, %v7485_v43  ;;  %v7498_v20 = vcombine.high %v7453_v4, %v7485_v43  ;;  %v7499_v6 = vcombine.low %v7460_v34, %v7492_v8  ;;  %v7500_v15 = vcombine.high %v7460_v34, %v7492_v8  ;;  %v6642_v63 = vpop.permute.xlu1 %6641 }
0x3144   : > { %v15652_v9 = vpack.c.bf16 %v7493_v62, %v7357_v28  ;;  %v15657_v26 = vpack.c.bf16 %v7494_v52, %v7358_v21  ;;  %v15662_v13 = vpack.c.bf16 %v7495_v50, %v7359_v19  ;;  %v15667_v2 = vpack.c.bf16 %v7496_v49, %v7360_v27 }
0x3145   : > { %v15672_v28 = vpack.c.bf16 %v7497_v58, %v7361_v32  ;;  %v15677_v30 = vpack.c.bf16 %v7498_v20, %v7362_v38  ;;  %v15682_v44 = vpack.c.bf16 %v7499_v6, %v7363_v55  ;;  %v15687_v54 = vpack.c.bf16 %v7500_v15, %v7364_v18 }
0x3146   : > { %v7525_v59 = vrot.slane %v7517_v41, %v15235_v39  ;;  %v7532_v21 = vrot.slane %v7518_v22, %v15235_v39  ;;  %v7516_v19 = vrot.slane %v7502_v17, %v15235_v39  ;;  %v7541_v36 = vrot.slane %v7533_v11, %v15235_v39  ;;  %v6676_v41 = vpop.permute.xlu0 %6675 }
0x3147   : > { %12010 = vmatmul.mubr.msk.f32.vlgmr.msra.gmra.mrb[60].mxu1 %vm1468_vm2, %v15057_v46  ;;  %v7549_v12 = vcombine.low %v6630_v14, %v6642_v63  ;;  %v7550_v27 = vcombine.high %v6630_v14, %v6642_v63  ;;  %v7548_v1 = vrot.slane %v7534_v33, %v15235_v39  ;;  %v6656_v38 = vpop.permute.xlu1 %6655  ;;  %v7653_v55 = vcombine.low %v15622_v47, %v15647_v29 }
0x3148   : > { %12021 = vmatmul.mubr.msk.f32.vlgmr.msra.gmra.mrb[68].mxu0 %vm1468_vm2, %v15057_v46  ;;  %12424 = vmatpush3.bf16.xpose.msk.msra.mxu1 %vm15405_vm10, %v15430_v25  ;;  %v7565_v3 = vcombine.low %v7509_v24, %v7525_v59  ;;  %v7566_v32 = vcombine.high %v7509_v24, %v7525_v59  ;;  %v7654_v18 = vcombine.high %v15622_v47, %v15647_v29 }
0x3149   : > { %12432 = vmatpush3.bf16.xpose.msk.msra.mxu0 %vm15405_vm10, %v15435_v40  ;;  %12425 = vmatprep.subr.bf16.mxu1 %v16572_v31  ;;  %v7557_v25 = vrot.slane %v7549_v12, %v15235_v39  ;;  %v7564_v22 = vrot.slane %v7550_v27, %v15235_v39  ;;  %v7581_v11 = vcombine.low %v7516_v19, %v7532_v21 }
0x314a   : > { %12433 = vmatprep.subr.bf16.mxu0 %v16572_v31  ;;  %v7582_v33 = vcombine.high %v7516_v19, %v7532_v21  ;;  %v7637_v40 = vcombine.low %v15145_v56, %v6656_v38  ;;  %12031 = vmatprep.mubr.msk.f32.mxu1 %vm13953_vm3, %v16582_v60  ;;  %v7669_v10 = vcombine.low %v15151_v7, %v6676_v41 }
0x314b   : > { %12042 = vmatprep.mubr.msk.f32.mxu0 %vm13953_vm3, %v16582_v60  ;;  %v7597_v51 = vcombine.low %v7541_v36, %v7557_v25  ;;  %v7598_v48 = vcombine.high %v7541_v36, %v7557_v25  ;;  %v7613_v47 = vcombine.low %v7548_v1, %v7564_v22  ;;  %v7614_v45 = vcombine.high %v7548_v1, %v7564_v22  ;;  %v6670_v4 = vpop.permute.xlu1 %6669 }
0x314c   : > { %v15719_v43 = vrot.slane %v7565_v3, %v15254_v0  ;;  %v15722_v8 = vrot.slane %v7566_v32, %v15254_v0  ;;  %v7638_v14 = vcombine.high %v15145_v56, %v6656_v38  ;;  %v7670_v52 = vcombine.high %v15151_v7, %v6676_v41 }
0x314d   : > { %v15726_v34 = vrot.slane %v7597_v51, %v15254_v0  ;;  %v15729_v17 = vrot.slane %v7598_v48, %v15254_v0  ;;  %v15732_v24 = vrot.slane %v7613_v47, %v15254_v0  ;;  %v15735_v62 = vrot.slane %v7614_v45, %v15254_v0 }
0x314e   : > { %v15739_v50 = vrot.slane %v7581_v11, %v15254_v0  ;;  %v15742_v56 = vrot.slane %v7582_v33, %v15254_v0  ;;  %v7645_v49 = vrot.slane %v7637_v40, %v15235_v39  ;;  %v7661_v19 = vrot.slane %v7653_v55, %v15235_v39 }
0x314f   : > { %v7629_v29 = vcombine.low %v15719_v43, %v15726_v34  ;;  %v7630_v58 = vcombine.high %v15719_v43, %v15726_v34  ;;  %v7631_v20 = vcombine.low %v15722_v8, %v15729_v17  ;;  %v7632_v7 = vcombine.high %v15722_v8, %v15729_v17  ;;  %v6682_v21 = vpop.permute.xlu1 %6681 }
0x3150   : > { %12428 = vmatpush3.bf16.xpose.msk.msra.mxu1 %vm15405_vm10, %v15512_v37  ;;  %v7633_v6 = vcombine.low %v15739_v50, %v15732_v24  ;;  %v7634_v15 = vcombine.high %v15739_v50, %v15732_v24  ;;  %v7635_v63 = vcombine.low %v15742_v56, %v15735_v62  ;;  %v7636_v59 = vcombine.high %v15742_v56, %v15735_v62 }
0x3151   : > { %12436 = vmatpush3.bf16.xpose.msk.msra.mxu0 %vm15405_vm10, %v15517_v23  ;;  %v7652_v37 = vrot.slane %v7638_v14, %v15235_v39  ;;  %12437 = vmatprep.subr.bf16.mxu1 %v16572_v31  ;;  %v7685_v36 = vcombine.low %v6670_v4, %v6682_v21  ;;  %v7686_v12 = vcombine.high %v6670_v4, %v6682_v21 }
0x3152   : > { %12445 = vmatprep.subr.bf16.mxu0 %v16572_v31  ;;  %v7668_v27 = vrot.slane %v7654_v18, %v15235_v39  ;;  %v7701_v1 = vcombine.low %v7645_v49, %v7661_v19  ;;  %v7702_v3 = vcombine.high %v7645_v49, %v7661_v19  ;;  %v7677_v32 = vrot.slane %v7669_v10, %v15235_v39 }
0x3153   : > { %v7684_v38 = vrot.slane %v7670_v52, %v15235_v39  ;;  %v7693_v23 = vrot.slane %v7685_v36, %v15235_v39  ;;  %v7700_v55 = vrot.slane %v7686_v12, %v15235_v39 }
0x3154   : > { %v7717_v41 = vcombine.low %v7652_v37, %v7668_v27  ;;  %v7718_v25 = vcombine.high %v7652_v37, %v7668_v27  ;;  %v7709_v18 = vrot.slane %v7701_v1, %v15254_v0  ;;  %v7716_v51 = vrot.slane %v7702_v3, %v15254_v0 }
0x3155   : > { %v7733_v22 = vcombine.low %v7677_v32, %v7693_v23  ;;  %v7734_v11 = vcombine.high %v7677_v32, %v7693_v23  ;;  %v7749_v33 = vcombine.low %v7684_v38, %v7700_v55  ;;  %v7750_v40 = vcombine.high %v7684_v38, %v7700_v55 }
0x3156   : > { %v7725_v10 = vrot.slane %v7717_v41, %v15254_v0  ;;  %v7732_v43 = vrot.slane %v7718_v25, %v15254_v0 }
0x3157   : > { %12032 = vmatmul.mubr.msk.f32.vlgmr.msra.gmra.mrb[62].mxu1 %vm1468_vm2, %v15057_v46  ;;  %v7741_v39 = vrot.slane %v7733_v22, %v15254_v0  ;;  %v7748_v48 = vrot.slane %v7734_v11, %v15254_v0  ;;  %v7757_v47 = vrot.slane %v7749_v33, %v15254_v0  ;;  %v7764_v45 = vrot.slane %v7750_v40, %v15254_v0 }
0x3158   : > { %12043 = vmatmul.mubr.msk.f32.vlgmr.msra.gmra.mrb[70].mxu0 %vm1468_vm2, %v15057_v46  ;;  %12440 = vmatpush3.bf16.xpose.msk.msra.mxu1 %vm15405_vm10, %v15440_v57 }
0x3159   : > { %12448 = vmatpush3.bf16.xpose.msk.msra.mxu0 %vm15405_vm10, %v15445_v42  ;;  %12441 = vmatprep.subr.bf16.mxu1 %v16572_v31  ;;  %v7765_v57 = vcombine.low %v7709_v18, %v7741_v39  ;;  %v7766_v8 = vcombine.high %v7709_v18, %v7741_v39  ;;  %v7767_v14 = vcombine.low %v7716_v51, %v7748_v48 }
0x315a   : > { %12449 = vmatprep.subr.bf16.mxu0 %v16572_v31  ;;  %v7768_v4 = vcombine.high %v7716_v51, %v7748_v48  ;;  %12053 = vmatprep.mubr.msk.f32.mxu1 %vm13953_vm3, %v16582_v60  ;;  %v7769_v34 = vcombine.low %v7725_v10, %v7757_v47  ;;  %v7770_v17 = vcombine.high %v7725_v10, %v7757_v47 }
0x315b   : > { %v7771_v24 = vcombine.low %v7732_v43, %v7764_v45  ;;  %v7772_v62 = vcombine.high %v7732_v43, %v7764_v45  ;;  %12064 = vmatprep.mubr.msk.f32.mxu0 %vm13953_vm3, %v16582_v60  ;;  %v12458_v42 = vpack.c.bf16 %v7765_v57, %v7629_v29  ;;  %v12466_v0 = vpack.c.bf16 %v7766_v8, %v7630_v58 }
0x315c   : > { %v12474_v52 = vpack.c.bf16 %v7767_v14, %v7631_v20  ;;  %v12482_v50 = vpack.c.bf16 %v7768_v4, %v7632_v7  ;;  %v12490_v56 = vpack.c.bf16 %v7769_v34, %v7633_v6  ;;  %v12498_v49 = vpack.c.bf16 %v7770_v17, %v7634_v15 }
0x315d   : > { %v12506_v21 = vpack.c.bf16 %v7771_v24, %v7635_v63  ;;  %v12514_v19 = vpack.c.bf16 %v7772_v62, %v7636_v59  ;;  %v9888_v63 = vld [vmem:[#allocation30 + $0x10] sm:$0xff]  ;;  %v9889_v59 = vld [vmem:[#allocation30 + $0x18] sm:$0xff]  ;;  %v9875_v62 = vsel %vm1468_vm2, %v15069_v61, 0.0 }
0x315e   : > { %v12561_v37 = vpack.c.bf16 %v9889_v59, %v9888_v63  ;;  %v9970_v63 = vld [vmem:[#allocation31] sm:$0xff]  ;;  %v9971_v59 = vld [vmem:[#allocation31 + $0x8] sm:$0xff] }
0x3160   : > { %12444 = vmatpush3.bf16.xpose.msk.msra.mxu1 %vm15405_vm10, %v15522_v5  ;;  %v9108_v5 = vld [vmem:[#allocation25] sm:$0xff] }
0x3161   : > { %12452 = vmatpush3.bf16.xpose.msk.msra.mxu0 %vm15405_vm10, %v15527_v16  ;;  %12453 = vmatprep.subr.bf16.mxu1 %v16572_v31  ;;  %v9109_v16 = vld [vmem:[#allocation25 + $0x8] sm:$0xff] }
0x3162   : > { %12461 = vmatprep.subr.bf16.mxu0 %v16572_v31 }
0x3167   : > { %12054 = vmatmul.mubr.msk.f32.vlgmr.msra.gmra.mrb[64].mxu1 %vm1468_vm2, %v15057_v46 }
0x3168   : > { %12065 = vmatmul.mubr.msk.f32.vlgmr.msra.gmra.mrb[72].mxu0 %vm1468_vm2, %v15057_v46  ;;  %12456 = vmatpush3.bf16.xpose.msk.msra.mxu1 %vm15405_vm10, %v15652_v9  ;;  %v12517_v9 = vpack.c.bf16 %v9109_v16, %v9108_v5 }
0x3169   : > { %12464 = vmatpush3.bf16.xpose.msk.msra.mxu0 %vm15405_vm10, %v15657_v26  ;;  %12457 = vmatprep.subr.bf16.mxu1 %v16572_v31  ;;  %v9110_v26 = vld [vmem:[#allocation25 + $0x10] sm:$0xff] }
0x316a   : > { %12465 = vmatprep.subr.bf16.mxu0 %v16572_v31  ;;  %12075 = vmatprep.mubr.msk.f32.mxu1 %vm13953_vm3, %v16582_v60 }
0x316b   : > { %12086 = vmatprep.mubr.msk.f32.mxu0 %vm13953_vm3, %v16582_v60 }
0x3170   : > { %12460 = vmatpush3.bf16.xpose.msk.msra.mxu1 %vm15405_vm10, %v12458_v42  ;;  %v9866_v42 = vsel %vm1468_vm2, %v15057_v46, 0.0 }
0x3171   : > { %12468 = vmatpush3.bf16.xpose.msk.msra.mxu0 %vm15405_vm10, %v12466_v0  ;;  %12469 = vmatprep.subr.bf16.mxu1 %v16572_v31  ;;  %v9876_v0 = vrot.slane %v9875_v62, 4 }
0x3172   : > { %12477 = vmatprep.subr.bf16.mxu0 %v16572_v31 }
0x3177   : > { %12076 = vmatmul.mubr.msk.f32.vlgmr.msra.gmra.mrb[66].mxu1 %vm1468_vm2, %v15069_v61 }
0x3178   : > { %12087 = vmatmul.mubr.msk.f32.vlgmr.msra.gmra.mrb[74].mxu0 %vm1468_vm2, %v15069_v61  ;;  %12472 = vmatpush3.bf16.xpose.msk.msra.mxu1 %vm15405_vm10, %v15662_v13  ;;  %v9111_v13 = vld [vmem:[#allocation25 + $0x18] sm:$0xff] }
0x3179   : > { %12480 = vmatpush3.bf16.xpose.msk.msra.mxu0 %vm15405_vm10, %v15667_v2  ;;  %12473 = vmatprep.subr.bf16.mxu1 %v16572_v31  ;;  %v12521_v2 = vpack.c.bf16 %v9111_v13, %v9110_v26 }
0x317a   : > { %12481 = vmatprep.subr.bf16.mxu0 %v16572_v31  ;;  %12097 = vmatprep.mubr.msk.f32.mxu1 %vm13953_vm3, %v16582_v60 }
0x317b   : > { %12108 = vmatprep.mubr.msk.f32.mxu0 %vm13953_vm3, %v16582_v60 }
0x3180   : > { %12476 = vmatpush3.bf16.xpose.msk.msra.mxu1 %vm15405_vm10, %v12474_v52  ;;  %v9867_v52 = vrot.slane %v9866_v42, 4 }
0x3181   : > { %12484 = vmatpush3.bf16.xpose.msk.msra.mxu0 %vm15405_vm10, %v12482_v50  ;;  %12485 = vmatprep.subr.bf16.mxu1 %v16572_v31  ;;  %v9877_v50 = vadd.f32 %v9876_v0, %v9875_v62 }
0x3182   : > { %12493 = vmatprep.subr.bf16.mxu0 %v16572_v31  ;;  %v9868_v5 = vadd.f32 %v9867_v52, %v9866_v42 }
0x3183   : > { %v9878_v26 = vrot.slane %v9877_v50, 2 }
0x3185   : > { %v9879_v13 = vadd.f32 %v9878_v26, %v9877_v50 }
0x3187   : > { %12098 = vmatmul.mubr.msk.f32.vlgmr.msra.gmra.mrb[68].mxu1 %vm1468_vm2, %v15069_v61 }
0x3188   : > { %12109 = vmatmul.mubr.msk.f32.vlgmr.msra.gmra.mrb[76].mxu0 %vm1468_vm2, %v15069_v61  ;;  %12488 = vmatpush3.bf16.xpose.msk.msra.mxu1 %vm15405_vm10, %v15672_v28  ;;  %v15902_v28 = vld [vmem:[#allocation24] ss:$0 sm:$0xff] }
0x3189   : > { %12496 = vmatpush3.bf16.xpose.msk.msra.mxu0 %vm15405_vm10, %v15677_v30  ;;  %12489 = vmatprep.subr.bf16.mxu1 %v16572_v31  ;;  %v9886_v30 = vld [vmem:[#allocation30] sm:$0xff] }
0x318a   : > { %12497 = vmatprep.subr.bf16.mxu0 %v16572_v31  ;;  %12119 = vmatprep.mubr.msk.f32.mxu1 %vm13953_vm3, %v16582_v60 }
0x318b   : > { %12130 = vmatprep.mubr.msk.f32.mxu0 %vm13953_vm3, %v16582_v60 }
0x3190   : > { %12492 = vmatpush3.bf16.xpose.msk.msra.mxu1 %vm15405_vm10, %v12490_v56 }
0x3191   : > { %12500 = vmatpush3.bf16.xpose.msk.msra.mxu0 %vm15405_vm10, %v12498_v49  ;;  %12501 = vmatprep.subr.bf16.mxu1 %v16572_v31 }
0x3192   : > { %12509 = vmatprep.subr.bf16.mxu0 %v16572_v31 }
0x3197   : > { %12120 = vmatmul.mubr.msk.f32.vlgmr.msra.gmra.mrb[70].mxu1 %vm1468_vm2, %v15069_v61 }
0x3198   : > { %12131 = vmatmul.mubr.msk.f32.vlgmr.msra.gmra.mrb[78].mxu0 %vm1468_vm2, %v15069_v61  ;;  %12504 = vmatpush3.bf16.xpose.msk.msra.mxu1 %vm15405_vm10, %v15682_v44  ;;  %v9887_v44 = vld [vmem:[#allocation30 + $0x8] sm:$0xff] }
0x3199   : > { %12512 = vmatpush3.bf16.xpose.msk.msra.mxu0 %vm15405_vm10, %v15687_v54  ;;  %12505 = vmatprep.subr.bf16.mxu1 %v16572_v31  ;;  %v12558_v7 = vpack.c.bf16 %v9887_v44, %v9886_v30 }
0x319a   : > { %12513 = vmatprep.subr.bf16.mxu0 %v16572_v31  ;;  %12141 = vmatprep.mubr.msk.f32.mxu1 %vm13953_vm3, %v16582_v60 }
0x319b   : > { %12152 = vmatprep.mubr.msk.f32.mxu0 %vm13953_vm3, %v16582_v60 }
0x31a0   : > { %12508 = vmatpush3.bf16.xpose.msk.msra.mxu1 %vm15405_vm10, %v12506_v21 }
0x31a1   : > { %12516 = vmatpush3.bf16.xpose.msk.msra.mxu0 %vm15405_vm10, %v12514_v19  ;;  %12518 = vmatprep.subr.bf16.mxu1 %v12517_v9 }
0x31a2   : > { %12525 = vmatprep.subr.bf16.mxu0 %v16572_v31 }
0x31a7   : > { %12142 = vmatmul.mubr.msk.f32.vlgmr.msra.gmra.mrb[72].mxu1 %vm1468_vm2, %v15069_v61 }
0x31a8   : > { %12153 = vmatmul.mubr.msk.f32.vlgmr.msra.gmra.mrb[80].mxu0 %vm1468_vm2, %v15069_v61  ;;  %12520 = vmatpush3.bf16.msra.mxu1 %v12517_v9  ;;  %v9869_v61 = vrot.slane %v9868_v5, 2 }
0x31a9   : > { %12522 = vmatprep.subr.bf16.mxu1 %v12521_v2  ;;  %12219 = vmatprep.mubr.msk.f32.mxu0 %vm13953_vm3, %v16582_v60 }
0x31aa   : > { %v9870_v46 = vadd.f32 %v9869_v61, %v9868_v5 }
0x31ac   : > { %12524 = vmatpush3.bf16.msra.mxu1 %v12521_v2  ;;  %v9880_v2 = vrot.slane %v9879_v13, 1  ;;  %v9871_v30 = vrot.slane %v9870_v46, 1 }
0x31ad   : > { %12557 = vmatprep.subr.bf16.mxu1 %v16572_v31 }
0x31ae   : > { %v9881_v44 = vadd.f32 %v9880_v2, %v9879_v13 }
0x320a   : > { %v7851_v54 = vpop.f32.mrb[58].mxu1  ;;  %v7933_v58 = vpop.f32.mrb[66].mxu0 }
0x320b   : > { %v9092_v29 = vadd.f32 %v15902_v28, %v7851_v54  ;;  %v11989_v20 = vpop.f32.mrb[59].mxu1  ;;  %v9093_v6 = vadd.f32 %v15902_v28, %v7933_v58  ;;  %v12000_v15 = vpop.f32.mrb[67].mxu0 }
0x320d   : > { %12163 = vmatprep.mubr.msk.f32.mxu1 %vm1468_vm2, %v9092_v29 }
0x320e   : > { %12164 = vmatmul.mubr.msk.f32.vlgmr.msra.gmra.mrb[74].mxu1 %vm1468_vm2, %v9093_v6 }
0x320f   : > { %12559 = vmatpush3.bf16.msra.mxu1 %v12558_v7  ;;  %v9872_v7 = vadd.f32 %v9871_v30, %v9870_v46 }
0x3210   : > { %12560 = vmatprep.subr.bf16.mxu1 %v16572_v31 }
0x3213   : > { %12562 = vmatpush3.bf16.msra.mxu1 %v12561_v37  ;;  %v9882_v37 = vmul.f32 0.125, %v9881_v44 }
0x3214   : > { %12563 = vmatprep.subr.bf16.mxu1 %v16572_v31 }
0x321a   : > { %v8015_v36 = vpop.f32.mrb[60].mxu1 }
0x321b   : > { %v9094_v12 = vadd.f32 %v15902_v28, %v8015_v36  ;;  %v8097_v27 = vpop.f32.mrb[68].mxu0  ;;  %v12011_v1 = vpop.f32.mrb[61].mxu1  ;;  %v9874_v36 = vmul.f32 0.125, %v9872_v7 }
0x321c   : > { %v9095_v3 = vadd.f32 %v15902_v28, %v8097_v27  ;;  %v12022_v32 = vpop.f32.mrb[69].mxu0  ;;  %v9972_v27 = vld [vmem:[#allocation31 + $0x10] sm:$0xff]  ;;  %v9973_v1 = vld [vmem:[#allocation31 + $0x18] sm:$0xff] }
0x321d   : > { %12166 = vmatprep.mubr.msk.f32.mxu1 %vm1468_vm2, %v9094_v12  ;;  %v12564_v12 = vpack.c.bf16 %v9971_v59, %v9970_v63  ;;  %v9885_v32 = vld [vmem:[#allocation3] sm:$0x3] }
0x321e   : > { %12167 = vmatmul.mubr.msk.f32.gmra.mrb[76].mxu1 %vm1468_vm2, %v9095_v3  ;;  %v9884_v3 = vsel %vm9883_vm11, %v9874_v36, %v9882_v37 }
0x322a   : > { %v8179_v38 = vpop.f32.mrb[62].mxu1 }
0x322b   : > { %v9096_v23 = vadd.f32 %v15902_v28, %v8179_v38  ;;  %v8261_v55 = vpop.f32.mrb[70].mxu0  ;;  %v12033_v41 = vpop.f32.mrb[63].mxu1  ;;  %v15952_v38 = vld [vmem:[#allocation27] ss:$0 sm:$0xff] }
0x322c   : > { %v9097_v25 = vadd.f32 %v15902_v28, %v8261_v55  ;;  %v12044_v22 = vpop.f32.mrb[71].mxu0 }
0x322d   : > { %12169 = vmatprep.mubr.msk.f32.mxu1 %vm1468_vm2, %v9096_v23 }
0x322e   : > { %12170 = vmatmul.mubr.msk.f32.gmra.mrb[78].mxu1 %vm1468_vm2, %v9097_v25 }
0x323a   : > { %v8343_v11 = vpop.f32.mrb[64].mxu1 }
0x323b   : > { %v9098_v33 = vadd.f32 %v15902_v28, %v8343_v11  ;;  %v8425_v40 = vpop.f32.mrb[72].mxu0  ;;  %v12055_v18 = vpop.f32.mrb[65].mxu1 }
0x323c   : > { %v9099_v51 = vadd.f32 %v15902_v28, %v8425_v40  ;;  %v12066_v39 = vpop.f32.mrb[73].mxu0 }
0x323d   : > { %12172 = vmatprep.mubr.msk.f32.mxu1 %vm1468_vm2, %v9098_v33 }
0x323e   : > { %12173 = vmatmul.mubr.msk.f32.gmra.mrb[80].mxu1 %vm1468_vm2, %v9099_v51 }
0x324a   : > { %v8507_v48 = vpop.f32.mrb[66].mxu1 }
0x324b   : > { %v9100_v47 = vadd.f32 %v15902_v28, %v8507_v48  ;;  %v8589_v45 = vpop.f32.mrb[74].mxu0  ;;  %v12077_v10 = vpop.f32.mrb[67].mxu1 }
0x324c   : > { %v9101_v43 = vadd.f32 %v15902_v28, %v8589_v45  ;;  %v12088_v57 = vpop.f32.mrb[75].mxu0 }
0x324d   : > { %12175 = vmatprep.mubr.msk.f32.mxu1 %vm1468_vm2, %v9100_v47 }
0x324e   : > { %12176 = vmatmul.mubr.msk.f32.gmra.mrb[82].mxu1 %vm1468_vm2, %v9101_v43 }
0x325a   : > { %v8671_v8 = vpop.f32.mrb[68].mxu1 }
0x325b   : > { %v9102_v14 = vadd.f32 %v15902_v28, %v8671_v8  ;;  %v8753_v4 = vpop.f32.mrb[76].mxu0  ;;  %v12099_v34 = vpop.f32.mrb[69].mxu1 }
0x325c   : > { %v9103_v17 = vadd.f32 %v15902_v28, %v8753_v4  ;;  %v12110_v24 = vpop.f32.mrb[77].mxu0 }
0x325d   : > { %12178 = vmatprep.mubr.msk.f32.mxu1 %vm1468_vm2, %v9102_v14 }
0x325e   : > { %12179 = vmatmul.mubr.msk.f32.gmra.mrb[84].mxu1 %vm1468_vm2, %v9103_v17 }
0x326a   : > { %v8835_v56 = vpop.f32.mrb[70].mxu1 }
0x326b   : > { %v9104_v49 = vadd.f32 %v15902_v28, %v8835_v56  ;;  %v8917_v21 = vpop.f32.mrb[78].mxu0  ;;  %v12121_v19 = vpop.f32.mrb[71].mxu1 }
0x326c   : > { %v9105_v16 = vadd.f32 %v15902_v28, %v8917_v21  ;;  %v12132_v9 = vpop.f32.mrb[79].mxu0 }
0x326d   : > { %12181 = vmatprep.mubr.msk.f32.mxu1 %vm1468_vm2, %v9104_v49 }
0x326e   : > { %12182 = vmatmul.mubr.msk.f32.gmra.mrb[86].mxu1 %vm1468_vm2, %v9105_v16 }
0x327a   : > { %v8999_v54 = vpop.f32.mrb[72].mxu1 }
0x327b   : > { %v9106_v29 = vadd.f32 %v15902_v28, %v8999_v54  ;;  %v9081_v58 = vpop.f32.mrb[80].mxu0  ;;  %v12143_v20 = vpop.f32.mrb[73].mxu1 }
0x327c   : > { %v9107_v6 = vadd.f32 %v15902_v28, %v9081_v58  ;;  %v12154_v15 = vpop.f32.mrb[81].mxu0  ;;  %v12567_v28 = vpack.c.bf16 %v9973_v1, %v9972_v27 }
0x327d   : > { %12184 = vmatprep.mubr.msk.f32.mxu1 %vm1468_vm2, %v9106_v29 }
0x327e   : > { %12185 = vmatmul.mubr.msk.f32.gmra.mrb[88].mxu1 %vm1468_vm2, %v9107_v6 }
0x327f   : > { %12230 = vmatprep.mubr.msk.f32.mxu1 %vm13953_vm3, %v16582_v60 }
0x3282   : > { %12231 = vmatmul.mubr.msk.f32.vlgmr.msra.gmra.mrb[90].mxu1 %vm1468_vm2, %v9884_v3 }
0x3283   : > { %12565 = vmatpush3.bf16.msra.mxu1 %v12564_v12  ;;  %12241 = vmatprep.mubr.msk.f32.mxu1 %vm13953_vm3, %v16582_v60 }
0x3284   : > { %12566 = vmatprep.subr.bf16.mxu1 %v16572_v31 }
0x3287   : > { %12568 = vmatpush3.bf16.msra.mxu1 %v12567_v28 }
0x3288   : > { %12569 = vmatprep.subr.bf16.mxu1 %v16572_v31 }
0x328a   : > { %12242 = vmatmul.mubr.msk.f32.vlgmr.msra.gmra.mrb[92].mxu1 %vm1468_vm2, %v9885_v32 }
0x328b   : > { %12252 = vmatprep.mubr.msk.f32.mxu1 %vm13953_vm3, %v16582_v60 }
0x32e1   : > { %v12165_v23 = vpop.f32.mrb[74].mxu1 }
0x32e2   : > { %v15955_v55 = vadd.f32 %v12165_v23, %v15952_v38  ;;  %v9233_v41 = vpop.f32.mrb[75].mxu1 }
0x32e3   : > { %v15958_v25 = vadd.f32 %v15952_v38, %v9233_v41 }
0x32e4   : > { %v15961_v22 = vmul.f32 0.70710677, %v15955_v55 }
0x32e5   : > { %v15964_v11 = vmul.f32 0.70710677, %v15958_v25 }
0x32e6   : > { %v9377_v33 = vand.u32 2147483647, %v15961_v22  ;;  %vm9345_vm12 = vcmp.lt.f32.partialorder %v15961_v22, 0.0 }
0x32e7   : > { %v9376_v40 = vand.u32 2147483647, %v15964_v11  ;;  %vm9344_vm13 = vcmp.lt.f32.partialorder %v15964_v11, 0.0 }
0x32e8   : > { %v9393_v18 = vmul.f32 0.3275911, %v9377_v33  ;;  %v9585_v47 = vsub.f32 0.0, %v9377_v33 }
0x32e9   : > { %v9392_v51 = vmul.f32 0.3275911, %v9376_v40  ;;  %v9584_v10 = vsub.f32 0.0, %v9376_v40 }
0x32ea   : > { %v9409_v39 = vadd.f32 1.0, %v9393_v18  ;;  %v9601_v8 = vmul.f32 %v9585_v47, %v9377_v33 }
0x32eb   : > { %v9408_v48 = vadd.f32 1.0, %v9392_v51  ;;  %v9600_v42 = vmul.f32 %v9584_v10, %v9376_v40 }
0x32ec   : > { %13034 = vrcp.f32 %v9409_v39  ;;  %v9618_v52 = vmul.f32 1.442695, %v9601_v8 }
0x32ed   : > { %13036 = vrcp.f32 %v9408_v48  ;;  %v9616_v9 = vmul.f32 1.442695, %v9600_v42 }
0x32ee   : > { %13038 = vpow2.f32 %v9618_v52 }
0x32f1   : > { %v12168_v45 = vpop.f32.mrb[76].mxu1 }
0x32f2   : > { %v15969_v43 = vadd.f32 %v12168_v45, %v15952_v38  ;;  %v9243_v57 = vpop.f32.mrb[77].mxu1 }
0x32f3   : > { %v15972_v14 = vadd.f32 %v15952_v38, %v9243_v57 }
0x32f4   : > { %v15975_v4 = vmul.f32 0.70710677, %v15969_v43 }
0x32f5   : > { %v15978_v17 = vmul.f32 0.70710677, %v15972_v14 }
0x32f6   : > { %v13035_v34 = vpop.eup %13034  ;;  %v9379_v0 = vand.u32 2147483647, %v15975_v4  ;;  %vm9347_vm14 = vcmp.lt.f32.partialorder %v15975_v4, 0.0 }
0x32f7   : > { %v13037_v24 = vpop.eup %13036  ;;  %v9441_v62 = vmul.f32 1.0614054, %v13035_v34  ;;  %v9378_v56 = vand.u32 2147483647, %v15978_v17  ;;  %vm9346_vm15 = vcmp.lt.f32.partialorder %v15978_v17, 0.0  ;;  %v9314_v17 = vmul.f32 0.5, %v15972_v14 }
0x32f8   : > { %v9440_v50 = vmul.f32 1.0614054, %v13037_v24  ;;  %v9395_v21 = vmul.f32 0.3275911, %v9379_v0  ;;  %v9587_v58 = vsub.f32 0.0, %v9379_v0  ;;  %v13039_v27 = vpop.eup %13038 }
0x32f9   : > { %v9457_v49 = vadd.f32 -1.4531521, %v9441_v62  ;;  %v9394_v5 = vmul.f32 0.3275911, %v9378_v56  ;;  %v9586_v6 = vsub.f32 0.0, %v9378_v56 }
0x32fa   : > { %v9456_v19 = vadd.f32 -1.4531521, %v9440_v50  ;;  %v9411_v26 = vadd.f32 1.0, %v9395_v21  ;;  %v9603_v3 = vmul.f32 %v9587_v58, %v9379_v0  ;;  %v16583_v50 = vmov 1.0  }
0x32fb   : > { %v9473_v16 = vmul.f32 %v13035_v34, %v9457_v49  ;;  %v9410_v13 = vadd.f32 1.0, %v9394_v5  ;;  %v9602_v41 = vmul.f32 %v9586_v6, %v9378_v56  ;;  %v9360_v5 = vsel %vm9344_vm13, -1.0, %v16583_v50 }
0x32fc   : > { %v9472_v61 = vmul.f32 %v13037_v24, %v9456_v19  ;;  %13040 = vrcp.f32 %v9411_v26  ;;  %v9622_v8 = vmul.f32 1.442695, %v9603_v3 }
0x32fd   : > { %v9489_v46 = vadd.f32 1.4214138, %v9473_v16  ;;  %13042 = vrcp.f32 %v9410_v13  ;;  %v9620_v0 = vmul.f32 1.442695, %v9602_v41  ;;  %v9313_v13 = vmul.f32 0.5, %v15955_v55 }
0x32fe   : > { %v9488_v2 = vadd.f32 1.4214138, %v9472_v61  ;;  %13044 = vpow2.f32 %v9616_v9 }
0x32ff   : > { %v9505_v30 = vmul.f32 %v13035_v34, %v9489_v46 }
0x3300   : > { %v9504_v44 = vmul.f32 %v13037_v24, %v9488_v2  ;;  %v9312_v2 = vmul.f32 0.5, %v15958_v25 }
0x3301   : > { %v9521_v54 = vadd.f32 -0.28449672, %v9505_v30  ;;  %v12171_v20 = vpop.f32.mrb[78].mxu1 }
0x3302   : > { %v9520_v29 = vadd.f32 -0.28449672, %v9504_v44  ;;  %v15983_v15 = vadd.f32 %v12171_v20, %v15952_v38  ;;  %v9253_v63 = vpop.f32.mrb[79].mxu1 }
0x3303   : > { %v9537_v7 = vmul.f32 %v13035_v34, %v9521_v54  ;;  %v15986_v37 = vadd.f32 %v15952_v38, %v9253_v63 }
0x3304   : > { %v9536_v59 = vmul.f32 %v13037_v24, %v9520_v29  ;;  %v15989_v12 = vmul.f32 0.70710677, %v15983_v15 }
0x3305   : > { %v9553_v36 = vadd.f32 0.2548296, %v9537_v7  ;;  %v15992_v28 = vmul.f32 0.70710677, %v15986_v37 }
0x3306   : > { %v9552_v1 = vadd.f32 0.2548296, %v9536_v59  ;;  %v15994_v32 = vpop.eup %13040  ;;  %v9381_v33 = vand.u32 2147483647, %v15989_v12  ;;  %vm9349_vm0 = vcmp.lt.f32.partialorder %v15989_v12, 0.0 }
0x3307   : > { %v9569_v23 = vmul.f32 %v13035_v34, %v9553_v36  ;;  %v15997_v40 = vpop.eup %13042  ;;  %v9443_v51 = vmul.f32 1.0614054, %v15994_v32  ;;  %v9380_v34 = vand.u32 2147483647, %v15992_v28  ;;  %vm9348_vm1 = vcmp.lt.f32.partialorder %v15992_v28, 0.0 }
0x3308   : > { %v9568_v18 = vmul.f32 %v13037_v24, %v9552_v1  ;;  %v13045_v39 = vpop.eup %13044  ;;  %v9442_v47 = vmul.f32 1.0614054, %v15997_v40  ;;  %v9397_v45 = vmul.f32 0.3275911, %v9381_v33  ;;  %v9361_v24 = vsel %vm9345_vm12, -1.0, %v16583_v50 }
0x3309   : > { %v9649_v48 = vmul.f32 %v13039_v27, %v9569_v23  ;;  %v9459_v57 = vadd.f32 -1.4531521, %v9443_v51  ;;  %v9396_v21 = vmul.f32 0.3275911, %v9380_v34  ;;  %v9589_v6 = vsub.f32 0.0, %v9381_v33 }
0x330a   : > { %v9648_v10 = vmul.f32 %v13045_v39, %v9568_v18  ;;  %v9458_v42 = vadd.f32 -1.4531521, %v9442_v47  ;;  %v9413_v52 = vadd.f32 1.0, %v9397_v45  ;;  %v9588_v23 = vsub.f32 0.0, %v9380_v34 }
0x330b   : > { %v9665_v62 = vsub.f32 1.0, %v9649_v48  ;;  %v9475_v49 = vmul.f32 %v15994_v32, %v9459_v57  ;;  %v9412_v61 = vadd.f32 1.0, %v9396_v21  ;;  %v9605_v39 = vmul.f32 %v9589_v6, %v9381_v33 }
0x330c   : > { %v9664_v56 = vsub.f32 1.0, %v9648_v10  ;;  %v9474_v16 = vmul.f32 %v15997_v40, %v9458_v42  ;;  %13046 = vrcp.f32 %v9413_v52  ;;  %v9604_v52 = vmul.f32 %v9588_v23, %v9380_v34 }
0x330d   : > { %v9681_v19 = vmul.f32 %v9665_v62, %v9361_v24  ;;  %v9491_v26 = vadd.f32 1.4214138, %v9475_v49  ;;  %13048 = vpow2.f32 %v9622_v8  ;;  %v9626_v49 = vmul.f32 1.442695, %v9605_v39 }
0x330e   : > { %v9680_v9 = vmul.f32 %v9664_v56, %v9360_v5  ;;  %v9490_v46 = vadd.f32 1.4214138, %v9474_v16  ;;  %13050 = vpow2.f32 %v9620_v0 }
0x330f   : > { %v9697_v22 = vadd.f32 1.0, %v9681_v19  ;;  %v9507_v44 = vmul.f32 %v15994_v32, %v9491_v26  ;;  %13052 = vrcp.f32 %v9412_v61  ;;  %v9363_v19 = vsel %vm9347_vm14, -1.0, %v16583_v50 }
0x3310   : > { %v9696_v30 = vadd.f32 1.0, %v9680_v9  ;;  %v9506_v54 = vmul.f32 %v15997_v40, %v9490_v46 }
0x3311   : > { %v9713_v11 = vmul.f32 %v9697_v22, %v9313_v13  ;;  %v9523_v58 = vadd.f32 -0.28449672, %v9507_v44  ;;  %v12174_v20 = vpop.f32.mrb[80].mxu1  ;;  %v9624_v13 = vmul.f32 1.442695, %v9604_v52 }
0x3312   : > { %v9712_v29 = vmul.f32 %v9696_v30, %v9312_v2  ;;  %v9522_v7 = vadd.f32 -0.28449672, %v9506_v54  ;;  %v16017_v63 = vadd.f32 %v12174_v20, %v15952_v38  ;;  %v9263_v55 = vpop.f32.mrb[81].mxu1  ;;  %v9315_v30 = vmul.f32 0.5, %v15969_v43 }
0x3313   : > { %v9539_v36 = vmul.f32 %v15994_v32, %v9523_v58  ;;  %v16021_v25 = vadd.f32 %v15952_v38, %v9263_v55 }
0x3314   : > { %v12526_v59 = vpack.c.bf16 %v9713_v11, %v9712_v29  ;;  %v9538_v27 = vmul.f32 %v15997_v40, %v9522_v7  ;;  %v16025_v1 = vmul.f32 0.70710677, %v16017_v63 }
0x3315   : > { %v9555_v3 = vadd.f32 0.2548296, %v9539_v36  ;;  %v16028_v41 = vmul.f32 0.70710677, %v16021_v25 }
0x3316   : > { %12528 = vmatpush3.bf16.xpose.msk.msra.mxu0 %vm15405_vm10, %v12526_v59  ;;  %v16032_v18 = vpop.eup %13046  ;;  %v9554_v51 = vadd.f32 0.2548296, %v9538_v27  ;;  %v9383_v48 = vand.u32 2147483647, %v16025_v1  ;;  %vm9351_vm4 = vcmp.lt.f32.partialorder %v16025_v1, 0.0 }
0x3317   : > { %12529 = vmatprep.subr.bf16.mxu0 %v16572_v31  ;;  %v13049_v47 = vpop.eup %13048  ;;  %v9571_v45 = vmul.f32 %v15994_v32, %v9555_v3  ;;  %v9445_v10 = vmul.f32 1.0614054, %v16032_v18  ;;  %v9382_v24 = vand.u32 2147483647, %v16028_v41  ;;  %vm9350_vm5 = vcmp.lt.f32.partialorder %v16028_v41, 0.0 }
0x3318   : > { %v13051_v57 = vpop.eup %13050  ;;  %v9570_v8 = vmul.f32 %v15997_v40, %v9554_v51  ;;  %v9399_v62 = vmul.f32 0.3275911, %v9383_v48  ;;  %v9362_v40 = vsel %vm9346_vm15, -1.0, %v16583_v50  ;;  %v9591_v59 = vsub.f32 0.0, %v9383_v48 }
0x3319   : > { %v16041_v42 = vpop.eup %13052  ;;  %v9651_v33 = vmul.f32 %v13049_v47, %v9571_v45  ;;  %v9461_v0 = vadd.f32 -1.4531521, %v9445_v10  ;;  %v9398_v16 = vmul.f32 0.3275911, %v9382_v24  ;;  %v9590_v47 = vsub.f32 0.0, %v9382_v24 }
0x331a   : > { %v9650_v56 = vmul.f32 %v13051_v57, %v9570_v8  ;;  %v9444_v32 = vmul.f32 1.0614054, %v16041_v42  ;;  %v9415_v21 = vadd.f32 1.0, %v9399_v62  ;;  %v9607_v8 = vmul.f32 %v9591_v59, %v9383_v48 }
0x331b   : > { %v9667_v4 = vsub.f32 1.0, %v9651_v33  ;;  %v9477_v5 = vmul.f32 %v16032_v18, %v9461_v0  ;;  %v9414_v22 = vadd.f32 1.0, %v9398_v16  ;;  %vm10307_vm15 = vcmask 0  }
0x331c   : > { %v9666_v9 = vsub.f32 1.0, %v9650_v56  ;;  %v9460_v26 = vadd.f32 -1.4531521, %v9444_v32  ;;  %13054 = vrcp.f32 %v9415_v21  ;;  %v9630_v16 = vmul.f32 1.442695, %v9607_v8 }
0x331d   : > { %v9683_v34 = vmul.f32 %v9667_v4, %v9363_v19  ;;  %v9493_v61 = vadd.f32 1.4214138, %v9477_v5  ;;  %13056 = vpow2.f32 %v9626_v49  ;;  %v9606_v19 = vmul.f32 %v9590_v47, %v9382_v24 }
0x331e   : > { %v9682_v46 = vmul.f32 %v9666_v9, %v9362_v40  ;;  %v9476_v2 = vmul.f32 %v16041_v42, %v9460_v26  ;;  %13058 = vrcp.f32 %v9414_v22  ;;  %v9365_v26 = vsel %vm9349_vm0, -1.0, %v16583_v50 }
0x331f   : > { %v9699_v44 = vadd.f32 1.0, %v9683_v34  ;;  %v9509_v11 = vmul.f32 %v16032_v18, %v9493_v61  ;;  %13060 = vpow2.f32 %v9624_v13 }
0x3320   : > { %v9698_v54 = vadd.f32 1.0, %v9682_v46  ;;  %v9492_v29 = vadd.f32 1.4214138, %v9476_v2  ;;  %v9628_v2 = vmul.f32 1.442695, %v9606_v19 }
0x3321   : > { %v9715_v58 = vmul.f32 %v9699_v44, %v9315_v30  ;;  %v9525_v20 = vadd.f32 -0.28449672, %v9509_v11  ;;  %v12177_v7 = vpop.f32.mrb[82].mxu1 }
0x3322   : > { %v9714_v6 = vmul.f32 %v9698_v54, %v9314_v17  ;;  %v9508_v55 = vmul.f32 %v16041_v42, %v9492_v29  ;;  %v16056_v36 = vadd.f32 %v12177_v7, %v15952_v38  ;;  %v9273_v43 = vpop.f32.mrb[83].mxu1  ;;  %v9364_v17 = vsel %vm9348_vm1, -1.0, %v16583_v50 }
0x3323   : > { %v9541_v27 = vmul.f32 %v16032_v18, %v9525_v20  ;;  %v16060_v3 = vadd.f32 %v15952_v38, %v9273_v43  ;;  %v9317_v29 = vmul.f32 0.5, %v15983_v15  ;;  %v9316_v20 = vmul.f32 0.5, %v15986_v37 }
0x3324   : > { %v12530_v14 = vpack.c.bf16 %v9715_v58, %v9714_v6  ;;  %v9524_v23 = vadd.f32 -0.28449672, %v9508_v55  ;;  %v16063_v51 = vmul.f32 0.70710677, %v16056_v36 }
0x3325   : > { %v9557_v39 = vadd.f32 0.2548296, %v9541_v27  ;;  %v16066_v45 = vmul.f32 0.70710677, %v16060_v3 }
0x3326   : > { %v16068_v10 = vpop.eup %13054  ;;  %v9540_v57 = vmul.f32 %v16041_v42, %v9524_v23  ;;  %v9385_v62 = vand.u32 2147483647, %v16063_v51  ;;  %12532 = vmatpush3.bf16.xpose.msk.msra.mxu0 %vm15405_vm10, %v12530_v14  ;;  %vm9353_vm6 = vcmp.lt.f32.partialorder %v16063_v51, 0.0 }
0x3327   : > { %v9573_v33 = vmul.f32 %v16032_v18, %v9557_v39  ;;  %v9447_v0 = vmul.f32 1.0614054, %v16068_v10  ;;  %12533 = vmatprep.subr.bf16.mxu0 %v16572_v31  ;;  %v13057_v52 = vpop.eup %13056  ;;  %v9384_v4 = vand.u32 2147483647, %v16066_v45  ;;  %vm9352_vm7 = vcmp.lt.f32.partialorder %v16066_v45, 0.0 }
0x3328   : > { %v9556_v56 = vadd.f32 0.2548296, %v9540_v57  ;;  %v9401_v49 = vmul.f32 0.3275911, %v9385_v62  ;;  %v16078_v32 = vpop.eup %13058  ;;  %v9593_v6 = vsub.f32 0.0, %v9385_v62 }
0x3329   : > { %v9653_v21 = vmul.f32 %v13057_v52, %v9573_v33  ;;  %v9463_v48 = vadd.f32 -1.4531521, %v9447_v0  ;;  %v9446_v18 = vmul.f32 1.0614054, %v16078_v32  ;;  %v13061_v9 = vpop.eup %13060  ;;  %v9400_v61 = vmul.f32 0.3275911, %v9384_v4 }
0x332a   : > { %v9572_v5 = vmul.f32 %v16041_v42, %v9556_v56  ;;  %v9417_v40 = vadd.f32 1.0, %v9401_v49  ;;  %v9592_v33 = vsub.f32 0.0, %v9384_v4 }
0x332b   : > { %v9669_v34 = vsub.f32 1.0, %v9653_v21  ;;  %v9479_v12 = vmul.f32 %v16068_v10, %v9463_v48  ;;  %v9462_v22 = vadd.f32 -1.4531521, %v9446_v18  ;;  %v9416_v42 = vadd.f32 1.0, %v9400_v61 }
0x332c   : > { %v9652_v13 = vmul.f32 %v13061_v9, %v9572_v5  ;;  %13062 = vrcp.f32 %v9417_v40  ;;  %v9609_v21 = vmul.f32 %v9593_v6, %v9385_v62 }
0x332d   : > { %v9685_v24 = vmul.f32 %v9669_v34, %v9365_v26  ;;  %v9495_v46 = vadd.f32 1.4214138, %v9479_v12  ;;  %13064 = vpow2.f32 %v9630_v16  ;;  %v9478_v44 = vmul.f32 %v16078_v32, %v9462_v22 }
0x332e   : > { %v9668_v30 = vsub.f32 1.0, %v9652_v13  ;;  %13066 = vrcp.f32 %v9416_v42  ;;  %v9608_v12 = vmul.f32 %v9592_v33, %v9384_v4  ;;  %v9634_v61 = vmul.f32 1.442695, %v9609_v21 }
0x332f   : > { %v9701_v11 = vadd.f32 1.0, %v9685_v24  ;;  %v9511_v54 = vmul.f32 %v16068_v10, %v9495_v46  ;;  %v9494_v58 = vadd.f32 1.4214138, %v9478_v44  ;;  %13068 = vpow2.f32 %v9628_v2 }
0x3330   : > { %v9684_v28 = vmul.f32 %v9668_v30, %v9364_v17  ;;  %v9367_v24 = vsel %vm9351_vm4, -1.0, %v16583_v50  ;;  %v9632_v17 = vmul.f32 1.442695, %v9608_v12 }
0x3331   : > { %v9527_v7 = vadd.f32 -0.28449672, %v9511_v54  ;;  %v12180_v55 = vpop.f32.mrb[84].mxu1  ;;  %v9717_v59 = vmul.f32 %v9701_v11, %v9317_v29  ;;  %v9510_v27 = vmul.f32 %v16078_v32, %v9494_v58  ;;  %v9366_v58 = vsel %vm9350_vm5, -1.0, %v16583_v50 }
0x3332   : > { %v9700_v43 = vadd.f32 1.0, %v9684_v28  ;;  %v16093_v14 = vadd.f32 %v12180_v55, %v15952_v38  ;;  %v9283_v23 = vpop.f32.mrb[85].mxu1  ;;  %v9318_v55 = vmul.f32 0.5, %v16021_v25 }
0x3333   : > { %v9543_v39 = vmul.f32 %v16068_v10, %v9527_v7  ;;  %v16097_v15 = vadd.f32 %v15952_v38, %v9283_v23  ;;  %v9526_v57 = vadd.f32 -0.28449672, %v9510_v27  ;;  %v9319_v7 = vmul.f32 0.5, %v16017_v63 }
0x3334   : > { %v9716_v47 = vmul.f32 %v9700_v43, %v9316_v20  ;;  %v16100_v37 = vmul.f32 0.70710677, %v16093_v14 }
0x3335   : > { %v9559_v8 = vadd.f32 0.2548296, %v9543_v39  ;;  %v16103_v0 = vmul.f32 0.70710677, %v16097_v15  ;;  %v9542_v49 = vmul.f32 %v16078_v32, %v9526_v57 }
0x3336   : > { %v16105_v52 = vpop.eup %13062  ;;  %v12534_v56 = vpack.c.bf16 %v9717_v59, %v9716_v47  ;;  %v9387_v48 = vand.u32 2147483647, %v16100_v37  ;;  %vm9355_vm8 = vcmp.lt.f32.partialorder %v16100_v37, 0.0 }
0x3337   : > { %v9575_v19 = vmul.f32 %v16068_v10, %v9559_v8  ;;  %v9449_v5 = vmul.f32 1.0614054, %v16105_v52  ;;  %v13065_v16 = vpop.eup %13064  ;;  %v9558_v18 = vadd.f32 0.2548296, %v9542_v49  ;;  %v9386_v62 = vand.u32 2147483647, %v16103_v0 }
0x3338   : > { %v9403_v40 = vmul.f32 0.3275911, %v9387_v48  ;;  %12536 = vmatpush3.bf16.xpose.msk.msra.mxu0 %vm15405_vm10, %v12534_v56  ;;  %v16114_v9 = vpop.eup %13066  ;;  %v9595_v43 = vsub.f32 0.0, %v9387_v48  ;;  %vm9354_vm9 = vcmp.lt.f32.partialorder %v16103_v0, 0.0 }
0x3339   : > { %v9655_v26 = vmul.f32 %v13065_v16, %v9575_v19  ;;  %v9465_v34 = vadd.f32 -1.4531521, %v9449_v5  ;;  %12537 = vmatprep.subr.bf16.mxu0 %v16572_v31  ;;  %v9574_v10 = vmul.f32 %v16078_v32, %v9558_v18  ;;  %v9448_v13 = vmul.f32 1.0614054, %v16114_v9  ;;  %v13069_v22 = vpop.eup %13068 }
0x333a   : > { %v9419_v1 = vadd.f32 1.0, %v9403_v40  ;;  %v9402_v42 = vmul.f32 0.3275911, %v9386_v62  ;;  %v9594_v19 = vsub.f32 0.0, %v9386_v62 }
0x333b   : > { %v9671_v46 = vsub.f32 1.0, %v9655_v26  ;;  %v9481_v2 = vmul.f32 %v16105_v52, %v9465_v34  ;;  %v9654_v4 = vmul.f32 %v13069_v22, %v9574_v10  ;;  %v9464_v30 = vadd.f32 -1.4531521, %v9448_v13 }
0x333c   : > { %13070 = vrcp.f32 %v9419_v1  ;;  %v9418_v32 = vadd.f32 1.0, %v9402_v42  ;;  %v9611_v26 = vmul.f32 %v9595_v43, %v9387_v48 }
0x333d   : > { %v9687_v44 = vmul.f32 %v9671_v46, %v9367_v24  ;;  %v9497_v11 = vadd.f32 1.4214138, %v9481_v2  ;;  %v9670_v54 = vsub.f32 1.0, %v9654_v4  ;;  %13072 = vpow2.f32 %v9634_v61 }
0x333e   : > { %v9480_v29 = vmul.f32 %v16114_v9, %v9464_v30  ;;  %13074 = vrcp.f32 %v9418_v32  ;;  %v9610_v46 = vmul.f32 %v9594_v19, %v9386_v62  ;;  %v9638_v42 = vmul.f32 1.442695, %v9611_v26 }
0x333f   : > { %v9703_v28 = vadd.f32 1.0, %v9687_v44  ;;  %v9513_v20 = vmul.f32 %v16105_v52, %v9497_v11  ;;  %v9686_v41 = vmul.f32 %v9670_v54, %v9366_v58  ;;  %13076 = vpow2.f32 %v9632_v17 }
0x3340   : > { %v9496_v6 = vadd.f32 1.4214138, %v9480_v29  ;;  %v9369_v44 = vsel %vm9353_vm6, -1.0, %v16583_v50 }
0x3341   : > { %v9529_v59 = vadd.f32 -0.28449672, %v9513_v20  ;;  %v12183_v27 = vpop.f32.mrb[86].mxu1  ;;  %v9719_v23 = vmul.f32 %v9703_v28, %v9319_v7  ;;  %v9702_v39 = vadd.f32 1.0, %v9686_v41 }
0x3342   : > { %v9512_v47 = vmul.f32 %v16114_v9, %v9496_v6  ;;  %v16130_v57 = vadd.f32 %v12183_v27, %v15952_v38  ;;  %v9293_v8 = vpop.f32.mrb[87].mxu1  ;;  %v9368_v6 = vsel %vm9352_vm7, -1.0, %v16583_v50  ;;  %v9320_v27 = vmul.f32 0.5, %v16060_v3 }
0x3343   : > { %v9545_v33 = vmul.f32 %v16105_v52, %v9529_v59  ;;  %v16134_v63 = vadd.f32 %v15952_v38, %v9293_v8  ;;  %v9718_v56 = vmul.f32 %v9702_v39, %v9318_v55  ;;  %v9321_v59 = vmul.f32 0.5, %v16056_v36 }
0x3344   : > { %v9528_v49 = vadd.f32 -0.28449672, %v9512_v47  ;;  %v16137_v25 = vmul.f32 0.70710677, %v16130_v57 }
0x3345   : > { %v9561_v21 = vadd.f32 0.2548296, %v9545_v33  ;;  %v16140_v5 = vmul.f32 0.70710677, %v16134_v63  ;;  %v12538_v18 = vpack.c.bf16 %v9719_v23, %v9718_v56 }
0x3346   : > { %v16142_v16 = vpop.eup %13070  ;;  %v9544_v40 = vmul.f32 %v16114_v9, %v9528_v49  ;;  %v16146_v34 = vand.u32 2147483647, %v16137_v25  ;;  %vm9357_vm11 = vcmp.lt.f32.partialorder %v16137_v25, 0.0 }
0x3347   : > { %v9577_v12 = vmul.f32 %v16105_v52, %v9561_v21  ;;  %v9451_v10 = vmul.f32 1.0614054, %v16142_v16  ;;  %v13073_v61 = vpop.eup %13072  ;;  %12540 = vmatpush3.bf16.xpose.msk.msra.mxu0 %vm15405_vm10, %v12538_v18  ;;  %v16157_v2 = vand.u32 2147483647, %v16140_v5  ;;  %vm9356_vm12 = vcmp.lt.f32.partialorder %v16140_v5, 0.0 }
0x3348   : > { %v9560_v13 = vadd.f32 0.2548296, %v9544_v40  ;;  %v9405_v1 = vmul.f32 0.3275911, %v16146_v34  ;;  %v16154_v22 = vpop.eup %13074  ;;  %12541 = vmatprep.subr.bf16.mxu0 %v16572_v31  ;;  %v9597_v39 = vsub.f32 0.0, %v16146_v34  ;;  %v9324_v5 = vmul.f32 0.5, %v16134_v63 }
0x3349   : > { %v9657_v24 = vmul.f32 %v13073_v61, %v9577_v12  ;;  %v9467_v48 = vadd.f32 -1.4531521, %v9451_v10  ;;  %v9450_v51 = vmul.f32 1.0614054, %v16154_v22  ;;  %v13077_v30 = vpop.eup %13076  ;;  %v9404_v32 = vmul.f32 0.3275911, %v16157_v2 }
0x334a   : > { %v9576_v52 = vmul.f32 %v16114_v9, %v9560_v13  ;;  %v9421_v4 = vadd.f32 1.0, %v9405_v1  ;;  %v9636_v9 = vmul.f32 1.442695, %v9610_v46  ;;  %v9596_v12 = vsub.f32 0.0, %v16157_v2 }
0x334b   : > { %v9673_v11 = vsub.f32 1.0, %v9657_v24  ;;  %v9483_v17 = vmul.f32 %v16142_v16, %v9467_v48  ;;  %v9466_v54 = vadd.f32 -1.4531521, %v9450_v51  ;;  %v9420_v58 = vadd.f32 1.0, %v9404_v32 }
0x334c   : > { %v9656_v62 = vmul.f32 %v13077_v30, %v9576_v52  ;;  %13078 = vrcp.f32 %v9421_v4 }
0x334d   : > { %v9689_v29 = vmul.f32 %v9673_v11, %v9369_v44  ;;  %v9499_v28 = vadd.f32 1.4214138, %v9483_v17  ;;  %13080 = vpow2.f32 %v9638_v42  ;;  %v9482_v7 = vmul.f32 %v16154_v22, %v9466_v54 }
0x334e   : > { %v9672_v20 = vsub.f32 1.0, %v9656_v62  ;;  %13082 = vrcp.f32 %v9420_v58 }
0x334f   : > { %v9705_v41 = vadd.f32 1.0, %v9689_v29  ;;  %v9515_v55 = vmul.f32 %v16142_v16, %v9499_v28  ;;  %v9498_v43 = vadd.f32 1.4214138, %v9482_v7  ;;  %13084 = vpow2.f32 %v9636_v9  ;;  %v11339_v7 = vld [vmem:[#allocation34] ss:$0 sm:$0xff] }
0x3350   : > { %v9688_v45 = vmul.f32 %v9672_v20, %v9368_v6  ;;  %v9371_v28 = vsel %vm9355_vm8, -1.0, %v16583_v50 }
0x3351   : > { %v9531_v23 = vadd.f32 -0.28449672, %v9515_v55  ;;  %v12186_v47 = vpop.f32.mrb[88].mxu1  ;;  %v9721_v8 = vmul.f32 %v9705_v41, %v9321_v59  ;;  %v9514_v56 = vmul.f32 %v16154_v22, %v9498_v43 }
0x3352   : > { %v9704_v33 = vadd.f32 1.0, %v9688_v45  ;;  %v16174_v49 = vadd.f32 %v12186_v47, %v15952_v38  ;;  %v9303_v21 = vpop.f32.mrb[89].mxu1 }
0x3353   : > { %v9547_v19 = vmul.f32 %v16142_v16, %v9531_v23  ;;  %v16178_v36 = vadd.f32 %v15952_v38, %v9303_v21  ;;  %v9530_v3 = vadd.f32 -0.28449672, %v9514_v56  ;;  %v9613_v38 = vmul.f32 %v9597_v39, %v16146_v34 }
0x3354   : > { %v9720_v18 = vmul.f32 %v9704_v33, %v9320_v27  ;;  %v16181_v40 = vmul.f32 0.70710677, %v16174_v49  ;;  %v9612_v34 = vmul.f32 %v9596_v12, %v16157_v2  ;;  %v9323_v33 = vmul.f32 0.5, %v16093_v14 }
0x3355   : > { %v9563_v26 = vadd.f32 0.2548296, %v9547_v19  ;;  %v16185_v10 = vmul.f32 0.70710677, %v16178_v36  ;;  %v16187_v61 = vpop.f32.mrb[90].mxu1  ;;  %v9546_v24 = vmul.f32 %v16154_v22, %v9530_v3  ;;  %v9322_v19 = vmul.f32 0.5, %v16097_v15 }
0x3356   : > { %v16189_v13 = vpop.eup %13078  ;;  %v12542_v1 = vpack.c.bf16 %v9721_v8, %v9720_v18  ;;  %v9391_v48 = vand.u32 2147483647, %v16181_v40  ;;  %v12232_v46 = vpop.f32.mrb[91].mxu1  ;;  %v9642_v62 = vmul.f32 1.442695, %v9613_v38  ;;  %v9370_v8 = vsel %vm9354_vm9, -1.0, %v16583_v50 }
0x3357   : > { %v9579_v52 = vmul.f32 %v16142_v16, %v9563_v26  ;;  %v9453_v42 = vmul.f32 1.0614054, %v16189_v13  ;;  %v13081_v51 = vpop.eup %13080  ;;  %v9562_v4 = vadd.f32 0.2548296, %v9546_v24  ;;  %v9390_v32 = vand.u32 2147483647, %v16185_v10 }
0x3358   : > { %v9407_v30 = vmul.f32 0.3275911, %v9391_v48  ;;  %12544 = vmatpush3.bf16.xpose.msk.msra.mxu0 %vm15405_vm10, %v12542_v1  ;;  %v16199_v44 = vpop.eup %13082  ;;  %v9599_v1 = vsub.f32 0.0, %v9391_v48  ;;  %vm9359_vm13 = vcmp.lt.f32.partialorder %v16181_v40, 0.0  ;;  %vm9358_vm14 = vcmp.lt.f32.partialorder %v16185_v10, 0.0 }
0x3359   : > { %v9659_v11 = vmul.f32 %v13081_v51, %v9579_v52  ;;  %v9469_v17 = vadd.f32 -1.4531521, %v9453_v42  ;;  %12545 = vmatprep.subr.bf16.mxu0 %v16572_v31  ;;  %v9578_v16 = vmul.f32 %v16154_v22, %v9562_v4  ;;  %v9452_v37 = vmul.f32 1.0614054, %v16199_v44  ;;  %v13085_v29 = vpop.eup %13084 }
0x335a   : > { %v9423_v54 = vadd.f32 1.0, %v9407_v30  ;;  %v9406_v20 = vmul.f32 0.3275911, %v9390_v32  ;;  %v9640_v22 = vmul.f32 1.442695, %v9612_v34  ;;  %v9598_v14 = vsub.f32 0.0, %v9390_v32 }
0x335b   : > { %v9675_v9 = vsub.f32 1.0, %v9659_v11  ;;  %v9485_v58 = vmul.f32 %v16189_v13, %v9469_v17  ;;  %v9658_v2 = vmul.f32 %v13085_v29, %v9578_v16  ;;  %v9468_v41 = vadd.f32 -1.4531521, %v9452_v37 }
0x335c   : > { %13086 = vrcp.f32 %v9423_v54  ;;  %v9422_v59 = vadd.f32 1.0, %v9406_v20  ;;  %v9615_v30 = vmul.f32 %v9599_v1, %v9391_v48  ;;  %v9614_v54 = vmul.f32 %v9598_v14, %v9390_v32 }
0x335d   : > { %v9691_v6 = vmul.f32 %v9675_v9, %v9371_v28  ;;  %v9501_v55 = vadd.f32 1.4214138, %v9485_v58  ;;  %v10050_v45 = vpop.f32.mrb[92].mxu1  ;;  %v9674_v43 = vsub.f32 1.0, %v9658_v2  ;;  %13088 = vpow2.f32 %v9642_v62 }
0x335e   : > { %v9484_v27 = vmul.f32 %v16199_v44, %v9468_v41  ;;  %v16210_v23 = vadd.f32 %v11339_v7, %v10050_v45  ;;  %v12243_v39 = vpop.f32.mrb[93].mxu1  ;;  %13090 = vrcp.f32 %v9422_v59  ;;  %v9646_v28 = vmul.f32 1.442695, %v9615_v30 }
0x335f   : > { %v9707_v47 = vadd.f32 1.0, %v9691_v6  ;;  %v9517_v0 = vmul.f32 %v16189_v13, %v9501_v55  ;;  %v9690_v56 = vmul.f32 %v9674_v43, %v9370_v8  ;;  %13092 = vpow2.f32 %v9640_v22 }
0x3360   : > { %v9500_v21 = vadd.f32 1.4214138, %v9484_v27  ;;  %10061 = vrot.lane.b32.xlu0 %v16210_v23, %s16560_s13  ;;  %v9373_v20 = vsel %vm9357_vm11, -1.0, %v16583_v50  ;;  %v9644_v6 = vmul.f32 1.442695, %v9614_v54  ;;  %13094 = vpow2.f32 %v9646_v28 }
0x3361   : > { %v9533_v18 = vadd.f32 -0.28449672, %v9517_v0  ;;  %v9723_v3 = vmul.f32 %v9707_v47, %v9323_v33  ;;  %v9706_v26 = vadd.f32 1.0, %v9690_v56  ;;  %v9325_v45 = vmul.f32 0.5, %v16130_v57 }
0x3362   : > { %v9516_v12 = vmul.f32 %v16199_v44, %v9500_v21  ;;  %13096 = vpow2.f32 %v9644_v6  ;;  %v9327_v30 = vmul.f32 0.5, %v16174_v49 }
0x3363   : > { %v9549_v24 = vmul.f32 %v16189_v13, %v9533_v18  ;;  %v9722_v38 = vmul.f32 %v9706_v26, %v9322_v19 }
0x3364   : > { %v9532_v46 = vadd.f32 -0.28449672, %v9516_v12 }
0x3365   : > { %v9565_v52 = vadd.f32 0.2548296, %v9549_v24  ;;  %v12546_v51 = vpack.c.bf16 %v9723_v3, %v9722_v38 }
0x3366   : > { %v13087_v42 = vpop.eup %13086  ;;  %v9548_v4 = vmul.f32 %v16199_v44, %v9532_v46  ;;  %v9375_v46 = vsel %vm9359_vm13, -1.0, %v16583_v50 }
0x3367   : > { %v9581_v15 = vmul.f32 %v16189_v13, %v9565_v52  ;;  %v9455_v11 = vmul.f32 1.0614054, %v13087_v42  ;;  %v13089_v17 = vpop.eup %13088  ;;  %12548 = vmatpush3.bf16.xpose.msk.msra.mxu0 %vm15405_vm10, %v12546_v51 }
0x3368   : > { %v9564_v34 = vadd.f32 0.2548296, %v9548_v4  ;;  %v13091_v16 = vpop.eup %13090  ;;  %12549 = vmatprep.subr.bf16.mxu0 %v16572_v31  ;;  %v9374_v4 = vsel %vm9358_vm14, -1.0, %v16583_v50 }
0x3369   : > { %v9661_v62 = vmul.f32 %v13089_v17, %v9581_v15  ;;  %v9471_v37 = vadd.f32 -1.4531521, %v9455_v11  ;;  %v9454_v48 = vmul.f32 1.0614054, %v13091_v16  ;;  %v13093_v9 = vpop.eup %13092  ;;  %v9326_v11 = vmul.f32 0.5, %v16178_v36 }
0x336a   : > { %v9580_v29 = vmul.f32 %v16199_v44, %v9564_v34  ;;  %v9372_v44 = vsel %vm9356_vm12, -1.0, %v16583_v50  ;;  %v13095_v12 = vpop.eup %13094 }
0x336b   : > { %v9677_v13 = vsub.f32 1.0, %v9661_v62  ;;  %v9487_v58 = vmul.f32 %v13087_v42, %v9471_v37  ;;  %v9470_v2 = vadd.f32 -1.4531521, %v9454_v48  ;;  %v11337_v62 = vld [vmem:[#allocation33] ss:$0 sm:$0xff] }
0x336c   : > { %v9660_v7 = vmul.f32 %v13093_v9, %v9580_v29  ;;  %v13097_v24 = vpop.eup %13096  ;;  %v9967_v10 = vadd.f32 %v11337_v62, %v16187_v61  ;;  %v10088_v61 = vld [vmem:[#allocation36] sm:$0xff] }
0x336d   : > { %v9693_v41 = vmul.f32 %v9677_v13, %v9373_v20  ;;  %v9503_v25 = vadd.f32 1.4214138, %v9487_v58  ;;  %v9486_v32 = vmul.f32 %v13091_v16, %v9470_v2  ;;  %v13116_v13 = vld [vmem:[#allocation3] sm:$0x3]  ;;  %v10089_v20 = vld [vmem:[#allocation36 + $0x8] sm:$0xff] }
0x336e   : > { %v9676_v55 = vsub.f32 1.0, %v9660_v7  ;;  %v10054_v37 = vadd.f32 %v16210_v23, %v9967_v10  ;;  %v10090_v23 = vld [vmem:[#allocation36 + $0x10] sm:$0xff]  ;;  %v12570_v7 = vpack.c.bf16 %v10089_v20, %v10088_v61  ;;  %v10091_v2 = vld [vmem:[#allocation36 + $0x18] sm:$0xff] }
0x336f   : > { %v9709_v22 = vadd.f32 1.0, %v9693_v41  ;;  %v9519_v59 = vmul.f32 %v13087_v42, %v9503_v25  ;;  %v9502_v27 = vadd.f32 1.4214138, %v9486_v32  ;;  %v12573_v41 = vpack.c.bf16 %v10091_v2, %v10090_v23 }
0x3370   : > { %v9692_v43 = vmul.f32 %v9676_v55, %v9372_v44  ;;  %v10055_v54 = vsub.f32 0.0, %v10054_v37  ;;  %12571 = vmatpush3.bf16.msra.mxu1 %v12570_v7 }
0x3371   : > { %v9535_v39 = vadd.f32 -0.28449672, %v9519_v59  ;;  %v9725_v47 = vmul.f32 %v9709_v22, %v9325_v45  ;;  %v9518_v0 = vmul.f32 %v13091_v16, %v9502_v27  ;;  %12572 = vmatprep.subr.bf16.mxu1 %v16572_v31  ;;  %v13970_v27 = vmov 0  }
0x3372   : > { %v9708_v8 = vadd.f32 1.0, %v9692_v43  ;;  %v10056_v29 = vmul.f32 1.442695, %v10055_v54  ;;  %v10198_v43 = vld [vmem:[#allocation6] sm:$0x1]  ;;  %12936 = vset.pattern.permute.xlu1 %v13970_v27  ;;  %12937 = vset.pattern.permute.xlu0 %v13970_v27 }
0x3373   : > { %v9551_v33 = vmul.f32 %v13087_v42, %v9535_v39  ;;  %v9534_v21 = vadd.f32 -0.28449672, %v9518_v0  ;;  %v9729_v39 = vld [vmem:[#allocation5] sm:$0x1] }
0x3374   : > { %v9724_v56 = vmul.f32 %v9708_v8, %v9324_v5  ;;  %13098 = vpow2.f32 %v10056_v29  ;;  %12574 = vmatpush3.bf16.msra.mxu1 %v12573_v41 }
0x3375   : > { %v9567_v19 = vadd.f32 0.2548296, %v9551_v33  ;;  %v9550_v3 = vmul.f32 %v13091_v16, %v9534_v21  ;;  %12255 = vmatprep.subr.mxu1 %v16582_v60 }
0x3376   : > { %v12550_v18 = vpack.c.bf16 %v9725_v47, %v9724_v56  ;;  %v11341_v47 = vld [vmem:[#allocation37] ss:$0 sm:$0xff] }
0x3377   : > { %v9583_v26 = vmul.f32 %v13087_v42, %v9567_v19  ;;  %v9566_v1 = vadd.f32 0.2548296, %v9550_v3 }
0x3378   : > { %12552 = vmatpush3.bf16.xpose.msk.msra.mxu0 %vm15405_vm10, %v12550_v18 }
0x3379   : > { %v9663_v57 = vmul.f32 %v13095_v12, %v9583_v26  ;;  %12553 = vmatprep.subr.bf16.mxu0 %v16572_v31  ;;  %v9582_v63 = vmul.f32 %v13091_v16, %v9566_v1  ;;  %v9728_v31 = vld [vmem:[#allocation28] sm:$0x1] }
0x337b   : > { %v9679_v38 = vsub.f32 1.0, %v9663_v57  ;;  %v9662_v52 = vmul.f32 %v13097_v24, %v9582_v63 }
0x337d   : > { %v9695_v14 = vmul.f32 %v9679_v38, %v9375_v46  ;;  %v9678_v42 = vsub.f32 1.0, %v9662_v52 }
0x337e   : > { %v13099_v28 = vpop.eup %13098 }
0x337f   : > { %v9711_v51 = vadd.f32 1.0, %v9695_v14  ;;  %v9694_v15 = vmul.f32 %v9678_v42, %v9374_v4  ;;  %v10058_v49 = vadd.f32 1.0, %v13099_v28 }
0x3381   : > { %v9727_v40 = vmul.f32 %v9711_v51, %v9327_v30  ;;  %v9710_v17 = vadd.f32 1.0, %v9694_v15  ;;  %13100 = vrcp.f32 %v10058_v49 }
0x3383   : > { %v9726_v34 = vmul.f32 %v9710_v17, %v9326_v11 }
0x3385   : > { %v12554_v16 = vpack.c.bf16 %v9727_v40, %v9726_v34  ;;  %v10197_v34 = vld [vmem:[#allocation39] sm:$0x1] }
0x3387   : > { %12556 = vmatpush3.bf16.xpose.msk.msra.mxu0 %vm15405_vm10, %v12554_v16  ;;  %vm10086_vm10 = vcmask 254976   ;;  %v9737_v16 = vsub.s32 0, %v15229_v35 }
0x338b   : > { %v13101_v48 = vpop.eup %13100 }
0x338c   : > { %v10071_v55 = vsub.f32 1.0, %v13101_v48 }
0x338e   : > { %12220 = vmatmul.mubr.msk.f32.vlgmr.msra.gmra.mrb[82].mxu0 %vm1468_vm2, %v9728_v31 }
0x33d2   : > { %v10062_v9 = vpop.permute.xlu0 %10061 }
0x33d3   : > { %v10064_v36 = vmul.f32 %v13101_v48, %v10062_v9 }
0x33d5   : > { %10066 = vrot.lane.b32.xlu1 %v10064_v36, %s16560_s13  ;;  %s16584_s13 = sld [smem:[#allocation86_spill]] }
0x33d9   : > { %10077 = vrot.lane.b32.xlu1 %v13116_v13, %s13966_s8 }
0x33db   : > { %s16585_s14 = scalar_lea.vmem %s16584_s13, %s14590_s1 }
0x33dd   : > { %10201 = vperm.xlu1 %12936, %v10198_v43  }
0x33e1   : > { %9732 = vperm.xlu1 %12936, %v9729_v39  }
0x3447   : > { %v10067_v53 = vpop.permute.xlu1 %10066 }
0x3448   : > { %v10069_v58 = vadd.f32 %v10067_v53, %v9967_v10 }
0x344a   : > { %13102 = vtanh.f32 %v10069_v58 }
0x344b   : > { %v10078_v6 = vpop.permute.xlu1 %10077 }
0x344c   : > { %v10080_v22 = vmul.f32 %v13101_v48, %v10078_v6 }
0x3454   : > { %v13103_v25 = vpop.eup %13102 }
0x3455   : > { %10073 = vrot.lane.b32.xlu0 %v13103_v25, %s16557_s5  ;;  %v10306_v25 = vstv %s10305_s20 }
0x3456   : > { %10308 = vst.msk [vmem:[#allocation43] sm:$0x1] %vm10307_vm15, %v10306_v25 }
0x345c   : > { %v10202_v62 = vpop.permute.xlu1 %10201 }
0x345d   : > { %v10207_v10 = vrot.slane %v10202_v62, %v9737_v16 }
0x3460   : > { %v9733_v37 = vpop.permute.xlu1 %9732 }
0x3461   : > { %v9738_v54 = vrot.slane %v9733_v37, %v9737_v16  ;;  %v9856_v29 = vpop.f32.mrb[82].mxu0 }
0x3463   : > { %v9857_v28 = vadd.f32 %v9856_v29, %v9738_v54 }
0x3465   : > { %v9860_v49 = vsub.f32 0.0, %v9857_v28 }
0x3467   : > { %v9861_v48 = vmul.f32 1.442695, %v9860_v49 }
0x34c7   : > { %v10074_v32 = vpop.permute.xlu0 %10073 }
0x34c8   : > { %v10076_v44 = vmul.f32 %v10074_v32, %v10071_v55 }
0x34ca   : > { %v10081_v59 = vadd.f32 %v10080_v22, %v10076_v44 }
0x34cc   : > { %10083 = vrot.lane.b32.xlu0 %v10081_v59, %s16557_s5 }
0x353e   : > { %v10084_v45 = vpop.permute.xlu0 %10083 }
0x353f   : > { %10087 = vst.msk [vmem:[#allocation3] sm:$0x3] %vm10086_vm10, %v10084_v45  ;;  %12253 = vmatmul.mubr.msk.f32.vlgmr.msra.gmra.mrb[94].mxu1 %vm1468_vm2, %v10084_v45 }
0x3540   : > { %12257 = vmatprep.mubr.msk.f32.mxu1 %vm13953_vm3, %v16582_v60 }
0x3612   : > { %v10167_v5 = vpop.f32.mrb[94].mxu1 }
0x3613   : > { %v10168_v8 = vadd.f32 %v11341_v47, %v10167_v5  ;;  %v12254_v0 = vpop.f32.mrb[95].mxu1 }
0x3615   : > { %v10172_v33 = vmul.f32 0.70710677, %v10168_v8  ;;  %v10171_v40 = vmul.f32 0.5, %v10168_v8 }
0x3617   : > { %v10175_v56 = vand.u32 2147483647, %v10172_v33  ;;  %vm10173_vm3 = vcmp.lt.f32.partialorder %v10172_v33, 0.0 }
0x3618   : > { %v10174_v30 = vsel %vm10173_vm3, -1.0, %v16583_v50  ;;  %v12221_v50 = vpop.f32.mrb[83].mxu0 }
0x3619   : > { %v10176_v21 = vmul.f32 0.3275911, %v10175_v56  ;;  %v10188_v60 = vsub.f32 0.0, %v10175_v56 }
0x361b   : > { %v10177_v19 = vadd.f32 1.0, %v10176_v21  ;;  %v10189_v3 = vmul.f32 %v10188_v60, %v10175_v56 }
0x361d   : > { %13104 = vrcp.f32 %v10177_v19  ;;  %v10190_v1 = vmul.f32 1.442695, %v10189_v3 }
0x361f   : > { %13106 = vpow2.f32 %v10190_v1 }
0x3620   : > { %13108 = vpow2.f32 %v9861_v48 }
0x3627   : > { %v13105_v18 = vpop.eup %13104 }
0x3628   : > { %v10179_v26 = vmul.f32 1.0614054, %v13105_v18 }
0x3629   : > { %v13107_v42 = vpop.eup %13106 }
0x362a   : > { %v10180_v12 = vadd.f32 -1.4531521, %v10179_v26  ;;  %v13109_v9 = vpop.eup %13108 }
0x362b   : > { %v9863_v36 = vadd.f32 1.0, %v13109_v9 }
0x362c   : > { %v10181_v57 = vmul.f32 %v13105_v18, %v10180_v12 }
0x362d   : > { %13110 = vrcp.f32 %v9863_v36 }
0x362e   : > { %v10182_v63 = vadd.f32 1.4214138, %v10181_v57 }
0x3630   : > { %v10183_v24 = vmul.f32 %v13105_v18, %v10182_v63 }
0x3632   : > { %v10184_v38 = vadd.f32 -0.28449672, %v10183_v24 }
0x3634   : > { %v10185_v46 = vmul.f32 %v13105_v18, %v10184_v38 }
0x3636   : > { %v10186_v52 = vadd.f32 0.2548296, %v10185_v46 }
0x3637   : > { %v13111_v35 = vpop.eup %13110 }
0x3638   : > { %v10187_v14 = vmul.f32 %v13105_v18, %v10186_v52  ;;  %9865 = vst [vmem:[%s16585_s14] sm:$0x1] %v13111_v35 }
0x363a   : > { %v10192_v51 = vmul.f32 %v13107_v42, %v10187_v14 }
0x363c   : > { %v10193_v4 = vsub.f32 1.0, %v10192_v51 }
0x363e   : > { %v10194_v15 = vmul.f32 %v10193_v4, %v10174_v30 }
0x3640   : > { %v10195_v11 = vadd.f32 1.0, %v10194_v15 }
0x3642   : > { %v10196_v17 = vmul.f32 %v10195_v11, %v10171_v40 }
0x3644   : > { %12256 = vmatpush3.xpose.msk.msra.mxu1 %vm1468_vm2, %v10196_v17 }
0x3647   : > { %12258 = vmatmul.mubr.msk.f32.vlgmr.msra.gmra.mrb[96].mxu1 %vm1468_vm2, %v10197_v34  ;;  %vm10289_vm2 = vcmask 8192  }
0x371a   : > { %v10280_v13 = vpop.f32.mrb[96].mxu1 }
0x371b   : > { %v10281_v53 = vadd.f32 %v10280_v13, %v10207_v10  ;;  %v12259_v58 = vpop.f32.mrb[97].mxu1 }
0x371d   : > { %v10284_v61 = vsub.f32 0.0, %v10281_v53 }
0x371f   : > { %v10285_v20 = vmul.f32 1.442695, %v10284_v61 }
0x3721   : > { %13112 = vpow2.f32 %v10285_v20 }
0x372b   : > { %v13113_v23 = vpop.eup %13112 }
0x372c   : > { %v10287_v7 = vadd.f32 1.0, %v13113_v23 }
0x372e   : > { %13114 = vrcp.f32 %v10287_v7 }
0x3738   : > { %v13115_v2 = vpop.eup %13114 }
0x3739   : > { %10290 = vst.msk [vmem:[%s14596_s4] sm:$0x1] %vm10289_vm2, %v13115_v2 }
0x3740   : > { %v10291_v41 = vld [vmem:[%s14596_s4] sm:$0x1] }
0x3741   : > { %10294 = vrot.lane.b32.xlu0 %v10291_v41, %s13971_s12  ;;  %12599 = vpush %v10291_v41 }
0x3772   : > { %s12600_s17 = spop %12599 }
0x37b3   : > { %v10295_v6 = vpop.permute.xlu0 %10294 }
0x37b4   : > { %12601 = vpush %v10295_v6 }
0x37e5   : > { %s12602_s5 = spop %12601 }
0x37e6   : > { %s10298_s1 = sadd.f32 %s12602_s5, %s12600_s17 }
0x37e8   : > { %s10299_s3 = smul.f32 0.5, %s10298_s1 }
0x37ea   : > { %p10300_p8 = scmp.ge.f32.partialorder %s10299_s3, 0.5 }
0x37ec   : > { %p10301_p2 = por %p16586_p12, %p10300_p8 }
0x37ee   : > { %s10302_s26 = scalar_select %p10301_p2, 1, 0 }
0x37f0   : > { %10304 = sst [smem:[#allocation4]] %s10302_s26 }
0x37f1 PF: > { %p11345_p6 = scmp.ne.s32.totalorder %s14195_s18, 2 }
0x37f2   : > { %s16587_s4 = sld [smem:[#allocation79_spill]] (!%p11345_p6)  ;;  %s16588_s24 = sld [smem:[#allocation81_spill]] (!%p11345_p6)  ;;  %vm10326_vm0 = vcmask (!%p11345_p6), 261120   ;;  %v10313_v45 = vld [vmem:[#allocation2] sm:$0xff] (!%p11345_p6)  ;;  %v16273_v43 = vld [vmem:[#allocation2 + $0x8] sm:$0xff] (!%p11345_p6)  ;;  %v13972_v23 = vmov (!%p11345_p6), 1.0  }
0x37f3   : > { %10312 = sbr.rel (%p11345_p6) target bundleno = 15136 (0x3b20), region = 248  ;;  %12268 = vmatprep.mubr.msk.f32.mxu0 (!%p11345_p6), %vm10326_vm0, %v10313_v45  ;;  %s16590_s0 = sld [smem:[#allocation80_spill]] (!%p11345_p6)  ;;  %vm10552_vm5 = vcmask (!%p11345_p6), 15360  }
0x37f4   : > { %s16591_s13 = sld [smem:[#allocation83_spill]] (!%p11345_p6)  ;;  %s16592_s14 = sld [smem:[#allocation82_spill]] (!%p11345_p6) }
0x37f5   : > { %s16593_s12 = sld [smem:[#allocation84_spill]] (!%p11345_p6) }
0x37f8   : > { %v10315_v55 = vld [vmem:[%s16587_s4] sm:$0xff] (!%p11345_p6)  ;;  %s16589_s8 = smov (!%p11345_p6), %s16588_s24  ;;  %v10316_v32 = vld [vmem:[%s16587_s4 + $0x8] sm:$0xff] (!%p11345_p6)  ;;  %v10317_v22 = vld [vmem:[%s16587_s4 + $0x10] sm:$0xff] (!%p11345_p6) }
0x37f9   : > { %v12575_v44 = vpack.c.bf16 (!%p11345_p6), %v10316_v32, %v10315_v55  ;;  %v10318_v59 = vld [vmem:[%s16587_s4 + $0x18] sm:$0xff] (!%p11345_p6)  ;;  %v10460_v27 = vld [vmem:[%s16588_s24] sm:$0xff] (!%p11345_p6)  ;;  %v10461_v39 = vld [vmem:[%s16589_s8 + $0x8] sm:$0xff] (!%p11345_p6) }
0x37fa   : > { %v12579_v31 = vpack.c.bf16 %v10318_v59, %v10317_v22  ;;  %v12583_v47 = vpack.c.bf16 %v10461_v39, %v10460_v27  ;;  %v10462_v5 = vld [vmem:[%s16589_s8 + $0x10] sm:$0xff]  ;;  %v10463_v8 = vld [vmem:[%s16589_s8 + $0x18] sm:$0xff]  ;;  %v11346_v33 = vld [vmem:[%s16590_s0] ss:$0 sm:$0xff] }
0x37fb   : > { %12576 = vmatprep.subr.bf16.mxu0 %v12575_v44  ;;  %v12587_v0 = vpack.c.bf16 %v10463_v8, %v10462_v5  ;;  %v10578_v27 = vld [vmem:[%s16591_s13 + $0x8] sm:$0xff]  ;;  %v10579_v39 = vld [vmem:[%s16591_s13 + $0x10] sm:$0xff]  ;;  %v10580_v5 = vld [vmem:[%s16591_s13 + $0x18] sm:$0xff] }
0x37fc   : > { %12578 = vmatpush3.bf16.msra.mxu0 %v12575_v44  ;;  %12584 = vmatprep.subr.bf16.mxu1 %v12583_v47  ;;  %v12595_v8 = vpack.c.bf16 %v10580_v5, %v10579_v39 }
0x37fd   : > { %12580 = vmatprep.subr.bf16.mxu0 %v12579_v31  ;;  %12586 = vmatpush3.bf16.msra.mxu1 %v12583_v47 }
0x37fe   : > { %12588 = vmatprep.subr.bf16.mxu1 %v12587_v0 }
0x3800   : > { %12582 = vmatpush3.bf16.msra.mxu0 %v12579_v31  ;;  %v10577_v31 = vld [vmem:[%s16591_s13] sm:$0xff] }
0x3801   : > { %12590 = vmatpush3.bf16.msra.mxu1 %v12587_v0  ;;  %v12591_v47 = vpack.c.bf16 %v10578_v27, %v10577_v31  ;;  %v11349_v0 = vld [vmem:[%s16592_s14] ss:$0 sm:$0xff] }
0x3803   : > { %12269 = vmatmul.mubr.msk.f32.vlgmr.msra.gmra.mrb[0].mxu0 %vm10326_vm0, %v16273_v43  ;;  %12592 = vmatprep.subr.bf16.mxu0 %v12591_v47 }
0x3804   : > { %12290 = vmatprep.mubr.msk.f32.mxu0 %vm10326_vm0, %v10313_v45  ;;  %12594 = vmatpush3.bf16.msra.mxu0 %v12591_v47 }
0x3805   : > { %12596 = vmatprep.subr.bf16.mxu0 %v12595_v8 }
0x3808   : > { %12598 = vmatpush3.bf16.msra.mxu0 %v12595_v8 }
0x380b   : > { %12291 = vmatmul.mubr.msk.f32.vlgmr.msra.gmra.mrb[2].mxu0 %vm10326_vm0, %v16273_v43 }
0x38d6   : > { %v12270_v56 = vpop.f32.mrb[0].mxu0 }
0x38d7   : > { %v10405_v21 = vadd.f32 %v12270_v56, %v11346_v33  ;;  %v10399_v19 = vpop.f32.mrb[1].mxu0 }
0x38d8   : > { %v10400_v60 = vadd.f32 %v11346_v33, %v10399_v19 }
0x38d9   : > { %v10411_v18 = vmul.f32 0.70710677, %v10405_v21  ;;  %v10409_v44 = vmul.f32 0.5, %v10405_v21 }
0x38da   : > { %v10410_v3 = vmul.f32 0.70710677, %v10400_v60  ;;  %v10408_v32 = vmul.f32 0.5, %v10400_v60 }
0x38db   : > { %v10417_v26 = vand.u32 2147483647, %v10411_v18  ;;  %vm10413_vm1 = vcmp.lt.f32.partialorder %v10411_v18, 0.0 }
0x38dc   : > { %v10416_v12 = vand.u32 2147483647, %v10410_v3  ;;  %vm10412_vm4 = vcmp.lt.f32.partialorder %v10410_v3, 0.0  ;;  %v10415_v7 = vsel %vm10413_vm1, -1.0, %v13972_v23 }
0x38dd   : > { %v10419_v1 = vmul.f32 0.3275911, %v10417_v26  ;;  %v10443_v38 = vsub.f32 0.0, %v10417_v26  ;;  %v10414_v25 = vsel %vm10412_vm4, -1.0, %v13972_v23 }
0x38de   : > { %v10418_v57 = vmul.f32 0.3275911, %v10416_v12  ;;  %v10442_v46 = vsub.f32 0.0, %v10416_v12 }
0x38df   : > { %v10421_v63 = vadd.f32 1.0, %v10419_v1  ;;  %v10445_v14 = vmul.f32 %v10443_v38, %v10417_v26 }
0x38e0   : > { %v10420_v24 = vadd.f32 1.0, %v10418_v57  ;;  %v10444_v4 = vmul.f32 %v10442_v46, %v10416_v12 }
0x38e1   : > { %13117 = vrcp.f32 %v10421_v63  ;;  %v10448_v40 = vmul.f32 1.442695, %v10445_v14  ;;  %v11352_v14 = vld [vmem:[%s16593_s12] ss:$0 sm:$0xff] }
0x38e2   : > { %13119 = vrcp.f32 %v10420_v24  ;;  %v10446_v34 = vmul.f32 1.442695, %v10444_v4 }
0x38e3   : > { %13121 = vpow2.f32 %v10448_v40 }
0x38e4   : > { %13123 = vpow2.f32 %v10446_v34 }
0x38eb   : > { %v13118_v52 = vpop.eup %13117 }
0x38ec   : > { %v13120_v42 = vpop.eup %13119  ;;  %v10425_v51 = vmul.f32 1.0614054, %v13118_v52 }
0x38ed   : > { %v10424_v30 = vmul.f32 1.0614054, %v13120_v42  ;;  %v13122_v35 = vpop.eup %13121 }
0x38ee   : > { %v10427_v15 = vadd.f32 -1.4531521, %v10425_v51  ;;  %v13124_v53 = vpop.eup %13123 }
0x38ef   : > { %v10426_v11 = vadd.f32 -1.4531521, %v10424_v30 }
0x38f0   : > { %v10429_v17 = vmul.f32 %v13118_v52, %v10427_v15 }
0x38f1   : > { %v10428_v16 = vmul.f32 %v13120_v42, %v10426_v11 }
0x38f2   : > { %v10431_v62 = vadd.f32 1.4214138, %v10429_v17 }
0x38f3   : > { %v10430_v10 = vadd.f32 1.4214138, %v10428_v16 }
0x38f4   : > { %v10433_v37 = vmul.f32 %v13118_v52, %v10431_v62 }
0x38f5   : > { %v10432_v54 = vmul.f32 %v13120_v42, %v10430_v10 }
0x38f6   : > { %v10435_v29 = vadd.f32 -0.28449672, %v10433_v37 }
0x38f7   : > { %v10434_v28 = vadd.f32 -0.28449672, %v10432_v54 }
0x38f8   : > { %v10437_v50 = vmul.f32 %v13118_v52, %v10435_v29 }
0x38f9   : > { %v10436_v49 = vmul.f32 %v13120_v42, %v10434_v28 }
0x38fa   : > { %v10439_v48 = vadd.f32 0.2548296, %v10437_v50 }
0x38fb   : > { %v10438_v9 = vadd.f32 0.2548296, %v10436_v49 }
0x38fc   : > { %v10441_v36 = vmul.f32 %v13118_v52, %v10439_v48  ;;  %v12292_v52 = vpop.f32.mrb[2].mxu0 }
0x38fd   : > { %v10440_v13 = vmul.f32 %v13120_v42, %v10438_v9  ;;  %v10654_v42 = vpop.f32.mrb[3].mxu0  ;;  %v10660_v51 = vadd.f32 %v12292_v52, %v11352_v14 }
0x38fe   : > { %v10451_v58 = vmul.f32 %v13122_v35, %v10441_v36  ;;  %v10655_v4 = vadd.f32 %v11352_v14, %v10654_v42 }
0x38ff   : > { %v10450_v61 = vmul.f32 %v13124_v53, %v10440_v13  ;;  %10664 = vst.msk [vmem:[#allocation41 + $0x8] sm:$0xff] %vm10326_vm0, %v10660_v51 }
0x3900   : > { %v10453_v20 = vsub.f32 1.0, %v10451_v58  ;;  %10663 = vst.msk [vmem:[#allocation41] sm:$0xff] %vm10326_vm0, %v10655_v4 }
0x3901   : > { %v10452_v2 = vsub.f32 1.0, %v10450_v61 }
0x3902   : > { %v10455_v41 = vmul.f32 %v10453_v20, %v10415_v7 }
0x3903   : > { %v10454_v6 = vmul.f32 %v10452_v2, %v10414_v25 }
0x3904   : > { %v10457_v55 = vadd.f32 1.0, %v10455_v41 }
0x3905   : > { %v10456_v22 = vadd.f32 1.0, %v10454_v6 }
0x3906   : > { %v10459_v45 = vmul.f32 %v10457_v55, %v10409_v44 }
0x3907   : > { %v10458_v59 = vmul.f32 %v10456_v22, %v10408_v32 }
0x3909   : > { %12279 = vmatprep.mubr.msk.f32.mxu1 %vm10326_vm0, %v10458_v59 }
0x390a   : > { %12280 = vmatmul.mubr.msk.f32.vlgmr.msra.gmra.mrb[0].mxu1 %vm10326_vm0, %v10459_v45 }
0x39dd   : > { %v12281_v33 = vpop.f32.mrb[0].mxu1 }
0x39de   : > { %v10543_v56 = vpop.f32.mrb[1].mxu1  ;;  %v10549_v19 = vadd.f32 %v12281_v33, %v11349_v0 }
0x39df   : > { %v10544_v21 = vadd.f32 %v11349_v0, %v10543_v56 }
0x39e0   : > { %v10556_v18 = vsel %vm10552_vm5, %v10549_v19, -inf }
0x39e1   : > { %v10553_v60 = vsel %vm10552_vm5, %v10544_v21, -inf }
0x39e2   : > { %10554 = vmax.xlane.f32.xlu0 %v10553_v60 }
0x39e6   : > { %10557 = vmax.xlane.f32.xlu0 %v10556_v18 }
0x3a6f   : > { %v10555_v3 = vpop.xlane.xlu0 %10554 }
0x3a70   : > { %v10559_v26 = vsub.f32 %v10544_v21, %v10555_v3 }
0x3a72   : > { %v10561_v12 = vmul.f32 1.442695, %v10559_v26 }
0x3a73   : > { %v10558_v1 = vpop.xlane.xlu0 %10557 }
0x3a74   : > { %13125 = vpow2.f32 %v10561_v12  ;;  %v10560_v57 = vsub.f32 %v10549_v19, %v10558_v1 }
0x3a76   : > { %v10563_v43 = vmul.f32 1.442695, %v10560_v57 }
0x3a78   : > { %13127 = vpow2.f32 %v10563_v43 }
0x3a7e   : > { %v13126_v63 = vpop.eup %13125 }
0x3a7f   : > { %v10565_v24 = vsel %vm10552_vm5, %v13126_v63, 0.0 }
0x3a80   : > { %10566 = vadd.xlane.f32.xlu1 %v10565_v24 }
0x3a82   : > { %v13128_v38 = vpop.eup %13127 }
0x3a83   : > { %v10568_v46 = vsel %vm10552_vm5, %v13128_v38, 0.0 }
0x3a84   : > { %10569 = vadd.xlane.f32.xlu1 %v10568_v46 }
0x3b0d   : > { %v10567_v30 = vpop.xlane.xlu1 %10566 }
0x3b0e   : > { %13129 = vrcp.f32 %v10567_v30 }
0x3b11   : > { %v10570_v15 = vpop.xlane.xlu1 %10569 }
0x3b12   : > { %13131 = vrcp.f32 %v10570_v15 }
0x3b18   : > { %v13130_v40 = vpop.eup %13129 }
0x3b19   : > { %v10573_v11 = vmul.f32 %v13130_v40, %v13126_v63 }
0x3b1b   : > { %10575 = vst.msk [vmem:[%s14159_s23] sm:$0xff] %vm10552_vm5, %v10573_v11 }
0x3b1c   : > { %v13132_v17 = vpop.eup %13131 }
0x3b1d   : > { %v10574_v34 = vmul.f32 %v13132_v17, %v13128_v38 }
0x3b1f   : > { %10576 = vst.msk [vmem:[%s14159_s23 + $0x8] sm:$0xff] %vm10552_vm5, %v10574_v34 }
0x3b20 PF: > { %s13973_s20 = smov [#allocation41]   ;;  %s16594_s17 = sld [smem:[#allocation85_spill]] }
0x3b21   : > { %s10707_s5 = sshll.u32 %s13973_s20, 4  ;;  %s11364_s1 = sshll.u32 %s14195_s18, 8  ;;  %s10708_s5 = int_to_ptr.vmem [resolvable:$true] %s10707_s5 }
0x3b22   : > { %s13721_s26 = scalar_lea.vmem %s10708_s5, 256  ;;  %p16595_p1 = scmp.eq.s32.totalorder %s14195_s18, 2 }
0x3b23   : > { %p13722_p5 = scmp.ne.s32.totalorder %s10708_s5, %s13721_s26  ;;  %p13728_p13 = scmp.lt.s32.totalorder %s10708_s5, %s10708_s5 }
0x3b24   : > { %p13729_p11 = scmp.lt.s32.totalorder %s13721_s26, %s13721_s26 }
0x3b25   : > { %p13723_p9 = pnand %p13722_p5, %p16595_p1 }
0x3b26   : > { %s16305_s3 = scalar_lea.hbm %s16594_s17, %s11364_s1  ;;  %p13730_p0 = por %p13729_p11, %p13728_p13 }
0x3b27   : > { %p13724_p10 = pneg %p13723_p9 }
0x3b29   : > { %p13731_p3 = pnand %p13730_p0, %p13724_p10 }
0x3b2b   : > { %13734 = shalt.err (!%p13731_p3)
}
0x3b2c   : > { %s13735_s24 = scalar_lea.hbm %s14164_s28, 256  ;;  %p16596_p7 = pmov %p16595_p1 }
0x3b2d   : > { %p13736_p4 = scmp.ne.s32.totalorder %s14164_s28, %s13735_s24  ;;  %p13741_p2 = scmp.lt.u32.totalorder %s13735_s24, %s14164_s28 }
0x3b2f   : > { %p13737_p8 = pnand %p13736_p4, %p16596_p7 }
0x3b31   : > { %p13738_p12 = pneg %p13737_p8 }
0x3b33   : > { %p13743_p6 = pnand %p13741_p2, %p13738_p12 }
0x3b35   : > { %13746 = shalt.err (!%p13743_p6)
}
0x3b36   : > { %s13974_s0 = smov 128   ;;  %s13975_s14 = smov 8  }
0x3b37   : > { %p16597_p5 = pmov %p16595_p1  ;;  %s10685_s12 = sshll.u32 %s14598_s6, 4  ;;  %s16321_s12 = int_to_ptr.vmem [resolvable:$true] %s10685_s12 }
0x3b38   : > { %s13976_s20 = smov [#allocation43]   ;;  %s16598_s26 = sand.u32 1, %s13875_s15  }
0x3b39   : > { %12689 = dma.vmem_to_hbm [thread:$0]  (%p16597_p5), %s10708_s5, 256, %s14164_s28, [#allocation42], %s13974_s0, %s13974_s0, %s13975_s14  }
0x3b3a   : > { %s16323_s1 = sshll.u32 %s13976_s20, 4  ;;  %s16327_s24 = scalar_lea.sflag [#allocation9], %s16598_s26  ;;  %s10722_s1 = int_to_ptr.vmem [resolvable:$true] %s16323_s1 }
0x3b3b   : > { %s13747_s4 = scalar_lea.vmem %s16321_s12, 256  ;;  %p16599_p9 = scmp.ne.s32.totalorder %s16504_s2, 0 }
0x3b3c   : > { %p13748_p1 = scmp.ne.s32.totalorder %s16321_s12, %s13747_s4  ;;  %s13977_s7 = smov [#allocation40]  }
0x3b3d   : > { %s13751_s8 = sshll.u32 %s13977_s7, 4  ;;  %s13752_s8 = int_to_ptr.vmem [resolvable:$false] %s13751_s8 }
0x3b3e   : > { %p13749_p10 = pnand %p13748_p1, %p16599_p9  ;;  %s13753_s6 = scalar_lea.vmem %s13752_s8, 512 }
0x3b3f   : > { %p13754_p11 = scmp.lt.s32.totalorder %s16321_s12, %s13752_s8  ;;  %p13755_p0 = scmp.lt.s32.totalorder %s13753_s6, %s13747_s4 }
0x3b40   : > { %p13750_p13 = pneg %p13749_p10 }
0x3b41   : > { %p13756_p3 = por %p13755_p0, %p13754_p11 }
0x3b43   : > { %p13757_p4 = pnand %p13756_p3, %p13750_p13 }
0x3b45   : > { %13760 = shalt.err (!%p13757_p4)
}
0x3b46   : > { %s13761_s5 = scalar_lea.hbm %s16305_s3, 256  ;;  %s13765_s7 = scalar_lea.hbm %s16594_s17, 768 }
0x3b47   : > { %p13762_p7 = scmp.ne.s32.totalorder %s16305_s3, %s13761_s5  ;;  %p13766_p2 = scmp.lt.u32.totalorder %s16305_s3, %s16594_s17 }
0x3b48   : > { %p13767_p6 = scmp.lt.u32.totalorder %s13765_s7, %s13761_s5  ;;  %p13769_p1 = scmp.lt.u32.totalorder %s13761_s5, %s16305_s3 }
0x3b49   : > { %p13763_p8 = pnand %p13762_p7, %p16599_p9 }
0x3b4a   : > { %p13768_p5 = por %p13767_p6, %p13766_p2 }
0x3b4b   : > { %p13764_p12 = pneg %p13763_p8 }
0x3b4c   : > { %p13770_p10 = por %p13769_p1, %p13768_p5 }
0x3b4e   : > { %p13771_p13 = pnand %p13770_p10, %p13764_p12 }
0x3b50   : > { %13774 = shalt.err (!%p13771_p13)
}
0x3b51   : > { %12687 = dma.vmem_to_hbm [thread:$0]  (%p16599_p9), %s16321_s12, 256, %s16305_s3, %s16327_s24, %s13974_s0, %s13974_s0, %s13975_s14  }
0x3b52   : > { %s13775_s4 = scalar_lea.vmem %s10722_s1, 16  ;;  %p16600_p0 = scmp.eq.s32.totalorder %s14195_s18, 2 }
0x3b53   : > { %p13776_p11 = scmp.ne.s32.totalorder %s10722_s1, %s13775_s4  ;;  %s13781_s8 = scalar_lea.vmem %s10722_s1, 32 }
0x3b54   : > { %p13782_p7 = scmp.lt.s32.totalorder %s10722_s1, %s10722_s1  ;;  %p13783_p8 = scmp.lt.s32.totalorder %s13781_s8, %s13775_s4 }
0x3b55   : > { %p13777_p3 = pnand %p13776_p11, %p16600_p0 }
0x3b56   : > { %p13784_p12 = por %p13783_p8, %p13782_p7 }
0x3b57   : > { %p13778_p4 = pneg %p13777_p3 }
0x3b59   : > { %p13785_p2 = pnand %p13784_p12, %p13778_p4 }
0x3b5b   : > { %13788 = shalt.err (!%p13785_p2)
}
0x3b5c   : > { %s13789_s2 = scalar_lea.hbm %s14169_s19, 16  ;;  %p16601_p5 = pmov %p16600_p0 }
0x3b5d   : > { %p13790_p6 = scmp.ne.s32.totalorder %s14169_s19, %s13789_s2  ;;  %p13795_p10 = scmp.lt.u32.totalorder %s13789_s2, %s14169_s19 }
0x3b5f   : > { %p13791_p9 = pnand %p13790_p6, %p16601_p5 }
0x3b61   : > { %p13792_p1 = pneg %p13791_p9 }
0x3b63   : > { %p13797_p13 = pnand %p13795_p10, %p13792_p1 }
0x3b65   : > { %13800 = shalt.err (!%p13797_p13)
}
0x3b66   : > { %p16602_p11 = pmov %p16600_p0 }
0x3b68   : > { %12691 = dma.vmem_to_hbm [thread:$0]  (%p16602_p11), %s10722_s1, 16, %s14169_s19, [#allocation42]  }
0x3b69   : > { %13862 = dma.done.wait (%p16600_p0), [#allocation42], 272   ;;  %p16603_p3 = pmov %p16600_p0 }
0x3b6b   : > { %13864 = vsyncadd (%p16603_p3), [#allocation42], 4294967024 }
0x3b6c PF: > { %s16604_s3 = sld [smem:[#allocation88_spill]]  ;;  %s16605_s0 = sld [smem:[#allocation92_spill]] }
0x3b6d   : > { %p12811_p4 = scmp.ge.s32.totalorder %s13883_s16, 2 }
0x3b72   : > { %s10744_s14 = sand.u32 1, %s16604_s3   ;;  %p16606_p7 = scmp.ne.s32.totalorder %s16605_s0, 0 }
0x3b73   : > { %s10745_s12 = scalar_lea.sflag [#allocation9], %s10744_s14 }
0x3b74   : > { %p12762_p8 = pnand %p12811_p4, %p16606_p7 }
0x3b76   : > { %13866 = dma.done.wait (!%p12762_p8), %s10745_s12, 256  }
0x3b77   : > { %13868 = vsyncadd (!%p12762_p8), %s10745_s12, 4294967040  ;;  %s16607_s16 = sld [smem:[#allocation90_spill]]  ;;  %s16608_s20 = sld [smem:[#allocation89_spill]] }
0x3b78   : > { %s16609_s0 = sld [smem:[#allocation91_spill]]  ;;  %s16610_s24 = smov %s13875_s15 }
0x3b7d   : > { %p104_p12 = scmp.ge.s32.totalorder %s16607_s16, 5   ;;  %s16611_s15 = smov %s16608_s20 }
0x3b7f   :  { %106 = sbr.rel (!%p104_p12) target bundleno = 93 (0x5d), region = 381 }
0x3b86   :  { %10762 = vsyncpa [#allocation8], 1 }
0x3b87   :  { %10764 = vsyncpa [#allocation8 + $0x1], 1 }
0x3b88   :  { %10765 = vsyncpa [#allocation11], 1 }
0x3b89   :  { %10766 = vsyncpa [#allocation14], 1 }
0x3b8a   :  { %10767 = vsyncpa [#allocation17], 1 }
0x3b8b   :  { %10768 = vsyncpa [#allocation20], 1 }
0x3b8c   :  { %10769 = vsyncpa [#allocation23], 1 }
0x3b8d   :  { %10770 = vsyncpa [#allocation26], 1 }
0x3b8e   :  { %10771 = vsyncpa [#allocation29], 1 }
0x3b8f   :  { %10772 = vsyncpa [#allocation32], 1 }
0x3b90   :  { %10773 = vsyncpa [#allocation35], 1 }
0x3b91   :  { %10774 = vsyncpa [#allocation38], 1 }
0x3b92   :  { %10775 = vsyncpa [#allocation9], 1 }
0x3b93   :  { %10777 = vsyncpa [#allocation9 + $0x1], 1 }
0x3b94   :  { %10778 = vsyncpa [#allocation42], 1 }

</bundles_post_ra>
